<compile_context>
chip_gen: v5e
topology: v5e:2x2
jax: 0.10.0
libtpu: 0.0.40
codegen_flags: <defaults>
</compile_context>

<pallas_src>
import jax
import jax.numpy as jnp
import numpy as np
from jax.experimental import pallas as pl
from jax.experimental.pallas import tpu as pltpu

# ----------------------------- config ---------------------------------------
MODEL_DIM = 32           # model_dim
N_FRAMES = 16            # n_frames
N_NOISE_FRAMES = 64      # n_noise_frames
N_ROOMS = 8              # n_rooms
N_SAMPLES = 1024         # n_samples
NYQUIST = 22050.0 / 2.0  # zounds.SR22050 nyquist
LOWEST_FREQ = 40.0 / NYQUIST
LRELU = 0.2
MASK_AFTER = 1

NOISE_STEP = N_SAMPLES // N_NOISE_FRAMES          # 16
NOISE_WINDOW = NOISE_STEP * 2                     # 32
NOISE_COEFFS = NOISE_WINDOW // 2 + 1              # 17
N_UP_BLOCKS = 2                                   # log2(N_NOISE_FRAMES / N_FRAMES)

REVERB_TB = 128                                   # reverb output tile (lane-dense)
REVERB_NB = N_SAMPLES // REVERB_TB                # 8
REVERB_K = N_SAMPLES + REVERB_TB                  # 1152 (lane-aligned contraction)


# ----------------------- static structural matrices --------------------------
def _interp_matrix(fin, fout):
    # F.interpolate(mode='linear', align_corners=False) as a (fin, fout) matrix.
    pos = (np.arange(fout, dtype=np.float64) + 0.5) * (fin / fout) - 0.5
    pos = np.clip(pos, 0.0, fin - 1.0)
    lo = np.floor(pos).astype(np.int64)
    hi = np.minimum(lo + 1, fin - 1)
    w = pos - lo
    m = np.zeros((fin, fout), dtype=np.float64)
    np.add.at(m, (lo, np.arange(fout)), 1.0 - w)
    np.add.at(m, (hi, np.arange(fout)), w)
    return m


_M = _interp_matrix(N_FRAMES, N_SAMPLES)
INTERP = _M.astype(np.float32)                              # amp upsampling
CUMINTERP = (np.cumsum(_M, axis=1) * np.pi).astype(np.float32)  # freq -> phase


def _upsample_conv_taps(lin):
    # nearest-x2 upsample combined with the per-tap time shift of a k=3, pad=1
    # conv: taps[k] = U2x @ S_(1-k)  so that  h @ taps[k] == shift_k(upsample2(h)).
    lout = 2 * lin
    u = np.zeros((lin, lout), np.float32)
    u[np.arange(lin), 2 * np.arange(lin)] = 1.0
    u[np.arange(lin), 2 * np.arange(lin) + 1] = 1.0
    taps = []
    for k in range(3):
        delta = 1 - k
        s = np.zeros((lout, lout), np.float32)
        idx = np.arange(lout)
        j = idx + delta
        valid = (j >= 0) & (j < lout)
        s[idx[valid], j[valid]] = 1.0
        taps.append(u @ s)
    return np.stack(taps, axis=0)


U1_TAPS = _upsample_conv_taps(N_FRAMES)          # (3, 16, 32)
U2_TAPS = _upsample_conv_taps(2 * N_FRAMES)      # (3, 32, 64)


# --------------------------- in-kernel helpers --------------------------------
def _leaky(v):
    return jnp.where(v > 0, v, LRELU * v)


def _sigmoid(v):
    return 1.0 / (1.0 + jnp.exp(-v))


# --------------------------- Pallas kernels ----------------------------------
def _heads_kernel(x_ref, rh_w_ref, rh_b_ref, rf_w_ref, rf_b_ref,
                  mh_w_ref, mh_b_ref, mf_w_ref, mf_b_ref, verb_ref,
                  ir_ref, mix_ref):
    # Fused: mean over frames, to_rooms LinearOutputStack, softmax, room-IR mix,
    # to_mix LinearOutputStack, sigmoid.  One launch instead of ~10.
    agg = jnp.mean(x_ref[...], axis=-1)                       # (B, D)

    h = agg
    for l in range(3):
        h = jnp.dot(h, rh_w_ref[l], preferred_element_type=jnp.float32) + rh_b_ref[l]
        h = _leaky(h)
    rooms = jnp.dot(h, rf_w_ref[...], preferred_element_type=jnp.float32) + rf_b_ref[...]
    rmax = jnp.max(rooms, axis=-1, keepdims=True)
    e = jnp.exp(rooms - rmax)
    w_room = e / jnp.sum(e, axis=-1, keepdims=True)           # softmax over rooms
    ir_ref[...] = jnp.dot(w_room, verb_ref[...],
                          preferred_element_type=jnp.float32)  # (B, n)

    h = agg
    for l in range(3):
        h = jnp.dot(h, mh_w_ref[l], preferred_element_type=jnp.float32) + mh_b_ref[l]
        h = _leaky(h)
    mix_ref[...] = _sigmoid(
        jnp.dot(h, mf_w_ref[...], preferred_element_type=jnp.float32) + mf_b_ref[...])


def _osc_kernel(x_ref, w_ref, b_ref, interp_ref, cum_ref, o_ref):
    # Fused oscillator bank: single packed amp|freq projection, amp**2,
    # sigmoid-constrained freq, interpolation as a matmul, phase accumulation
    # via the cumulative interpolation matrix (no in-kernel cumsum), sin, and
    # the oscillator sum - all per batch element.
    x = x_ref[0]                                                       # (D, F)
    h = jnp.dot(w_ref[...], x, preferred_element_type=jnp.float32) + b_ref[...]
    amp = h[:MODEL_DIM] ** 2                                           # amp_activation
    freq = LOWEST_FREQ + _sigmoid(h[MODEL_DIM:]) * (1.0 - LOWEST_FREQ)  # constrain
    amp_s = jnp.dot(amp, interp_ref[...], preferred_element_type=jnp.float32)   # (D, n)
    phase = jnp.dot(freq, cum_ref[...], preferred_element_type=jnp.float32)     # (D, n)
    o_ref[0] = jnp.sum(amp_s * jnp.sin(phase), axis=0, keepdims=True)  # (1, n)


def _noise_coeff_kernel(x_ref, wi_ref, bi_ref, wu_ref, bu_ref, wf_ref, bf_ref,
                        u1_ref, u2_ref, o_ref):
    # Fused NoiseModel conv chain: 1x1 init conv, two (nearest-x2 + conv k=3)
    # blocks expressed as sums of tap matmuls (no im2col / repeat), final 1x1
    # conv to rfft coefficients, squared, mask_after=1.
    x = x_ref[0]                                                       # (D, F)
    h = _leaky(jnp.dot(wi_ref[...], x, preferred_element_type=jnp.float32)
               + bi_ref[...])
    for blk in range(N_UP_BLOCKS):
        u_ref = (u1_ref, u2_ref)[blk]
        acc = None
        for k in range(3):
            t = jnp.dot(wu_ref[blk, k], h, preferred_element_type=jnp.float32)
            t = jnp.dot(t, u_ref[k], preferred_element_type=jnp.float32)
            acc = t if acc is None else acc + t
        h = _leaky(acc + bu_ref[blk])
    coeff = jnp.dot(wf_ref[...], h, preferred_element_type=jnp.float32) + bf_ref[...]
    coeff = coeff ** 2                                                 # squared=True
    row = jax.lax.broadcasted_iota(jnp.int32, coeff.shape, 0)
    o_ref[0] = jnp.where(row < MASK_AFTER, coeff, 0.0)                 # mask_after=1


def _reverb_mix_kernel(mix_ref, dry_ref, dstack_ref, band_ref, o_ref):
    # Block-banded causal convolution + dry/wet mix.  dstack: (NB, K) unfolded dry
    # windows; band: (K, TB) banded IR (bf16).  M = NB rows on the MXU, f32 acc.
    wet = jnp.dot(dstack_ref[0].astype(jnp.bfloat16), band_ref[0],
                  preferred_element_type=jnp.float32)                  # (NB, TB)
    mix = mix_ref[pl.program_id(0), 0]                                 # SMEM scalar
    o_ref[0] = dry_ref[0] * mix + wet * (1.0 - mix)


# --------------------------- Pallas wrappers ----------------------------------
def heads_forward(p, x, verb_rooms):
    B = x.shape[0]
    ir, mix = pl.pallas_call(
        _heads_kernel,
        out_shape=(jax.ShapeDtypeStruct((B, N_SAMPLES), jnp.float32),
                   jax.ShapeDtypeStruct((B, 1), jnp.float32)),
    )(x, p["rooms_h_w"], p["rooms_h_b"], p["rooms_f_w"], p["rooms_f_b"],
      p["mix_h_w"], p["mix_h_b"], p["mix_f_w"], p["mix_f_b"], verb_rooms)
    return ir, mix


def oscillator_bank(p, x):
    B = x.shape[0]
    d2 = 2 * MODEL_DIM
    return pl.pallas_call(
        _osc_kernel,
        out_shape=jax.ShapeDtypeStruct((B, 1, N_SAMPLES), jnp.float32),
        grid=(B,),
        in_specs=[
            pl.BlockSpec((1, MODEL_DIM, N_FRAMES), lambda b: (b, 0, 0)),
            pl.BlockSpec((d2, MODEL_DIM), lambda b: (0, 0)),
            pl.BlockSpec((d2, 1), lambda b: (0, 0)),
            pl.BlockSpec((N_FRAMES, N_SAMPLES), lambda b: (0, 0)),
            pl.BlockSpec((N_FRAMES, N_SAMPLES), lambda b: (0, 0)),
        ],
        out_specs=pl.BlockSpec((1, 1, N_SAMPLES), lambda b: (b, 0, 0)),
        compiler_params=pltpu.CompilerParams(dimension_semantics=("parallel",)),
    )(x, p["w"], p["b"], INTERP, CUMINTERP)


def noise_coeffs(p, x):
    B = x.shape[0]
    return pl.pallas_call(
        _noise_coeff_kernel,
        out_shape=jax.ShapeDtypeStruct((B, NOISE_COEFFS, N_NOISE_FRAMES), jnp.float32),
        grid=(B,),
        in_specs=[
            pl.BlockSpec((1, MODEL_DIM, N_FRAMES), lambda b: (b, 0, 0)),
            pl.BlockSpec((MODEL_DIM, MODEL_DIM), lambda b: (0, 0)),
            pl.BlockSpec((MODEL_DIM, 1), lambda b: (0, 0)),
            pl.BlockSpec((N_UP_BLOCKS, 3, MODEL_DIM, MODEL_DIM),
                         lambda b: (0, 0, 0, 0)),
            pl.BlockSpec((N_UP_BLOCKS, MODEL_DIM, 1), lambda b: (0, 0, 0)),
            pl.BlockSpec((NOISE_COEFFS, MODEL_DIM), lambda b: (0, 0)),
            pl.BlockSpec((NOISE_COEFFS, 1), lambda b: (0, 0)),
            pl.BlockSpec((3, N_FRAMES, 2 * N_FRAMES), lambda b: (0, 0, 0)),
            pl.BlockSpec((3, 2 * N_FRAMES, 4 * N_FRAMES), lambda b: (0, 0, 0)),
        ],
        out_specs=pl.BlockSpec((1, NOISE_COEFFS, N_NOISE_FRAMES),
                               lambda b: (b, 0, 0)),
        compiler_params=pltpu.CompilerParams(dimension_semantics=("parallel",)),
    )(x, p["w_init"], p["b_init"], p["w_up"], p["b_up"],
      p["w_final"], p["b_final"], U1_TAPS, U2_TAPS)


def reverb_and_mix(dry, ir, mix):
    # dry: (B, n), ir: (B, n), mix: (B, 1)  ->  (B, 1, n)
    B, n = dry.shape
    tb, nb, k = REVERB_TB, REVERB_NB, REVERB_K

    # Unfold dry into NB overlapping causal windows of length K (static slices).
    dry_pad = jnp.pad(dry, ((0, 0), (n, 0)))                          # (B, 2n)
    dstack = jnp.stack([dry_pad[:, j * tb:j * tb + k] for j in range(nb)],
                       axis=1)                                        # (B, NB, K)

    # Banded IR slab: band[b, kk, t] = ir[b, n + t - kk] (0 outside [0, n)).
    irf_pad = jnp.pad(jnp.flip(ir, axis=-1), ((0, 0), (tb, tb)))      # (B, n + 2TB)
    band = jnp.stack([irf_pad[:, tb - 1 - t: tb - 1 - t + k] for t in range(tb)],
                     axis=-1)                                         # (B, K, TB)
    band = band.astype(jnp.bfloat16)                                  # MXU-input bf16

    dry_r = dry.reshape(B, nb, tb)
    out = pl.pallas_call(
        _reverb_mix_kernel,
        out_shape=jax.ShapeDtypeStruct((B, nb, tb), jnp.float32),
        grid=(B,),
        in_specs=[
            pl.BlockSpec(memory_space=pltpu.MemorySpace.SMEM),        # mix scalars
            pl.BlockSpec((1, nb, tb), lambda b: (b, 0, 0)),
            pl.BlockSpec((1, nb, k), lambda b: (b, 0, 0)),
            pl.BlockSpec((1, k, tb), lambda b: (b, 0, 0)),
        ],
        out_specs=pl.BlockSpec((1, nb, tb), lambda b: (b, 0, 0)),
        compiler_params=pltpu.CompilerParams(dimension_semantics=("parallel",)),
    )(mix, dry_r, dstack, band)
    return out.reshape(B, 1, n)


# --------------------------- noise synthesis (plain JAX) ----------------------
def synth_noise(coeff, noise_key):
    # TODO(synk): rfft/irfft white-noise filtering + overlap-add has no Pallas
    # equivalent; done in plain JAX (tiny at this config).
    B = coeff.shape[0]
    noise = jax.random.uniform(noise_key, (B, N_SAMPLES + NOISE_STEP),
                               minval=-1.0, maxval=1.0)
    frames = jnp.concatenate(
        [noise[:, :N_SAMPLES].reshape(B, N_NOISE_FRAMES, NOISE_STEP),
         noise[:, NOISE_STEP:NOISE_STEP + N_SAMPLES].reshape(
             B, N_NOISE_FRAMES, NOISE_STEP)],
        axis=-1)                                                      # (B, nf, window)
    spec = jnp.fft.rfft(frames, axis=-1) * jnp.transpose(coeff, (0, 2, 1))
    filt = jnp.fft.irfft(spec, n=NOISE_WINDOW, axis=-1)               # (B, nf, window)
    first = filt[:, :, :NOISE_STEP].reshape(B, N_SAMPLES)
    second = filt[:, :, NOISE_STEP:].reshape(B, N_SAMPLES)
    return first + jnp.pad(second, ((0, 0), (NOISE_STEP, 0)))[:, :N_SAMPLES]


# --------------------------- full forward ------------------------------------
def audio_model_forward(params, x, noise_key):
    B = x.shape[0]
    x = x.reshape(B, MODEL_DIM, N_FRAMES)

    ir, mix = heads_forward(params["heads"], x, params["verb_rooms"])  # (B,n),(B,1)
    harm = oscillator_bank(params["osc"], x)[:, 0, :]                  # (B, n)
    coeff = noise_coeffs(params["noise"], x)                           # (B, 17, nf)
    noise = synth_noise(coeff, noise_key)                              # (B, n)

    dry = harm + noise                                                 # (B, n)
    return reverb_and_mix(dry, ir, mix)                                # (B, 1, n)


# --------------------------- parameter init ----------------------------------
def _uniform(key, shape, scale):
    return jax.random.uniform(key, shape, minval=-scale, maxval=scale,
                              dtype=jnp.float32)


def init_params(key):
    ks = iter(jax.random.split(key, 24))
    d = MODEL_DIM
    s_d = 1.0 / np.sqrt(d)
    s_3d = 1.0 / np.sqrt(3 * d)

    heads = {
        "rooms_h_w": _uniform(next(ks), (3, d, d), s_d),
        "rooms_h_b": _uniform(next(ks), (3, 1, d), s_d),
        "rooms_f_w": _uniform(next(ks), (d, N_ROOMS), s_d),
        "rooms_f_b": _uniform(next(ks), (1, N_ROOMS), s_d),
        "mix_h_w": _uniform(next(ks), (3, d, d), s_d),
        "mix_h_b": _uniform(next(ks), (3, 1, d), s_d),
        "mix_f_w": _uniform(next(ks), (d, 1), s_d),
        "mix_f_b": _uniform(next(ks), (1, 1), s_d),
    }
    osc = {
        "w": _uniform(next(ks), (2 * d, d), s_d),   # rows [0:D]=amp, [D:2D]=freq
        "b": _uniform(next(ks), (2 * d, 1), s_d),
    }
    noise = {
        "w_init": _uniform(next(ks), (d, d), s_d),
        "b_init": _uniform(next(ks), (d, 1), s_d),
        "w_up": _uniform(next(ks), (N_UP_BLOCKS, 3, d, d), s_3d),
        "b_up": _uniform(next(ks), (N_UP_BLOCKS, d, 1), s_3d),
        "w_final": _uniform(next(ks), (NOISE_COEFFS, d), s_d),
        "b_final": _uniform(next(ks), (NOISE_COEFFS, 1), s_d),
    }
    verb_rooms = _uniform(next(ks), (N_ROOMS, N_SAMPLES), 0.01)

    return {"heads": heads, "osc": osc, "noise": noise, "verb_rooms": verb_rooms}


# ------------------------------- main -----------------------------------------
if __name__ == "__main__":
    key = jax.random.PRNGKey(0)
    k_params, k_x, k_noise = jax.random.split(key, 3)
    params = init_params(k_params)
    x = jax.random.normal(k_x, (2, MODEL_DIM, N_FRAMES), dtype=jnp.float32)

    fwd = jax.jit(audio_model_forward)
    out = jax.block_until_ready(fwd(params, x, k_noise))

    assert out.shape == (2, 1, N_SAMPLES), out.shape
    assert bool(jnp.all(jnp.isfinite(out)))
    print("KERNEL_OK")
</pallas_src>

<mosaic_0001>
module attributes {stable_mosaic.version = 11 : i64} {
  func.func @_heads_kernel(%arg0: memref<2x32x16xf32, #tpu.memory_space<vmem>>, %arg1: memref<3x32x32xf32, #tpu.memory_space<vmem>>, %arg2: memref<3x1x32xf32, #tpu.memory_space<vmem>>, %arg3: memref<32x8xf32, #tpu.memory_space<vmem>>, %arg4: memref<1x8xf32, #tpu.memory_space<vmem>>, %arg5: memref<3x32x32xf32, #tpu.memory_space<vmem>>, %arg6: memref<3x1x32xf32, #tpu.memory_space<vmem>>, %arg7: memref<32x1xf32, #tpu.memory_space<vmem>>, %arg8: memref<1x1xf32, #tpu.memory_space<vmem>>, %arg9: memref<8x1024xf32, #tpu.memory_space<vmem>>, %arg10: memref<2x1024xf32, #tpu.memory_space<vmem>>, %arg11: memref<2x1xf32, #tpu.memory_space<vmem>>) attributes {dimension_semantics = [], scalar_prefetch = 0 : i64, scratch_operands = 0 : i64, tpu.core_type = #tpu.core_type<tc>} {
    %c0 = arith.constant 0 : index
    %c0_0 = arith.constant 0 : index
    %c0_1 = arith.constant 0 : index
    %0 = vector.load %arg0[%c0, %c0_0, %c0_1] : memref<2x32x16xf32, #tpu.memory_space<vmem>>, vector<2x32x16xf32>
    %cst = arith.constant dense<0.000000e+00> : vector<2x32xf32>
    %1 = vector.multi_reduction <add>, %0, %cst [2] : vector<2x32x16xf32> to vector<2x32xf32>
    %cst_2 = arith.constant 1.600000e+01 : f32
    %2 = vector.broadcast %cst_2 : f32 to vector<2x32xf32>
    %3 = arith.divf %1, %2 : vector<2x32xf32>
    %c0_3 = arith.constant 0 : index
    %c0_4 = arith.constant 0 : index
    %c0_5 = arith.constant 0 : index
    %4 = vector.load %arg1[%c0_3, %c0_4, %c0_5] : memref<3x32x32xf32, #tpu.memory_space<vmem>>, vector<1x32x32xf32>
    %5 = vector.shape_cast %4 : vector<1x32x32xf32> to vector<32x32xf32>
    %cst_6 = arith.constant dense<0.000000e+00> : vector<2x32xf32>
    %6 = tpu.matmul %3, %5, %cst_6 {dimension_numbers = #tpu.dot_dimension_numbers<[1], [0], [0], [1], [0, 0, 1, 1], [], []>} : vector<2x32xf32>, vector<32x32xf32>, vector<2x32xf32> -> vector<2x32xf32>
    %c0_7 = arith.constant 0 : index
    %c0_8 = arith.constant 0 : index
    %c0_9 = arith.constant 0 : index
    %7 = vector.load %arg2[%c0_7, %c0_8, %c0_9] : memref<3x1x32xf32, #tpu.memory_space<vmem>>, vector<1x1x32xf32>
    %8 = vector.shape_cast %7 : vector<1x1x32xf32> to vector<1x32xf32>
    %9 = vector.broadcast %8 : vector<1x32xf32> to vector<2x32xf32>
    %10 = arith.addf %6, %9 : vector<2x32xf32>
    %cst_10 = arith.constant 0.000000e+00 : f32
    %11 = vector.broadcast %cst_10 : f32 to vector<2x32xf32>
    %12 = arith.cmpf ogt, %10, %11 : vector<2x32xf32>
    %cst_11 = arith.constant 2.000000e-01 : f32
    %13 = vector.broadcast %cst_11 : f32 to vector<2x32xf32>
    %14 = arith.mulf %13, %10 : vector<2x32xf32>
    %15 = arith.select %12, %10, %14 : vector<2x32xi1>, vector<2x32xf32>
    %c1 = arith.constant 1 : index
    %c0_12 = arith.constant 0 : index
    %c0_13 = arith.constant 0 : index
    %16 = vector.load %arg1[%c1, %c0_12, %c0_13] : memref<3x32x32xf32, #tpu.memory_space<vmem>>, vector<1x32x32xf32>
    %17 = vector.shape_cast %16 : vector<1x32x32xf32> to vector<32x32xf32>
    %cst_14 = arith.constant dense<0.000000e+00> : vector<2x32xf32>
    %18 = tpu.matmul %15, %17, %cst_14 {dimension_numbers = #tpu.dot_dimension_numbers<[1], [0], [0], [1], [0, 0, 1, 1], [], []>} : vector<2x32xf32>, vector<32x32xf32>, vector<2x32xf32> -> vector<2x32xf32>
    %c1_15 = arith.constant 1 : index
    %c0_16 = arith.constant 0 : index
    %c0_17 = arith.constant 0 : index
    %19 = vector.load %arg2[%c1_15, %c0_16, %c0_17] : memref<3x1x32xf32, #tpu.memory_space<vmem>>, vector<1x1x32xf32>
    %20 = vector.shape_cast %19 : vector<1x1x32xf32> to vector<1x32xf32>
    %21 = vector.broadcast %20 : vector<1x32xf32> to vector<2x32xf32>
    %22 = arith.addf %18, %21 : vector<2x32xf32>
    %cst_18 = arith.constant 0.000000e+00 : f32
    %23 = vector.broadcast %cst_18 : f32 to vector<2x32xf32>
    %24 = arith.cmpf ogt, %22, %23 : vector<2x32xf32>
    %cst_19 = arith.constant 2.000000e-01 : f32
    %25 = vector.broadcast %cst_19 : f32 to vector<2x32xf32>
    %26 = arith.mulf %25, %22 : vector<2x32xf32>
    %27 = arith.select %24, %22, %26 : vector<2x32xi1>, vector<2x32xf32>
    %c2 = arith.constant 2 : index
    %c0_20 = arith.constant 0 : index
    %c0_21 = arith.constant 0 : index
    %28 = vector.load %arg1[%c2, %c0_20, %c0_21] : memref<3x32x32xf32, #tpu.memory_space<vmem>>, vector<1x32x32xf32>
    %29 = vector.shape_cast %28 : vector<1x32x32xf32> to vector<32x32xf32>
    %cst_22 = arith.constant dense<0.000000e+00> : vector<2x32xf32>
    %30 = tpu.matmul %27, %29, %cst_22 {dimension_numbers = #tpu.dot_dimension_numbers<[1], [0], [0], [1], [0, 0, 1, 1], [], []>} : vector<2x32xf32>, vector<32x32xf32>, vector<2x32xf32> -> vector<2x32xf32>
    %c2_23 = arith.constant 2 : index
    %c0_24 = arith.constant 0 : index
    %c0_25 = arith.constant 0 : index
    %31 = vector.load %arg2[%c2_23, %c0_24, %c0_25] : memref<3x1x32xf32, #tpu.memory_space<vmem>>, vector<1x1x32xf32>
    %32 = vector.shape_cast %31 : vector<1x1x32xf32> to vector<1x32xf32>
    %33 = vector.broadcast %32 : vector<1x32xf32> to vector<2x32xf32>
    %34 = arith.addf %30, %33 : vector<2x32xf32>
    %cst_26 = arith.constant 0.000000e+00 : f32
    %35 = vector.broadcast %cst_26 : f32 to vector<2x32xf32>
    %36 = arith.cmpf ogt, %34, %35 : vector<2x32xf32>
    %cst_27 = arith.constant 2.000000e-01 : f32
    %37 = vector.broadcast %cst_27 : f32 to vector<2x32xf32>
    %38 = arith.mulf %37, %34 : vector<2x32xf32>
    %39 = arith.select %36, %34, %38 : vector<2x32xi1>, vector<2x32xf32>
    %c0_28 = arith.constant 0 : index
    %c0_29 = arith.constant 0 : index
    %40 = vector.load %arg3[%c0_28, %c0_29] : memref<32x8xf32, #tpu.memory_space<vmem>>, vector<32x8xf32>
    %cst_30 = arith.constant dense<0.000000e+00> : vector<2x8xf32>
    %41 = tpu.matmul %39, %40, %cst_30 {dimension_numbers = #tpu.dot_dimension_numbers<[1], [0], [0], [1], [0, 0, 1, 1], [], []>} : vector<2x32xf32>, vector<32x8xf32>, vector<2x8xf32> -> vector<2x8xf32>
    %c0_31 = arith.constant 0 : index
    %c0_32 = arith.constant 0 : index
    %42 = vector.load %arg4[%c0_31, %c0_32] : memref<1x8xf32, #tpu.memory_space<vmem>>, vector<1x8xf32>
    %43 = vector.broadcast %42 : vector<1x8xf32> to vector<2x8xf32>
    %44 = arith.addf %41, %43 : vector<2x8xf32>
    %cst_33 = arith.constant dense<0xFF800000> : vector<2xf32>
    %45 = vector.multi_reduction <maximumf>, %44, %cst_33 [1] : vector<2x8xf32> to vector<2xf32>
    %46 = vector.shape_cast %45 : vector<2xf32> to vector<2x1xf32>
    %47 = vector.broadcast %46 : vector<2x1xf32> to vector<2x8xf32>
    %48 = arith.subf %44, %47 : vector<2x8xf32>
    %49 = math.exp %48 : vector<2x8xf32>
    %cst_34 = arith.constant dense<0.000000e+00> : vector<2xf32>
    %50 = vector.multi_reduction <add>, %49, %cst_34 [1] : vector<2x8xf32> to vector<2xf32>
    %51 = vector.shape_cast %50 : vector<2xf32> to vector<2x1xf32>
    %52 = vector.broadcast %51 : vector<2x1xf32> to vector<2x8xf32>
    %53 = arith.divf %49, %52 : vector<2x8xf32>
    %c0_35 = arith.constant 0 : index
    %c0_36 = arith.constant 0 : index
    %54 = vector.load %arg9[%c0_35, %c0_36] : memref<8x1024xf32, #tpu.memory_space<vmem>>, vector<8x1024xf32>
    %cst_37 = arith.constant dense<0.000000e+00> : vector<2x1024xf32>
    %55 = tpu.matmul %53, %54, %cst_37 {dimension_numbers = #tpu.dot_dimension_numbers<[1], [0], [0], [1], [0, 0, 1, 1], [], []>} : vector<2x8xf32>, vector<8x1024xf32>, vector<2x1024xf32> -> vector<2x1024xf32>
    %c0_38 = arith.constant 0 : index
    %c0_39 = arith.constant 0 : index
    %56 = vector.load %arg10[%c0_38, %c0_39] : memref<2x1024xf32, #tpu.memory_space<vmem>>, vector<2x1024xf32>
    tpu.vector_store %arg10[%c0_38, %c0_39], %55 {strides = array<i32>} : memref<2x1024xf32, #tpu.memory_space<vmem>>, vector<2x1024xf32>,
    %c0_40 = arith.constant 0 : index
    %c0_41 = arith.constant 0 : index
    %c0_42 = arith.constant 0 : index
    %57 = vector.load %arg5[%c0_40, %c0_41, %c0_42] : memref<3x32x32xf32, #tpu.memory_space<vmem>>, vector<1x32x32xf32>
    %58 = vector.shape_cast %57 : vector<1x32x32xf32> to vector<32x32xf32>
    %cst_43 = arith.constant dense<0.000000e+00> : vector<2x32xf32>
    %59 = tpu.matmul %3, %58, %cst_43 {dimension_numbers = #tpu.dot_dimension_numbers<[1], [0], [0], [1], [0, 0, 1, 1], [], []>} : vector<2x32xf32>, vector<32x32xf32>, vector<2x32xf32> -> vector<2x32xf32>
    %c0_44 = arith.constant 0 : index
    %c0_45 = arith.constant 0 : index
    %c0_46 = arith.constant 0 : index
    %60 = vector.load %arg6[%c0_44, %c0_45, %c0_46] : memref<3x1x32xf32, #tpu.memory_space<vmem>>, vector<1x1x32xf32>
    %61 = vector.shape_cast %60 : vector<1x1x32xf32> to vector<1x32xf32>
    %62 = vector.broadcast %61 : vector<1x32xf32> to vector<2x32xf32>
    %63 = arith.addf %59, %62 : vector<2x32xf32>
    %cst_47 = arith.constant 0.000000e+00 : f32
    %64 = vector.broadcast %cst_47 : f32 to vector<2x32xf32>
    %65 = arith.cmpf ogt, %63, %64 : vector<2x32xf32>
    %cst_48 = arith.constant 2.000000e-01 : f32
    %66 = vector.broadcast %cst_48 : f32 to vector<2x32xf32>
    %67 = arith.mulf %66, %63 : vector<2x32xf32>
    %68 = arith.select %65, %63, %67 : vector<2x32xi1>, vector<2x32xf32>
    %c1_49 = arith.constant 1 : index
    %c0_50 = arith.constant 0 : index
    %c0_51 = arith.constant 0 : index
    %69 = vector.load %arg5[%c1_49, %c0_50, %c0_51] : memref<3x32x32xf32, #tpu.memory_space<vmem>>, vector<1x32x32xf32>
    %70 = vector.shape_cast %69 : vector<1x32x32xf32> to vector<32x32xf32>
    %cst_52 = arith.constant dense<0.000000e+00> : vector<2x32xf32>
    %71 = tpu.matmul %68, %70, %cst_52 {dimension_numbers = #tpu.dot_dimension_numbers<[1], [0], [0], [1], [0, 0, 1, 1], [], []>} : vector<2x32xf32>, vector<32x32xf32>, vector<2x32xf32> -> vector<2x32xf32>
    %c1_53 = arith.constant 1 : index
    %c0_54 = arith.constant 0 : index
    %c0_55 = arith.constant 0 : index
    %72 = vector.load %arg6[%c1_53, %c0_54, %c0_55] : memref<3x1x32xf32, #tpu.memory_space<vmem>>, vector<1x1x32xf32>
    %73 = vector.shape_cast %72 : vector<1x1x32xf32> to vector<1x32xf32>
    %74 = vector.broadcast %73 : vector<1x32xf32> to vector<2x32xf32>
    %75 = arith.addf %71, %74 : vector<2x32xf32>
    %cst_56 = arith.constant 0.000000e+00 : f32
    %76 = vector.broadcast %cst_56 : f32 to vector<2x32xf32>
    %77 = arith.cmpf ogt, %75, %76 : vector<2x32xf32>
    %cst_57 = arith.constant 2.000000e-01 : f32
    %78 = vector.broadcast %cst_57 : f32 to vector<2x32xf32>
    %79 = arith.mulf %78, %75 : vector<2x32xf32>
    %80 = arith.select %77, %75, %79 : vector<2x32xi1>, vector<2x32xf32>
    %c2_58 = arith.constant 2 : index
    %c0_59 = arith.constant 0 : index
    %c0_60 = arith.constant 0 : index
    %81 = vector.load %arg5[%c2_58, %c0_59, %c0_60] : memref<3x32x32xf32, #tpu.memory_space<vmem>>, vector<1x32x32xf32>
    %82 = vector.shape_cast %81 : vector<1x32x32xf32> to vector<32x32xf32>
    %cst_61 = arith.constant dense<0.000000e+00> : vector<2x32xf32>
    %83 = tpu.matmul %80, %82, %cst_61 {dimension_numbers = #tpu.dot_dimension_numbers<[1], [0], [0], [1], [0, 0, 1, 1], [], []>} : vector<2x32xf32>, vector<32x32xf32>, vector<2x32xf32> -> vector<2x32xf32>
    %c2_62 = arith.constant 2 : index
    %c0_63 = arith.constant 0 : index
    %c0_64 = arith.constant 0 : index
    %84 = vector.load %arg6[%c2_62, %c0_63, %c0_64] : memref<3x1x32xf32, #tpu.memory_space<vmem>>, vector<1x1x32xf32>
    %85 = vector.shape_cast %84 : vector<1x1x32xf32> to vector<1x32xf32>
    %86 = vector.broadcast %85 : vector<1x32xf32> to vector<2x32xf32>
    %87 = arith.addf %83, %86 : vector<2x32xf32>
    %cst_65 = arith.constant 0.000000e+00 : f32
    %88 = vector.broadcast %cst_65 : f32 to vector<2x32xf32>
    %89 = arith.cmpf ogt, %87, %88 : vector<2x32xf32>
    %cst_66 = arith.constant 2.000000e-01 : f32
    %90 = vector.broadcast %cst_66 : f32 to vector<2x32xf32>
    %91 = arith.mulf %90, %87 : vector<2x32xf32>
    %92 = arith.select %89, %87, %91 : vector<2x32xi1>, vector<2x32xf32>
    %c0_67 = arith.constant 0 : index
    %c0_68 = arith.constant 0 : index
    %93 = vector.load %arg7[%c0_67, %c0_68] : memref<32x1xf32, #tpu.memory_space<vmem>>, vector<32x1xf32>
    %cst_69 = arith.constant dense<0.000000e+00> : vector<2x1xf32>
    %94 = tpu.matmul %92, %93, %cst_69 {dimension_numbers = #tpu.dot_dimension_numbers<[1], [0], [0], [1], [0, 0, 1, 1], [], []>} : vector<2x32xf32>, vector<32x1xf32>, vector<2x1xf32> -> vector<2x1xf32>
    %c0_70 = arith.constant 0 : index
    %c0_71 = arith.constant 0 : index
    %95 = vector.load %arg8[%c0_70, %c0_71] : memref<1x1xf32, #tpu.memory_space<vmem>>, vector<1x1xf32>
    %96 = vector.broadcast %95 : vector<1x1xf32> to vector<2x1xf32>
    %97 = arith.addf %94, %96 : vector<2x1xf32>
    %cst_72 = arith.constant 0.000000e+00 : f32
    %98 = vector.broadcast %cst_72 : f32 to vector<2x1xf32>
    %99 = arith.subf %98, %97 : vector<2x1xf32>
    %100 = math.exp %99 : vector<2x1xf32>
    %cst_73 = arith.constant 1.000000e+00 : f32
    %101 = vector.broadcast %cst_73 : f32 to vector<2x1xf32>
    %102 = arith.addf %101, %100 : vector<2x1xf32>
    %cst_74 = arith.constant 1.000000e+00 : f32
    %103 = vector.broadcast %cst_74 : f32 to vector<2x1xf32>
    %104 = arith.divf %103, %102 : vector<2x1xf32>
    %c0_75 = arith.constant 0 : index
    %c0_76 = arith.constant 0 : index
    %105 = vector.load %arg11[%c0_75, %c0_76] : memref<2x1xf32, #tpu.memory_space<vmem>>, vector<2x1xf32>
    tpu.vector_store %arg11[%c0_75, %c0_76], %104 {strides = array<i32>} : memref<2x1xf32, #tpu.memory_space<vmem>>, vector<2x1xf32>,
    return
  }
}

module attributes {stable_mosaic.version = 11 : i64} {
  func.func @_noise_coeff_kernel(%arg0: i32, %arg1: memref<1x32x16xf32, #tpu.memory_space<vmem>>, %arg2: memref<32x32xf32, #tpu.memory_space<vmem>>, %arg3: memref<32x1xf32, #tpu.memory_space<vmem>>, %arg4: memref<2x3x32x32xf32, #tpu.memory_space<vmem>>, %arg5: memref<2x32x1xf32, #tpu.memory_space<vmem>>, %arg6: memref<17x32xf32, #tpu.memory_space<vmem>>, %arg7: memref<17x1xf32, #tpu.memory_space<vmem>>, %arg8: memref<3x16x32xf32, #tpu.memory_space<vmem>>, %arg9: memref<3x32x64xf32, #tpu.memory_space<vmem>>, %arg10: memref<1x17x64xf32, #tpu.memory_space<vmem>>) attributes {dimension_semantics = [#tpu.dimension_semantics<parallel>], iteration_bounds = array<i64: 2>, scalar_prefetch = 0 : i64, scratch_operands = 0 : i64, tpu.core_type = #tpu.core_type<tc>, window_params = [{transform_indices = @transform_0, window_bounds = array<i64: 1, 32, 16>}, {pipeline_mode = #tpu.pipeline_mode<synchronous>, transform_indices = @transform_1, window_bounds = array<i64: 32, 32>}, {pipeline_mode = #tpu.pipeline_mode<synchronous>, transform_indices = @transform_2, window_bounds = array<i64: 32, 1>}, {pipeline_mode = #tpu.pipeline_mode<synchronous>, transform_indices = @transform_3, window_bounds = array<i64: 2, 3, 32, 32>}, {pipeline_mode = #tpu.pipeline_mode<synchronous>, transform_indices = @transform_4, window_bounds = array<i64: 2, 32, 1>}, {pipeline_mode = #tpu.pipeline_mode<synchronous>, transform_indices = @transform_5, window_bounds = array<i64: 17, 32>}, {pipeline_mode = #tpu.pipeline_mode<synchronous>, transform_indices = @transform_6, window_bounds = array<i64: 17, 1>}, {pipeline_mode = #tpu.pipeline_mode<synchronous>, transform_indices = @transform_7, window_bounds = array<i64: 3, 16, 32>}, {pipeline_mode = #tpu.pipeline_mode<synchronous>, transform_indices = @transform_8, window_bounds = array<i64: 3, 32, 64>}, {transform_indices = @transform_9, window_bounds = array<i64: 1, 17, 64>}]} {
    %c0 = arith.constant 0 : index
    %c0_0 = arith.constant 0 : index
    %c0_1 = arith.constant 0 : index
    %0 = vector.load %arg1[%c0, %c0_0, %c0_1] : memref<1x32x16xf32, #tpu.memory_space<vmem>>, vector<1x32x16xf32>
    %1 = vector.shape_cast %0 : vector<1x32x16xf32> to vector<32x16xf32>
    %c0_2 = arith.constant 0 : index
    %c0_3 = arith.constant 0 : index
    %2 = vector.load %arg2[%c0_2, %c0_3] : memref<32x32xf32, #tpu.memory_space<vmem>>, vector<32x32xf32>
    %cst = arith.constant dense<0.000000e+00> : vector<32x16xf32>
    %3 = tpu.matmul %2, %1, %cst {dimension_numbers = #tpu.dot_dimension_numbers<[1], [0], [0], [1], [0, 0, 1, 1], [], []>} : vector<32x32xf32>, vector<32x16xf32>, vector<32x16xf32> -> vector<32x16xf32>
    %c0_4 = arith.constant 0 : index
    %c0_5 = arith.constant 0 : index
    %4 = vector.load %arg3[%c0_4, %c0_5] : memref<32x1xf32, #tpu.memory_space<vmem>>, vector<32x1xf32>
    %5 = vector.broadcast %4 : vector<32x1xf32> to vector<32x16xf32>
    %6 = arith.addf %3, %5 : vector<32x16xf32>
    %cst_6 = arith.constant 0.000000e+00 : f32
    %7 = vector.broadcast %cst_6 : f32 to vector<32x16xf32>
    %8 = arith.cmpf ogt, %6, %7 : vector<32x16xf32>
    %cst_7 = arith.constant 2.000000e-01 : f32
    %9 = vector.broadcast %cst_7 : f32 to vector<32x16xf32>
    %10 = arith.mulf %9, %6 : vector<32x16xf32>
    %11 = arith.select %8, %6, %10 : vector<32x16xi1>, vector<32x16xf32>
    %c0_8 = arith.constant 0 : index
    %c0_9 = arith.constant 0 : index
    %c0_10 = arith.constant 0 : index
    %c0_11 = arith.constant 0 : index
    %12 = vector.load %arg4[%c0_8, %c0_9, %c0_10, %c0_11] : memref<2x3x32x32xf32, #tpu.memory_space<vmem>>, vector<1x1x32x32xf32>
    %13 = vector.shape_cast %12 : vector<1x1x32x32xf32> to vector<32x32xf32>
    %cst_12 = arith.constant dense<0.000000e+00> : vector<32x16xf32>
    %14 = tpu.matmul %13, %11, %cst_12 {dimension_numbers = #tpu.dot_dimension_numbers<[1], [0], [0], [1], [0, 0, 1, 1], [], []>} : vector<32x32xf32>, vector<32x16xf32>, vector<32x16xf32> -> vector<32x16xf32>
    %c0_13 = arith.constant 0 : index
    %c0_14 = arith.constant 0 : index
    %c0_15 = arith.constant 0 : index
    %15 = vector.load %arg8[%c0_13, %c0_14, %c0_15] : memref<3x16x32xf32, #tpu.memory_space<vmem>>, vector<1x16x32xf32>
    %16 = vector.shape_cast %15 : vector<1x16x32xf32> to vector<16x32xf32>
    %cst_16 = arith.constant dense<0.000000e+00> : vector<32x32xf32>
    %17 = tpu.matmul %14, %16, %cst_16 {dimension_numbers = #tpu.dot_dimension_numbers<[1], [0], [0], [1], [0, 0, 1, 1], [], []>} : vector<32x16xf32>, vector<16x32xf32>, vector<32x32xf32> -> vector<32x32xf32>
    %c0_17 = arith.constant 0 : index
    %c1 = arith.constant 1 : index
    %c0_18 = arith.constant 0 : index
    %c0_19 = arith.constant 0 : index
    %18 = vector.load %arg4[%c0_17, %c1, %c0_18, %c0_19] : memref<2x3x32x32xf32, #tpu.memory_space<vmem>>, vector<1x1x32x32xf32>
    %19 = vector.shape_cast %18 : vector<1x1x32x32xf32> to vector<32x32xf32>
    %cst_20 = arith.constant dense<0.000000e+00> : vector<32x16xf32>
    %20 = tpu.matmul %19, %11, %cst_20 {dimension_numbers = #tpu.dot_dimension_numbers<[1], [0], [0], [1], [0, 0, 1, 1], [], []>} : vector<32x32xf32>, vector<32x16xf32>, vector<32x16xf32> -> vector<32x16xf32>
    %c1_21 = arith.constant 1 : index
    %c0_22 = arith.constant 0 : index
    %c0_23 = arith.constant 0 : index
    %21 = vector.load %arg8[%c1_21, %c0_22, %c0_23] : memref<3x16x32xf32, #tpu.memory_space<vmem>>, vector<1x16x32xf32>
    %22 = vector.shape_cast %21 : vector<1x16x32xf32> to vector<16x32xf32>
    %cst_24 = arith.constant dense<0.000000e+00> : vector<32x32xf32>
    %23 = tpu.matmul %20, %22, %cst_24 {dimension_numbers = #tpu.dot_dimension_numbers<[1], [0], [0], [1], [0, 0, 1, 1], [], []>} : vector<32x16xf32>, vector<16x32xf32>, vector<32x32xf32> -> vector<32x32xf32>
    %24 = arith.addf %17, %23 : vector<32x32xf32>
    %c0_25 = arith.constant 0 : index
    %c2 = arith.constant 2 : index
    %c0_26 = arith.constant 0 : index
    %c0_27 = arith.constant 0 : index
    %25 = vector.load %arg4[%c0_25, %c2, %c0_26, %c0_27] : memref<2x3x32x32xf32, #tpu.memory_space<vmem>>, vector<1x1x32x32xf32>
    %26 = vector.shape_cast %25 : vector<1x1x32x32xf32> to vector<32x32xf32>
    %cst_28 = arith.constant dense<0.000000e+00> : vector<32x16xf32>
    %27 = tpu.matmul %26, %11, %cst_28 {dimension_numbers = #tpu.dot_dimension_numbers<[1], [0], [0], [1], [0, 0, 1, 1], [], []>} : vector<32x32xf32>, vector<32x16xf32>, vector<32x16xf32> -> vector<32x16xf32>
    %c2_29 = arith.constant 2 : index
    %c0_30 = arith.constant 0 : index
    %c0_31 = arith.constant 0 : index
    %28 = vector.load %arg8[%c2_29, %c0_30, %c0_31] : memref<3x16x32xf32, #tpu.memory_space<vmem>>, vector<1x16x32xf32>
    %29 = vector.shape_cast %28 : vector<1x16x32xf32> to vector<16x32xf32>
    %cst_32 = arith.constant dense<0.000000e+00> : vector<32x32xf32>
    %30 = tpu.matmul %27, %29, %cst_32 {dimension_numbers = #tpu.dot_dimension_numbers<[1], [0], [0], [1], [0, 0, 1, 1], [], []>} : vector<32x16xf32>, vector<16x32xf32>, vector<32x32xf32> -> vector<32x32xf32>
    %31 = arith.addf %24, %30 : vector<32x32xf32>
    %c0_33 = arith.constant 0 : index
    %c0_34 = arith.constant 0 : index
    %c0_35 = arith.constant 0 : index
    %32 = vector.load %arg5[%c0_33, %c0_34, %c0_35] : memref<2x32x1xf32, #tpu.memory_space<vmem>>, vector<1x32x1xf32>
    %33 = vector.shape_cast %32 : vector<1x32x1xf32> to vector<32x1xf32>
    %34 = vector.broadcast %33 : vector<32x1xf32> to vector<32x32xf32>
    %35 = arith.addf %31, %34 : vector<32x32xf32>
    %cst_36 = arith.constant 0.000000e+00 : f32
    %36 = vector.broadcast %cst_36 : f32 to vector<32x32xf32>
    %37 = arith.cmpf ogt, %35, %36 : vector<32x32xf32>
    %cst_37 = arith.constant 2.000000e-01 : f32
    %38 = vector.broadcast %cst_37 : f32 to vector<32x32xf32>
    %39 = arith.mulf %38, %35 : vector<32x32xf32>
    %40 = arith.select %37, %35, %39 : vector<32x32xi1>, vector<32x32xf32>
    %c1_38 = arith.constant 1 : index
    %c0_39 = arith.constant 0 : index
    %c0_40 = arith.constant 0 : index
    %c0_41 = arith.constant 0 : index
    %41 = vector.load %arg4[%c1_38, %c0_39, %c0_40, %c0_41] : memref<2x3x32x32xf32, #tpu.memory_space<vmem>>, vector<1x1x32x32xf32>
    %42 = vector.shape_cast %41 : vector<1x1x32x32xf32> to vector<32x32xf32>
    %cst_42 = arith.constant dense<0.000000e+00> : vector<32x32xf32>
    %43 = tpu.matmul %42, %40, %cst_42 {dimension_numbers = #tpu.dot_dimension_numbers<[1], [0], [0], [1], [0, 0, 1, 1], [], []>} : vector<32x32xf32>, vector<32x32xf32>, vector<32x32xf32> -> vector<32x32xf32>
    %c0_43 = arith.constant 0 : index
    %c0_44 = arith.constant 0 : index
    %c0_45 = arith.constant 0 : index
    %44 = vector.load %arg9[%c0_43, %c0_44, %c0_45] : memref<3x32x64xf32, #tpu.memory_space<vmem>>, vector<1x32x64xf32>
    %45 = vector.shape_cast %44 : vector<1x32x64xf32> to vector<32x64xf32>
    %cst_46 = arith.constant dense<0.000000e+00> : vector<32x64xf32>
    %46 = tpu.matmul %43, %45, %cst_46 {dimension_numbers = #tpu.dot_dimension_numbers<[1], [0], [0], [1], [0, 0, 1, 1], [], []>} : vector<32x32xf32>, vector<32x64xf32>, vector<32x64xf32> -> vector<32x64xf32>
    %c1_47 = arith.constant 1 : index
    %c1_48 = arith.constant 1 : index
    %c0_49 = arith.constant 0 : index
    %c0_50 = arith.constant 0 : index
    %47 = vector.load %arg4[%c1_47, %c1_48, %c0_49, %c0_50] : memref<2x3x32x32xf32, #tpu.memory_space<vmem>>, vector<1x1x32x32xf32>
    %48 = vector.shape_cast %47 : vector<1x1x32x32xf32> to vector<32x32xf32>
    %cst_51 = arith.constant dense<0.000000e+00> : vector<32x32xf32>
    %49 = tpu.matmul %48, %40, %cst_51 {dimension_numbers = #tpu.dot_dimension_numbers<[1], [0], [0], [1], [0, 0, 1, 1], [], []>} : vector<32x32xf32>, vector<32x32xf32>, vector<32x32xf32> -> vector<32x32xf32>
    %c1_52 = arith.constant 1 : index
    %c0_53 = arith.constant 0 : index
    %c0_54 = arith.constant 0 : index
    %50 = vector.load %arg9[%c1_52, %c0_53, %c0_54] : memref<3x32x64xf32, #tpu.memory_space<vmem>>, vector<1x32x64xf32>
    %51 = vector.shape_cast %50 : vector<1x32x64xf32> to vector<32x64xf32>
    %cst_55 = arith.constant dense<0.000000e+00> : vector<32x64xf32>
    %52 = tpu.matmul %49, %51, %cst_55 {dimension_numbers = #tpu.dot_dimension_numbers<[1], [0], [0], [1], [0, 0, 1, 1], [], []>} : vector<32x32xf32>, vector<32x64xf32>, vector<32x64xf32> -> vector<32x64xf32>
    %53 = arith.addf %46, %52 : vector<32x64xf32>
    %c1_56 = arith.constant 1 : index
    %c2_57 = arith.constant 2 : index
    %c0_58 = arith.constant 0 : index
    %c0_59 = arith.constant 0 : index
    %54 = vector.load %arg4[%c1_56, %c2_57, %c0_58, %c0_59] : memref<2x3x32x32xf32, #tpu.memory_space<vmem>>, vector<1x1x32x32xf32>
    %55 = vector.shape_cast %54 : vector<1x1x32x32xf32> to vector<32x32xf32>
    %cst_60 = arith.constant dense<0.000000e+00> : vector<32x32xf32>
    %56 = tpu.matmul %55, %40, %cst_60 {dimension_numbers = #tpu.dot_dimension_numbers<[1], [0], [0], [1], [0, 0, 1, 1], [], []>} : vector<32x32xf32>, vector<32x32xf32>, vector<32x32xf32> -> vector<32x32xf32>
    %c2_61 = arith.constant 2 : index
    %c0_62 = arith.constant 0 : index
    %c0_63 = arith.constant 0 : index
    %57 = vector.load %arg9[%c2_61, %c0_62, %c0_63] : memref<3x32x64xf32, #tpu.memory_space<vmem>>, vector<1x32x64xf32>
    %58 = vector.shape_cast %57 : vector<1x32x64xf32> to vector<32x64xf32>
    %cst_64 = arith.constant dense<0.000000e+00> : vector<32x64xf32>
    %59 = tpu.matmul %56, %58, %cst_64 {dimension_numbers = #tpu.dot_dimension_numbers<[1], [0], [0], [1], [0, 0, 1, 1], [], []>} : vector<32x32xf32>, vector<32x64xf32>, vector<32x64xf32> -> vector<32x64xf32>
    %60 = arith.addf %53, %59 : vector<32x64xf32>
    %c1_65 = arith.constant 1 : index
    %c0_66 = arith.constant 0 : index
    %c0_67 = arith.constant 0 : index
    %61 = vector.load %arg5[%c1_65, %c0_66, %c0_67] : memref<2x32x1xf32, #tpu.memory_space<vmem>>, vector<1x32x1xf32>
    %62 = vector.shape_cast %61 : vector<1x32x1xf32> to vector<32x1xf32>
    %63 = vector.broadcast %62 : vector<32x1xf32> to vector<32x64xf32>
    %64 = arith.addf %60, %63 : vector<32x64xf32>
    %cst_68 = arith.constant 0.000000e+00 : f32
    %65 = vector.broadcast %cst_68 : f32 to vector<32x64xf32>
    %66 = arith.cmpf ogt, %64, %65 : vector<32x64xf32>
    %cst_69 = arith.constant 2.000000e-01 : f32
    %67 = vector.broadcast %cst_69 : f32 to vector<32x64xf32>
    %68 = arith.mulf %67, %64 : vector<32x64xf32>
    %69 = arith.select %66, %64, %68 : vector<32x64xi1>, vector<32x64xf32>
    %c0_70 = arith.constant 0 : index
    %c0_71 = arith.constant 0 : index
    %70 = vector.load %arg6[%c0_70, %c0_71] : memref<17x32xf32, #tpu.memory_space<vmem>>, vector<17x32xf32>
    %cst_72 = arith.constant dense<0.000000e+00> : vector<17x64xf32>
    %71 = tpu.matmul %70, %69, %cst_72 {dimension_numbers = #tpu.dot_dimension_numbers<[1], [0], [0], [1], [0, 0, 1, 1], [], []>} : vector<17x32xf32>, vector<32x64xf32>, vector<17x64xf32> -> vector<17x64xf32>
    %c0_73 = arith.constant 0 : index
    %c0_74 = arith.constant 0 : index
    %72 = vector.load %arg7[%c0_73, %c0_74] : memref<17x1xf32, #tpu.memory_space<vmem>>, vector<17x1xf32>
    %73 = vector.broadcast %72 : vector<17x1xf32> to vector<17x64xf32>
    %74 = arith.addf %71, %73 : vector<17x64xf32>
    %75 = arith.mulf %74, %74 : vector<17x64xf32>
    %76 = tpu.iota {dimensions = array<i32: 0>} : vector<17x64xi32>
    %c1_i32 = arith.constant 1 : i32
    %77 = vector.broadcast %c1_i32 : i32 to vector<17x64xi32>
    %78 = arith.cmpi slt, %76, %77 : vector<17x64xi32>
    %cst_75 = arith.constant 0.000000e+00 : f32
    %79 = vector.broadcast %cst_75 : f32 to vector<17x64xf32>
    %80 = arith.select %78, %75, %79 : vector<17x64xi1>, vector<17x64xf32>
    %c0_76 = arith.constant 0 : index
    %c0_77 = arith.constant 0 : index
    %c0_78 = arith.constant 0 : index
    %81 = vector.load %arg10[%c0_76, %c0_77, %c0_78] : memref<1x17x64xf32, #tpu.memory_space<vmem>>, vector<1x17x64xf32>
    %82 = vector.shape_cast %81 : vector<1x17x64xf32> to vector<17x64xf32>
    %83 = vector.shape_cast %80 : vector<17x64xf32> to vector<1x17x64xf32>
    tpu.vector_store %arg10[%c0_76, %c0_77, %c0_78], %83 {strides = array<i32>} : memref<1x17x64xf32, #tpu.memory_space<vmem>>, vector<1x17x64xf32>,
    return
  }
  func.func @transform_0(%arg0: i32) -> (i32, i32, i32) {
    %c0_i32 = arith.constant 0 : i32
    %c0_i32_0 = arith.constant 0 : i32
    %c0_i32_1 = arith.constant 0 : i32
    return %arg0, %c0_i32, %c0_i32_0 : i32, i32, i32
  }
  func.func @transform_1(%arg0: i32) -> (i32, i32) {
    %c0_i32 = arith.constant 0 : i32
    %c0_i32_0 = arith.constant 0 : i32
    %c0_i32_1 = arith.constant 0 : i32
    return %c0_i32, %c0_i32_0 : i32, i32
  }
  func.func @transform_2(%arg0: i32) -> (i32, i32) {
    %c0_i32 = arith.constant 0 : i32
    %c0_i32_0 = arith.constant 0 : i32
    %c0_i32_1 = arith.constant 0 : i32
    return %c0_i32, %c0_i32_0 : i32, i32
  }
  func.func @transform_3(%arg0: i32) -> (i32, i32, i32, i32) {
    %c0_i32 = arith.constant 0 : i32
    %c0_i32_0 = arith.constant 0 : i32
    %c0_i32_1 = arith.constant 0 : i32
    %c0_i32_2 = arith.constant 0 : i32
    %c0_i32_3 = arith.constant 0 : i32
    return %c0_i32, %c0_i32_0, %c0_i32_1, %c0_i32_2 : i32, i32, i32, i32
  }
  func.func @transform_4(%arg0: i32) -> (i32, i32, i32) {
    %c0_i32 = arith.constant 0 : i32
    %c0_i32_0 = arith.constant 0 : i32
    %c0_i32_1 = arith.constant 0 : i32
    %c0_i32_2 = arith.constant 0 : i32
    return %c0_i32, %c0_i32_0, %c0_i32_1 : i32, i32, i32
  }
  func.func @transform_5(%arg0: i32) -> (i32, i32) {
    %c0_i32 = arith.constant 0 : i32
    %c0_i32_0 = arith.constant 0 : i32
    %c0_i32_1 = arith.constant 0 : i32
    return %c0_i32, %c0_i32_0 : i32, i32
  }
  func.func @transform_6(%arg0: i32) -> (i32, i32) {
    %c0_i32 = arith.constant 0 : i32
    %c0_i32_0 = arith.constant 0 : i32
    %c0_i32_1 = arith.constant 0 : i32
    return %c0_i32, %c0_i32_0 : i32, i32
  }
  func.func @transform_7(%arg0: i32) -> (i32, i32, i32) {
    %c0_i32 = arith.constant 0 : i32
    %c0_i32_0 = arith.constant 0 : i32
    %c0_i32_1 = arith.constant 0 : i32
    %c0_i32_2 = arith.constant 0 : i32
    return %c0_i32, %c0_i32_0, %c0_i32_1 : i32, i32, i32
  }
  func.func @transform_8(%arg0: i32) -> (i32, i32, i32) {
    %c0_i32 = arith.constant 0 : i32
    %c0_i32_0 = arith.constant 0 : i32
    %c0_i32_1 = arith.constant 0 : i32
    %c0_i32_2 = arith.constant 0 : i32
    return %c0_i32, %c0_i32_0, %c0_i32_1 : i32, i32, i32
  }
  func.func @transform_9(%arg0: i32) -> (i32, i32, i32) {
    %c0_i32 = arith.constant 0 : i32
    %c0_i32_0 = arith.constant 0 : i32
    %c0_i32_1 = arith.constant 0 : i32
    return %arg0, %c0_i32, %c0_i32_0 : i32, i32, i32
  }
}

module attributes {stable_mosaic.version = 11 : i64} {
  func.func @_osc_kernel(%arg0: i32, %arg1: memref<1x32x16xf32, #tpu.memory_space<vmem>>, %arg2: memref<64x32xf32, #tpu.memory_space<vmem>>, %arg3: memref<64x1xf32, #tpu.memory_space<vmem>>, %arg4: memref<16x1024xf32, #tpu.memory_space<vmem>>, %arg5: memref<16x1024xf32, #tpu.memory_space<vmem>>, %arg6: memref<1x1x1024xf32, #tpu.memory_space<vmem>>) attributes {dimension_semantics = [#tpu.dimension_semantics<parallel>], iteration_bounds = array<i64: 2>, scalar_prefetch = 0 : i64, scratch_operands = 0 : i64, tpu.core_type = #tpu.core_type<tc>, window_params = [{transform_indices = @transform_0, window_bounds = array<i64: 1, 32, 16>}, {pipeline_mode = #tpu.pipeline_mode<synchronous>, transform_indices = @transform_1, window_bounds = array<i64: 64, 32>}, {pipeline_mode = #tpu.pipeline_mode<synchronous>, transform_indices = @transform_2, window_bounds = array<i64: 64, 1>}, {pipeline_mode = #tpu.pipeline_mode<synchronous>, transform_indices = @transform_3, window_bounds = array<i64: 16, 1024>}, {pipeline_mode = #tpu.pipeline_mode<synchronous>, transform_indices = @transform_4, window_bounds = array<i64: 16, 1024>}, {transform_indices = @transform_5, window_bounds = array<i64: 1, 1, 1024>}]} {
    %c0 = arith.constant 0 : index
    %c0_0 = arith.constant 0 : index
    %c0_1 = arith.constant 0 : index
    %0 = vector.load %arg1[%c0, %c0_0, %c0_1] : memref<1x32x16xf32, #tpu.memory_space<vmem>>, vector<1x32x16xf32>
    %1 = vector.shape_cast %0 : vector<1x32x16xf32> to vector<32x16xf32>
    %c0_2 = arith.constant 0 : index
    %c0_3 = arith.constant 0 : index
    %2 = vector.load %arg2[%c0_2, %c0_3] : memref<64x32xf32, #tpu.memory_space<vmem>>, vector<64x32xf32>
    %cst = arith.constant dense<0.000000e+00> : vector<64x16xf32>
    %3 = tpu.matmul %2, %1, %cst {dimension_numbers = #tpu.dot_dimension_numbers<[1], [0], [0], [1], [0, 0, 1, 1], [], []>} : vector<64x32xf32>, vector<32x16xf32>, vector<64x16xf32> -> vector<64x16xf32>
    %c0_4 = arith.constant 0 : index
    %c0_5 = arith.constant 0 : index
    %4 = vector.load %arg3[%c0_4, %c0_5] : memref<64x1xf32, #tpu.memory_space<vmem>>, vector<64x1xf32>
    %5 = vector.broadcast %4 : vector<64x1xf32> to vector<64x16xf32>
    %6 = arith.addf %3, %5 : vector<64x16xf32>
    %7 = vector.extract_strided_slice %6 {offsets = [0, 0], sizes = [32, 16], strides = [1, 1]} : vector<64x16xf32> to vector<32x16xf32>
    %8 = arith.mulf %7, %7 : vector<32x16xf32>
    %9 = vector.extract_strided_slice %6 {offsets = [32, 0], sizes = [32, 16], strides = [1, 1]} : vector<64x16xf32> to vector<32x16xf32>
    %cst_6 = arith.constant 0.000000e+00 : f32
    %10 = vector.broadcast %cst_6 : f32 to vector<32x16xf32>
    %11 = arith.subf %10, %9 : vector<32x16xf32>
    %12 = math.exp %11 : vector<32x16xf32>
    %cst_7 = arith.constant 1.000000e+00 : f32
    %13 = vector.broadcast %cst_7 : f32 to vector<32x16xf32>
    %14 = arith.addf %13, %12 : vector<32x16xf32>
    %cst_8 = arith.constant 1.000000e+00 : f32
    %15 = vector.broadcast %cst_8 : f32 to vector<32x16xf32>
    %16 = arith.divf %15, %14 : vector<32x16xf32>
    %cst_9 = arith.constant 0.996371865 : f32
    %17 = vector.broadcast %cst_9 : f32 to vector<32x16xf32>
    %18 = arith.mulf %16, %17 : vector<32x16xf32>
    %cst_10 = arith.constant 0.00362811796 : f32
    %19 = vector.broadcast %cst_10 : f32 to vector<32x16xf32>
    %20 = arith.addf %19, %18 : vector<32x16xf32>
    %c0_11 = arith.constant 0 : index
    %c0_12 = arith.constant 0 : index
    %21 = vector.load %arg4[%c0_11, %c0_12] : memref<16x1024xf32, #tpu.memory_space<vmem>>, vector<16x1024xf32>
    %cst_13 = arith.constant dense<0.000000e+00> : vector<32x1024xf32>
    %22 = tpu.matmul %8, %21, %cst_13 {dimension_numbers = #tpu.dot_dimension_numbers<[1], [0], [0], [1], [0, 0, 1, 1], [], []>} : vector<32x16xf32>, vector<16x1024xf32>, vector<32x1024xf32> -> vector<32x1024xf32>
    %c0_14 = arith.constant 0 : index
    %c0_15 = arith.constant 0 : index
    %23 = vector.load %arg5[%c0_14, %c0_15] : memref<16x1024xf32, #tpu.memory_space<vmem>>, vector<16x1024xf32>
    %cst_16 = arith.constant dense<0.000000e+00> : vector<32x1024xf32>
    %24 = tpu.matmul %20, %23, %cst_16 {dimension_numbers = #tpu.dot_dimension_numbers<[1], [0], [0], [1], [0, 0, 1, 1], [], []>} : vector<32x16xf32>, vector<16x1024xf32>, vector<32x1024xf32> -> vector<32x1024xf32>
    %25 = math.sin %24 : vector<32x1024xf32>
    %26 = arith.mulf %22, %25 : vector<32x1024xf32>
    %cst_17 = arith.constant dense<0.000000e+00> : vector<1024xf32>
    %27 = vector.multi_reduction <add>, %26, %cst_17 [0] : vector<32x1024xf32> to vector<1024xf32>
    %28 = vector.shape_cast %27 : vector<1024xf32> to vector<1x1024xf32>
    %c0_18 = arith.constant 0 : index
    %c0_19 = arith.constant 0 : index
    %c0_20 = arith.constant 0 : index
    %29 = vector.load %arg6[%c0_18, %c0_19, %c0_20] : memref<1x1x1024xf32, #tpu.memory_space<vmem>>, vector<1x1x1024xf32>
    %30 = vector.shape_cast %29 : vector<1x1x1024xf32> to vector<1x1024xf32>
    %31 = vector.shape_cast %28 : vector<1x1024xf32> to vector<1x1x1024xf32>
    tpu.vector_store %arg6[%c0_18, %c0_19, %c0_20], %31 {strides = array<i32>} : memref<1x1x1024xf32, #tpu.memory_space<vmem>>, vector<1x1x1024xf32>,
    return
  }
  func.func @transform_0(%arg0: i32) -> (i32, i32, i32) {
    %c0_i32 = arith.constant 0 : i32
    %c0_i32_0 = arith.constant 0 : i32
    %c0_i32_1 = arith.constant 0 : i32
    return %arg0, %c0_i32, %c0_i32_0 : i32, i32, i32
  }
  func.func @transform_1(%arg0: i32) -> (i32, i32) {
    %c0_i32 = arith.constant 0 : i32
    %c0_i32_0 = arith.constant 0 : i32
    %c0_i32_1 = arith.constant 0 : i32
    return %c0_i32, %c0_i32_0 : i32, i32
  }
  func.func @transform_2(%arg0: i32) -> (i32, i32) {
    %c0_i32 = arith.constant 0 : i32
    %c0_i32_0 = arith.constant 0 : i32
    %c0_i32_1 = arith.constant 0 : i32
    return %c0_i32, %c0_i32_0 : i32, i32
  }
  func.func @transform_3(%arg0: i32) -> (i32, i32) {
    %c0_i32 = arith.constant 0 : i32
    %c0_i32_0 = arith.constant 0 : i32
    %c0_i32_1 = arith.constant 0 : i32
    return %c0_i32, %c0_i32_0 : i32, i32
  }
  func.func @transform_4(%arg0: i32) -> (i32, i32) {
    %c0_i32 = arith.constant 0 : i32
    %c0_i32_0 = arith.constant 0 : i32
    %c0_i32_1 = arith.constant 0 : i32
    return %c0_i32, %c0_i32_0 : i32, i32
  }
  func.func @transform_5(%arg0: i32) -> (i32, i32, i32) {
    %c0_i32 = arith.constant 0 : i32
    %c0_i32_0 = arith.constant 0 : i32
    %c0_i32_1 = arith.constant 0 : i32
    return %arg0, %c0_i32, %c0_i32_0 : i32, i32, i32
  }
}

module attributes {stable_mosaic.version = 11 : i64} {
  func.func @_reverb_mix_kernel(%arg0: i32, %arg1: memref<2x1xf32, #tpu.memory_space<smem>>, %arg2: memref<1x8x128xf32, #tpu.memory_space<vmem>>, %arg3: memref<1x8x1152xf32, #tpu.memory_space<vmem>>, %arg4: memref<1x1152x128xbf16, #tpu.memory_space<vmem>>, %arg5: memref<1x8x128xf32, #tpu.memory_space<vmem>>) attributes {dimension_semantics = [#tpu.dimension_semantics<parallel>], iteration_bounds = array<i64: 2>, scalar_prefetch = 0 : i64, scratch_operands = 0 : i64, tpu.core_type = #tpu.core_type<tc>, window_params = [{transform_indices = @transform_0, window_bounds = array<i64: 2, 1>}, {transform_indices = @transform_1, window_bounds = array<i64: 1, 8, 128>}, {transform_indices = @transform_2, window_bounds = array<i64: 1, 8, 1152>}, {transform_indices = @transform_3, window_bounds = array<i64: 1, 1152, 128>}, {transform_indices = @transform_4, window_bounds = array<i64: 1, 8, 128>}]} {
    %c0 = arith.constant 0 : index
    %c0_0 = arith.constant 0 : index
    %c0_1 = arith.constant 0 : index
    %0 = vector.load %arg3[%c0, %c0_0, %c0_1] : memref<1x8x1152xf32, #tpu.memory_space<vmem>>, vector<1x8x1152xf32>
    %1 = vector.shape_cast %0 : vector<1x8x1152xf32> to vector<8x1152xf32>
    %2 = arith.truncf %1 : vector<8x1152xf32> to vector<8x1152xbf16>
    %c0_2 = arith.constant 0 : index
    %c0_3 = arith.constant 0 : index
    %c0_4 = arith.constant 0 : index
    %3 = vector.load %arg4[%c0_2, %c0_3, %c0_4] : memref<1x1152x128xbf16, #tpu.memory_space<vmem>>, vector<1x1152x128xbf16>
    %4 = vector.shape_cast %3 : vector<1x1152x128xbf16> to vector<1152x128xbf16>
    %cst = arith.constant dense<0.000000e+00> : vector<8x128xf32>
    %5 = tpu.matmul %2, %4, %cst {dimension_numbers = #tpu.dot_dimension_numbers<[1], [0], [0], [1], [0, 0, 1, 1], [], []>} : vector<8x1152xbf16>, vector<1152x128xbf16>, vector<8x128xf32> -> vector<8x128xf32>
    %6 = arith.index_cast %arg0 : i32 to index
    %c0_5 = arith.constant 0 : index
    %7 = memref.load %arg1[%6, %c0_5] : memref<2x1xf32, #tpu.memory_space<smem>>
    %c0_6 = arith.constant 0 : index
    %c0_7 = arith.constant 0 : index
    %c0_8 = arith.constant 0 : index
    %8 = vector.load %arg2[%c0_6, %c0_7, %c0_8] : memref<1x8x128xf32, #tpu.memory_space<vmem>>, vector<1x8x128xf32>
    %9 = vector.shape_cast %8 : vector<1x8x128xf32> to vector<8x128xf32>
    %10 = vector.broadcast %7 : f32 to vector<8x128xf32>
    %11 = arith.mulf %9, %10 : vector<8x128xf32>
    %cst_9 = arith.constant 1.000000e+00 : f32
    %12 = arith.subf %cst_9, %7 : f32
    %13 = vector.broadcast %12 : f32 to vector<8x128xf32>
    %14 = arith.mulf %5, %13 : vector<8x128xf32>
    %15 = arith.addf %11, %14 : vector<8x128xf32>
    %c0_10 = arith.constant 0 : index
    %c0_11 = arith.constant 0 : index
    %c0_12 = arith.constant 0 : index
    %16 = vector.load %arg5[%c0_10, %c0_11, %c0_12] : memref<1x8x128xf32, #tpu.memory_space<vmem>>, vector<1x8x128xf32>
    %17 = vector.shape_cast %16 : vector<1x8x128xf32> to vector<8x128xf32>
    %18 = vector.shape_cast %15 : vector<8x128xf32> to vector<1x8x128xf32>
    tpu.vector_store %arg5[%c0_10, %c0_11, %c0_12], %18 {strides = array<i32>} : memref<1x8x128xf32, #tpu.memory_space<vmem>>, vector<1x8x128xf32>,
    return
  }
  func.func @transform_0(%arg0: i32) -> (i32, i32) {
    %c0_i32 = arith.constant 0 : i32
    %c0_i32_0 = arith.constant 0 : i32
    %c0_i32_1 = arith.constant 0 : i32
    return %c0_i32, %c0_i32_0 : i32, i32
  }
  func.func @transform_1(%arg0: i32) -> (i32, i32, i32) {
    %c0_i32 = arith.constant 0 : i32
    %c0_i32_0 = arith.constant 0 : i32
    %c0_i32_1 = arith.constant 0 : i32
    return %arg0, %c0_i32, %c0_i32_0 : i32, i32, i32
  }
  func.func @transform_2(%arg0: i32) -> (i32, i32, i32) {
    %c0_i32 = arith.constant 0 : i32
    %c0_i32_0 = arith.constant 0 : i32
    %c0_i32_1 = arith.constant 0 : i32
    return %arg0, %c0_i32, %c0_i32_0 : i32, i32, i32
  }
  func.func @transform_3(%arg0: i32) -> (i32, i32, i32) {
    %c0_i32 = arith.constant 0 : i32
    %c0_i32_0 = arith.constant 0 : i32
    %c0_i32_1 = arith.constant 0 : i32
    return %arg0, %c0_i32, %c0_i32_0 : i32, i32, i32
  }
  func.func @transform_4(%arg0: i32) -> (i32, i32, i32) {
    %c0_i32 = arith.constant 0 : i32
    %c0_i32_0 = arith.constant 0 : i32
    %c0_i32_1 = arith.constant 0 : i32
    return %arg0, %c0_i32, %c0_i32_0 : i32, i32, i32
  }
}

</mosaic_0001>

<bundles_post_ra>
// kernel: audio_model_forward.4
= control target key start
LH: loop header
LB: loop body
LE: loop exit
PB: predicated region body
PF: predicated region fallthrough
CT: control target
= control target key end

     0   :  { %s978_s0 = inlined_call_operand.vmem [shape: f32[2,32,16], index: 0, kind: input, shape index: {}]   ;;  %s979_s1 = inlined_call_operand.vmem [shape: f32[3,32,32], index: 1, kind: input, shape index: {}]   ;;  %s980_s2 = inlined_call_operand.vmem [shape: f32[3,1,32], index: 2, kind: input, shape index: {}]   ;;  %s981_s3 = inlined_call_operand.vmem [shape: f32[32,8], index: 3, kind: input, shape index: {}]   ;;  %s982_s4 = inlined_call_operand.vmem [shape: f32[1,8], index: 4, kind: input, shape index: {}]   ;;  %s983_s5 = inlined_call_operand.hbm [shape: f32[3,32,32], index: 5, kind: input, shape index: {}]   ;;  %s984_s6 = inlined_call_operand.vmem [shape: f32[3,1,32], index: 6, kind: input, shape index: {}]   ;;  %s985_s7 = inlined_call_operand.vmem [shape: f32[32,1], index: 7, kind: input, shape index: {}]   ;;  %s986_s8 = inlined_call_operand.<no memory space> [shape: f32[1,1], index: 8, kind: input, shape index: {}]   ;;  %s987_s9 = inlined_call_operand.vmem [shape: f32[8,1024], index: 9, kind: input, shape index: {}]   ;;  %s988_s10 = inlined_call_operand.vmem [shape: f32[2,1024], index: 10, kind: output, shape index: {0}]   ;;  %s989_s11 = inlined_call_operand.vmem [shape: f32[2,1], index: 11, kind: output, shape index: {1}]  }
   0x1   :  { %v17_v0 = vstv %s986_s8 }
   0x2   :  { %18 = vst [vmem:[#allocation2] sm:$0x1] %v17_v0 }
   0x3   :  { %19 = vsyncpa [#allocation4], 0  ;;  %s34_s21 = sshll.u32 %s983_s5, 4  ;;  %s736_s22 = smov [#allocation3]   ;;  %s35_s21 = int_to_ptr.hbm [resolvable:$true] %s34_s21 }
   0x4   :  { %s36_s23 = sshll.u32 %s736_s22, 4  ;;  %s737_s24 = smov 128   ;;  %s37_s23 = int_to_ptr.vmem [resolvable:$true] %s36_s23 }
   0x5   :  { %s738_s25 = smov 8  }
   0x6   :  { %42 = dma.hbm_to_vmem [thread:$0]  %s35_s21, 1536, %s37_s23, [#allocation4], %s737_s24, %s737_s24, %s738_s25  }
   0x7   :  { %734 = dma.done.wait [#allocation4], 1536  }
   0x8   :  { %735 = vsyncadd [#allocation4], 4294965760  ;;  %vm63_vm0 = vcmask 130048   ;;  %v59_v1 = vld [vmem:[%s978_s0 + $0x20] sm:$0xff]  ;;  %v57_v3 = vld [vmem:[%s978_s0 + $0x10] sm:$0xff]  ;;  %v739_v18 = vmov 16.0   ;;  %v119_v30 = vlaneseq }
   0x9   :  { %v55_v2 = vld [vmem:[%s978_s0] sm:$0xff]  ;;  %v76_v4 = vsel %vm63_vm0, %v59_v1, 0.0  ;;  %v70_v6 = vsel %vm63_vm0, %v57_v3, 0.0  ;;  %v60_v7 = vld [vmem:[%s978_s0 + $0x28] sm:$0xff]  ;;  %v61_v9 = vld [vmem:[%s978_s0 + $0x30] sm:$0xff]  ;;  %700 = vrcp.f32 %v739_v18  ;;  %vm124_vm2 = vcmask 130112  }
   0xa   :  { %v64_v5 = vsel %vm63_vm0, %v55_v2, 0.0  ;;  %77 = vadd.xlane.f32.xlu1 %v76_v4  ;;  %71 = vadd.xlane.f32.xlu2 %v70_v6  ;;  %v56_v8 = vld [vmem:[%s978_s0 + $0x8] sm:$0xff]  ;;  %v79_v10 = vsel %vm63_vm0, %v60_v7, 0.0  ;;  %v82_v12 = vsel %vm63_vm0, %v61_v9, 0.0  ;;  %v62_v13 = vld [vmem:[%s978_s0 + $0x38] sm:$0xff]  ;;  %v105_v19 = vld [vmem:[%s979_s1 + $0x10] sm:$0xff] }
   0xb   :  { %65 = vadd.xlane.f32.xlu0 %v64_v5  ;;  %v67_v11 = vsel %vm63_vm0, %v56_v8, 0.0  ;;  %v58_v14 = vld [vmem:[%s978_s0 + $0x18] sm:$0xff]  ;;  %v85_v15 = vsel %vm63_vm0, %v62_v13, 0.0  ;;  %v104_v20 = vld [vmem:[%s979_s1 + $0x8] sm:$0xff]  ;;  %v103_v21 = vld [vmem:[%s979_s1] sm:$0xff]  ;;  %v120_v32 = vand.u32 127, %v119_v30 }
   0xc   :  { %v73_v16 = vsel %vm63_vm0, %v58_v14, 0.0  ;;  %v106_v17 = vld [vmem:[%s979_s1 + $0x18] sm:$0xff]  ;;  %vm128_vm3 = vcmask 195712   ;;  %vm132_vm4 = vcmask 261312   ;;  %vm141_vm5 = vcmask 1041409   ;;  %v663_v1 = vld [vmem:[%s979_s1 + $0x30] sm:$0xff] }
   0xd   :  { %158 = vmatpush.msra.mxu0 %v106_v17  ;;  %v664_v23 = vld [vmem:[%s979_s1 + $0x38] sm:$0xff]  ;;  %v122_v36 = vadd.s32 4294967288, %v120_v32  ;;  %v126_v45 = vadd.s32 4294967280, %v120_v32  ;;  %v130_v49 = vadd.s32 4294967272, %v120_v32  ;;  %vm143_vm6 = vcmask 261120   ;;  %v662_v2 = vld [vmem:[%s979_s1 + $0x28] sm:$0xff] }
   0xe   :  { %194 = vmatpush.msra.mxu1 %v664_v23  ;;  %v661_v3 = vld [vmem:[%s979_s1 + $0x20] sm:$0xff]  ;;  %v670_v4 = vld [vmem:[%s979_s1 + $0x58] sm:$0xff]  ;;  %vm272_vm10 = vcmask 58368   ;;  %vm305_vm15 = vcmask 64512   ;;  %vm483_vm0 = vcmask 1041408  }
   0xf   :  { %159 = vmatpush.msra.mxu0 %v105_v19  ;;  %v701_v22 = vpop.eup %700  ;;  %230 = vmatpush.msra.mxu2 %v670_v4  ;;  %v692_v5 = vld [vmem:[%s980_s2] ss:$0 sm:$0xff]  ;;  %v244_v13 = vld [vmem:[%s981_s3 + $0x18] sm:$0xff]  ;;  %v693_v14 = vld [vmem:[%s980_s2 + $0x1] ss:$0 sm:$0xff] }
  0x10   :  { %v89_v24 = vmul.f32 16.0, %v701_v22  ;;  %vm93_vm1 = vweird.f32 %v701_v22  ;;  %195 = vmatpush.msra.mxu1 %v663_v1  ;;  %264 = vmatpush.msra.mxu3 %v244_v13  ;;  %v243_v19 = vld [vmem:[%s981_s3 + $0x10] sm:$0xff]  ;;  %v567_v1 = vld [vmem:[#allocation3 + $0x58] sm:$0xff] }
  0x11   :  { %160 = vmatpush.msra.mxu0 %v104_v20  ;;  %v242_v20 = vld [vmem:[%s981_s3 + $0x8] sm:$0xff]  ;;  %v696_v13 = vld [vmem:[%s984_s6] ss:$0 sm:$0xff] }
  0x12   :  { %80 = vadd.xlane.f32.xlu1 %v79_v10  ;;  %83 = vadd.xlane.f32.xlu2 %v82_v12  ;;  %v90_v25 = vsub.f32 1.0, %v89_v24  ;;  %v669_v10 = vld [vmem:[%s979_s1 + $0x50] sm:$0xff]  ;;  %v667_v12 = vld [vmem:[%s979_s1 + $0x40] sm:$0xff] }
  0x13   :  { %68 = vadd.xlane.f32.xlu0 %v67_v11  ;;  %161 = vmatpush.msra.mxu0 %v103_v21  ;;  %v668_v11 = vld [vmem:[%s979_s1 + $0x48] sm:$0xff]  ;;  %v241_v21 = vld [vmem:[%s981_s3] sm:$0xff] }
  0x14   :  { %v91_v26 = vmul.f32 %v701_v22, %v90_v25  ;;  %196 = vmatpush.msra.mxu1 %v662_v2  ;;  %231 = vmatpush.msra.mxu2 %v669_v10 }
  0x15   :  { %265 = vmatpush.msra.mxu3 %v243_v19 }
  0x16   :  { %v92_v31 = vadd.f32 %v701_v22, %v91_v26  ;;  %197 = vmatpush.msra.mxu1 %v661_v3  ;;  %232 = vmatpush.msra.mxu2 %v668_v11 }
  0x17   :  { %266 = vmatpush.msra.mxu3 %v242_v20 }
  0x18   :  { %v94_v33 = vsel %vm93_vm1, %v701_v22, %v92_v31  ;;  %233 = vmatpush.msra.mxu2 %v667_v12  ;;  %v694_v22 = vld [vmem:[%s980_s2 + $0x2] ss:$0 sm:$0xff]  ;;  %vm485_vm1 = vcmask 1045508  }
  0x19   :  { %267 = vmatpush.msra.mxu3 %v241_v21 }
  0x1a   :  { %86 = vadd.xlane.f32.xlu1 %v85_v15 }
  0x1b   :  { %74 = vadd.xlane.f32.xlu0 %v73_v16 }
  0x7d   :  { %v78_v27 = vpop.xlane.xlu1 %77  ;;  %v72_v29 = vpop.xlane.xlu2 %71 }
  0x7e   :  { %v66_v28 = vpop.xlane.xlu0 %65  ;;  %v99_v40 = vmul.f32 %v94_v33, %v78_v27  ;;  %v97_v46 = vmul.f32 %v94_v33, %v72_v29  ;;  %v695_v27 = vld [vmem:[%s982_s4] ss:$0 sm:$0xff] }
  0x7f   :  { %v95_v41 = vmul.f32 %v94_v33, %v66_v28 }
  0x80   :  { %v134_v47 = vperm.slane %v99_v40, %v120_v32  ;;  %v127_v57 = vperm.slane %v97_v46, %v126_v45  ;;  %v301_v40 = vld [vmem:[%s987_s9 + $0x20] sm:$0xff] }
  0x81   :  { %v121_v48 = vperm.slane %v95_v41, %v120_v32  ;;  %v302_v41 = vld [vmem:[%s987_s9 + $0x28] sm:$0xff] }
  0x85   :  { %v81_v34 = vpop.xlane.xlu1 %80  ;;  %v84_v39 = vpop.xlane.xlu2 %83 }
  0x86   :  { %v69_v35 = vpop.xlane.xlu0 %68  ;;  %v100_v37 = vmul.f32 %v94_v33, %v81_v34  ;;  %v101_v42 = vmul.f32 %v94_v33, %v84_v39  ;;  %v300_v39 = vld [vmem:[%s987_s9 + $0x18] sm:$0xff] }
  0x87   :  { %v96_v38 = vmul.f32 %v94_v33, %v69_v35  ;;  %384 = vmatpush.msrb.mxu3 %v300_v39 }
  0x88   :  { %v135_v43 = vperm.slane %v100_v37, %v122_v36  ;;  %v137_v50 = vperm.slane %v101_v42, %v126_v45  ;;  %v298_v37 = vld [vmem:[%s987_s9 + $0x8] sm:$0xff]  ;;  %v303_v42 = vld [vmem:[%s987_s9 + $0x30] sm:$0xff] }
  0x89   :  { %v123_v44 = vperm.slane %v96_v38, %v122_v36  ;;  %v297_v36 = vld [vmem:[%s987_s9] sm:$0xff]  ;;  %v299_v38 = vld [vmem:[%s987_s9 + $0x10] sm:$0xff]  ;;  %344 = vmatpush.msrb.mxu1 %v298_v37 }
  0x8a   :  { %v136_v53 = vsel %vm124_vm2, %v135_v43, %v134_v47  ;;  %324 = vmatpush.msrb.mxu0 %v297_v36  ;;  %364 = vmatpush.msrb.mxu2 %v299_v38  ;;  %v304_v43 = vld [vmem:[%s987_s9 + $0x38] sm:$0xff]  ;;  %v600_v36 = vld [vmem:[%s985_s7 + $0x8] sm:$0xff]  ;;  %v599_v37 = vld [vmem:[%s985_s7] sm:$0xff] }
  0x8b   :  { %v125_v54 = vsel %vm124_vm2, %v123_v44, %v121_v48  ;;  %v138_v61 = vsel %vm128_vm3, %v137_v50, %v136_v53  ;;  %vm487_vm2 = vcmask 1043456   ;;  %v698_v38 = vld [vmem:[%s984_s6 + $0x2] ss:$0 sm:$0xff] }
  0x8c   :  { %v129_v60 = vsel %vm128_vm3, %v127_v57, %v125_v54  ;;  %v498_v57 = vld [vmem:[#allocation3 + $0x10] sm:$0xff] }
  0x8d   :  { %v87_v51 = vpop.xlane.xlu1 %86 }
  0x8e   :  { %v75_v52 = vpop.xlane.xlu0 %74  ;;  %v102_v55 = vmul.f32 %v94_v33, %v87_v51 }
  0x8f   :  { %v98_v56 = vmul.f32 %v94_v33, %v75_v52 }
  0x90   :  { %v139_v58 = vperm.slane %v102_v55, %v130_v49 }
  0x91   :  { %v131_v59 = vperm.slane %v98_v56, %v130_v49  ;;  %v499_v56 = vld [vmem:[#allocation3 + $0x18] sm:$0xff] }
  0x92   :  { %v140_v63 = vsel %vm132_vm4, %v139_v58, %v138_v61  ;;  %v497_v58 = vld [vmem:[#allocation3 + $0x8] sm:$0xff]  ;;  %v530_v61 = vld [vmem:[#allocation3 + $0x30] sm:$0xff] }
  0x93   :  { %v133_v62 = vsel %vm132_vm4, %v131_v59, %v129_v60  ;;  %v496_v59 = vld [vmem:[#allocation3] sm:$0xff]  ;;  %v531_v60 = vld [vmem:[#allocation3 + $0x38] sm:$0xff] }
  0x94   :  { %v853_v0 = vsel %vm141_vm5, %v140_v63, %v133_v62  ;;  %v529_v62 = vld [vmem:[#allocation3 + $0x28] sm:$0xff]  ;;  %v528_v63 = vld [vmem:[#allocation3 + $0x20] sm:$0xff] }
  0x95   :  { %660 = vmatmul.msk.f32.vlgmr.msra.gmra.mxu0 %vm143_vm6, %v853_v0 }
  0x96   :  { %404 = vmatpush.msra.mxu0 %v301_v40 }
 0x112   :  { %v163_v6 = vpop.f32.mrf.mxu0 }
 0x113   :  { %v164_v7 = vadd.f32 %v692_v5, %v163_v6 }
 0x115   :  { %v167_v8 = vmul.f32 0.2, %v164_v7  ;;  %vm166_vm7 = vcmp.gt.f32.partialorder %v164_v7, 0.0 }
 0x117   :  { %v168_v9 = vsel %vm166_vm7, %v164_v7, %v167_v8 }
 0x118   :  { %666 = vmatmul.msk.f32.vlgmr.msra.gmra.mxu1 %vm143_vm6, %v168_v9 }
 0x119   :  { %424 = vmatpush.msra.mxu1 %v302_v41 }
 0x195   :  { %v199_v15 = vpop.f32.mrf.mxu1 }
 0x196   :  { %v200_v16 = vadd.f32 %v693_v14, %v199_v15 }
 0x198   :  { %v203_v17 = vmul.f32 0.2, %v200_v16  ;;  %vm202_vm8 = vcmp.gt.f32.partialorder %v200_v16, 0.0 }
 0x19a   :  { %v204_v18 = vsel %vm202_vm8, %v200_v16, %v203_v17 }
 0x19b   :  { %672 = vmatmul.msk.f32.vlgmr.msra.gmra.mxu2 %vm143_vm6, %v204_v18 }
 0x19c   :  { %444 = vmatpush.msra.mxu2 %v303_v42 }
 0x21e   :  { %v235_v23 = vpop.f32.mrf.mxu2 }
 0x21f   :  { %v236_v24 = vadd.f32 %v694_v22, %v235_v23 }
 0x221   :  { %v239_v25 = vmul.f32 0.2, %v236_v24  ;;  %vm238_vm9 = vcmp.gt.f32.partialorder %v236_v24, 0.0 }
 0x223   :  { %v240_v26 = vsel %vm238_vm9, %v236_v24, %v239_v25 }
 0x224   :  { %673 = vmatmul.msk.f32.vlgmr.msra.gmra.mxu3 %vm143_vm6, %v240_v26  ;;  %v566_v26 = vld [vmem:[#allocation3 + $0x50] sm:$0xff] }
 0x225   :  { %464 = vmatpush.msra.mxu3 %v304_v43  ;;  %v699_v43 = vld [vmem:[#allocation2] ss:$0 sm:$0xff] }
 0x2a7   :  { %v269_v28 = vpop.f32.mrf.mxu3 }
 0x2a8   :  { %v270_v29 = vadd.f32 %v695_v27, %v269_v28  ;;  %v565_v27 = vld [vmem:[#allocation3 + $0x48] sm:$0xff]  ;;  %v564_v28 = vld [vmem:[#allocation3 + $0x40] sm:$0xff] }
 0x2aa   :  { %v273_v30 = vsel %vm272_vm10, %v270_v29, -inf }
 0x2ab   :  { %274 = vmax.xlane.f32.xlu2 %v273_v30  ;;  %v697_v30 = vld [vmem:[%s984_s6 + $0x1] ss:$0 sm:$0xff] }
 0x31e   :  { %v275_v31 = vpop.xlane.xlu2 %274 }
 0x31f   :  { %v276_v32 = vsub.f32 %v270_v29, %v275_v31  ;;  %v602_v29 = vld [vmem:[%s985_s7 + $0x18] sm:$0xff] }
 0x321   :  { %v277_v33 = vmul.f32 1.442695, %v276_v32 }
 0x323   :  { %702 = vpow2.f32 %v277_v33 }
 0x329   :  { %v703_v34 = vpop.eup %702 }
 0x32a   :  { %v279_v35 = vsel %vm272_vm10, %v703_v34, 0.0 }
 0x32b   :  { %280 = vadd.xlane.f32.xlu0 %v279_v35  ;;  %v601_v35 = vld [vmem:[%s985_s7 + $0x10] sm:$0xff] }
 0x39e   :  { %v281_v44 = vpop.xlane.xlu0 %280 }
 0x39f   :  { %704 = vrcp.f32 %v281_v44  ;;  %v293_v48 = vand.u32 2147483648, %v281_v44  ;;  %v291_v50 = vand.u32 2147483647, %v281_v44  ;;  %vm287_vm12 = vweird.f32 %v281_v44 }
 0x3a1   :  { %v294_v52 = vor.u32 1.1754944e-38, %v293_v48  ;;  %vm292_vm14 = vcmp.eq.f32.partialorder %v291_v50, 8.507059e+37 }
 0x3a5   :  { %v705_v45 = vpop.eup %704 }
 0x3a6   :  { %v283_v46 = vmul.f32 %v705_v45, %v281_v44  ;;  %vm288_vm11 = vweird.f32 %v705_v45 }
 0x3a7   :  { %vm289_vm13 = vmor %vm287_vm12, %vm288_vm11 }
 0x3a8   :  { %v284_v47 = vsub.f32 1.0, %v283_v46 }
 0x3aa   :  { %v285_v49 = vmul.f32 %v705_v45, %v284_v47 }
 0x3ac   :  { %v286_v51 = vadd.f32 %v705_v45, %v285_v49 }
 0x3ae   :  { %v290_v53 = vsel %vm289_vm13, %v705_v45, %v286_v51 }
 0x3af   :  { %v295_v54 = vsel %vm292_vm14, %v294_v52, %v290_v53 }
 0x3b0   :  { %v296_v55 = vmul.f32 %v703_v34, %v295_v54 }
 0x3b2   :  { %674 = vmatmul.msk.f32.vlgmr.msrb.gmra.mxu0 %vm305_vm15, %v296_v55  ;;  %675 = vmatmul.msk.f32.vlgmr.msrb.gmra.mxu1 %vm305_vm15, %v296_v55 }
 0x3b3   :  { %676 = vmatmul.msk.f32.vlgmr.msrb.gmra.mxu2 %vm305_vm15, %v296_v55  ;;  %677 = vmatmul.msk.f32.vlgmr.msrb.gmra.mxu3 %vm305_vm15, %v296_v55 }
 0x3b4   :  { %516 = vmatpush.msrb.mxu0 %v499_v56  ;;  %552 = vmatpush.msrb.mxu1 %v531_v60 }
 0x3b5   :  { %588 = vmatpush.msrb.mxu2 %v567_v1  ;;  %622 = vmatpush.msrb.mxu3 %v602_v29 }
 0x3b6   :  { %517 = vmatpush.msrb.mxu0 %v498_v57  ;;  %553 = vmatpush.msrb.mxu1 %v530_v61 }
 0x3b7   :  { %589 = vmatpush.msrb.mxu2 %v566_v26  ;;  %623 = vmatpush.msrb.mxu3 %v601_v35 }
 0x3b8   :  { %518 = vmatpush.msrb.mxu0 %v497_v58  ;;  %554 = vmatpush.msrb.mxu1 %v529_v62 }
 0x3b9   :  { %590 = vmatpush.msrb.mxu2 %v565_v27  ;;  %624 = vmatpush.msrb.mxu3 %v600_v36 }
 0x3ba   :  { %678 = vmatmul.msk.f32.vlgmr.msra.gmra.mxu0 %vm305_vm15, %v296_v55  ;;  %679 = vmatmul.msk.f32.vlgmr.msra.gmra.mxu1 %vm305_vm15, %v296_v55 }
 0x3bb   :  { %680 = vmatmul.msk.f32.vlgmr.msra.gmra.mxu2 %vm305_vm15, %v296_v55  ;;  %681 = vmatmul.msk.f32.vlgmr.msra.gmra.mxu3 %vm305_vm15, %v296_v55 }
 0x3bc   :  { %519 = vmatpush.msrb.mxu0 %v496_v59  ;;  %555 = vmatpush.msrb.mxu1 %v528_v63 }
 0x3bd   :  { %591 = vmatpush.msrb.mxu2 %v564_v28  ;;  %625 = vmatpush.msrb.mxu3 %v599_v37 }
 0x3c2   :  { %682 = vmatmul.msk.f32.vlgmr.msrb.gmra.mxu0 %vm143_vm6, %v853_v0 }
 0x42f   :  { %v326_v2 = vpop.f32.mrf.mxu0  ;;  %v346_v3 = vpop.f32.mrf.mxu1 }
 0x430   :  { %v477_v4 = vrot.slane %v346_v3, 6 }
 0x432   :  { %v484_v9 = vsel %vm483_vm0, %v326_v2, %v477_v4 }
 0x436   :  { %v366_v5 = vpop.f32.mrf.mxu2  ;;  %v386_v6 = vpop.f32.mrf.mxu3 }
 0x437   :  { %v478_v7 = vrot.slane %v366_v5, 4  ;;  %v479_v8 = vrot.slane %v386_v6, 2  ;;  %v406_v0 = vpop.f32.mrf.mxu0  ;;  %v426_v12 = vpop.f32.mrf.mxu1 }
 0x438   :  { %v480_v14 = vrot.slane %v426_v12, 6 }
 0x439   :  { %v486_v10 = vsel %vm485_vm1, %v478_v7, %v479_v8 }
 0x43a   :  { %v488_v11 = vsel %vm487_vm2, %v484_v9, %v486_v10  ;;  %v489_v21 = vsel %vm483_vm0, %v406_v0, %v480_v14 }
 0x43b   :  { %494 = vst [vmem:[%s988_s10] sm:$0xff] %v488_v11 }
 0x43e   :  { %v446_v15 = vpop.f32.mrf.mxu2  ;;  %v466_v16 = vpop.f32.mrf.mxu3 }
 0x43f   :  { %v481_v17 = vrot.slane %v446_v15, 4  ;;  %v482_v18 = vrot.slane %v466_v16, 2  ;;  %v521_v19 = vpop.f32.mrf.mxu0 }
 0x440   :  { %v522_v20 = vadd.f32 %v696_v13, %v521_v19 }
 0x441   :  { %v490_v22 = vsel %vm485_vm1, %v481_v17, %v482_v18 }
 0x442   :  { %v491_v23 = vsel %vm487_vm2, %v489_v21, %v490_v22  ;;  %vm524_vm3 = vcmp.gt.f32.partialorder %v522_v20, 0.0  ;;  %v525_v24 = vmul.f32 0.2, %v522_v20 }
 0x443   :  { %495 = vst [vmem:[%s988_s10 + $0x8] sm:$0xff] %v491_v23 }
 0x444   :  { %v526_v25 = vsel %vm524_vm3, %v522_v20, %v525_v24 }
 0x445   :  { %684 = vmatmul.msk.f32.vlgmr.msrb.gmra.mxu1 %vm143_vm6, %v526_v25 }
 0x4c2   :  { %v557_v31 = vpop.f32.mrf.mxu1 }
 0x4c3   :  { %v558_v32 = vadd.f32 %v697_v30, %v557_v31 }
 0x4c5   :  { %vm560_vm4 = vcmp.gt.f32.partialorder %v558_v32, 0.0  ;;  %v561_v33 = vmul.f32 0.2, %v558_v32 }
 0x4c7   :  { %v562_v34 = vsel %vm560_vm4, %v558_v32, %v561_v33 }
 0x4c8   :  { %686 = vmatmul.msk.f32.vlgmr.msrb.gmra.mxu2 %vm143_vm6, %v562_v34 }
 0x54b   :  { %v593_v39 = vpop.f32.mrf.mxu2 }
 0x54c   :  { %v594_v40 = vadd.f32 %v698_v38, %v593_v39 }
 0x54e   :  { %vm596_vm5 = vcmp.gt.f32.partialorder %v594_v40, 0.0  ;;  %v597_v41 = vmul.f32 0.2, %v594_v40 }
 0x550   :  { %v598_v42 = vsel %vm596_vm5, %v594_v40, %v597_v41 }
 0x551   :  { %687 = vmatmul.msk.f32.vlgmr.msrb.gmra.mxu3 %vm143_vm6, %v598_v42  ;;  %vm649_vm6 = vcmask 1024  }
 0x5d4   :  { %v627_v44 = vpop.f32.mrf.mxu3 }
 0x5d5   :  { %v628_v45 = vadd.f32 %v699_v43, %v627_v44 }
 0x5d7   :  { %v630_v46 = vsub.f32 0.0, %v628_v45 }
 0x5d9   :  { %v631_v47 = vmul.f32 1.442695, %v630_v46 }
 0x5db   :  { %706 = vpow2.f32 %v631_v47 }
 0x5e1   :  { %v707_v48 = vpop.eup %706 }
 0x5e2   :  { %v633_v49 = vadd.f32 1.0, %v707_v48 }
 0x5e4   :  { %708 = vrcp.f32 %v633_v49  ;;  %v645_v53 = vand.u32 2147483648, %v633_v49  ;;  %v643_v55 = vand.u32 2147483647, %v633_v49  ;;  %vm639_vm8 = vweird.f32 %v633_v49 }
 0x5e6   :  { %v646_v57 = vor.u32 1.1754944e-38, %v645_v53  ;;  %vm644_vm10 = vcmp.eq.f32.partialorder %v643_v55, 8.507059e+37 }
 0x5ea   :  { %v709_v50 = vpop.eup %708 }
 0x5eb   :  { %v635_v51 = vmul.f32 %v709_v50, %v633_v49  ;;  %vm640_vm7 = vweird.f32 %v709_v50 }
 0x5ec   :  { %vm641_vm9 = vmor %vm639_vm8, %vm640_vm7 }
 0x5ed   :  { %v636_v52 = vsub.f32 1.0, %v635_v51 }
 0x5ef   :  { %v637_v54 = vmul.f32 %v709_v50, %v636_v52 }
 0x5f1   :  { %v638_v56 = vadd.f32 %v709_v50, %v637_v54 }
 0x5f3   :  { %v642_v58 = vsel %vm641_vm9, %v709_v50, %v638_v56 }
 0x5f4   :  { %v647_v59 = vsel %vm644_vm10, %v646_v57, %v642_v58 }
 0x5f5   :  { %650 = vst.msk [vmem:[%s989_s11] sm:$0x3] %vm649_vm6, %v647_v59 }
 0x5f6   :  { %659 = vsyncpa [#allocation4], 1 }

// kernel: reverse.0
= control target key start
LH: loop header
LB: loop body
LE: loop exit
PB: predicated region body
PF: predicated region fallthrough
CT: control target
= control target key end

     0   :  { %v57_v4 = vlaneseq  ;;  %v63_v5 = vld [vmem:[#allocation0 + $0x7] ss:$-1 sm:$0xff]  ;;  %v91_v6 = vld [vmem:[#allocation0 + $0x1f] ss:$-1 sm:$0xff]  ;;  %s200_s0 = inlined_call_operand.vmem [shape: f32[2,64,15], index: 0, kind: input, shape index: {}]   ;;  %s201_s1 = inlined_call_operand.vmem [shape: f32[2,64,15], index: 1, kind: output, shape index: {}]  }
   0x1   :  { %v37_v0 = vld [vmem:[%s200_s0] sm:$0xff]  ;;  %v39_v1 = vld [vmem:[%s200_s0 + $0x8] sm:$0xff]  ;;  %v41_v2 = vld [vmem:[%s200_s0 + $0x10] sm:$0xff]  ;;  %v64_v7 = vrot.slane %v63_v5, 1  ;;  %v92_v8 = vrot.slane %v91_v6, 1 }
   0x2   :  { %38 = vst [vmem:[#allocation0 + $0x8] sm:$0xff] %v37_v0  ;;  %v43_v3 = vld [vmem:[%s200_s0 + $0x18] sm:$0xff]  ;;  %v58_v9 = vshrl.u32 %v57_v4, 7 }
   0x3   :  { %40 = vst [vmem:[#allocation0 + $0x10] sm:$0xff] %v39_v1 }
   0x4   :  { %42 = vst [vmem:[#allocation0 + $0x20] sm:$0xff] %v41_v2  ;;  %vm59_vm0 = vcmp.lt.s32.totalorder %v58_v9, 7 }
   0x5   :  { %44 = vst [vmem:[#allocation0 + $0x28] sm:$0xff] %v43_v3 }
   0x6   :  { %65 = vst [vmem:[#allocation1 + $0x8] sm:$0xff] %v64_v7 }
   0x7   :  { %93 = vst [vmem:[#allocation1 + $0x18] sm:$0xff] %v92_v8 }
   0x9   :  { %v50_v10 = vld [vmem:[#allocation0 + $0xf] ss:$-1 sm:$0xff] }
   0xa   :  { %v68_v11 = vld [vmem:[#allocation0 + $0xf] ss:$-1 sm:$0xff]  ;;  %v51_v12 = vrot.slane %v50_v10, 1  ;;  %v55_v13 = vld [vmem:[#allocation0 + $0x17] ss:$-1 sm:$0xff] }
   0xb   :  { %v69_v14 = vrot.slane %v68_v11, 1  ;;  %v56_v15 = vrot.slane %v55_v13, 1  ;;  %v78_v16 = vld [vmem:[#allocation0 + $0x27] ss:$-1 sm:$0xff] }
   0xc   :  { %v96_v17 = vld [vmem:[#allocation0 + $0x27] ss:$-1 sm:$0xff]  ;;  %52 = vst [vmem:[#allocation1] sm:$0xff] %v51_v12  ;;  %v79_v18 = vrot.slane %v78_v16, 1  ;;  %v83_v19 = vld [vmem:[#allocation0 + $0x2f] ss:$-1 sm:$0xff] }
   0xd   :  { %60 = vst.msk [vmem:[#allocation1] sm:$0xff] %vm59_vm0, %v56_v15  ;;  %v84_v20 = vrot.slane %v83_v19, 1  ;;  %v97_v21 = vrot.slane %v96_v17, 1 }
   0xe   :  { %73 = vst.msk [vmem:[#allocation1 + $0x8] sm:$0xff] %vm59_vm0, %v69_v14 }
   0xf   :  { %80 = vst [vmem:[#allocation1 + $0x10] sm:$0xff] %v79_v18 }
  0x10   :  { %88 = vst.msk [vmem:[#allocation1 + $0x10] sm:$0xff] %vm59_vm0, %v84_v20 }
  0x11   :  { %101 = vst.msk [vmem:[#allocation1 + $0x18] sm:$0xff] %vm59_vm0, %v97_v21 }
  0x14   :  { %v136_v22 = vld [vmem:[#allocation1] sm:$0xff] }
  0x15   :  { %137 = vst [vmem:[%s201_s1] sm:$0xff] %v136_v22  ;;  %v138_v23 = vld [vmem:[#allocation1 + $0x8] sm:$0xff] }
  0x16   :  { %139 = vst [vmem:[%s201_s1 + $0x8] sm:$0xff] %v138_v23 }
  0x17   :  { %v140_v24 = vld [vmem:[#allocation1 + $0x10] sm:$0xff] }
  0x18   :  { %141 = vst [vmem:[%s201_s1 + $0x10] sm:$0xff] %v140_v24  ;;  %v142_v25 = vld [vmem:[#allocation1 + $0x18] sm:$0xff] }
  0x19   :  { %143 = vst [vmem:[%s201_s1 + $0x18] sm:$0xff] %v142_v25 }

// kernel: audio_model_forward.6
= control target key start
LH: loop header
LB: loop body
LE: loop exit
PB: predicated region body
PF: predicated region fallthrough
CT: control target
= control target key end

     0   :  { %s1363_s30 = smov 0   ;;  %s1625_s0 = inlined_call_operand.vmem [shape: f32[2,32,16], index: 0, kind: input, shape index: {}]   ;;  %s1626_s1 = inlined_call_operand.vmem [shape: f32[32,32], index: 1, kind: input, shape index: {}]   ;;  %s1627_s2 = inlined_call_operand.vmem [shape: f32[32,1], index: 2, kind: input, shape index: {}]   ;;  %s1628_s3 = inlined_call_operand.vmem [shape: f32[2,3,32,32], index: 3, kind: input, shape index: {}]   ;;  %s1629_s4 = inlined_call_operand.vmem [shape: f32[2,32,1], index: 4, kind: input, shape index: {}]   ;;  %s1630_s5 = inlined_call_operand.vmem [shape: f32[17,32], index: 5, kind: input, shape index: {}]   ;;  %s1631_s6 = inlined_call_operand.vmem [shape: f32[17,1], index: 6, kind: input, shape index: {}]   ;;  %s1632_s7 = inlined_call_operand.vmem [shape: f32[3,16,32], index: 7, kind: input, shape index: {}]   ;;  %s1633_s8 = inlined_call_operand.vmem [shape: f32[3,32,64], index: 8, kind: input, shape index: {}]   ;;  %s1634_s9 = inlined_call_operand.vmem [shape: f32[2,17,64], index: 9, kind: output, shape index: {}]  }
   0x1 LB: > { %s1181_s10 = sadd.s32 4294967295, %s1309_s30   ;;  %p1185_p0 = scmp.ge.s32.totalorder %s1309_s30, 1  ;;  %s1309_s30 = sphi %s1363_s30, %s19_s30  }
   0x2   : > { %p287_p1 = scmp.lt.s32.totalorder %s1309_s30, 3 }
   0x4   : > { %p288_p2 = pnand %p1185_p0, %p287_p1 }
   0x5   : > { %p323_p3 = scmp.lt.s32.totalorder (!%p288_p2), %s1181_s10, 1 }
   0x6   : > { %291 = sbr.rel (%p288_p2) target bundleno = 987 (0x3db), region = 56 }
   0xb   : > { %v344_v0 = vld [vmem:[%s1627_s2 + $0x18] sm:$0xff]  ;;  %v342_v1 = vld [vmem:[%s1627_s2 + $0x8] sm:$0xff]  ;;  %v1311_v2 = vmov 0   ;;  %s1636_s10 = smov (!%p323_p3, %s1181_s10), 1  ;;  %v343_v5 = vld [vmem:[%s1627_s2 + $0x10] sm:$0xff]  ;;  %vm365_vm0 = vcmask 261120  }
   0xc   : > { %1300 = vset.pattern.permute.xlu0 %v1311_v2  ;;  %1301 = vset.pattern.permute.xlu1 %v1311_v2  ;;  %s1282_s15 = sshll.u32 %s1636_s10, 5  ;;  %v341_v6 = vld [vmem:[%s1627_s2] sm:$0xff]  ;;  %v340_v10 = vld [vmem:[%s1626_s1 + $0x18] sm:$0xff]  ;;  %v693_v11 = vld [vmem:[%s1629_s4 + $0x8] sm:$0xff]  ;;  %vm515_vm5 = vcmask 130048   ;;  %s1289_s25 = smul.u32 24, %s1636_s10 }
   0xd   : > { %362 = vperm.xlu0 %1300, %v344_v0   ;;  %352 = vperm.xlu1 %1301, %v342_v1   ;;  %s327_s18 = scalar_lea.vmem %s1625_s0, %s1282_s15  ;;  %v337_v9 = vld [vmem:[%s1626_s1] sm:$0xff]  ;;  %v338_v13 = vld [vmem:[%s1626_s1 + $0x8] sm:$0xff]  ;;  %v1275_v14 = vld [vmem:[%s1629_s4 + $0x30] sm:$0xff]  ;;  %vm1121_vm14 = vcmask 523264   ;;  %vm1124_vm15 = vcmask 516096  }
   0xe   : > { %1302 = vset.pattern.permute.xlu2 %v1311_v2  ;;  %v336_v3 = vld [vmem:[%s327_s18 + $0x18] sm:$0xff]  ;;  %v335_v4 = vld [vmem:[%s327_s18 + $0x10] sm:$0xff]  ;;  %v334_v7 = vld [vmem:[%s327_s18 + $0x8] sm:$0xff]  ;;  %s332_s28 = scalar_lea.vmem %s1634_s9, %s1289_s25 }
   0xf   : > { %390 = vmatpush.msra.mxu0 %v336_v3  ;;  %1283 = vmatpush.msra.mxu2 %v336_v3  ;;  %v333_v8 = vld [vmem:[%s327_s18] sm:$0xff]  ;;  %v1274_v15 = vld [vmem:[%s1629_s4 + $0x28] sm:$0xff]  ;;  %v339_v16 = vld [vmem:[%s1626_s1 + $0x10] sm:$0xff] }
  0x10   : > { %v692_v12 = vld [vmem:[%s1629_s4] sm:$0xff]  ;;  %v1206_v36 = vld [vmem:[%s1632_s7 + $0x18] sm:$0xff]  ;;  %v1198_v42 = vld [vmem:[%s1628_s3 + $0x28] sm:$0xff] }
  0x11   : > { %391 = vmatpush.msra.mxu0 %v335_v4  ;;  %1284 = vmatpush.msra.mxu2 %v335_v4  ;;  %v1055_v17 = vld [vmem:[%s1631_s6] sm:$0xff]  ;;  %v420_v43 = vld [vmem:[%s1628_s3 + $0x8] sm:$0xff]  ;;  %v1199_v45 = vld [vmem:[%s1628_s3 + $0x30] sm:$0xff] }
  0x12   : > { %1287 = vmatpush.msra.mxu3 %v1206_v36  ;;  %v1197_v38 = vld [vmem:[%s1628_s3 + $0x20] sm:$0xff]  ;;  %v1216_v44 = vld [vmem:[%s1628_s3 + $0x48] sm:$0xff]  ;;  %v421_v46 = vld [vmem:[%s1628_s3 + $0x10] sm:$0xff] }
  0x13   : > { %392 = vmatpush.msra.mxu0 %v334_v7  ;;  %1285 = vmatpush.msra.mxu2 %v334_v7  ;;  %v419_v40 = vld [vmem:[%s1628_s3] sm:$0xff]  ;;  %v1217_v47 = vld [vmem:[%s1628_s3 + $0x50] sm:$0xff]  ;;  %v1200_v48 = vld [vmem:[%s1628_s3 + $0x38] sm:$0xff] }
  0x14   : > { %v1215_v41 = vld [vmem:[%s1628_s3 + $0x40] sm:$0xff]  ;;  %v422_v49 = vld [vmem:[%s1628_s3 + $0x18] sm:$0xff]  ;;  %v1205_v51 = vld [vmem:[%s1632_s7 + $0x10] sm:$0xff] }
  0x15   : > { %357 = vperm.xlu0 %1300, %v343_v5   ;;  %347 = vperm.xlu1 %1301, %v341_v6   ;;  %v1218_v50 = vld [vmem:[%s1628_s3 + $0x58] sm:$0xff]  ;;  %v465_v52 = vld [vmem:[%s1632_s7 + $0x8] sm:$0xff]  ;;  %v464_v53 = vld [vmem:[%s1632_s7] sm:$0xff] }
  0x16   : > { %393 = vmatpush.msra.mxu0 %v333_v8  ;;  %1286 = vmatpush.msra.mxu2 %v333_v8  ;;  %v1224_v55 = vld [vmem:[%s1632_s7 + $0x28] sm:$0xff]  ;;  %v1223_v57 = vld [vmem:[%s1632_s7 + $0x20] sm:$0xff]  ;;  %v695_v0 = vld [vmem:[%s1629_s4 + $0x18] sm:$0xff] }
  0x17   : > { %1189 = vmatmul.msk.f32.vlgmr.msra.gmra.mxu0 %vm365_vm0, %v337_v9  ;;  %1192 = vmatmul.msk.f32.vlgmr.msra.gmra.mxu2 %vm365_vm0, %v340_v10  ;;  %v694_v2 = vld [vmem:[%s1629_s4 + $0x10] sm:$0xff]  ;;  %v1276_v4 = vld [vmem:[%s1629_s4 + $0x38] sm:$0xff]  ;;  %v1273_v6 = vld [vmem:[%s1629_s4 + $0x20] sm:$0xff] }
  0x18   : > { %1288 = vmatpush.msra.mxu3 %v1205_v51  ;;  %713 = vperm.xlu2 %1302, %v695_v0   ;;  %v1268_v0 = vld [vmem:[%s1633_s8 + $0x58] sm:$0xff] }
  0x1a   : > { %583 = vmatpush.msrb.mxu3 %v465_v52  ;;  %v1248_v52 = vld [vmem:[%s1633_s8 + $0x38] sm:$0xff] }
  0x1c   : > { %584 = vmatpush.msrb.mxu3 %v464_v53  ;;  %v781_v53 = vld [vmem:[%s1633_s8 + $0x18] sm:$0xff] }
  0x1d   : > { %703 = vperm.xlu0 %1300, %v693_v11   ;;  %698 = vperm.xlu1 %1301, %v692_v12  }
  0x1f   : > { %1190 = vmatmul.msk.f32.gmra.mxu0 %vm365_vm0, %v338_v13 }
  0x20   : > { %708 = vperm.xlu2 %1302, %v694_v2   ;;  %v1266_v2 = vld [vmem:[%s1633_s8 + $0x48] sm:$0xff] }
  0x25   : > { %1028 = vperm.xlu0 %1300, %v1275_v14   ;;  %1023 = vperm.xlu1 %1301, %v1274_v15  }
  0x27   : > { %1191 = vmatmul.msk.f32.gmra.mxu0 %vm365_vm0, %v339_v16 }
  0x28   : > { %1033 = vperm.xlu2 %1302, %v1276_v4  }
  0x2d   : > { %1060 = vperm.xlu0 %1300, %v1055_v17  }
  0x30   : > { %1018 = vperm.xlu2 %1302, %v1273_v6  }
  0x72   : > { %v714_v17 = vpop.permute.xlu2 %713 }
  0x7f   : > { %v363_v19 = vpop.permute.xlu0 %362  ;;  %v353_v20 = vpop.permute.xlu1 %352 }
  0x87   : > { %v358_v26 = vpop.permute.xlu0 %357  ;;  %v348_v28 = vpop.permute.xlu1 %347 }
  0x94   : > { %v395_v18 = vpop.f32.mrf.mxu0 }
  0x95   : > { %v396_v30 = vadd.f32 %v395_v18, %v348_v28 }
  0x97   : > { %v411_v34 = vmul.f32 0.2, %v396_v30  ;;  %vm407_vm4 = vcmp.gt.f32.partialorder %v396_v30, 0.0 }
  0x99   : > { %v415_v39 = vsel %vm407_vm4, %v396_v30, %v411_v34  ;;  %v699_v34 = vpop.permute.xlu1 %698 }
  0x9a   : > { %v404_v21 = vpop.f32.mrf.mxu2 }
  0x9b   : > { %v405_v22 = vadd.f32 %v404_v21, %v363_v19 }
  0x9c   : > { %v398_v23 = vpop.f32.mrf.mxu0 }
  0x9d   : > { %v414_v24 = vmul.f32 0.2, %v405_v22  ;;  %vm410_vm1 = vcmp.gt.f32.partialorder %v405_v22, 0.0  ;;  %v399_v27 = vadd.f32 %v398_v23, %v353_v20 }
  0x9f   : > { %v418_v25 = vsel %vm410_vm1, %v405_v22, %v414_v24  ;;  %v412_v32 = vmul.f32 0.2, %v399_v27  ;;  %vm408_vm3 = vcmp.gt.f32.partialorder %v399_v27, 0.0 }
  0xa0   : > { %447 = vmatpush.msra.mxu1 %v418_v25  ;;  %495 = vmatpush.msrb.mxu2 %v418_v25 }
  0xa1   : > { %627 = vmatpush.msrb.mxu0 %v418_v25  ;;  %v416_v37 = vsel %vm408_vm3, %v399_v27, %v412_v32  ;;  %v709_v27 = vpop.permute.xlu2 %708 }
  0xa4   : > { %v401_v29 = vpop.f32.mrf.mxu0 }
  0xa5   : > { %v402_v31 = vadd.f32 %v401_v29, %v358_v26 }
  0xa7   : > { %v413_v33 = vmul.f32 0.2, %v402_v31  ;;  %vm409_vm2 = vcmp.gt.f32.partialorder %v402_v31, 0.0 }
  0xa9   : > { %v417_v35 = vsel %vm409_vm2, %v402_v31, %v413_v33  ;;  %v704_v31 = vpop.permute.xlu0 %703 }
  0xaa   : > { %448 = vmatpush.msra.mxu1 %v417_v35  ;;  %496 = vmatpush.msrb.mxu2 %v417_v35 }
  0xab   : > { %628 = vmatpush.msrb.mxu0 %v417_v35 }
  0xac   : > { %449 = vmatpush.msra.mxu1 %v416_v37  ;;  %497 = vmatpush.msrb.mxu2 %v416_v37 }
  0xad   : > { %629 = vmatpush.msrb.mxu0 %v416_v37 }
  0xae   : > { %450 = vmatpush.msra.mxu1 %v415_v39  ;;  %498 = vmatpush.msrb.mxu2 %v415_v39 }
  0xaf   : > { %630 = vmatpush.msrb.mxu0 %v415_v39  ;;  %1201 = vmatmul.msk.f32.vlgmr.msrb.gmra.mxu2 %vm365_vm0, %v1197_v38 }
  0xb0   : > { %1193 = vmatmul.msk.f32.vlgmr.msra.gmra.mxu1 %vm365_vm0, %v419_v40  ;;  %1219 = vmatmul.msk.f32.vlgmr.msrb.gmra.mxu0 %vm365_vm0, %v1215_v41 }
  0xb1   : > { %542 = vmatpush.msrb.mxu1 %v1206_v36  ;;  %857 = vmatpush.msra.mxu0 %v1248_v52 }
  0xb3   : > { %543 = vmatpush.msrb.mxu1 %v1205_v51  ;;  %v1240_v51 = vld [vmem:[%s1628_s3 + $0x98] sm:$0xff] }
  0xb5   : > { %673 = vmatpush.msra.mxu1 %v1224_v55  ;;  %v780_v55 = vld [vmem:[%s1633_s8 + $0x10] sm:$0xff] }
  0xb7   : > { %1202 = vmatmul.msk.f32.gmra.mxu2 %vm365_vm0, %v1198_v42  ;;  %674 = vmatpush.msra.mxu1 %v1223_v57  ;;  %v779_v57 = vld [vmem:[%s1633_s8 + $0x8] sm:$0xff] }
  0xb8   : > { %1194 = vmatmul.msk.f32.gmra.mxu1 %vm365_vm0, %v420_v43  ;;  %1220 = vmatmul.msk.f32.gmra.mxu0 %vm365_vm0, %v1216_v44  ;;  %v1229_v43 = vld [vmem:[%s1628_s3 + $0x60] sm:$0xff] }
  0xb9   : > { %v1237_v44 = vld [vmem:[%s1628_s3 + $0x80] sm:$0xff] }
  0xbf   : > { %1203 = vmatmul.msk.f32.gmra.mxu2 %vm365_vm0, %v1199_v45 }
  0xc0   : > { %1195 = vmatmul.msk.f32.gmra.mxu1 %vm365_vm0, %v421_v46  ;;  %1221 = vmatmul.msk.f32.gmra.mxu0 %vm365_vm0, %v1217_v47  ;;  %v1230_v46 = vld [vmem:[%s1628_s3 + $0x68] sm:$0xff] }
  0xc1   : > { %v1238_v47 = vld [vmem:[%s1628_s3 + $0x88] sm:$0xff] }
  0xc7   : > { %1204 = vmatmul.msk.f32.gmra.mxu2 %vm365_vm0, %v1200_v48  ;;  %v1231_v48 = vld [vmem:[%s1628_s3 + $0x70] sm:$0xff] }
  0xc8   : > { %1196 = vmatmul.msk.f32.gmra.mxu1 %vm365_vm0, %v422_v49  ;;  %1222 = vmatmul.msk.f32.gmra.mxu0 %vm365_vm0, %v1218_v50  ;;  %v1239_v49 = vld [vmem:[%s1628_s3 + $0x90] sm:$0xff]  ;;  %v1232_v50 = vld [vmem:[%s1628_s3 + $0x78] sm:$0xff] }
 0x12d   : > { %v632_v56 = vpop.f32.mrf.mxu0  ;;  %v452_v63 = vpop.f32.mrf.mxu1 }
 0x132   : > { %v500_v54 = vpop.f32.mrf.mxu2 }
 0x133   : > { %1207 = vmatmul.msk.f32.vlgmr.msrb.gmra.mxu1 %vm515_vm5, %v500_v54  ;;  %v1247_v54 = vld [vmem:[%s1633_s8 + $0x30] sm:$0xff] }
 0x134   : > { %898 = vmatpush.msrb.mxu1 %v781_v53  ;;  %858 = vmatpush.msra.mxu0 %v1247_v54  ;;  %v1053_v53 = vld [vmem:[%s1630_s5 + $0x8] sm:$0xff]  ;;  %v1054_v54 = vld [vmem:[%s1630_s5 + $0x10] sm:$0x1] }
 0x135   : > { %v635_v59 = vpop.f32.mrf.mxu0  ;;  %v455_v3 = vpop.f32.mrf.mxu1 }
 0x136   : > { %899 = vmatpush.msrb.mxu1 %v780_v55  ;;  %v1312_v55 = vmov 0.0  }
 0x137   : > { %1123 = vst.msk [vmem:[%s332_s28 + $0x8] sm:$0xff] %vm1121_vm14, %v1312_v55 }
 0x138   : > { %900 = vmatpush.msrb.mxu1 %v779_v57  ;;  %1125 = vst.msk [vmem:[%s332_s28 + $0x10] sm:$0x1] %vm1124_vm15, %v1312_v55 }
 0x13a   : > { %v503_v58 = vpop.f32.mrf.mxu2 }
 0x13b   : > { %1208 = vmatmul.msk.f32.vlgmr.msra.gmra.mxu3 %vm515_vm5, %v503_v58  ;;  %1225 = vmatmul.msk.f32.vlgmr.msra.gmra.mxu1 %vm515_vm5, %v632_v56  ;;  %v1246_v56 = vld [vmem:[%s1633_s8 + $0x28] sm:$0xff]  ;;  %v1257_v58 = vld [vmem:[%s1628_s3 + $0xa0] sm:$0xff] }
 0x13c   : > { %859 = vmatpush.msra.mxu0 %v1246_v56  ;;  %v1111_v56 = vlaneseq }
 0x13d   : > { %v638_v61 = vpop.f32.mrf.mxu0  ;;  %v458_v5 = vpop.f32.mrf.mxu1 }
 0x13e   : > { %v1112_v57 = vshrl.u32 %v1111_v56, 7 }
 0x140   : > { %vm1115_vm1 = vcmp.lt.s32.totalorder %v1112_v57, 1 }
 0x142   : > { %v506_v60 = vpop.f32.mrf.mxu2 }
 0x143   : > { %1209 = vmatmul.msk.f32.gmra.mxu3 %vm515_vm5, %v506_v60  ;;  %1226 = vmatmul.msk.f32.gmra.mxu1 %vm515_vm5, %v635_v59  ;;  %v1258_v59 = vld [vmem:[%s1628_s3 + $0xa8] sm:$0xff]  ;;  %v1259_v60 = vld [vmem:[%s1628_s3 + $0xb0] sm:$0xff] }
 0x145   : > { %v641_v1 = vpop.f32.mrf.mxu0  ;;  %v461_v7 = vpop.f32.mrf.mxu1 }
 0x14a   : > { %v509_v62 = vpop.f32.mrf.mxu2 }
 0x14b   : > { %1210 = vmatmul.msk.f32.gmra.mxu3 %vm515_vm5, %v509_v62  ;;  %1227 = vmatmul.msk.f32.gmra.mxu1 %vm515_vm5, %v638_v61  ;;  %v1260_v61 = vld [vmem:[%s1628_s3 + $0xb8] sm:$0xff]  ;;  %v1245_v62 = vld [vmem:[%s1633_s8 + $0x20] sm:$0xff] }
 0x14c   : > { %860 = vmatpush.msra.mxu0 %v1245_v62 }
 0x153   : > { %1211 = vmatmul.msk.f32.vlgmr.msrb.gmra.mxu3 %vm515_vm5, %v452_v63  ;;  %1228 = vmatmul.msk.f32.gmra.mxu1 %vm515_vm5, %v641_v1  ;;  %v778_v63 = vld [vmem:[%s1633_s8] sm:$0xff]  ;;  %v1267_v1 = vld [vmem:[%s1633_s8 + $0x50] sm:$0xff] }
 0x154   : > { %901 = vmatpush.msrb.mxu1 %v778_v63 }
 0x15b   : > { %1212 = vmatmul.msk.f32.gmra.mxu3 %vm515_vm5, %v455_v3 }
 0x163   : > { %1213 = vmatmul.msk.f32.gmra.mxu3 %vm515_vm5, %v458_v5  ;;  %v1265_v5 = vld [vmem:[%s1633_s8 + $0x40] sm:$0xff] }
 0x16b   : > { %1214 = vmatmul.msk.f32.gmra.mxu3 %vm515_vm5, %v461_v7 }
 0x1b0   : > { %v545_v10 = vpop.f32.mrf.mxu1 }
 0x1b8   : > { %v676_v12 = vpop.f32.mrf.mxu1 }
 0x1be   : > { %v548_v8 = vpop.f32.mrf.mxu3 }
 0x1c0   : > { %v679_v14 = vpop.f32.mrf.mxu1 }
 0x1c6   : > { %v551_v9 = vpop.f32.mrf.mxu3 }
 0x1c8   : > { %v682_v16 = vpop.f32.mrf.mxu1 }
 0x1ce   : > { %v554_v11 = vpop.f32.mrf.mxu3 }
 0x1d0   : > { %v685_v24 = vpop.f32.mrf.mxu1 }
 0x1d6   : > { %v586_v13 = vpop.f32.mrf.mxu3 }
 0x1d7   : > { %v587_v21 = vadd.f32 %v586_v13, %v545_v10 }
 0x1d9   : > { %v688_v28 = vadd.f32 %v676_v12, %v587_v21 }
 0x1db   : > { %v716_v35 = vadd.f32 %v699_v34, %v688_v28  ;;  %v1029_v34 = vpop.permute.xlu0 %1028 }
 0x1dd   : > { %v724_v41 = vmul.f32 0.2, %v716_v35  ;;  %vm720_vm9 = vcmp.gt.f32.partialorder %v716_v35, 0.0 }
 0x1de   : > { %v589_v15 = vpop.f32.mrf.mxu3 }
 0x1df   : > { %v590_v20 = vadd.f32 %v589_v15, %v548_v8  ;;  %v728_v45 = vsel %vm720_vm9, %v716_v35, %v724_v41 }
 0x1e1   : > { %v689_v25 = vadd.f32 %v679_v14, %v590_v20 }
 0x1e3   : > { %v717_v32 = vadd.f32 %v704_v31, %v689_v25  ;;  %v1034_v25 = vpop.permute.xlu2 %1033 }
 0x1e5   : > { %v725_v39 = vmul.f32 0.2, %v717_v32  ;;  %vm721_vm8 = vcmp.gt.f32.partialorder %v717_v32, 0.0 }
 0x1e6   : > { %v592_v18 = vpop.f32.mrf.mxu3 }
 0x1e7   : > { %v593_v19 = vadd.f32 %v592_v18, %v551_v9  ;;  %v729_v42 = vsel %vm721_vm8, %v717_v32, %v725_v39  ;;  %v1024_v39 = vpop.permute.xlu1 %1023 }
 0x1e9   : > { %v690_v22 = vadd.f32 %v682_v16, %v593_v19 }
 0x1eb   : > { %v718_v29 = vadd.f32 %v709_v27, %v690_v22 }
 0x1ed   : > { %v726_v37 = vmul.f32 0.2, %v718_v29  ;;  %vm722_vm7 = vcmp.gt.f32.partialorder %v718_v29, 0.0 }
 0x1ee   : > { %v595_v23 = vpop.f32.mrf.mxu3 }
 0x1ef   : > { %v596_v26 = vadd.f32 %v595_v23, %v554_v11  ;;  %v730_v40 = vsel %vm722_vm7, %v718_v29, %v726_v37 }
 0x1f1   : > { %v691_v30 = vadd.f32 %v685_v24, %v596_v26 }
 0x1f3   : > { %v719_v33 = vadd.f32 %v714_v17, %v691_v30 }
 0x1f5   : > { %v727_v36 = vmul.f32 0.2, %v719_v33  ;;  %vm723_vm6 = vcmp.gt.f32.partialorder %v719_v33, 0.0 }
 0x1f7   : > { %v731_v38 = vsel %vm723_vm6, %v719_v33, %v727_v36 }
 0x1f8   : > { %761 = vmatpush.msra.mxu2 %v731_v38  ;;  %811 = vmatpush.msra.mxu3 %v731_v38 }
 0x1fa   : > { %762 = vmatpush.msra.mxu2 %v730_v40  ;;  %812 = vmatpush.msra.mxu3 %v730_v40 }
 0x1fc   : > { %763 = vmatpush.msra.mxu2 %v729_v42  ;;  %813 = vmatpush.msra.mxu3 %v729_v42 }
 0x1fe   : > { %764 = vmatpush.msra.mxu2 %v728_v45  ;;  %814 = vmatpush.msra.mxu3 %v728_v45 }
 0x1ff   : > { %1233 = vmatmul.msk.f32.vlgmr.msra.gmra.mxu2 %vm365_vm0, %v1229_v43  ;;  %1241 = vmatmul.msk.f32.vlgmr.msra.gmra.mxu3 %vm365_vm0, %v1237_v44 }
 0x200   : > { %944 = vmatpush.msrb.mxu2 %v731_v38  ;;  %990 = vmatpush.msrb.mxu3 %v1268_v0 }
 0x202   : > { %945 = vmatpush.msrb.mxu2 %v730_v40  ;;  %991 = vmatpush.msrb.mxu3 %v1267_v1 }
 0x204   : > { %946 = vmatpush.msrb.mxu2 %v729_v42  ;;  %992 = vmatpush.msrb.mxu3 %v1266_v2  ;;  %v1019_v42 = vpop.permute.xlu2 %1018 }
 0x206   : > { %947 = vmatpush.msrb.mxu2 %v728_v45  ;;  %993 = vmatpush.msrb.mxu3 %v1265_v5 }
 0x207   : > { %1234 = vmatmul.msk.f32.gmra.mxu2 %vm365_vm0, %v1230_v46  ;;  %1242 = vmatmul.msk.f32.gmra.mxu3 %vm365_vm0, %v1238_v47 }
 0x20f   : > { %1235 = vmatmul.msk.f32.gmra.mxu2 %vm365_vm0, %v1231_v48  ;;  %1243 = vmatmul.msk.f32.gmra.mxu3 %vm365_vm0, %v1239_v49 }
 0x217   : > { %1236 = vmatmul.msk.f32.gmra.mxu2 %vm365_vm0, %v1232_v50  ;;  %1244 = vmatmul.msk.f32.gmra.mxu3 %vm365_vm0, %v1240_v51  ;;  %v1052_v51 = vld [vmem:[%s1630_s5] sm:$0xff] }
 0x21f   : > { %1261 = vmatmul.msk.f32.vlgmr.msrb.gmra.mxu2 %vm365_vm0, %v1257_v58  ;;  %v1061_v58 = vpop.permute.xlu0 %1060 }
 0x227   : > { %1262 = vmatmul.msk.f32.gmra.mxu2 %vm365_vm0, %v1258_v59 }
 0x22f   : > { %1263 = vmatmul.msk.f32.gmra.mxu2 %vm365_vm0, %v1259_v60 }
 0x237   : > { %1264 = vmatmul.msk.f32.gmra.mxu2 %vm365_vm0, %v1260_v61 }
 0x282   : > { %v766_v3 = vpop.f32.mrf.mxu2  ;;  %v816_v4 = vpop.f32.mrf.mxu3 }
 0x283   : > { %1249 = vmatmul.msk.f32.vlgmr.msra.gmra.mxu0 %vm365_vm0, %v816_v4  ;;  %1253 = vmatmul.msk.f32.vlgmr.msrb.gmra.mxu1 %vm365_vm0, %v766_v3 }
 0x28a   : > { %v769_v6 = vpop.f32.mrf.mxu2  ;;  %v819_v7 = vpop.f32.mrf.mxu3 }
 0x28b   : > { %1250 = vmatmul.msk.f32.gmra.mxu0 %vm365_vm0, %v819_v7  ;;  %1254 = vmatmul.msk.f32.gmra.mxu1 %vm365_vm0, %v769_v6 }
 0x292   : > { %v772_v8 = vpop.f32.mrf.mxu2  ;;  %v822_v9 = vpop.f32.mrf.mxu3 }
 0x293   : > { %1251 = vmatmul.msk.f32.gmra.mxu0 %vm365_vm0, %v822_v9  ;;  %1255 = vmatmul.msk.f32.gmra.mxu1 %vm365_vm0, %v772_v8 }
 0x29a   : > { %v775_v10 = vpop.f32.mrf.mxu2  ;;  %v825_v11 = vpop.f32.mrf.mxu3 }
 0x29b   : > { %1252 = vmatmul.msk.f32.gmra.mxu0 %vm365_vm0, %v825_v11  ;;  %1256 = vmatmul.msk.f32.gmra.mxu1 %vm365_vm0, %v775_v10 }
 0x2a2   : > { %v949_v12 = vpop.f32.mrf.mxu2 }
 0x2a3   : > { %1269 = vmatmul.msk.f32.vlgmr.msrb.gmra.mxu3 %vm365_vm0, %v949_v12 }
 0x2aa   : > { %v952_v13 = vpop.f32.mrf.mxu2 }
 0x2ab   : > { %1270 = vmatmul.msk.f32.gmra.mxu3 %vm365_vm0, %v952_v13 }
 0x2b2   : > { %v955_v14 = vpop.f32.mrf.mxu2 }
 0x2b3   : > { %1271 = vmatmul.msk.f32.gmra.mxu3 %vm365_vm0, %v955_v14 }
 0x2ba   : > { %v958_v15 = vpop.f32.mrf.mxu2 }
 0x2bb   : > { %1272 = vmatmul.msk.f32.gmra.mxu3 %vm365_vm0, %v958_v15 }
 0x300   : > { %v862_v16 = vpop.f32.mrf.mxu0  ;;  %v903_v17 = vpop.f32.mrf.mxu1 }
 0x301   : > { %v904_v31 = vadd.f32 %v903_v17, %v862_v16 }
 0x308   : > { %v865_v18 = vpop.f32.mrf.mxu0  ;;  %v906_v19 = vpop.f32.mrf.mxu1 }
 0x309   : > { %v907_v29 = vadd.f32 %v906_v19, %v865_v18 }
 0x310   : > { %v868_v22 = vpop.f32.mrf.mxu0  ;;  %v909_v23 = vpop.f32.mrf.mxu1 }
 0x311   : > { %v910_v26 = vadd.f32 %v909_v23, %v868_v22 }
 0x318   : > { %v871_v27 = vpop.f32.mrf.mxu0  ;;  %v912_v28 = vpop.f32.mrf.mxu1 }
 0x319   : > { %v913_v32 = vadd.f32 %v912_v28, %v871_v27 }
 0x326   : > { %v995_v20 = vpop.f32.mrf.mxu3 }
 0x327   : > { %v1007_v36 = vadd.f32 %v995_v20, %v904_v31 }
 0x329   : > { %v1036_v43 = vadd.f32 %v1019_v42, %v1007_v36 }
 0x32b   : > { %v1044_v49 = vmul.f32 0.2, %v1036_v43  ;;  %vm1040_vm13 = vcmp.gt.f32.partialorder %v1036_v43, 0.0 }
 0x32d   : > { %v1048_v52 = vsel %vm1040_vm13, %v1036_v43, %v1044_v49 }
 0x32e   : > { %v998_v21 = vpop.f32.mrf.mxu3 }
 0x32f   : > { %v1008_v33 = vadd.f32 %v998_v21, %v907_v29 }
 0x331   : > { %v1037_v40 = vadd.f32 %v1024_v39, %v1008_v33 }
 0x333   : > { %v1045_v47 = vmul.f32 0.2, %v1037_v40  ;;  %vm1041_vm12 = vcmp.gt.f32.partialorder %v1037_v40, 0.0 }
 0x335   : > { %v1049_v50 = vsel %vm1041_vm12, %v1037_v40, %v1045_v47 }
 0x336   : > { %v1001_v24 = vpop.f32.mrf.mxu3 }
 0x337   : > { %v1009_v30 = vadd.f32 %v1001_v24, %v910_v26 }
 0x339   : > { %v1038_v37 = vadd.f32 %v1029_v34, %v1009_v30 }
 0x33b   : > { %v1046_v45 = vmul.f32 0.2, %v1038_v37  ;;  %vm1042_vm11 = vcmp.gt.f32.partialorder %v1038_v37, 0.0 }
 0x33d   : > { %v1050_v48 = vsel %vm1042_vm11, %v1038_v37, %v1046_v45 }
 0x33e   : > { %v1004_v35 = vpop.f32.mrf.mxu3 }
 0x33f   : > { %v1010_v38 = vadd.f32 %v1004_v35, %v913_v32 }
 0x341   : > { %v1039_v41 = vadd.f32 %v1034_v25, %v1010_v38 }
 0x343   : > { %v1047_v44 = vmul.f32 0.2, %v1039_v41  ;;  %vm1043_vm10 = vcmp.gt.f32.partialorder %v1039_v41, 0.0 }
 0x345   : > { %v1051_v46 = vsel %vm1043_vm10, %v1039_v41, %v1047_v44 }
 0x346   : > { %1094 = vmatpush.msrb.mxu0 %v1051_v46 }
 0x348   : > { %1095 = vmatpush.msrb.mxu0 %v1050_v48 }
 0x34a   : > { %1096 = vmatpush.msrb.mxu0 %v1049_v50 }
 0x34c   : > { %1097 = vmatpush.msrb.mxu0 %v1048_v52 }
 0x34d   : > { %1277 = vmatmul.msk.f32.vlgmr.msrb.gmra.mxu0 %vm365_vm0, %v1052_v51 }
 0x355   : > { %1278 = vmatmul.msk.f32.gmra.mxu0 %vm365_vm0, %v1053_v53 }
 0x35d   : > { %1279 = vmatmul.msk.f32.gmra.mxu0 %vm365_vm0, %v1054_v54 }
 0x3ca   : > { %v1099_v59 = vpop.f32.mrf.mxu0 }
 0x3cb   : > { %v1100_v60 = vadd.f32 %v1099_v59, %v1061_v58 }
 0x3cd   : > { %v1108_v61 = vmul.f32 %v1100_v60, %v1100_v60 }
 0x3cf   : > { %v1118_v62 = vsel %vm1115_vm1, %v1108_v61, 0.0 }
 0x3d0   : > { %1122 = vst.msk [vmem:[%s332_s28] sm:$0xff] %vm1121_vm14, %v1118_v62 }
 0x3d2   : > { %v1102_v63 = vpop.f32.mrf.mxu0 }
 0x3da   : > { %v1105_v0 = vpop.f32.mrf.mxu0 }
 0x3db PF: > { %s19_s30 = sadd.s32 1, %s1309_s30  }
 0x3dc   : > { %p16_p4 = scmp.ge.s32.totalorder %s19_s30, 4  }
 0x3de   :  { %18 = sbr.rel (!%p16_p4) target bundleno = 1 (0x1), region = 96 }

// kernel: audio_model_forward.5
= control target key start
LH: loop header
LB: loop body
LE: loop exit
PB: predicated region body
PF: predicated region fallthrough
CT: control target
= control target key end

     0   :  { %s6368_s18 = smov 0   ;;  %s12989_s0 = inlined_call_operand.vmem [shape: f32[2,32,16], index: 0, kind: input, shape index: {}]   ;;  %s12990_s1 = inlined_call_operand.vmem [shape: f32[64,32], index: 1, kind: input, shape index: {}]   ;;  %s12991_s2 = inlined_call_operand.vmem [shape: f32[64,1], index: 2, kind: input, shape index: {}]   ;;  %s12992_s3 = inlined_call_operand.vmem [shape: f32[16,1024], index: 3, kind: input, shape index: {}]   ;;  %s12993_s4 = inlined_call_operand.vmem [shape: f32[16,1024], index: 4, kind: input, shape index: {}]   ;;  %s12994_s5 = inlined_call_operand.vmem [shape: f32[2,1,1024], index: 5, kind: output, shape index: {}]  }
   0x1 LB: > { %s6106_s19 = sadd.s32 4294967295, %s6329_s18   ;;  %p6110_p0 = scmp.ge.s32.totalorder %s6329_s18, 1  ;;  %s6329_s18 = sphi %s6368_s18, %s15_s18  }
   0x2   : > { %p187_p1 = scmp.lt.s32.totalorder %s6329_s18, 3 }
   0x4   : > { %p188_p2 = pnand %p6110_p0, %p187_p1 }
   0x6   : > { %191 = sbr.rel (%p188_p2) target bundleno = 1603 (0x643), region = 40 }
   0xb   : > { %p214_p3 = scmp.lt.s32.totalorder %s6106_s19, 1  ;;  %v238_v0 = vld [vmem:[%s12991_s2 + $0x18] sm:$0xff]  ;;  %v236_v1 = vld [vmem:[%s12991_s2 + $0x8] sm:$0xff]  ;;  %v12997_v2 = vmov 0   ;;  %v237_v5 = vld [vmem:[%s12991_s2 + $0x10] sm:$0xff]  ;;  %vm283_vm0 = vcmask 261120  }
   0xc   : > { %6305 = vset.pattern.permute.xlu1 %v12997_v2  ;;  %6304 = vset.pattern.permute.xlu0 %v12997_v2  ;;  %v235_v6 = vld [vmem:[%s12991_s2] sm:$0xff]  ;;  %v241_v10 = vld [vmem:[%s12991_s2 + $0x30] sm:$0xff]  ;;  %v242_v11 = vld [vmem:[%s12991_s2 + $0x38] sm:$0xff]  ;;  %vm453_vm1 = vcmask 130048  }
   0xd   : > { %s13657_s19 = smov (!%p214_p3, %s6106_s19), 1  ;;  %260 = vperm.xlu1 %6305, %v238_v0   ;;  %250 = vperm.xlu0 %6304, %v236_v1   ;;  %v227_v9 = vld [vmem:[%s12990_s1] sm:$0xff]  ;;  %v228_v12 = vld [vmem:[%s12990_s1 + $0x8] sm:$0xff]  ;;  %v229_v13 = vld [vmem:[%s12990_s1 + $0x10] sm:$0xff] }
   0xe   : > { %6306 = vset.pattern.permute.xlu2 %v12997_v2  ;;  %s6284_s24 = sshll.u32 %s13657_s19, 5  ;;  %v230_v14 = vld [vmem:[%s12990_s1 + $0x18] sm:$0xff]  ;;  %v239_v15 = vld [vmem:[%s12991_s2 + $0x20] sm:$0xff]  ;;  %v240_v17 = vld [vmem:[%s12991_s2 + $0x28] sm:$0xff]  ;;  %s6113_s28 = sshll.u32 %s13657_s19, 3 }
   0xf   : > { %s218_s27 = scalar_lea.vmem %s12989_s0, %s6284_s24  ;;  %265 = vperm.xlu2 %6306, %v239_v15   ;;  %v231_v16 = vld [vmem:[%s12990_s1 + $0x20] sm:$0xff]  ;;  %v232_v18 = vld [vmem:[%s12990_s1 + $0x28] sm:$0xff]  ;;  %v233_v19 = vld [vmem:[%s12990_s1 + $0x30] sm:$0xff]  ;;  %s222_s6 = scalar_lea.vmem %s12994_s5, %s6113_s28 }
  0x10   : > { %v226_v3 = vld [vmem:[%s218_s27 + $0x18] sm:$0xff]  ;;  %v225_v4 = vld [vmem:[%s218_s27 + $0x10] sm:$0xff]  ;;  %v224_v7 = vld [vmem:[%s218_s27 + $0x8] sm:$0xff] }
  0x11   : > { %320 = vmatpush.msra.mxu0 %v226_v3  ;;  %v223_v8 = vld [vmem:[%s218_s27] sm:$0xff]  ;;  %v234_v20 = vld [vmem:[%s12990_s1 + $0x38] sm:$0xff]  ;;  %v446_v22 = vld [vmem:[%s12992_s3 + $0x48] sm:$0xff] }
  0x12   : > { %v445_v21 = vld [vmem:[%s12992_s3 + $0x40] sm:$0xff]  ;;  %v438_v24 = vld [vmem:[%s12992_s3 + $0x8] sm:$0xff]  ;;  %6287 = vmatpush.msra.mxu2 %v446_v22  ;;  %v448_v25 = vld [vmem:[%s12992_s3 + $0x58] sm:$0xff] }
  0x13   : > { %321 = vmatpush.msra.mxu0 %v225_v4  ;;  %480 = vmatpush.msra.mxu1 %v445_v21  ;;  %v437_v23 = vld [vmem:[%s12992_s3] sm:$0xff]  ;;  %v440_v26 = vld [vmem:[%s12992_s3 + $0x18] sm:$0xff]  ;;  %v447_v27 = vld [vmem:[%s12992_s3 + $0x50] sm:$0xff] }
  0x14   : > { %6285 = vmatpush.msra.mxu3 %v445_v21  ;;  %6288 = vmatpush.msra.mxu2 %v438_v24  ;;  %v449_v28 = vld [vmem:[%s12992_s3 + $0x60] sm:$0xff]  ;;  %v439_v30 = vld [vmem:[%s12992_s3 + $0x10] sm:$0xff]  ;;  %v450_v52 = vld [vmem:[%s12992_s3 + $0x68] sm:$0xff] }
  0x15   : > { %255 = vperm.xlu0 %6304, %v237_v5   ;;  %245 = vperm.xlu1 %6305, %v235_v6   ;;  %v441_v31 = vld [vmem:[%s12992_s3 + $0x20] sm:$0xff]  ;;  %v451_v39 = vld [vmem:[%s12992_s3 + $0x70] sm:$0xff]  ;;  %v452_v53 = vld [vmem:[%s12992_s3 + $0x78] sm:$0xff] }
  0x16   : > { %322 = vmatpush.msra.mxu0 %v224_v7  ;;  %481 = vmatpush.msra.mxu1 %v437_v23  ;;  %v443_v41 = vld [vmem:[%s12992_s3 + $0x30] sm:$0xff]  ;;  %v707_v54 = vld [vmem:[%s12993_s4 + $0x48] sm:$0xff]  ;;  %v444_v57 = vld [vmem:[%s12992_s3 + $0x38] sm:$0xff] }
  0x17   : > { %270 = vperm.xlu2 %6306, %v240_v17   ;;  %6286 = vmatpush.msra.mxu3 %v437_v23  ;;  %v442_v56 = vld [vmem:[%s12992_s3 + $0x28] sm:$0xff]  ;;  %v708_v63 = vld [vmem:[%s12993_s4 + $0x50] sm:$0xff]  ;;  %v706_v23 = vld [vmem:[%s12993_s4 + $0x40] sm:$0xff] }
  0x18   : > { %323 = vmatpush.msra.mxu0 %v223_v8  ;;  %567 = vmatpush.msrb.mxu1 %v448_v25  ;;  %v699_v58 = vld [vmem:[%s12993_s4 + $0x8] sm:$0xff]  ;;  %v700_v1 = vld [vmem:[%s12993_s4 + $0x10] sm:$0xff]  ;;  %v698_v25 = vld [vmem:[%s12993_s4] sm:$0xff] }
  0x19   : > { %6114 = vmatmul.msk.f32.vlgmr.msra.gmra.mxu0 %vm283_vm0, %v227_v9  ;;  %538 = vmatpush.msrb.mxu3 %v447_v27 }
  0x1a   : > { %509 = vmatpush.msrb.mxu0 %v446_v22  ;;  %568 = vmatpush.msrb.mxu1 %v440_v26 }
  0x1b   : > { %596 = vmatpush.msrb.mxu2 %v449_v28  ;;  %539 = vmatpush.msrb.mxu3 %v439_v30  ;;  %v701_v28 = vld [vmem:[%s12993_s4 + $0x18] sm:$0xff] }
  0x1c   : > { %510 = vmatpush.msrb.mxu0 %v438_v24  ;;  %v709_v24 = vld [vmem:[%s12993_s4 + $0x58] sm:$0xff] }
  0x1d   : > { %275 = vperm.xlu0 %6304, %v241_v10   ;;  %280 = vperm.xlu1 %6305, %v242_v11  }
  0x1e   : > { %597 = vmatpush.msrb.mxu2 %v441_v31  ;;  %769 = vmatpush.msra.mxu0 %v707_v54 }
  0x20   : > { %770 = vmatpush.msra.mxu0 %v699_v58 }
  0x21   : > { %6115 = vmatmul.msk.f32.gmra.mxu0 %vm283_vm0, %v228_v12 }
  0x29   : > { %6116 = vmatmul.msk.f32.gmra.mxu0 %vm283_vm0, %v229_v13 }
  0x31   : > { %6117 = vmatmul.msk.f32.gmra.mxu0 %vm283_vm0, %v230_v14 }
  0x39   : > { %6118 = vmatmul.msk.f32.gmra.mxu0 %vm283_vm0, %v231_v16 }
  0x41   : > { %6119 = vmatmul.msk.f32.gmra.mxu0 %vm283_vm0, %v232_v18 }
  0x49   : > { %6120 = vmatmul.msk.f32.gmra.mxu0 %vm283_vm0, %v233_v19 }
  0x51   : > { %6121 = vmatmul.msk.f32.gmra.mxu0 %vm283_vm0, %v234_v20 }
  0x69   : > { %v266_v49 = vpop.permute.xlu2 %265 }
  0x71   : > { %v271_v60 = vpop.permute.xlu2 %270 }
  0x7f   : > { %v261_v29 = vpop.permute.xlu1 %260  ;;  %v251_v36 = vpop.permute.xlu0 %250 }
  0x87   : > { %v246_v32 = vpop.permute.xlu1 %245  ;;  %v256_v42 = vpop.permute.xlu0 %255 }
  0x8f   : > { %v276_v6 = vpop.permute.xlu0 %275  ;;  %v281_v15 = vpop.permute.xlu1 %280 }
  0x96   : > { %v325_v33 = vpop.f32.mrf.mxu0 }
  0x97   : > { %v326_v34 = vadd.f32 %v325_v33, %v246_v32 }
  0x99   : > { %v6471_v35 = vmul.f32 %v326_v34, %v326_v34  ;;  %v711_v34 = vld [vmem:[%s12993_s4 + $0x68] sm:$0xff] }
  0x9b   : > { %6122 = vmatmul.msk.f32.vlgmr.msra.gmra.mxu1 %vm453_vm1, %v6471_v35  ;;  %6126 = vmatmul.msk.f32.vlgmr.msrb.gmra.mxu0 %vm453_vm1, %v6471_v35 }
  0x9c   : > { %654 = vmatpush.msra.mxu1 %v451_v39  ;;  %885 = vmatpush.msrb.mxu0 %v711_v34 }
  0x9e   : > { %v328_v37 = vpop.f32.mrf.mxu0  ;;  %655 = vmatpush.msra.mxu1 %v443_v41 }
  0x9f   : > { %v329_v38 = vadd.f32 %v328_v37, %v251_v36  ;;  %v703_v36 = vld [vmem:[%s12993_s4 + $0x28] sm:$0xff] }
  0xa0   : > { %886 = vmatpush.msrb.mxu0 %v703_v36  ;;  %v13003_v36 = vmov 2102212464  }
  0xa1   : > { %v6480_v40 = vmul.f32 %v329_v38, %v329_v38 }
  0xa3   : > { %6123 = vmatmul.msk.f32.vlgmr.msra.gmra.mxu3 %vm453_vm1, %v6480_v40  ;;  %6127 = vmatmul.msk.f32.vlgmr.msra.gmra.mxu2 %vm453_vm1, %v6480_v40 }
  0xa4   : > { %6134 = vmatmul.msk.f32.vlgmr.msrb.gmra.mxu1 %vm453_vm1, %v6471_v35  ;;  %625 = vmatpush.msra.mxu3 %v450_v52 }
  0xa5   : > { %683 = vmatpush.msra.mxu2 %v452_v53  ;;  %798 = vmatpush.msrb.mxu1 %v708_v63 }
  0xa6   : > { %v331_v43 = vpop.f32.mrf.mxu0  ;;  %626 = vmatpush.msra.mxu3 %v442_v56  ;;  %v713_v56 = vld [vmem:[%s12993_s4 + $0x78] sm:$0xff] }
  0xa7   : > { %v332_v44 = vadd.f32 %v331_v43, %v256_v42  ;;  %684 = vmatpush.msra.mxu2 %v444_v57  ;;  %799 = vmatpush.msrb.mxu1 %v700_v1 }
  0xa9   : > { %v6491_v45 = vmul.f32 %v332_v44, %v332_v44 }
  0xab   : > { %6124 = vmatmul.msk.f32.gmra.mxu3 %vm453_vm1, %v6491_v45  ;;  %6128 = vmatmul.msk.f32.gmra.mxu2 %vm453_vm1, %v6491_v45 }
  0xac   : > { %6135 = vmatmul.msk.f32.gmra.mxu1 %vm453_vm1, %v6480_v40 }
  0xae   : > { %v334_v46 = vpop.f32.mrf.mxu0 }
  0xaf   : > { %v335_v47 = vadd.f32 %v334_v46, %v261_v29 }
  0xb1   : > { %v6499_v48 = vmul.f32 %v335_v47, %v335_v47 }
  0xb3   : > { %6125 = vmatmul.msk.f32.gmra.mxu3 %vm453_vm1, %v6499_v48  ;;  %6129 = vmatmul.msk.f32.gmra.mxu2 %vm453_vm1, %v6499_v48 }
  0xb4   : > { %6136 = vmatmul.msk.f32.gmra.mxu1 %vm453_vm1, %v6491_v45 }
  0xb6   : > { %v337_v50 = vpop.f32.mrf.mxu0 }
  0xb7   : > { %v338_v51 = vadd.f32 %v337_v50, %v266_v49  ;;  %v13007_v49 = vmov 683565275  }
  0xb9   : > { %v353_v55 = vsub.f32 0.0, %v338_v51 }
  0xbb   : > { %v357_v59 = vmul.f32 1.442695, %v353_v55  ;;  %6130 = vmatmul.msk.f32.vlgmr.msrb.gmra.mxu3 %vm453_vm1, %v6471_v35  ;;  %6138 = vmatmul.msk.f32.vlgmr.msrb.gmra.mxu2 %vm453_vm1, %v6471_v35  ;;  %v710_v55 = vld [vmem:[%s12993_s4 + $0x60] sm:$0xff] }
  0xbc   : > { %6137 = vmatmul.msk.f32.gmra.mxu1 %vm453_vm1, %v6499_v48  ;;  %740 = vmatpush.msrb.mxu3 %v706_v23 }
  0xbd   : > { %6307 = vpow2.f32 %v357_v59  ;;  %827 = vmatpush.msrb.mxu2 %v709_v24  ;;  %v704_v59 = vld [vmem:[%s12993_s4 + $0x30] sm:$0xff] }
  0xbe   : > { %v340_v61 = vpop.f32.mrf.mxu0  ;;  %741 = vmatpush.msrb.mxu3 %v698_v25 }
  0xbf   : > { %v341_v62 = vadd.f32 %v340_v61, %v271_v60  ;;  %828 = vmatpush.msrb.mxu2 %v701_v28 }
  0xc1   : > { %v354_v0 = vsub.f32 0.0, %v341_v62 }
  0xc3   : > { %v6308_v3 = vpop.eup %6307  ;;  %v359_v4 = vmul.f32 1.442695, %v354_v0  ;;  %6131 = vmatmul.msk.f32.gmra.mxu3 %vm453_vm1, %v6480_v40  ;;  %6139 = vmatmul.msk.f32.gmra.mxu2 %vm453_vm1, %v6480_v40 }
  0xc4   : > { %v365_v5 = vadd.f32 1.0, %v6308_v3  ;;  %6146 = vmatmul.msk.f32.vlgmr.msra.gmra.mxu1 %vm453_vm1, %v6471_v35 }
  0xc5   : > { %6309 = vpow2.f32 %v359_v4 }
  0xc6   : > { %6311 = vrcp.f32 %v365_v5  ;;  %v343_v7 = vpop.f32.mrf.mxu0  ;;  %vm374_vm2 = vweird.f32 %v365_v5  ;;  %v380_v16 = vand.u32 2147483648, %v365_v5  ;;  %v378_v19 = vand.u32 2147483647, %v365_v5 }
  0xc7   : > { %v344_v8 = vadd.f32 %v343_v7, %v276_v6 }
  0xc8   : > { %v381_v27 = vor.u32 1.1754944e-38, %v380_v16  ;;  %vm379_vm5 = vcmp.eq.f32.partialorder %v378_v19, 8.507059e+37  ;;  %v702_v16 = vld [vmem:[%s12993_s4 + $0x20] sm:$0xff] }
  0xc9   : > { %v355_v9 = vsub.f32 0.0, %v344_v8 }
  0xcb   : > { %v6310_v10 = vpop.eup %6309  ;;  %v361_v11 = vmul.f32 1.442695, %v355_v9  ;;  %6132 = vmatmul.msk.f32.gmra.mxu3 %vm453_vm1, %v6491_v45  ;;  %6140 = vmatmul.msk.f32.gmra.mxu2 %vm453_vm1, %v6491_v45 }
  0xcc   : > { %v6312_v12 = vpop.eup %6311  ;;  %v366_v13 = vadd.f32 1.0, %v6310_v10  ;;  %6147 = vmatmul.msk.f32.gmra.mxu1 %vm453_vm1, %v6480_v40 }
  0xcd   : > { %v370_v14 = vmul.f32 %v6312_v12, %v365_v5  ;;  %6313 = vpow2.f32 %v361_v11  ;;  %vm375_vm3 = vweird.f32 %v6312_v12 }
  0xce   : > { %6315 = vrcp.f32 %v366_v13  ;;  %v346_v17 = vpop.f32.mrf.mxu0  ;;  %vm6558_vm4 = vmor %vm374_vm2, %vm375_vm3  ;;  %vm389_vm6 = vweird.f32 %v366_v13  ;;  %v395_v41 = vand.u32 2147483648, %v366_v13  ;;  %v393_v44 = vand.u32 2147483647, %v366_v13 }
  0xcf   : > { %v371_v18 = vsub.f32 1.0, %v370_v14  ;;  %v347_v20 = vadd.f32 %v346_v17, %v281_v15 }
  0xd0   : > { %v396_v50 = vor.u32 1.1754944e-38, %v395_v41  ;;  %vm394_vm9 = vcmp.eq.f32.partialorder %v393_v44, 8.507059e+37 }
  0xd1   : > { %v372_v21 = vmul.f32 %v6312_v12, %v371_v18  ;;  %v356_v22 = vsub.f32 0.0, %v347_v20  ;;  %v705_v18 = vld [vmem:[%s12993_s4 + $0x38] sm:$0xff] }
  0xd3   : > { %v6314_v29 = vpop.eup %6313  ;;  %v373_v30 = vadd.f32 %v6312_v12, %v372_v21  ;;  %v363_v31 = vmul.f32 1.442695, %v356_v22  ;;  %6133 = vmatmul.msk.f32.gmra.mxu3 %vm453_vm1, %v6499_v48  ;;  %6141 = vmatmul.msk.f32.gmra.mxu2 %vm453_vm1, %v6499_v48 }
  0xd4   : > { %v6316_v32 = vpop.eup %6315  ;;  %v367_v33 = vadd.f32 1.0, %v6314_v29  ;;  %6148 = vmatmul.msk.f32.gmra.mxu1 %vm453_vm1, %v6491_v45 }
  0xd5   : > { %v377_v37 = vsel %vm6558_vm4, %v6312_v12, %v373_v30  ;;  %v385_v38 = vmul.f32 %v6316_v32, %v366_v13  ;;  %6317 = vpow2.f32 %v363_v31  ;;  %vm390_vm7 = vweird.f32 %v6316_v32 }
  0xd6   : > { %v382_v39 = vsel %vm379_vm5, %v381_v27, %v377_v37  ;;  %6319 = vrcp.f32 %v367_v33  ;;  %vm6581_vm8 = vmor %vm389_vm6, %vm390_vm7  ;;  %v410_v63 = vand.u32 2147483648, %v367_v33  ;;  %v408_v3 = vand.u32 2147483647, %v367_v33 }
  0xd7   : > { %v429_v42 = vmul.f32 0.99637187, %v382_v39  ;;  %v386_v43 = vsub.f32 1.0, %v385_v38  ;;  %vm404_vm11 = vweird.f32 %v367_v33  ;;  %v13001_v38 = vmov 920167782  }
  0xd8   : > { %v411_v6 = vor.u32 1.1754944e-38, %v410_v63  ;;  %vm409_vm13 = vcmp.eq.f32.partialorder %v408_v3, 8.507059e+37 }
  0xd9   : > { %v6579_v46 = vadd.f32 0.003628118, %v429_v42  ;;  %v387_v47 = vmul.f32 %v6316_v32, %v386_v43 }
  0xdb   : > { %v6318_v51 = vpop.eup %6317  ;;  %v388_v52 = vadd.f32 %v6316_v32, %v387_v47  ;;  %6142 = vmatmul.msk.f32.vlgmr.msra.gmra.mxu3 %vm453_vm1, %v6471_v35  ;;  %6150 = vmatmul.msk.f32.vlgmr.msra.gmra.mxu2 %vm453_vm1, %v6471_v35  ;;  %v712_v35 = vld [vmem:[%s12993_s4 + $0x70] sm:$0xff] }
  0xdc   : > { %v6320_v53 = vpop.eup %6319  ;;  %v368_v54 = vadd.f32 1.0, %v6318_v51  ;;  %6149 = vmatmul.msk.f32.gmra.mxu1 %vm453_vm1, %v6499_v48  ;;  %6158 = vmatmul.msk.f32.vlgmr.msra.gmra.mxu0 %vm453_vm1, %v6579_v46  ;;  %v13009_v51 = vmov 2475754826  }
  0xdd   : > { %v392_v57 = vsel %vm6581_vm8, %v6316_v32, %v388_v52  ;;  %v400_v58 = vmul.f32 %v6320_v53, %v367_v33  ;;  %856 = vmatpush.msra.mxu3 %v710_v55  ;;  %943 = vmatpush.msra.mxu2 %v713_v56  ;;  %vm405_vm10 = vweird.f32 %v6320_v53 }
  0xde   : > { %v397_v60 = vsel %vm394_vm9, %v396_v50, %v392_v57  ;;  %6321 = vrcp.f32 %v368_v54  ;;  %914 = vmatpush.msra.mxu1 %v712_v35  ;;  %vm406_vm12 = vmor %vm404_vm11, %vm405_vm10  ;;  %v425_v12 = vand.u32 2147483648, %v368_v54  ;;  %vm419_vm15 = vweird.f32 %v368_v54 }
  0xdf   : > { %v430_v61 = vmul.f32 0.99637187, %v397_v60  ;;  %v401_v62 = vsub.f32 1.0, %v400_v58  ;;  %857 = vmatpush.msra.mxu3 %v702_v16  ;;  %944 = vmatpush.msra.mxu2 %v705_v18 }
  0xe0   : > { %915 = vmatpush.msra.mxu1 %v704_v59  ;;  %v426_v17 = vor.u32 1.1754944e-38, %v425_v12 }
  0xe1   : > { %v6607_v0 = vadd.f32 0.003628118, %v430_v61  ;;  %v402_v1 = vmul.f32 %v6320_v53, %v401_v62 }
  0xe3   : > { %v403_v4 = vadd.f32 %v6320_v53, %v402_v1  ;;  %6143 = vmatmul.msk.f32.gmra.mxu3 %vm453_vm1, %v6480_v40  ;;  %6151 = vmatmul.msk.f32.gmra.mxu2 %vm453_vm1, %v6480_v40  ;;  %v423_v40 = vand.u32 2147483647, %v368_v54 }
  0xe4   : > { %v6322_v5 = vpop.eup %6321  ;;  %6159 = vmatmul.msk.f32.gmra.mxu0 %vm453_vm1, %v6607_v0  ;;  %6162 = vmatmul.msk.f32.vlgmr.msrb.gmra.mxu1 %vm453_vm1, %v6579_v46 }
  0xe5   : > { %v407_v7 = vsel %vm406_vm12, %v6320_v53, %v403_v4  ;;  %v415_v8 = vmul.f32 %v6322_v5, %v368_v54  ;;  %vm420_vm14 = vweird.f32 %v6322_v5  ;;  %vm424_vm2 = vcmp.eq.f32.partialorder %v423_v40, 8.507059e+37 }
  0xe6   : > { %v412_v9 = vsel %vm409_vm13, %v411_v6, %v407_v7  ;;  %vm421_vm0 = vmor %vm419_vm15, %vm420_vm14  ;;  %v13011_v54 = vmov 2131351028  }
  0xe7   : > { %v431_v10 = vmul.f32 0.99637187, %v412_v9  ;;  %v416_v11 = vsub.f32 1.0, %v415_v8 }
  0xe9   : > { %v435_v13 = vadd.f32 0.003628118, %v431_v10  ;;  %v417_v14 = vmul.f32 %v6322_v5, %v416_v11 }
  0xeb   : > { %v418_v15 = vadd.f32 %v6322_v5, %v417_v14  ;;  %6144 = vmatmul.msk.f32.gmra.mxu3 %vm453_vm1, %v6491_v45  ;;  %6152 = vmatmul.msk.f32.gmra.mxu2 %vm453_vm1, %v6491_v45 }
  0xec   : > { %6160 = vmatmul.msk.f32.gmra.mxu0 %vm453_vm1, %v435_v13  ;;  %6163 = vmatmul.msk.f32.gmra.mxu1 %vm453_vm1, %v6607_v0 }
  0xed   : > { %v422_v19 = vsel %vm421_vm0, %v6322_v5, %v418_v15 }
  0xee   : > { %v427_v45 = vsel %vm424_vm2, %v426_v17, %v422_v19 }
  0xef   : > { %v432_v20 = vmul.f32 0.99637187, %v427_v45 }
  0xf1   : > { %v436_v21 = vadd.f32 0.003628118, %v432_v20 }
  0xf3   : > { %6145 = vmatmul.msk.f32.gmra.mxu3 %vm453_vm1, %v6499_v48  ;;  %6153 = vmatmul.msk.f32.gmra.mxu2 %vm453_vm1, %v6499_v48 }
  0xf4   : > { %6161 = vmatmul.msk.f32.gmra.mxu0 %vm453_vm1, %v436_v21  ;;  %6164 = vmatmul.msk.f32.gmra.mxu1 %vm453_vm1, %v435_v13 }
  0xfb   : > { %6154 = vmatmul.msk.f32.vlgmr.msrb.gmra.mxu3 %vm453_vm1, %v6579_v46  ;;  %6166 = vmatmul.msk.f32.vlgmr.msrb.gmra.mxu2 %vm453_vm1, %v6579_v46 }
  0xfc   : > { %6165 = vmatmul.msk.f32.gmra.mxu1 %vm453_vm1, %v436_v21  ;;  %6174 = vmatmul.msk.f32.vlgmr.msrb.gmra.mxu0 %vm453_vm1, %v6579_v46 }
 0x103   : > { %6155 = vmatmul.msk.f32.gmra.mxu3 %vm453_vm1, %v6607_v0  ;;  %6167 = vmatmul.msk.f32.gmra.mxu2 %vm453_vm1, %v6607_v0 }
 0x104   : > { %6175 = vmatmul.msk.f32.gmra.mxu0 %vm453_vm1, %v6607_v0  ;;  %6178 = vmatmul.msk.f32.vlgmr.msra.gmra.mxu1 %vm453_vm1, %v6579_v46 }
 0x10b   : > { %6156 = vmatmul.msk.f32.gmra.mxu3 %vm453_vm1, %v435_v13  ;;  %6168 = vmatmul.msk.f32.gmra.mxu2 %vm453_vm1, %v435_v13 }
 0x10c   : > { %6176 = vmatmul.msk.f32.gmra.mxu0 %vm453_vm1, %v435_v13  ;;  %6179 = vmatmul.msk.f32.gmra.mxu1 %vm453_vm1, %v6607_v0 }
 0x113   : > { %6157 = vmatmul.msk.f32.gmra.mxu3 %vm453_vm1, %v436_v21  ;;  %6169 = vmatmul.msk.f32.gmra.mxu2 %vm453_vm1, %v436_v21 }
 0x114   : > { %6177 = vmatmul.msk.f32.gmra.mxu0 %vm453_vm1, %v436_v21  ;;  %6180 = vmatmul.msk.f32.gmra.mxu1 %vm453_vm1, %v435_v13 }
 0x118   : > { %v6673_v48 = vpop.f32.mrf.mxu1  ;;  %v6675_v22 = vpop.f32.mrf.mxu0 }
 0x119   : > { %13199 = vst [vmem:[#allocation2_spill] sm:$0xff] %v6673_v48 }
 0x11a   : > { %13200 = vst [vmem:[#allocation3_spill] sm:$0xff] %v6675_v22 }
 0x11b   : > { %6170 = vmatmul.msk.f32.vlgmr.msra.gmra.mxu3 %vm453_vm1, %v6579_v46  ;;  %6182 = vmatmul.msk.f32.vlgmr.msra.gmra.mxu2 %vm453_vm1, %v6579_v46  ;;  %v12999_v46 = vmov 1326507024  }
 0x11c   : > { %6181 = vmatmul.msk.f32.gmra.mxu1 %vm453_vm1, %v436_v21 }
 0x121   : > { %v6677_v23 = vpop.f32.mrf.mxu1 }
 0x122   : > { %13201 = vst [vmem:[#allocation4_spill] sm:$0xff] %v6677_v23 }
 0x123   : > { %6171 = vmatmul.msk.f32.gmra.mxu3 %vm453_vm1, %v6607_v0  ;;  %6183 = vmatmul.msk.f32.gmra.mxu2 %vm453_vm1, %v6607_v0 }
 0x129   : > { %v6682_v26 = vpop.f32.mrf.mxu1 }
 0x12a   : > { %13203 = vst [vmem:[#allocation6_spill] sm:$0xff] %v6682_v26 }
 0x12b   : > { %6172 = vmatmul.msk.f32.gmra.mxu3 %vm453_vm1, %v435_v13  ;;  %6184 = vmatmul.msk.f32.gmra.mxu2 %vm453_vm1, %v435_v13 }
 0x131   : > { %v6684_v29 = vpop.f32.mrf.mxu1 }
 0x132   : > { %13204 = vst [vmem:[#allocation7_spill] sm:$0xff] %v6684_v29 }
 0x133   : > { %6173 = vmatmul.msk.f32.gmra.mxu3 %vm453_vm1, %v436_v21  ;;  %6185 = vmatmul.msk.f32.gmra.mxu2 %vm453_vm1, %v436_v21 }
 0x139   : > { %v6686_v32 = vpop.f32.mrf.mxu1 }
 0x13a   : > { %13205 = vst [vmem:[#allocation8_spill] sm:$0xff] %v6686_v32 }
 0x141   : > { %v6693_v41 = vpop.f32.mrf.mxu1 }
 0x142   : > { %13206 = vst [vmem:[#allocation9_spill] sm:$0xff] %v6693_v41 }
 0x149   : > { %v6728_v5 = vpop.f32.mrf.mxu1 }
 0x14a   : > { %13208 = vst [vmem:[#allocation11_spill] sm:$0xff] %v6728_v5 }
 0x151   : > { %v6751_v18 = vpop.f32.mrf.mxu1 }
 0x152   : > { %13209 = vst [vmem:[#allocation12_spill] sm:$0xff] %v6751_v18 }
 0x159   : > { %v6679_v24 = vpop.f32.mrf.mxu0 }
 0x15a   : > { %13202 = vst [vmem:[#allocation5_spill] sm:$0xff] %v6679_v24  ;;  %v1116_v25 = vand.u32 2139095040, %v6679_v24  ;;  %v13005_v42 = vand.u32 2147483647, %v6679_v24 }
 0x15c   : > { %v1117_v27 = vshrl.u32 %v1116_v25, 23  ;;  %v1120_v58 = vand.u32 8388607, %v13005_v42 }
 0x15e   : > { %v6189_v28 = vadd.s32 4294967169, %v1117_v27  ;;  %v1121_v3 = vor.u32 8388608, %v1120_v58 }
 0x160   : > { %v1123_v30 = vadd.s32 1, %v6189_v28  ;;  %v6744_v11 = vshll.u32 %v1121_v3, 8 }
 0x161   : > { %v6713_v60 = vpop.f32.mrf.mxu0 }
 0x162   : > { %vm1124_vm3 = vcmp.gt.s32.totalorder %v1123_v30, 0  ;;  %13207 = vst [vmem:[#allocation10_spill] sm:$0xff] %v6713_v60  ;;  %v2356_v1 = vand.u32 2139095040, %v6713_v60  ;;  %v1162_v40 = vand.u32 65535, %v6744_v11  ;;  %v1163_v19 = vshrl.u32 %v6744_v11, 16 }
 0x163   : > { %v1125_v31 = vsel %vm1124_vm3, %v1123_v30, 0 }
 0x164   : > { %v1127_v33 = vand.u32 31, %v1125_v31  ;;  %v6696_v43 = vshrl.u32 %v1125_v31, 5  ;;  %v2357_v10 = vshrl.u32 %v2356_v1, 23 }
 0x166   : > { %v6688_v34 = vsub.s32 32, %v1127_v33  ;;  %v1139_v37 = vshll.u32 %v13003_v36, %v1127_v33  ;;  %v1142_v44 = vshll.u32 %v13001_v38, %v1127_v33  ;;  %v1130_v50 = vshll.u32 %v13007_v49, %v1127_v33 }
 0x167   : > { %v1133_v52 = vshll.u32 %v13009_v51, %v1127_v33  ;;  %v1136_v56 = vshll.u32 %v13011_v54, %v1127_v33  ;;  %vm1148_vm1 = vcmp.lt.s32.totalorder %v6696_v43, 4  ;;  %vm1145_vm4 = vcmp.lt.s32.totalorder %v6696_v43, 1 }
 0x168   : > { %v1140_v39 = vshrl.u32 %v13001_v38, %v6688_v34  ;;  %v1143_v47 = vshrl.u32 %v12999_v46, %v6688_v34  ;;  %v1131_v53 = vshrl.u32 %v13009_v51, %v6688_v34  ;;  %v1134_v55 = vshrl.u32 %v13011_v54, %v6688_v34 }
 0x169   : > { %v1137_v35 = vshrl.u32 %v13003_v36, %v6688_v34  ;;  %vm1147_vm5 = vcmp.lt.s32.totalorder %v6696_v43, 3  ;;  %vm1146_vm6 = vcmp.lt.s32.totalorder %v6696_v43, 2  ;;  %v6213_v14 = vadd.s32 4294967169, %v2357_v10 }
 0x16a   : > { %v1141_v57 = vor.u32 %v1140_v39, %v1139_v37  ;;  %v1144_v59 = vor.u32 %v1143_v47, %v1142_v44  ;;  %v6715_v61 = vor.u32 %v1131_v53, %v1130_v50  ;;  %v6717_v62 = vor.u32 %v1134_v55, %v1133_v52  ;;  %v6757_v55 = vpop.f32.mrf.mxu1 }
 0x16b   : > { %v6719_v63 = vor.u32 %v1137_v35, %v1136_v56  ;;  %v2363_v17 = vadd.s32 1, %v6213_v14  ;;  %13210 = vst [vmem:[#allocation13_spill] sm:$0xff] %v6757_v55 }
 0x16c   : > { %v1154_v0 = vsel %vm1148_vm1, %v1141_v57, 920167782  ;;  %v1158_v4 = vsel %vm1148_vm1, %v1144_v59, 1326507024  ;;  %v1153_v6 = vsel %vm1145_vm4, %v6715_v61, %v6717_v62 }
 0x16d   : > { %v1155_v7 = vsel %vm1147_vm5, %v6719_v63, %v1154_v0  ;;  %v1157_v8 = vsel %vm1145_vm4, %v6717_v62, %v6719_v63  ;;  %v1159_v9 = vsel %vm1147_vm5, %v1141_v57, %v1158_v4  ;;  %vm2364_vm7 = vcmp.gt.s32.totalorder %v2363_v17, 0 }
 0x16e   : > { %v1156_v12 = vsel %vm1146_vm6, %v1153_v6, %v1155_v7  ;;  %v1160_v13 = vsel %vm1146_vm6, %v1157_v8, %v1159_v9  ;;  %v2365_v39 = vsel %vm2364_vm7, %v2363_v17, 0  ;;  %v12996_v7 = vand.u32 2147483647, %v6713_v60 }
 0x16f   : > { %v1187_v15 = vshrl.u32 %v1156_v12, 16  ;;  %v1165_v16 = vshrl.u32 %v1160_v13, 16  ;;  %v1186_v45 = vand.u32 65535, %v1156_v12  ;;  %v1164_v21 = vand.u32 65535, %v1160_v13 }
 0x170   : > { %v2367_v53 = vand.u32 31, %v2365_v39  ;;  %v6771_v12 = vshrl.u32 %v2365_v39, 5  ;;  %v1129_v39 = vshrl.u32 %v13007_v49, %v6688_v34 }
 0x171   : > { %v1189_v20 = vmul.u32 %v1187_v15, %v1162_v40  ;;  %v1167_v25 = vmul.u32 %v1165_v16, %v1162_v40  ;;  %v1188_v27 = vmul.u32 %v1186_v45, %v1162_v40  ;;  %v6754_v28 = vmul.u32 %v1186_v45, %v1163_v19 }
 0x172   : > { %v1166_v31 = vmul.u32 %v1164_v21, %v1162_v40  ;;  %v1168_v33 = vmul.u32 %v1164_v21, %v1163_v19  ;;  %v1191_v56 = vmul.u32 %v1187_v15, %v1163_v19  ;;  %v1169_v35 = vmul.u32 %v1165_v16, %v1163_v19 }
 0x173   : > { %v1192_v30 = vshll.u32 %v1189_v20, 16  ;;  %v1170_v37 = vshll.u32 %v1167_v25, 16  ;;  %v1194_v44 = vshll.u32 %v6754_v28, 16  ;;  %v6763_v59 = vsub.s32 32, %v2367_v53 }
 0x174   : > { %v1172_v50 = vshll.u32 %v1168_v33, 16  ;;  %v1193_v6 = vshrl.u32 %v1189_v20, 16  ;;  %v2379_v8 = vshll.u32 %v13003_v36, %v2367_v53  ;;  %v2382_v13 = vshll.u32 %v13001_v38, %v2367_v53 }
 0x175   : > { %vm1196_vm8 = vc.u32 %v1188_v27, %v1192_v30  ;;  %v1198_v47 = vadd.s32 %v1192_v30, %v1188_v27  ;;  %vm1174_vm9 = vc.u32 %v1166_v31, %v1170_v37  ;;  %v1176_v52 = vadd.s32 %v1170_v37, %v1166_v31  ;;  %v6785_v27 = vpop.f32.mrf.mxu1 }
 0x176   : > { %v1197_v57 = vsel %vm1196_vm8, 1, %v12997_v2  ;;  %v1175_v58 = vsel %vm1174_vm9, 1, %v12997_v2  ;;  %v2380_v9 = vshrl.u32 %v13001_v38, %v6763_v59  ;;  %v2383_v14 = vshrl.u32 %v12999_v46, %v6763_v59 }
 0x177   : > { %vm1200_vm10 = vc.u32 %v1198_v47, %v1194_v44  ;;  %vm1178_vm11 = vc.u32 %v1176_v52, %v1172_v50  ;;  %v1199_v0 = vadd.s32 %v1197_v57, %v1191_v56  ;;  %v1177_v1 = vadd.s32 %v1175_v58, %v1169_v35 }
 0x178   : > { %v1201_v3 = vsel %vm1200_vm10, 1, %v12997_v2  ;;  %v1179_v4 = vsel %vm1178_vm11, 1, %v12997_v2  ;;  %v1171_v40 = vshrl.u32 %v1167_v25, 16  ;;  %v2370_v16 = vshll.u32 %v13007_v49, %v2367_v53 }
 0x179   : > { %v1203_v10 = vadd.s32 %v1201_v3, %v1199_v0  ;;  %v1181_v15 = vadd.s32 %v1179_v4, %v1177_v1  ;;  %v2371_v17 = vshrl.u32 %v13009_v51, %v6763_v59  ;;  %v2373_v19 = vshll.u32 %v13009_v51, %v2367_v53 }
 0x17a   : > { %v2374_v45 = vshrl.u32 %v13011_v54, %v6763_v59  ;;  %v2376_v20 = vshll.u32 %v13011_v54, %v2367_v53  ;;  %v2377_v21 = vshrl.u32 %v13003_v36, %v6763_v59  ;;  %v2381_v30 = vor.u32 %v2380_v9, %v2379_v8 }
 0x17b   : > { %v1204_v25 = vadd.s32 %v1203_v10, %v1193_v6  ;;  %v2360_v31 = vand.u32 8388607, %v12996_v7  ;;  %v2384_v37 = vor.u32 %v2383_v14, %v2382_v13  ;;  %vm2388_vm12 = vcmp.lt.s32.totalorder %v6771_v12, 4 }
 0x17c   : > { %v1150_v50 = vsel %vm1148_vm1, %v6719_v63, 2102212464  ;;  %v1182_v52 = vadd.s32 %v1181_v15, %v1171_v40  ;;  %v1271_v53 = vand.u32 2139095040, %v6785_v27  ;;  %v1195_v56 = vshrl.u32 %v6754_v28, 16 }
 0x17d   : > { %v6797_v35 = vor.u32 %v2371_v17, %v2370_v16  ;;  %v6799_v57 = vor.u32 %v2374_v45, %v2373_v19  ;;  %v6801_v58 = vor.u32 %v2377_v21, %v2376_v20  ;;  %v1173_v0 = vshrl.u32 %v1168_v33, 16 }
 0x17e   : > { %vm2385_vm13 = vcmp.lt.s32.totalorder %v6771_v12, 1  ;;  %vm2387_vm14 = vcmp.lt.s32.totalorder %v6771_v12, 3  ;;  %v2394_v34 = vsel %vm2388_vm12, %v2381_v30, 920167782  ;;  %v1205_v63 = vadd.s32 %v1204_v25, %v1195_v56 }
 0x17f   : > { %v2398_v1 = vsel %vm2388_vm12, %v2384_v37, 1326507024  ;;  %v1149_v3 = vsel %vm1145_vm4, %v1129_v39, %v6715_v61  ;;  %v6812_v4 = vadd.s32 %v1182_v52, %v1173_v0  ;;  %v2361_v6 = vor.u32 8388608, %v2360_v31 }
 0x180   : > { %v1151_v33 = vsel %vm1147_vm5, %v6717_v62, %v1150_v50  ;;  %vm2386_vm15 = vcmp.lt.s32.totalorder %v6771_v12, 2  ;;  %v2393_v8 = vsel %vm2385_vm13, %v6797_v35, %v6799_v57  ;;  %v2395_v9 = vsel %vm2387_vm14, %v6801_v58, %v2394_v34 }
 0x181   : > { %v6827_v61 = vadd.s32 %v1198_v47, %v1194_v44  ;;  %v2397_v62 = vsel %vm2385_vm13, %v6799_v57, %v6801_v58  ;;  %v2399_v10 = vsel %vm2387_vm14, %v2381_v30, %v2398_v1  ;;  %v1272_v13 = vshrl.u32 %v1271_v53, 23 }
 0x182   : > { %v1209_v14 = vadd.s32 1, %v1205_v63  ;;  %v2396_v40 = vsel %vm2386_vm15, %v2393_v8, %v2395_v9  ;;  %v1152_v28 = vsel %vm1146_vm6, %v1149_v3, %v1151_v33  ;;  %v2400_v44 = vsel %vm2386_vm15, %v2397_v62, %v2399_v10 }
 0x183   : > { %vm1208_vm0 = vc.u32 %v6812_v4, %v6827_v61  ;;  %v6843_v47 = vshll.u32 %v2361_v6, 8  ;;  %v6192_v15 = vadd.s32 4294967169, %v1272_v13  ;;  %v2427_v17 = vshrl.u32 %v2396_v40, 16 }
 0x184   : > { %v1210_v16 = vsel %vm1208_vm0, %v1209_v14, %v1205_v63  ;;  %v1206_v19 = vmul.u32 %v6744_v11, %v1152_v28  ;;  %v2405_v45 = vshrl.u32 %v2400_v44, 16  ;;  %v2426_v37 = vand.u32 65535, %v2396_v40 }
 0x185   : > { %v2402_v20 = vand.u32 65535, %v6843_v47  ;;  %v1278_v30 = vadd.s32 1, %v6192_v15  ;;  %v2404_v39 = vand.u32 65535, %v2400_v44  ;;  %v2403_v50 = vshrl.u32 %v6843_v47, 16 }
 0x186   : > { %v1211_v21 = vadd.s32 %v1210_v16, %v1206_v19 }
 0x187   : > { %v2429_v25 = vmul.u32 %v2427_v17, %v2402_v20  ;;  %v2407_v31 = vmul.u32 %v2405_v45, %v2402_v20  ;;  %vm1279_vm2 = vcmp.gt.s32.totalorder %v1278_v30, 0  ;;  %v2428_v56 = vmul.u32 %v2426_v37, %v2402_v20 }
 0x188   : > { %v1212_v43 = vadd.s32 536870912, %v1211_v21  ;;  %v6848_v0 = vmul.u32 %v2426_v37, %v2403_v50  ;;  %v1280_v34 = vsel %vm1279_vm2, %v1278_v30, 0  ;;  %v2406_v63 = vmul.u32 %v2404_v39, %v2402_v20 }
 0x189   : > { %v2432_v52 = vshll.u32 %v2429_v25, 16  ;;  %v2410_v53 = vshll.u32 %v2407_v31, 16  ;;  %v6852_v1 = vmul.u32 %v2404_v39, %v2403_v50  ;;  %v1282_v33 = vand.u32 31, %v1280_v34 }
 0x18a   : > { %v6850_v11 = vshrl.u32 %v1212_v43, 30  ;;  %v2434_v8 = vshll.u32 %v6848_v0, 16  ;;  %v2431_v14 = vmul.u32 %v2427_v17, %v2403_v50  ;;  %v2409_v40 = vmul.u32 %v2405_v45, %v2403_v50 }
 0x18b   : > { %vm2436_vm3 = vc.u32 %v2428_v56, %v2432_v52  ;;  %v6854_v3 = vadd.s32 %v2432_v52, %v2428_v56  ;;  %vm2414_vm1 = vc.u32 %v2406_v63, %v2410_v53  ;;  %v2416_v6 = vadd.s32 %v2410_v53, %v2406_v63 }
 0x18c   : > { %v1214_v9 = vshll.u32 %v6850_v11, 30  ;;  %v2412_v62 = vshll.u32 %v6852_v1, 16  ;;  %v2437_v10 = vsel %vm2436_vm3, 1, %v12997_v2  ;;  %v2415_v13 = vsel %vm2414_vm1, 1, %v12997_v2 }
 0x18d   : > { %vm2440_vm4 = vc.u32 %v6854_v3, %v2434_v8  ;;  %v6864_v28 = vsub.s32 32, %v1282_v33  ;;  %v2439_v44 = vadd.s32 %v2437_v10, %v2431_v14  ;;  %v2417_v16 = vadd.s32 %v2415_v13, %v2409_v40 }
 0x18e   : > { %vm2418_vm5 = vc.u32 %v2416_v6, %v2412_v62  ;;  %v6866_v15 = vsub.s32 %v1211_v21, %v1214_v9  ;;  %v2441_v19 = vsel %vm2440_vm4, 1, %v12997_v2  ;;  %v12995_v30 = vand.u32 2147483647, %v6785_v27 }
 0x18f   : > { %v2419_v20 = vsel %vm2418_vm5, 1, %v12997_v2  ;;  %v1297_v17 = vshll.u32 %v13001_v38, %v1282_v33  ;;  %v1298_v37 = vshrl.u32 %v12999_v46, %v6864_v28  ;;  %v2443_v43 = vadd.s32 %v2441_v19, %v2439_v44  ;;  %v6901_v19 = vpop.f32.mrf.mxu0 }
 0x190   : > { %v6874_v45 = vshrl.u32 %v1280_v34, 5  ;;  %v1294_v39 = vshll.u32 %v13003_v36, %v1282_v33  ;;  %v1295_v21 = vshrl.u32 %v13001_v38, %v6864_v28  ;;  %vm1216_vm6 = vcmp.lt.s32.totalorder %v6866_v15, 0  ;;  %13211 = vst [vmem:[#allocation14_spill] sm:$0xff] %v6901_v19 }
 0x191   : > { %v1217_v50 = vsub.s32 0, %v6866_v15  ;;  %v2421_v52 = vadd.s32 %v2419_v20, %v2417_v16  ;;  %v2433_v53 = vshrl.u32 %v2429_v25, 16  ;;  %v1288_v56 = vshll.u32 %v13009_v51, %v1282_v33 }
 0x192   : > { %v1289_v63 = vshrl.u32 %v13011_v54, %v6864_v28  ;;  %v1291_v6 = vshll.u32 %v13011_v54, %v1282_v33  ;;  %v1292_v34 = vshrl.u32 %v13003_v36, %v6864_v28  ;;  %v2411_v9 = vshrl.u32 %v2407_v31, 16 }
 0x193   : > { %v1285_v62 = vshll.u32 %v13007_v49, %v1282_v33  ;;  %v1286_v10 = vshrl.u32 %v13009_v51, %v6864_v28  ;;  %v1299_v13 = vor.u32 %v1298_v37, %v1297_v17  ;;  %v2369_v25 = vshrl.u32 %v13007_v49, %v6763_v59 }
 0x194   : > { %v2444_v14 = vadd.s32 %v2443_v43, %v2433_v53  ;;  %v1296_v40 = vor.u32 %v1295_v21, %v1294_v39  ;;  %vm1303_vm7 = vcmp.lt.s32.totalorder %v6874_v45, 4  ;;  %v1218_v44 = vsel %vm1216_vm6, %v1217_v50, %v6866_v15 }
 0x195   : > { %v2390_v31 = vsel %vm2388_vm12, %v6801_v58, 2102212464  ;;  %v2422_v33 = vadd.s32 %v2421_v52, %v2411_v9  ;;  %v1275_v16 = vand.u32 8388607, %v12995_v30  ;;  %v2413_v59 = vshrl.u32 %v6852_v1, 16 }
 0x196   : > { %v2435_v20 = vshrl.u32 %v6848_v0, 16  ;;  %v6905_v17 = vor.u32 %v1289_v63, %v1288_v56  ;;  %v6907_v37 = vor.u32 %v1292_v34, %v1291_v6  ;;  %v6909_v43 = vor.u32 %v1286_v10, %v1285_v62 }
 0x197   : > { %vm1300_vm8 = vcmp.lt.s32.totalorder %v6874_v45, 1  ;;  %vm1302_vm9 = vcmp.lt.s32.totalorder %v6874_v45, 3  ;;  %v1313_v58 = vsel %vm1303_vm7, %v1299_v13, 1326507024  ;;  %v1219_v39 = vclz %v1218_v44 }
 0x198   : > { %v2445_v21 = vadd.s32 %v2444_v14, %v2435_v20  ;;  %v1309_v1 = vsel %vm1303_vm7, %v1296_v40, 920167782  ;;  %v3596_v50 = vand.u32 2139095040, %v6901_v19  ;;  %v2389_v52 = vsel %vm2385_vm13, %v2369_v25, %v6797_v35 }
 0x199   : > { %v6921_v53 = vadd.s32 %v2422_v33, %v2413_v59  ;;  %v1276_v56 = vor.u32 8388608, %v1275_v16  ;;  %vm1301_vm10 = vcmp.lt.s32.totalorder %v6874_v45, 2  ;;  %v1312_v63 = vsel %vm1300_vm8, %v6905_v17, %v6907_v37 }
 0x19a   : > { %v1314_v6 = vsel %vm1302_vm9, %v1296_v40, %v1313_v58  ;;  %v2391_v34 = vsel %vm2387_vm14, %v6799_v57, %v2390_v31  ;;  %v6936_v35 = vadd.s32 %v6854_v3, %v2434_v8  ;;  %v1308_v9 = vsel %vm1300_vm8, %v6909_v43, %v6905_v17 }
 0x19b   : > { %v1310_v62 = vsel %vm1302_vm9, %v6907_v37, %v1309_v1  ;;  %v6190_v10 = vadd.s32 4294967294, %v1219_v39  ;;  %v2449_v13 = vadd.s32 1, %v2445_v21  ;;  %v3597_v25 = vshrl.u32 %v3596_v50, 23 }
 0x19c   : > { %vm2448_vm11 = vc.u32 %v6921_v53, %v6936_v35  ;;  %v1315_v57 = vsel %vm1301_vm10, %v1312_v63, %v1314_v6  ;;  %v2392_v0 = vsel %vm2386_vm15, %v2389_v52, %v2391_v34  ;;  %v1311_v3 = vsel %vm1301_vm10, %v1308_v9, %v1310_v62 }
 0x19d   : > { %v6953_v8 = vshll.u32 %v1276_v56, 8  ;;  %vm6191_vm12 = vcmp.lt.s32.totalorder %v6190_v10, 0  ;;  %v2450_v14 = vsel %vm2448_vm11, %v2449_v13, %v2445_v21  ;;  %v1320_v40 = vshrl.u32 %v1315_v57, 16 }
 0x19e   : > { %v6237_v44 = vadd.s32 4294967169, %v3597_v25  ;;  %v2446_v31 = vmul.u32 %v6843_v47, %v2392_v0  ;;  %v1342_v33 = vshrl.u32 %v1311_v3, 16  ;;  %v1222_v59 = vsel %vm6191_vm12, 0, %v6190_v10 }
 0x19f   : > { %v1317_v16 = vand.u32 65535, %v6953_v8  ;;  %v1227_v1 = vsub.s32 4294967266, %v1222_v59  ;;  %v1319_v50 = vand.u32 65535, %v1315_v57  ;;  %v1341_v56 = vand.u32 65535, %v1311_v3 }
 0x1a0   : > { %v2451_v20 = vadd.s32 %v2450_v14, %v2446_v31  ;;  %v3603_v12 = vadd.s32 1, %v6237_v44  ;;  %v1318_v21 = vshrl.u32 %v6953_v8, 16  ;;  %v1223_v47 = vsub.s32 32, %v1222_v59  ;;  %v6974_v31 = vpop.f32.mrf.mxu1 }
 0x1a1   : > { %v6957_v58 = vmul.u32 %v1320_v40, %v1317_v16  ;;  %v6959_v39 = vmul.u32 %v1342_v33, %v1317_v16  ;;  %v1207_v34 = vadd.s32 %v6827_v61, %v6812_v4  ;;  %v1228_v9 = vadd.s32 127, %v1227_v1  ;;  %13212 = vst [vmem:[#allocation15_spill] sm:$0xff] %v6974_v31 }
 0x1a2   : > { %v2452_v52 = vadd.s32 536870912, %v2451_v20  ;;  %vm3604_vm13 = vcmp.gt.s32.totalorder %v3603_v12, 0  ;;  %v1321_v62 = vmul.u32 %v1319_v50, %v1317_v16  ;;  %v6966_v10 = vmul.u32 %v1319_v50, %v1318_v21 }
 0x1a3   : > { %v1325_v63 = vshll.u32 %v6957_v58, 16  ;;  %v1347_v6 = vshll.u32 %v6959_v39, 16  ;;  %v1343_v25 = vmul.u32 %v1341_v56, %v1317_v16  ;;  %v6970_v57 = vmul.u32 %v1341_v56, %v1318_v21 }
 0x1a4   : > { %v6968_v13 = vshrl.u32 %v2452_v52, 30  ;;  %v3605_v0 = vsel %vm3604_vm13, %v3603_v12, 0  ;;  %v1225_v14 = vshrl.u32 %v1207_v34, %v1223_v47  ;;  %v1229_v30 = vshll.u32 %v1228_v9, 23 }
 0x1a5   : > { %vm1329_vm14 = vc.u32 %v1321_v62, %v1325_v63  ;;  %v1331_v3 = vadd.s32 %v1325_v63, %v1321_v62  ;;  %vm1351_vm15 = vc.u32 %v1343_v25, %v1347_v6  ;;  %v6972_v44 = vadd.s32 %v1347_v6, %v1343_v25 }
 0x1a6   : > { %v1327_v4 = vshll.u32 %v6966_v10, 16  ;;  %v3607_v61 = vand.u32 31, %v3605_v0  ;;  %v1224_v1 = vshll.u32 %v6866_v15, %v1222_v59  ;;  %v2454_v50 = vshll.u32 %v6968_v13, 30 }
 0x1a7   : > { %v1330_v16 = vsel %vm1329_vm14, 1, %v12997_v2  ;;  %v1349_v12 = vshll.u32 %v6970_v57, 16  ;;  %v1324_v52 = vmul.u32 %v1320_v40, %v1318_v21  ;;  %v1352_v56 = vsel %vm1351_vm15, 1, %v12997_v2 }
 0x1a8   : > { %vm1333_vm0 = vc.u32 %v1331_v3, %v1327_v4  ;;  %v2511_v63 = vand.u32 2139095040, %v6974_v31  ;;  %v1226_v47 = vor.u32 %v1225_v14, %v1224_v1  ;;  %v1346_v6 = vmul.u32 %v1342_v33, %v1318_v21 }
 0x1a9   : > { %vm1355_vm2 = vc.u32 %v6972_v44, %v1349_v12  ;;  %v1230_v34 = vor.u32 4788187, %v1229_v30  ;;  %v1332_v15 = vadd.s32 %v1330_v16, %v1324_v52  ;;  %v6986_v59 = vsub.s32 32, %v3607_v61 }
 0x1aa   : > { %v6988_v9 = vsub.s32 %v2451_v20, %v2454_v50  ;;  %v1334_v62 = vsel %vm1333_vm0, 1, %v12997_v2  ;;  %v1354_v40 = vadd.s32 %v1352_v56, %v1346_v6  ;;  %v1356_v25 = vsel %vm1355_vm2, 1, %v12997_v2 }
 0x1ab   : > { %v2512_v3 = vshrl.u32 %v2511_v63, 23  ;;  %v1233_v4 = vcvt.s32.f32 %v1226_v47  ;;  %v1231_v7 = vand.u32 2147483647, %v1230_v34  ;;  %v1336_v14 = vadd.s32 %v1334_v62, %v1332_v15 }
 0x1ac   : > { %v3620_v33 = vshrl.u32 %v13001_v38, %v6986_v59  ;;  %v3623_v30 = vshrl.u32 %v12999_v46, %v6986_v59  ;;  %vm2456_vm3 = vcmp.lt.s32.totalorder %v6988_v9, 0  ;;  %v1326_v20 = vshrl.u32 %v6957_v58, 16 }
 0x1ad   : > { %v1348_v21 = vshrl.u32 %v6959_v39, 16  ;;  %v1358_v1 = vadd.s32 %v1356_v25, %v1354_v40  ;;  %v13006_v50 = vand.u32 2147483647, %v6901_v19  ;;  %v3619_v16 = vshll.u32 %v13003_v36, %v3607_v61 }
 0x1ae   : > { %v3622_v52 = vshll.u32 %v13001_v38, %v3607_v61  ;;  %v6216_v56 = vadd.s32 4294967169, %v2512_v3  ;;  %v7002_v63 = vshrl.u32 %v3605_v0, 5  ;;  %v3611_v47 = vshrl.u32 %v13009_v51, %v6986_v59 }
 0x1af   : > { %v3614_v6 = vshrl.u32 %v13011_v54, %v6986_v59  ;;  %v3617_v58 = vshrl.u32 %v13003_v36, %v6986_v59  ;;  %v2457_v39 = vsub.s32 0, %v6988_v9  ;;  %v1337_v34 = vadd.s32 %v1336_v14, %v1326_v20 }
 0x1b0   : > { %v3621_v15 = vor.u32 %v3620_v33, %v3619_v16  ;;  %v3624_v62 = vor.u32 %v3623_v30, %v3622_v52  ;;  %v1359_v40 = vadd.s32 %v1358_v1, %v1348_v21  ;;  %v3610_v25 = vshll.u32 %v13007_v49, %v3607_v61 }
 0x1b1   : > { %v3613_v0 = vshll.u32 %v13009_v51, %v3607_v61  ;;  %v3616_v3 = vshll.u32 %v13011_v54, %v3607_v61  ;;  %v1328_v2 = vshrl.u32 %v6966_v10, 16  ;;  %v1350_v46 = vshrl.u32 %v6970_v57, 16 }
 0x1b2   : > { %v3600_v38 = vand.u32 8388607, %v13006_v50  ;;  %v2518_v36 = vadd.s32 1, %v6216_v56  ;;  %v7018_v42 = vor.u32 %v3611_v47, %v3610_v25  ;;  %vm3628_vm1 = vcmp.lt.s32.totalorder %v7002_v63, 4 }
 0x1b3   : > { %v7020_v14 = vor.u32 %v3614_v6, %v3613_v0  ;;  %v7022_v33 = vor.u32 %v3617_v58, %v3616_v3  ;;  %v1284_v30 = vshrl.u32 %v13007_v49, %v6864_v28  ;;  %v1305_v10 = vsel %vm1303_vm7, %v6907_v37, 2102212464 }
 0x1b4   : > { %v3634_v61 = vsel %vm3628_vm1, %v3621_v15, 920167782  ;;  %v3638_v20 = vsel %vm3628_vm1, %v3624_v62, 1326507024  ;;  %v1234_v21 = vmul.f32 %v1233_v4, %v1231_v7  ;;  %v2458_v1 = vsel %vm2456_vm3, %v2457_v39, %v6988_v9 }
 0x1b5   : > { %v7037_v16 = vadd.s32 %v1337_v34, %v1328_v2  ;;  %v1360_v52 = vadd.s32 %v1359_v40, %v1350_v46  ;;  %v3601_v56 = vor.u32 8388608, %v3600_v38  ;;  %vm3625_vm4 = vcmp.lt.s32.totalorder %v7002_v63, 1 }
 0x1b6   : > { %vm3627_vm5 = vcmp.lt.s32.totalorder %v7002_v63, 3  ;;  %vm2519_vm6 = vcmp.gt.s32.totalorder %v2518_v36, 0  ;;  %v3633_v28 = vsel %vm3625_vm4, %v7018_v42, %v7020_v14  ;;  %v3637_v2 = vsel %vm3625_vm4, %v7020_v14, %v7022_v33 }
 0x1b7   : > { %v3635_v7 = vsel %vm3627_vm5, %v7022_v33, %v3634_v61  ;;  %v3639_v38 = vsel %vm3627_vm5, %v3621_v15, %v3638_v20  ;;  %v2459_v46 = vclz %v2458_v1  ;;  %v1304_v37 = vsel %vm1300_vm8, %v1284_v30, %v6909_v43 }
 0x1b8   : > { %v1306_v4 = vsel %vm1302_vm9, %v6905_v17, %v1305_v10  ;;  %v7063_v47 = vadd.s32 %v6972_v44, %v1349_v12  ;;  %v1235_v6 = vxor.u32 2147483648, %v1234_v21  ;;  %v1364_v58 = vadd.s32 1, %v1360_v52 }
 0x1b9   : > { %vm3626_vm7 = vcmp.lt.s32.totalorder %v7002_v63, 2  ;;  %v2520_v39 = vsel %vm2519_vm6, %v2518_v36, 0  ;;  %v1307_v17 = vsel %vm1301_vm10, %v1304_v37, %v1306_v4  ;;  %v7076_v57 = vshll.u32 %v3601_v56, 8 }
 0x1ba   : > { %vm1363_vm11 = vc.u32 %v7037_v16, %v7063_v47  ;;  %v3636_v43 = vsel %vm3626_vm7, %v3633_v28, %v3635_v7  ;;  %v7072_v34 = vsel %vm3626_vm7, %v3637_v2, %v3639_v38  ;;  %vm1115_vm8 = vcmp.lt.s32.totalorder %v6679_v24, 0 }
 0x1bb   : > { %v6214_v44 = vadd.s32 4294967294, %v2459_v46  ;;  %v2522_v12 = vand.u32 31, %v2520_v39  ;;  %v1236_v36 = vsel %vm1115_vm8, %v1235_v6, %v1234_v21  ;;  %v1365_v15 = vsel %vm1363_vm11, %v1364_v58, %v1360_v52 }
 0x1bc   : > { %v3645_v62 = vshrl.u32 %v7072_v34, 16  ;;  %v3667_v40 = vshrl.u32 %v3636_v43, 16  ;;  %v1237_v25 = vsub.s32 4, %v6850_v11  ;;  %v1361_v0 = vmul.u32 %v6953_v8, %v1307_v17 }
 0x1bd   : > { %v13213_v45 = vand.u32 2147483647, %v6679_v24  ;;  %v3642_v30 = vand.u32 65535, %v7076_v57  ;;  %vm6215_vm10 = vcmp.lt.s32.totalorder %v6214_v44, 0  ;;  %v7098_v20 = vsub.s32 32, %v2522_v12 }
 0x1be   : > { %v7096_v61 = vadd.s32 %v1365_v15, %v1361_v0  ;;  %v3666_v8 = vand.u32 65535, %v3636_v43  ;;  %v7107_v52 = vsel %vm1115_vm8, %v1237_v25, %v6850_v11  ;;  %v7113_v28 = vsel %vm6215_vm10, 0, %v6214_v44 }
 0x1bf   : > { %vm7086_vm9 = vcmp.le.f32.partialorder %v13213_v45, 0.7853982  ;;  %v7100_v21 = vmul.u32 %v3645_v62, %v3642_v30  ;;  %v7102_v1 = vmul.u32 %v3667_v40, %v3642_v30  ;;  %v3643_v7 = vshrl.u32 %v7076_v57, 16 }
 0x1c0   : > { %v7094_v10 = vsel %vm7086_vm9, %v6679_v24, %v1236_v36  ;;  %v1367_v38 = vadd.s32 536870912, %v7096_v61  ;;  %v3644_v46 = vand.u32 65535, %v7072_v34  ;;  %v13216_v37 = vmov 2102212464   ;;  %v7126_v36 = vpop.f32.mrf.mxu0 }
 0x1c1   : > { %v7111_v56 = vmul.f32 %v7094_v10, %v7094_v10  ;;  %v2534_v4 = vshll.u32 %v13216_v37, %v2522_v12  ;;  %v13217_v6 = vmov 920167782   ;;  %v3650_v58 = vshll.u32 %v7100_v21, 16  ;;  %13218 = vst [vmem:[#allocation16_spill] sm:$0xff] %v7126_v36 }
 0x1c2   : > { %v2535_v11 = vshrl.u32 %v13217_v6, %v7098_v20  ;;  %v3668_v43 = vmul.u32 %v3666_v8, %v3642_v30  ;;  %v3672_v17 = vshll.u32 %v7102_v1, 16  ;;  %v7124_v44 = vshrl.u32 %v2520_v39, 5 }
 0x1c3   : > { %v2525_v15 = vshll.u32 %v13007_v49, %v2522_v12  ;;  %v2528_v25 = vshll.u32 %v13009_v51, %v2522_v12  ;;  %v2537_v34 = vshll.u32 %v13217_v6, %v2522_v12  ;;  %v13219_v0 = vmov 1326507024  }
 0x1c4   : > { %v2538_v45 = vshrl.u32 %v13219_v0, %v7098_v20  ;;  %v2526_v50 = vshrl.u32 %v13009_v51, %v7098_v20  ;;  %v2529_v2 = vshrl.u32 %v13011_v54, %v7098_v20  ;;  %v2531_v39 = vshll.u32 %v13011_v54, %v2522_v12 }
 0x1c5   : > { %v2532_v55 = vshrl.u32 %v13216_v37, %v7098_v20  ;;  %v3646_v32 = vmul.u32 %v3644_v46, %v3642_v30  ;;  %v7140_v49 = vmul.u32 %v3666_v8, %v3643_v7  ;;  %v2536_v18 = vor.u32 %v2535_v11, %v2534_v4 }
 0x1c6   : > { %v4836_v29 = vand.u32 2139095040, %v7126_v36  ;;  %v7143_v5 = vshrl.u32 %v1367_v38, 30  ;;  %v7145_v41 = vmul.u32 %v3644_v46, %v3643_v7  ;;  %vm7147_vm12 = vc.u32 %v3668_v43, %v3672_v17 }
 0x1c7   : > { %v13222_v26 = vand.u32 2147483647, %v6974_v31  ;;  %vm3654_vm13 = vc.u32 %v3646_v32, %v3650_v58  ;;  %v3656_v54 = vadd.s32 %v3650_v58, %v3646_v32  ;;  %v7153_v23 = vadd.s32 %v3672_v17, %v3668_v43 }
 0x1c8   : > { %v2539_v30 = vor.u32 %v2538_v45, %v2537_v34  ;;  %v7155_v8 = vor.u32 %v2526_v50, %v2525_v15  ;;  %v7157_v4 = vor.u32 %v2529_v2, %v2528_v25  ;;  %v7159_v38 = vor.u32 %v2532_v55, %v2531_v39 }
 0x1c9   : > { %v2515_v12 = vand.u32 8388607, %v13222_v26  ;;  %vm2543_vm14 = vcmp.lt.s32.totalorder %v7124_v44, 4  ;;  %v3671_v46 = vmul.u32 %v3667_v40, %v3643_v7  ;;  %v3674_v11 = vshll.u32 %v7140_v49, 16 }
 0x1ca   : > { %v2549_v48 = vsel %vm2543_vm14, %v2536_v18, 920167782  ;;  %v4837_v26 = vshrl.u32 %v4836_v29, 23  ;;  %v3649_v31 = vmul.u32 %v3645_v62, %v3643_v7  ;;  %v3652_v32 = vshll.u32 %v7145_v41, 16 }
 0x1cb   : > { %v13223_v58 = vmov 0   ;;  %vm3680_vm15 = vc.u32 %v7153_v23, %v3674_v11  ;;  %vm2540_vm0 = vcmp.lt.s32.totalorder %v7124_v44, 1  ;;  %vm2542_vm2 = vcmp.lt.s32.totalorder %v7124_v44, 3 }
 0x1cc   : > { %v3655_v43 = vsel %vm3654_vm13, 1, %v13223_v58  ;;  %v3677_v50 = vsel %vm7147_vm12, 1, %v13223_v58  ;;  %v2553_v29 = vsel %vm2543_vm14, %v2539_v30, 1326507024  ;;  %vm3658_vm3 = vc.u32 %v3656_v54, %v3652_v32 }
 0x1cd   : > { %v2516_v55 = vor.u32 8388608, %v2515_v12  ;;  %v2548_v62 = vsel %vm2540_vm0, %v7155_v8, %v7157_v4  ;;  %v2550_v51 = vsel %vm2542_vm2, %v7159_v38, %v2549_v48  ;;  %v1369_v40 = vshll.u32 %v7143_v5, 30 }
 0x1ce   : > { %v3657_v7 = vadd.s32 %v3655_v43, %v3649_v31  ;;  %v3679_v2 = vadd.s32 %v3677_v50, %v3671_v46  ;;  %v6261_v17 = vadd.s32 4294967169, %v4837_v26  ;;  %v3681_v15 = vsel %vm3680_vm15, 1, %v13223_v58 }
 0x1cf   : > { %vm2541_vm6 = vcmp.lt.s32.totalorder %v7124_v44, 2  ;;  %v2552_v54 = vsel %vm2540_vm0, %v7157_v4, %v7159_v38  ;;  %v2554_v25 = vsel %vm2542_vm2, %v2536_v18, %v2553_v29  ;;  %v3659_v34 = vsel %vm3658_vm3, 1, %v13223_v58 }
 0x1d0   : > { %v7196_v48 = vsel %vm2541_vm6, %v2548_v62, %v2550_v51  ;;  %v1240_v31 = vsel %vm7086_vm9, 0, %v7107_v52  ;;  %v2467_v45 = vsub.s32 4294967266, %v7113_v28  ;;  %v2477_v39 = vsub.s32 4, %v6968_v13 }
 0x1d1   : > { %v7203_v12 = vshll.u32 %v2516_v55, 8  ;;  %v7206_v30 = vsub.s32 %v7096_v61, %v1369_v40  ;;  %v3683_v18 = vadd.s32 %v3681_v15, %v3679_v2  ;;  %v7210_v46 = vsel %vm2541_vm6, %v2552_v54, %v2554_v25 }
 0x1d2   : > { %v4843_v26 = vadd.s32 1, %v6261_v17  ;;  %v1242_v32 = vmul.f32 -0.001358992, %v7111_v56  ;;  %vm2355_vm11 = vcmp.lt.s32.totalorder %v6713_v60, 0  ;;  %v3661_v3 = vadd.s32 %v3659_v34, %v3657_v7 }
 0x1d3   : > { %v13015_v52 = vshrl.u32 %v7196_v48, 16  ;;  %v1249_v43 = vmul.f32 -0.00019511016, %v7111_v56  ;;  %v7216_v50 = vadd.s32 3, %v1240_v31  ;;  %v2447_v61 = vadd.s32 %v6936_v35, %v6921_v53 }
 0x1d4   : > { %v3673_v29 = vshrl.u32 %v7102_v1, 16  ;;  %v7224_v55 = vsel %vm2355_vm11, %v2477_v39, %v6968_v13  ;;  %v3651_v62 = vshrl.u32 %v7100_v21, 16  ;;  %v2557_v51 = vand.u32 65535, %v7203_v12 }
 0x1d5   : > { %v2560_v40 = vshrl.u32 %v7210_v46, 16  ;;  %v2468_v7 = vadd.s32 127, %v2467_v45  ;;  %v1372_v2 = vsub.s32 0, %v7206_v30  ;;  %vm4844_vm8 = vcmp.gt.s32.totalorder %v4843_v26, 0 }
 0x1d6   : > { %v3684_v17 = vadd.s32 %v3683_v18, %v3673_v29  ;;  %v1243_v15 = vadd.f32 0.041655596, %v1242_v32  ;;  %vm1371_vm9 = vcmp.lt.s32.totalorder %v7206_v30, 0  ;;  %v3662_v53 = vadd.s32 %v3661_v3, %v3651_v62 }
 0x1d7   : > { %v7233_v35 = vmul.u32 %v13015_v52, %v2557_v51  ;;  %v1250_v13 = vadd.f32 0.008332121, %v1249_v43  ;;  %v2463_v21 = vsub.s32 32, %v7113_v28  ;;  %v3630_v1 = vsel %vm3628_vm1, %v7022_v33, 2102212464 }
 0x1d8   : > { %v3675_v54 = vshrl.u32 %v7140_v49, 16  ;;  %v3653_v25 = vshrl.u32 %v7145_v41, 16  ;;  %v7241_v34 = vmul.u32 %v2560_v40, %v2557_v51  ;;  %v2581_v31 = vand.u32 65535, %v7196_v48 }
 0x1d9   : > { %v4845_v45 = vsel %vm4844_vm8, %v4843_v26, 0  ;;  %v2469_v39 = vshll.u32 %v2468_v7, 23  ;;  %v1373_v18 = vsel %vm1371_vm9, %v1372_v2, %v7206_v30  ;;  %v13224_v32 = vmov 683565275  }
 0x1da   : > { %v3609_v3 = vshrl.u32 %v13224_v32, %v6986_v59  ;;  %v3685_v43 = vadd.s32 %v3684_v17, %v3675_v54  ;;  %v7247_v29 = vadd.s32 %v3662_v53, %v3653_v25  ;;  %v2558_v33 = vshrl.u32 %v7203_v12, 16 }
 0x1db   : > { %v2559_v62 = vand.u32 65535, %v7210_v46  ;;  %v2587_v41 = vshll.u32 %v7233_v35, 16  ;;  %v2465_v52 = vshrl.u32 %v2447_v61, %v2463_v21  ;;  %v3631_v7 = vsel %vm3627_vm5, %v7020_v14, %v3630_v1 }
 0x1dc   : > { %v3629_v26 = vsel %vm3625_vm4, %v3609_v3, %v7018_v42  ;;  %v4847_v2 = vand.u32 31, %v4845_v45  ;;  %v7261_v59 = vadd.s32 %v7153_v23, %v3674_v11  ;;  %v2565_v17 = vshll.u32 %v7241_v34, 16 }
 0x1dd   : > { %v2583_v46 = vmul.u32 %v2581_v31, %v2557_v51  ;;  %v7264_v53 = vmul.u32 %v2581_v31, %v2558_v33  ;;  %v2464_v61 = vshll.u32 %v6988_v9, %v7113_v28  ;;  %v7268_v21 = vor.u32 4788187, %v2469_v39 }
 0x1de   : > { %v1374_v42 = vclz %v1373_v18  ;;  %v3689_v54 = vadd.s32 1, %v3685_v43  ;;  %vm3688_vm1 = vc.u32 %v7247_v29, %v7261_v59  ;;  %v2561_v14 = vmul.u32 %v2559_v62, %v2557_v51 }
 0x1df   : > { %v7272_v49 = vmul.u32 %v2559_v62, %v2558_v33  ;;  %v7274_v23 = vadd.s32 %v2587_v41, %v2583_v46  ;;  %v7277_v11 = vmul.f32 %v1243_v15, %v7111_v56  ;;  %v3632_v1 = vsel %vm3626_vm7, %v3629_v26, %v3631_v7 }
 0x1e0   : > { %vm2591_vm4 = vc.u32 %v2583_v46, %v2587_v41  ;;  %v7281_v9 = vsub.s32 32, %v4847_v2  ;;  %v7284_v28 = vmul.f32 %v1250_v13, %v7111_v56  ;;  %v2466_v25 = vor.u32 %v2465_v52, %v2464_v61 }
 0x1e1   : > { %v2571_v31 = vadd.s32 %v2565_v17, %v2561_v14  ;;  %v13016_v51 = vshll.u32 %v7264_v53, 16  ;;  %v2471_v39 = vand.u32 2147483647, %v7268_v21  ;;  %v6193_v18 = vadd.s32 4294967294, %v1374_v42  ;;  %v7307_v42 = vpop.f32.mrf.mxu1 }
 0x1e2   : > { %v3690_v3 = vsel %vm3688_vm1, %v3689_v54, %v3685_v43  ;;  %vm2569_vm5 = vc.u32 %v2561_v14, %v2565_v17  ;;  %v3686_v15 = vmul.u32 %v7076_v57, %v3632_v1  ;;  %v2567_v63 = vshll.u32 %v7272_v49, 16  ;;  %13226 = vst [vmem:[#allocation17_spill] sm:$0xff] %v7307_v42 }
 0x1e3   : > { %v2592_v62 = vsel %vm2591_vm4, 1, %v13223_v58  ;;  %vm2595_vm7 = vc.u32 %v7274_v23, %v13016_v51  ;;  %v13225_v52 = vshrl.u32 %v7196_v48, 16  ;;  %v4860_v26 = vshrl.u32 %v13217_v6, %v7281_v9 }
 0x1e4   : > { %v4863_v43 = vshrl.u32 %v13219_v0, %v7281_v9  ;;  %v7301_v57 = vadd.s32 %v3690_v3, %v3686_v15  ;;  %v2564_v7 = vmul.u32 %v2560_v40, %v2558_v33  ;;  %v2570_v17 = vsel %vm2569_vm5, 1, %v13223_v58 }
 0x1e5   : > { %v2586_v13 = vmul.u32 %v13225_v52, %v2558_v33  ;;  %vm2573_vm10 = vc.u32 %v2571_v31, %v2567_v63  ;;  %v2596_v61 = vsel %vm2595_vm7, 1, %v13223_v58  ;;  %v4859_v48 = vshll.u32 %v13216_v37, %v4847_v2 }
 0x1e6   : > { %v4862_v21 = vshll.u32 %v13217_v6, %v4847_v2  ;;  %v7309_v54 = vshrl.u32 %v4845_v45, 5  ;;  %v13227_v14 = vmov 2475754826   ;;  %v13228_v3 = vmov 2131351028  }
 0x1e7   : > { %v2594_v46 = vadd.s32 %v2592_v62, %v2586_v13  ;;  %v4851_v1 = vshrl.u32 %v13227_v14, %v7281_v9  ;;  %v4854_v40 = vshrl.u32 %v13228_v3, %v7281_v9  ;;  %v4857_v33 = vshrl.u32 %v13216_v37, %v7281_v9 }
 0x1e8   : > { %v2572_v31 = vadd.s32 %v2570_v17, %v2564_v7  ;;  %v2574_v15 = vsel %vm2573_vm10, 1, %v13223_v58  ;;  %v4861_v63 = vor.u32 %v4860_v26, %v4859_v48  ;;  %v4864_v62 = vor.u32 %v4863_v43, %v4862_v21 }
 0x1e9   : > { %v4850_v52 = vshll.u32 %v13224_v32, %v4847_v2  ;;  %v4853_v13 = vshll.u32 %v13227_v14, %v4847_v2  ;;  %v4856_v45 = vshll.u32 %v13228_v3, %v4847_v2  ;;  %v3751_v51 = vand.u32 2139095040, %v7307_v42 }
 0x1ea   : > { %vm6194_vm12 = vcmp.lt.s32.totalorder %v6193_v18, 0  ;;  %v3692_v41 = vadd.s32 536870912, %v7301_v57  ;;  %v2598_v22 = vadd.s32 %v2596_v61, %v2594_v46  ;;  %v13229_v19 = vand.u32 2147483647, %v7126_v36 }
 0x1eb   : > { %v7325_v7 = vor.u32 %v4851_v1, %v4850_v52  ;;  %v7327_v17 = vor.u32 %v4854_v40, %v4853_v13  ;;  %v7329_v26 = vor.u32 %v4857_v33, %v4856_v45  ;;  %vm4868_vm13 = vcmp.lt.s32.totalorder %v7309_v54, 4 }
 0x1ec   : > { %v4840_v24 = vand.u32 8388607, %v13229_v19  ;;  %v2576_v43 = vadd.s32 %v2574_v15, %v2572_v31  ;;  %v2588_v2 = vshrl.u32 %v7233_v35, 16  ;;  %v4874_v48 = vsel %vm4868_vm13, %v4861_v63, 920167782 }
 0x1ed   : > { %v4878_v46 = vsel %vm4868_vm13, %v4864_v62, 1326507024  ;;  %v2473_v61 = vcvt.s32.f32 %v2466_v25  ;;  %v7337_v21 = vsel %vm6194_vm12, 0, %v6193_v18  ;;  %v2566_v19 = vshrl.u32 %v7241_v34, 16 }
 0x1ee   : > { %v3752_v1 = vshrl.u32 %v3751_v51, 23  ;;  %v13230_v40 = vand.u32 2147483647, %v6713_v60  ;;  %v2599_v31 = vadd.s32 %v2598_v22, %v2588_v2  ;;  %v4841_v35 = vor.u32 8388608, %v4840_v24 }
 0x1ef   : > { %vm4865_vm3 = vcmp.lt.s32.totalorder %v7309_v54, 1  ;;  %vm4867_vm8 = vcmp.lt.s32.totalorder %v7309_v54, 3  ;;  %v2474_v24 = vmul.f32 %v2473_v61, %v2471_v39  ;;  %v1382_v18 = vsub.s32 4294967266, %v7337_v21 }
 0x1f0   : > { %vm7342_vm15 = vcmp.le.f32.partialorder %v13230_v40, 0.7853982  ;;  %v4873_v25 = vsel %vm4865_vm3, %v7325_v7, %v7327_v17  ;;  %v4875_v34 = vsel %vm4867_vm8, %v7329_v26, %v4874_v48  ;;  %v4877_v51 = vsel %vm4865_vm3, %v7327_v17, %v7329_v26 }
 0x1f1   : > { %v4879_v22 = vsel %vm4867_vm8, %v4861_v63, %v4878_v46  ;;  %v7362_v15 = vshrl.u32 %v3692_v41, 30  ;;  %v2577_v62 = vadd.s32 %v2576_v43, %v2566_v19  ;;  %v1252_v52 = vadd.f32 -0.16666654, %v7284_v28 }
 0x1f2   : > { %v2590_v13 = vshrl.u32 %v7264_v53, 16  ;;  %vm4866_vm9 = vcmp.lt.s32.totalorder %v7309_v54, 2  ;;  %v6240_v45 = vadd.s32 4294967169, %v3752_v1  ;;  %v2524_v2 = vshrl.u32 %v13224_v32, %v7098_v20  ;;  %v7384_v20 = vpop.f32.mrf.mxu3 }
 0x1f3   : > { %13233 = vst [vmem:[#allocation18_spill] sm:$0xff] %v7362_v15  ;;  %v2568_v48 = vshrl.u32 %v7272_v49, 16  ;;  %v7372_v39 = vsel %vm4866_vm9, %v4873_v25, %v4875_v34  ;;  %v7376_v41 = vsel %vm4866_vm9, %v4877_v51, %v4879_v22  ;;  %v1245_v28 = vadd.f32 -0.4999988, %v7277_v11 }
 0x1f4   : > { %v2545_v63 = vsel %vm2543_vm14, %v7159_v38, 2102212464  ;;  %v2600_v43 = vadd.s32 %v2599_v31, %v2590_v13  ;;  %v7382_v46 = vshll.u32 %v4841_v35, 8  ;;  %13234 = vst [vmem:[#allocation19_spill] sm:$0xff] %v7384_v20  ;;  %v2475_v49 = vxor.u32 2147483648, %v2474_v24 }
 0x1f5   : > { %v1383_v61 = vadd.s32 127, %v1382_v18  ;;  %v3694_v19 = vshll.u32 %v7362_v15, 30  ;;  %v7387_v1 = vadd.s32 %v2577_v62, %v2568_v48  ;;  %v1253_v40 = vmul.f32 %v1252_v52, %v7111_v56 }
 0x1f6   : > { %v4885_v25 = vshrl.u32 %v7376_v41, 16  ;;  %v4907_v11 = vshrl.u32 %v7372_v39, 16  ;;  %v3758_v34 = vadd.s32 1, %v6240_v45  ;;  %v1378_v38 = vsub.s32 32, %v7337_v21 }
 0x1f7   : > { %v2544_v31 = vsel %vm2540_vm0, %v2524_v2, %v7155_v8  ;;  %v2546_v35 = vsel %vm2542_vm2, %v7157_v4, %v2545_v63  ;;  %v13235_v51 = vshll.u32 %v7264_v53, 16  ;;  %v2480_v18 = vsel %vm7342_vm15, 0, %v7224_v55 }
 0x1f8   : > { %v1362_v62 = vadd.s32 %v7063_v47, %v7037_v16  ;;  %v2604_v52 = vadd.s32 1, %v2600_v43  ;;  %v4882_v13 = vand.u32 65535, %v7382_v46  ;;  %v2476_v8 = vsel %vm2355_vm11, %v2475_v49, %v2474_v24 }
 0x1f9   : > { %v7402_v22 = vadd.s32 %v7274_v23, %v13235_v51  ;;  %v1384_v45 = vshll.u32 %v1383_v61, 23  ;;  %v7413_v4 = vsub.s32 %v7301_v57, %v3694_v19  ;;  %v2547_v53 = vsel %vm2541_vm6, %v2544_v31, %v2546_v35 }
 0x1fa   : > { %v7421_v55 = vmul.u32 %v4885_v25, %v4882_v13  ;;  %v7425_v16 = vmul.u32 %v4907_v11, %v4882_v13  ;;  %vm3759_vm0 = vcmp.gt.s32.totalorder %v3758_v34, 0  ;;  %v1246_v47 = vmul.f32 %v1245_v28, %v7111_v56 }
 0x1fb   : > { %vm2603_vm14 = vc.u32 %v7387_v1, %v7402_v22  ;;  %v1254_v23 = vadd.f32 1.0, %v1253_v40  ;;  %v1380_v57 = vshrl.u32 %v1362_v62, %v1378_v38  ;;  %v4906_v24 = vand.u32 65535, %v7372_v39  ;;  %v7443_v38 = vpop.f32.mrf.mxu3 }
 0x1fc   : > { %v7432_v44 = vsel %vm7342_vm15, %v6713_v60, %v2476_v8  ;;  %v1379_v2 = vshll.u32 %v7206_v30, %v7337_v21  ;;  %v2605_v48 = vsel %vm2603_vm14, %v2604_v52, %v2600_v43  ;;  %v4884_v63 = vand.u32 65535, %v7376_v41  ;;  %13236 = vst [vmem:[#allocation20_spill] sm:$0xff] %v7443_v38 }
 0x1fd   : > { %v1385_v49 = vor.u32 4788187, %v1384_v45  ;;  %v3697_v61 = vsub.s32 0, %v7413_v4  ;;  %v2601_v56 = vmul.u32 %v7203_v12, %v2547_v53  ;;  %v3760_v28 = vsel %vm3759_vm0, %v3758_v34, 0 }
 0x1fe   : > { %vm3696_vm2 = vcmp.lt.s32.totalorder %v7413_v4, 0  ;;  %v4883_v19 = vshrl.u32 %v7382_v46, 16  ;;  %v4890_v33 = vshll.u32 %v7421_v55, 16  ;;  %v4912_v40 = vshll.u32 %v7425_v16, 16 }
 0x1ff   : > { %v7447_v30 = vmul.f32 %v7432_v44, %v7432_v44  ;;  %v1381_v21 = vor.u32 %v1380_v57, %v1379_v2  ;;  %v7449_v43 = vadd.s32 %v2605_v48, %v2601_v56  ;;  %v4908_v31 = vmul.u32 %v4906_v24, %v4882_v13 }
 0x200   : > { %v4886_v12 = vmul.u32 %v4884_v63, %v4882_v13  ;;  %v7451_v34 = vmul.u32 %v4884_v63, %v4883_v19  ;;  %v7453_v35 = vmul.u32 %v4906_v24, %v4883_v19  ;;  %v3762_v51 = vand.u32 31, %v3760_v28 }
 0x201   : > { %v7456_v62 = vand.u32 3, %v7216_v50  ;;  %v7458_v52 = vadd.s32 3, %v2480_v18  ;;  %v1386_v8 = vand.u32 2147483647, %v1385_v49  ;;  %v3698_v45 = vsel %vm3696_vm2, %v3697_v61, %v7413_v4 }
 0x202   : > { %vm4894_vm6 = vc.u32 %v4886_v12, %v4890_v33  ;;  %v4896_v53 = vadd.s32 %v4890_v33, %v4886_v12  ;;  %vm4916_vm11 = vc.u32 %v4908_v31, %v4912_v40  ;;  %v7463_v57 = vadd.s32 %v4912_v40, %v4908_v31 }
 0x203   : > { %v7465_v13 = vadd.f32 1.0, %v1246_v47  ;;  %v7468_v24 = vmul.f32 %v1254_v23, %v7094_v10  ;;  %v2482_v50 = vmul.f32 -0.001358992, %v7447_v30  ;;  %v1388_v2 = vcvt.s32.f32 %v1381_v21 }
 0x204   : > { %v2607_v18 = vadd.s32 536870912, %v7449_v43  ;;  %v4892_v48 = vshll.u32 %v7451_v34, 16  ;;  %v13021_v63 = vshll.u32 %v7453_v35, 16  ;;  %v7474_v49 = vsub.s32 32, %v3762_v51 }
 0x205   : > { %v1389_v61 = vmul.f32 %v1388_v2, %v1386_v8  ;;  %v3699_v56 = vclz %v3698_v45  ;;  %v4895_v33 = vsel %vm4894_vm6, 1, %v13223_v58  ;;  %v4917_v47 = vsel %vm4916_vm11, 1, %v13223_v58 }
 0x206   : > { %v4889_v10 = vmul.u32 %v4885_v25, %v4883_v19  ;;  %vm4898_vm1 = vc.u32 %v4896_v53, %v4892_v48  ;;  %v4911_v23 = vmul.u32 %v4907_v11, %v4883_v19  ;;  %vm4920_vm4 = vc.u32 %v7463_v57, %v13021_v63  ;;  %v7495_v11 = vpop.f32.mrf.mxu3 }
 0x207   : > { %v7487_v31 = vadd.f32 0.041655596, %v2482_v50  ;;  %v2489_v12 = vmul.f32 -0.00019511016, %v7447_v30  ;;  %vm1270_vm5 = vcmp.lt.s32.totalorder %v6785_v27, 0  ;;  %v7491_v41 = vshrl.u32 %v2607_v18, 30 }
 0x208   : > { %v4897_v25 = vadd.s32 %v4895_v33, %v4889_v10  ;;  %v4919_v8 = vadd.s32 %v4917_v47, %v4911_v23  ;;  %v3775_v39 = vshrl.u32 %v13217_v6, %v7474_v49  ;;  %13237 = vst [vmem:[#allocation21_spill] sm:$0xff] %v7495_v11  ;;  %v1390_v19 = vxor.u32 2147483648, %v1389_v61 }
 0x209   : > { %v4899_v45 = vsel %vm4898_vm1, 1, %v13223_v58  ;;  %v4921_v53 = vsel %vm4920_vm4, 1, %v13223_v58  ;;  %v3778_v50 = vshrl.u32 %v13219_v0, %v7474_v49  ;;  %v6238_v2 = vadd.s32 4294967294, %v3699_v56 }
 0x20a   : > { %v7502_v18 = vshrl.u32 %v3760_v28, 5  ;;  %v3774_v33 = vshll.u32 %v13216_v37, %v3762_v51  ;;  %v3766_v47 = vshrl.u32 %v13227_v14, %v7474_v49  ;;  %v3769_v10 = vshrl.u32 %v13228_v3, %v7474_v49 }
 0x20b   : > { %v3772_v23 = vshrl.u32 %v13216_v37, %v7474_v49  ;;  %v3777_v21 = vshll.u32 %v13217_v6, %v3762_v51  ;;  %v13238_v40 = vand.u32 2147483647, %v6785_v27  ;;  %v2609_v28 = vshll.u32 %v7491_v41, 30 }
 0x20c   : > { %v4901_v63 = vadd.s32 %v4899_v45, %v4897_v25  ;;  %v4923_v48 = vadd.s32 %v4921_v53, %v4919_v8  ;;  %v3776_v11 = vor.u32 %v3775_v39, %v3774_v33  ;;  %v3765_v38 = vshll.u32 %v13224_v32, %v3762_v51  ;;  %v7571_v45 = vpop.f32.mrf.mxu2 }
 0x20d   : > { %vm7514_vm7 = vcmp.le.f32.partialorder %v13238_v40, 0.7853982  ;;  %v3768_v20 = vshll.u32 %v13227_v14, %v3762_v51  ;;  %v3771_v36 = vshll.u32 %v13228_v3, %v3762_v51  ;;  %v3779_v15 = vor.u32 %v3778_v50, %v3777_v21 }
 0x20e   : > { %vm6239_vm10 = vcmp.lt.s32.totalorder %v6238_v2, 0  ;;  %v4891_v60 = vshrl.u32 %v7421_v55, 16  ;;  %v4913_v40 = vshrl.u32 %v7425_v16, 16  ;;  %v13241_v37 = vand.u32 2147483647, %v7307_v42 }
 0x20f   : > { %v7526_v6 = vor.u32 %v3766_v47, %v3765_v38  ;;  %v7528_v25 = vor.u32 %v3769_v10, %v3768_v20  ;;  %v7530_v8 = vor.u32 %v3772_v23, %v3771_v36  ;;  %vm3783_vm12 = vcmp.lt.s32.totalorder %v7502_v18, 4 }
 0x210   : > { %v3755_v0 = vand.u32 8388607, %v13241_v37  ;;  %vm1260_vm15 = vcmp.eq.s32.totalorder %v7456_v62, 0  ;;  %v2490_v51 = vadd.f32 0.008332121, %v2489_v12  ;;  %v1391_v21 = vsel %vm1270_vm5, %v1390_v19, %v1389_v61  ;;  %v7549_v61 = vpop.f32.mrf.mxu3 }
 0x211   : > { %v4924_v55 = vadd.s32 %v4923_v48, %v4913_v40  ;;  %v3789_v16 = vsel %vm3783_vm12, %v3776_v11, 920167782  ;;  %v7538_v39 = vsel %vm6239_vm10, 0, %v6238_v2  ;;  %v7541_v37 = vsub.s32 %v7449_v43, %v2609_v28  ;;  %13242 = vst [vmem:[#allocation22_spill] sm:$0xff] %v7549_v61 }
 0x212   : > { %v4902_v20 = vadd.s32 %v4901_v63, %v4891_v60  ;;  %v3793_v36 = vsel %vm3783_vm12, %v3779_v15, 1326507024  ;;  %vm1263_vm14 = vcmp.eq.s32.totalorder %v7456_v62, 2  ;;  %v4915_v38 = vshrl.u32 %v7453_v35, 16 }
 0x213   : > { %v3756_v12 = vor.u32 8388608, %v3755_v0  ;;  %vm3780_vm0 = vcmp.lt.s32.totalorder %v7502_v18, 1  ;;  %vm3782_vm2 = vcmp.lt.s32.totalorder %v7502_v18, 3  ;;  %v4849_v19 = vshrl.u32 %v13224_v32, %v7281_v9 }
 0x214   : > { %v4893_v43 = vshrl.u32 %v7451_v34, 16  ;;  %v3788_v60 = vsel %vm3780_vm0, %v7526_v6, %v7528_v25  ;;  %v3790_v0 = vsel %vm3782_vm2, %v7530_v8, %v3789_v16  ;;  %vm1259_vm6 = vcmp.lt.s32.totalorder %v7456_v62, 2  ;;  %v7656_v62 = vpop.f32.mrf.mxu2 }
 0x215   : > { %v4870_v15 = vsel %vm4868_vm13, %v7329_v26, 2102212464  ;;  %v4925_v63 = vadd.s32 %v4924_v55, %v4915_v38  ;;  %v3792_v9 = vsel %vm3780_vm0, %v7528_v25, %v7530_v8  ;;  %v3794_v34 = vsel %vm3782_vm2, %v3776_v11, %v3793_v36  ;;  %v7582_v26 = vpop.f32.mrf.mxu1  ;;  %13248 = vst [vmem:[#allocation25_spill] sm:$0xff] %v7656_v62 }
 0x216   : > { %v7576_v53 = vsel %vm7514_vm7, %v6785_v27, %v1391_v21  ;;  %v2612_v50 = vsub.s32 0, %v7541_v37  ;;  %v7579_v2 = vadd.s32 %v4902_v20, %v4893_v43  ;;  %vm3781_vm13 = vcmp.lt.s32.totalorder %v7502_v18, 2  ;;  %13243 = vst [vmem:[#allocation23_spill] sm:$0xff] %v7582_v26 }
 0x217   : > { %v3707_v48 = vsub.s32 4294967266, %v7538_v39  ;;  %vm2611_vm11 = vcmp.lt.s32.totalorder %v7541_v37, 0  ;;  %v4869_v11 = vsel %vm4865_vm3, %v4849_v19, %v7325_v7  ;;  %v7591_v33 = vsel %vm3781_vm13, %v3788_v60, %v3790_v0 }
 0x218   : > { %v4871_v47 = vsel %vm4867_vm8, %v7327_v17, %v4870_v15  ;;  %v13244_v10 = vshll.u32 %v7453_v35, 16  ;;  %v7603_v28 = vsel %vm3781_vm13, %v3792_v9, %v3794_v34  ;;  %v7605_v40 = vshll.u32 %v3756_v12, 8  ;;  %v7637_v54 = vpop.f32.mrf.mxu3 }
 0x219   : > { %v2484_v7 = vmul.f32 %v7487_v31, %v7447_v30  ;;  %v7610_v21 = vand.u32 3, %v7458_v52  ;;  %v4929_v55 = vadd.s32 1, %v4925_v63  ;;  %v4991_v17 = vand.u32 2139095040, %v7582_v26  ;;  %13247 = vst [vmem:[#allocation24_spill] sm:$0xff] %v7637_v54 }
 0x21a   : > { %v7599_v23 = vadd.s32 %v7463_v57, %v13244_v10  ;;  %v13245_v35 = vxor.u32 2147483648, %v7468_v24  ;;  %v2613_v16 = vsel %vm2611_vm11, %v2612_v50, %v7541_v37  ;;  %v13032_v20 = vshrl.u32 %v7591_v33, 16 }
 0x21b   : > { %v7624_v52 = vmul.f32 %v7576_v53, %v7576_v53  ;;  %v3708_v31 = vadd.s32 127, %v3707_v48  ;;  %v4872_v36 = vsel %vm4866_vm9, %v4869_v11, %v4871_v47  ;;  %v13031_v38 = vshrl.u32 %v7603_v28, 16 }
 0x21c   : > { %v1262_v57 = vsel %vm1260_vm15, %v7465_v13, %v13245_v35  ;;  %vm4928_vm3 = vc.u32 %v7579_v2, %v7599_v23  ;;  %v13246_v12 = vxor.u32 2147483648, %v7465_v13  ;;  %v2491_v43 = vmul.f32 %v2490_v51, %v7447_v30 }
 0x21d   : > { %v3703_v60 = vsub.s32 32, %v7538_v39  ;;  %v3797_v0 = vand.u32 65535, %v7605_v40  ;;  %v2485_v15 = vadd.f32 -0.4999988, %v2484_v7  ;;  %v2614_v9 = vclz %v2613_v16 }
 0x21e   : > { %v1265_v19 = vsel %vm1263_vm14, %v13246_v12, %v7468_v24  ;;  %v4930_v34 = vsel %vm4928_vm3, %v4929_v55, %v4925_v63  ;;  %v4992_v50 = vshrl.u32 %v4991_v17, 23  ;;  %v3687_v13 = vadd.s32 %v7261_v59, %v7247_v29 }
 0x21f   : > { %v7641_v48 = vsel %vm1259_vm6, %v1262_v57, %v1265_v19  ;;  %v4926_v24 = vmul.u32 %v7382_v46, %v4872_v36  ;;  %v7648_v51 = vmul.u32 %v13032_v20, %v3797_v0  ;;  %v1392_v11 = vsub.s32 4, %v7143_v5 }
 0x220   : > { %v1404_v63 = vmul.f32 -0.00019511016, %v7624_v52  ;;  %v3709_v47 = vshll.u32 %v3708_v31, 23  ;;  %v7654_v10 = vmul.u32 %v13031_v38, %v3797_v0  ;;  %v2492_v7 = vadd.f32 -0.16666654, %v2491_v43 }
 0x221   : > { %v3705_v55 = vshrl.u32 %v3687_v13, %v3703_v60  ;;  %v7658_v29 = vadd.s32 %v4930_v34, %v4926_v24  ;;  %v3821_v59 = vand.u32 65535, %v7591_v33  ;;  %v2486_v46 = vmul.f32 %v2485_v15, %v7447_v30  ;;  %v13249_v24 = vld [vmem:[#allocation5_spill] sm:$0xff] }
 0x222   : > { %v6217_v17 = vadd.s32 4294967294, %v2614_v9  ;;  %v3799_v35 = vand.u32 65535, %v7603_v28  ;;  %v6264_v57 = vadd.s32 4294967169, %v4992_v50  ;;  %v1397_v16 = vmul.f32 -0.001358992, %v7624_v52 }
 0x223   : > { %v3704_v31 = vshll.u32 %v7413_v4, %v7538_v39  ;;  %v3798_v36 = vshrl.u32 %v7605_v40, 16  ;;  %v3827_v12 = vshll.u32 %v7648_v51, 16  ;;  %v1393_v19 = vsel %vm1270_vm5, %v1392_v11, %v7143_v5 }
 0x224   : > { %v1405_v43 = vadd.f32 0.008332121, %v1404_v63  ;;  %v3710_v60 = vor.u32 4788187, %v3709_v47  ;;  %v3805_v15 = vshll.u32 %v7654_v10, 16  ;;  %v4932_v34 = vadd.s32 536870912, %v7658_v29 }
 0x225   : > { %v3706_v9 = vor.u32 %v3705_v55, %v3704_v31  ;;  %v3823_v50 = vmul.u32 %v3821_v59, %v3797_v0  ;;  %v7673_v13 = vmul.u32 %v3821_v59, %v3798_v36  ;;  %vm1256_vm8 = vweird.f32 %v13249_v24  ;;  %v7683_v59 = vpop.f32.mrf.mxu3  ;;  %v13258_v24 = vld [vmem:[#allocation3_spill] sm:$0xff] }
 0x226   : > { %vm6218_vm9 = vcmp.lt.s32.totalorder %v6217_v17, 0  ;;  %v3801_v4 = vmul.u32 %v3799_v35, %v3797_v0  ;;  %v7676_v39 = vmul.u32 %v3799_v35, %v3798_v36  ;;  %v4998_v38 = vadd.s32 1, %v6264_v57  ;;  %13250 = vst [vmem:[#allocation5_spill] sm:$0xff] %v7683_v59 }
 0x227   : > { %v2493_v20 = vmul.f32 %v2492_v7, %v7447_v30  ;;  %v1395_v5 = vsel %vm7514_vm7, 0, %v1393_v19  ;;  %vm3831_vm1 = vc.u32 %v3823_v50, %v3827_v12  ;;  %v7681_v11 = vadd.s32 %v3827_v12, %v3823_v50 }
 0x228   : > { %v1398_v63 = vadd.f32 0.041655596, %v1397_v16  ;;  %v3711_v47 = vand.u32 2147483647, %v3710_v60  ;;  %vm3809_vm4 = vc.u32 %v3801_v4, %v3805_v15  ;;  %v3811_v55 = vadd.s32 %v3805_v15, %v3801_v4  ;;  %v7693_v16 = vpop.f32.mrf.mxu2 }
 0x229   : > { %v1406_v31 = vmul.f32 %v1405_v43, %v7624_v52  ;;  %v7686_v0 = vsel %vm6218_vm9, 0, %v6217_v17  ;;  %v7688_v35 = vshrl.u32 %v4932_v34, 30  ;;  %v3829_v30 = vshll.u32 %v7673_v13, 16  ;;  %13251 = vst [vmem:[#allocation26_spill] sm:$0xff] %v7693_v16 }
 0x22a   : > { %v3713_v7 = vcvt.s32.f32 %v3706_v9  ;;  %v3807_v56 = vshll.u32 %v7676_v39, 16  ;;  %v3832_v57 = vsel %vm3831_vm1, 1, %v13223_v58  ;;  %vm4999_vm5 = vcmp.gt.s32.totalorder %v4998_v38, 0 }
 0x22b   : > { %v2494_v12 = vadd.f32 1.0, %v2493_v20  ;;  %v3810_v19 = vsel %vm3809_vm4, 1, %v13223_v58  ;;  %v13252_v60 = vshrl.u32 %v7591_v33, 16  ;;  %vm3835_vm7 = vc.u32 %v7681_v11, %v3829_v30 }
 0x22c   : > { %v3714_v17 = vmul.f32 %v3713_v7, %v3711_v47  ;;  %v2622_v15 = vsub.s32 4294967266, %v7686_v0  ;;  %v13253_v9 = vshrl.u32 %v7603_v28, 16  ;;  %vm3813_vm10 = vc.u32 %v3811_v55, %v3807_v56  ;;  %v13254_v55 = vld [vmem:[#allocation14_spill] sm:$0xff] }
 0x22d   : > { %v3826_v43 = vmul.u32 %v13252_v60, %v3798_v36  ;;  %v1399_v50 = vmul.f32 %v1398_v63, %v7624_v52  ;;  %v4934_v20 = vshll.u32 %v7688_v35, 30  ;;  %v5000_v59 = vsel %vm4999_vm5, %v4998_v38, 0 }
 0x22e   : > { %v3804_v34 = vmul.u32 %v13253_v9, %v3798_v36  ;;  %v7706_v16 = vadd.f32 1.0, %v2486_v46  ;;  %v1407_v33 = vadd.f32 -0.16666654, %v1406_v31  ;;  %v3836_v54 = vsel %vm3835_vm7, 1, %v13223_v58 }
 0x22f   : > { %v3834_v4 = vadd.s32 %v3832_v57, %v3826_v43  ;;  %v1267_v47 = vsel %vm1256_vm8, nan, %v7641_v48  ;;  %v7713_v28 = vmul.f32 %v2494_v12, %v7432_v44  ;;  %v1412_v36 = vadd.s32 3, %v1395_v5 }
 0x230   : > { %v3812_v60 = vadd.s32 %v3810_v19, %v3804_v34  ;;  %v3814_v63 = vsel %vm3813_vm10, 1, %v13223_v58  ;;  %vm3595_vm15 = vcmp.lt.s32.totalorder %v13254_v55, 0  ;;  %v3715_v7 = vxor.u32 2147483648, %v3714_v17 }
 0x231   : > { %v2623_v38 = vadd.s32 127, %v2622_v15  ;;  %v5002_v46 = vand.u32 31, %v5000_v59  ;;  %v1400_v56 = vadd.f32 -0.4999988, %v1399_v50  ;;  %v13255_v31 = vand.u32 2147483647, %v13254_v55  ;;  %v7731_v15 = vpop.f32.mrf.mxu3 }
 0x232   : > { %v7724_v48 = vsub.s32 %v7658_v29, %v4934_v20  ;;  %v3838_v44 = vadd.s32 %v3836_v54, %v3834_v4  ;;  %v7727_v5 = vmul.f32 %v1267_v47, %v13258_v24  ;;  %v1408_v19 = vmul.f32 %v1407_v33, %v7624_v52  ;;  %13259 = vst [vmem:[#allocation14_spill] sm:$0xff] %v7731_v15  ;;  %v7743_v33 = vpop.f32.mrf.mxu2 }
 0x233   : > { %vm7719_vm14 = vcmp.le.f32.partialorder %v13255_v31, 0.7853982  ;;  %v3816_v43 = vadd.s32 %v3814_v63, %v3812_v60  ;;  %v7734_v34 = vand.u32 3, %v1412_v36  ;;  %v2618_v50 = vsub.s32 32, %v7686_v0  ;;  %13260 = vst [vmem:[#allocation3_spill] sm:$0xff] %v7743_v33 }
 0x234   : > { %v3828_v29 = vshrl.u32 %v7648_v51, 16  ;;  %v3716_v54 = vsel %vm3595_vm15, %v3715_v7, %v3714_v17  ;;  %v2624_v20 = vshll.u32 %v2623_v38, 23  ;;  %v3806_v4 = vshrl.u32 %v7654_v10, 16 }
 0x235   : > { %v7741_v47 = vsub.s32 32, %v5002_v46  ;;  %v7746_v60 = vmul.f32 %v1400_v56, %v7624_v52  ;;  %v2602_v36 = vadd.s32 %v7402_v22, %v7387_v1  ;;  %v4937_v63 = vsub.s32 0, %v7724_v48 }
 0x236   : > { %v3839_v31 = vadd.s32 %v3838_v44, %v3828_v29  ;;  %v7751_v51 = vadd.f32 1.0, %v1408_v19  ;;  %vm4936_vm6 = vcmp.lt.s32.totalorder %v7724_v48, 0  ;;  %v3785_v10 = vsel %vm3783_vm12, %v7530_v8, 2102212464 }
 0x237   : > { %v3817_v17 = vadd.s32 %v3816_v43, %v3806_v4  ;;  %v7760_v52 = vsel %vm7719_vm14, %v13254_v55, %v3716_v54  ;;  %v2620_v7 = vshrl.u32 %v2602_v36, %v2618_v50  ;;  %v3764_v1 = vshrl.u32 %v13224_v32, %v7474_v49 }
 0x238   : > { %v3830_v22 = vshrl.u32 %v7673_v13, 16  ;;  %v7765_v38 = vor.u32 4788187, %v2624_v20  ;;  %v3808_v56 = vshrl.u32 %v7676_v39, 16  ;;  %v13261_v44 = vmov 920167782  }
 0x239   : > { %v5015_v24 = vshrl.u32 %v13261_v44, %v7741_v47  ;;  %v13262_v8 = vmov 1326507024   ;;  %v4938_v43 = vsel %vm4936_vm6, %v4937_v63, %v7724_v48  ;;  %v3784_v50 = vsel %vm3780_vm0, %v3764_v1, %v7526_v6 }
 0x23a   : > { %v5018_v19 = vshrl.u32 %v13262_v8, %v7741_v47  ;;  %v3786_v49 = vsel %vm3782_vm2, %v7528_v25, %v3785_v10  ;;  %v3840_v29 = vadd.s32 %v3839_v31, %v3830_v22  ;;  %v7779_v54 = vadd.s32 %v3817_v17, %v3808_v56  ;;  %v7798_v56 = vpop.f32.mrf.mxu3 }
 0x23b   : > { %v13263_v20 = vmov 2102212464   ;;  %v5017_v36 = vshll.u32 %v13261_v44, %v5002_v46  ;;  %vm2500_vm12 = vcmp.eq.s32.totalorder %v7610_v21, 0  ;;  %v7785_v63 = vshrl.u32 %v5000_v59, 5  ;;  %13264 = vst [vmem:[#allocation27_spill] sm:$0xff] %v7798_v56 }
 0x23c   : > { %v5014_v4 = vshll.u32 %v13263_v20, %v5002_v46  ;;  %v5006_v6 = vshrl.u32 %v13227_v14, %v7741_v47  ;;  %v5009_v1 = vshrl.u32 %v13228_v3, %v7741_v47  ;;  %v5012_v25 = vshrl.u32 %v13263_v20, %v7741_v47 }
 0x23d   : > { %v4939_v31 = vclz %v4938_v43  ;;  %v7796_v10 = vadd.s32 %v7681_v11, %v3829_v30  ;;  %v5019_v22 = vor.u32 %v5018_v19, %v5017_v36  ;;  %vm2503_vm0 = vcmp.eq.s32.totalorder %v7610_v21, 2  ;;  %v7814_v19 = vpop.f32.mrf.mxu2 }
 0x23e   : > { %v5016_v17 = vor.u32 %v5015_v24, %v5014_v4  ;;  %v3844_v59 = vadd.s32 1, %v3840_v29  ;;  %v5005_v12 = vshll.u32 %v13224_v32, %v5002_v46  ;;  %v5008_v9 = vshll.u32 %v13227_v14, %v5002_v46  ;;  %v7812_v24 = vpop.f32.mrf.mxu0  ;;  %13267 = vst [vmem:[#allocation29_spill] sm:$0xff] %v7814_v19 }
 0x23f   : > { %v5011_v39 = vshll.u32 %v13228_v3, %v5002_v46  ;;  %v2619_v43 = vshll.u32 %v7541_v37, %v7686_v0  ;;  %v3787_v13 = vsel %vm3781_vm13, %v3784_v50, %v3786_v49  ;;  %vm3843_vm2 = vc.u32 %v7779_v54, %v7796_v10  ;;  %13266 = vst [vmem:[#allocation28_spill] sm:$0xff] %v7812_v24 }
 0x240   : > { %v13265_v11 = vand.u32 2147483647, %v7582_v26  ;;  %vm2499_vm11 = vcmp.lt.s32.totalorder %v7610_v21, 2  ;;  %v7817_v4 = vor.u32 %v5006_v6, %v5005_v12  ;;  %v7819_v46 = vor.u32 %v5009_v1, %v5008_v9  ;;  %v13268_v6 = vld [vmem:[#allocation10_spill] sm:$0xff] }
 0x241   : > { %v7821_v37 = vor.u32 %v5012_v25, %v5011_v39  ;;  %vm5023_vm13 = vcmp.lt.s32.totalorder %v7785_v63, 4  ;;  %v7826_v18 = vmul.f32 %v7760_v52, %v7760_v52  ;;  %v6262_v0 = vadd.s32 4294967294, %v4939_v31 }
 0x242   : > { %v4995_v30 = vand.u32 8388607, %v13265_v11  ;;  %v5029_v50 = vsel %vm5023_vm13, %v5016_v17, 920167782  ;;  %v5033_v49 = vsel %vm5023_vm13, %v5019_v22, 1326507024  ;;  %v2621_v36 = vor.u32 %v2620_v7, %v2619_v43 }
 0x243   : > { %v2626_v12 = vand.u32 2147483647, %v7765_v38  ;;  %v3845_v9 = vsel %vm3843_vm2, %v3844_v59, %v3840_v29  ;;  %v1736_v39 = vand.u32 2139095040, %v7812_v24  ;;  %vm2496_vm3 = vweird.f32 %v13268_v6  ;;  %v13270_v59 = vld [vmem:[#allocation18_spill] sm:$0xff] }
 0x244   : > { %v3841_v1 = vmul.u32 %v7605_v40, %v3787_v13  ;;  %v4996_v25 = vor.u32 8388608, %v4995_v30  ;;  %vm5020_vm8 = vcmp.lt.s32.totalorder %v7785_v63, 1  ;;  %vm5022_vm9 = vcmp.lt.s32.totalorder %v7785_v63, 3 }
 0x245   : > { %v5028_v31 = vsel %vm5020_vm8, %v7817_v4, %v7819_v46  ;;  %v5030_v7 = vsel %vm5022_vm9, %v7821_v37, %v5029_v50  ;;  %v5032_v38 = vsel %vm5020_vm8, %v7819_v46, %v7821_v37  ;;  %v5034_v40 = vsel %vm5022_vm9, %v5016_v17, %v5033_v49 }
 0x246   : > { %v13269_v29 = vxor.u32 2147483648, %v7713_v28  ;;  %v3717_v43 = vsub.s32 4, %v13270_v59  ;;  %vm6263_vm1 = vcmp.lt.s32.totalorder %v6262_v0, 0  ;;  %v7857_v13 = vadd.s32 %v3845_v9, %v3841_v1 }
 0x247   : > { %v1410_v11 = vmul.f32 %v7751_v51, %v7576_v53  ;;  %v2628_v30 = vcvt.s32.f32 %v2621_v36  ;;  %vm5021_vm4 = vcmp.lt.s32.totalorder %v7785_v63, 2  ;;  %v1737_v50 = vshrl.u32 %v1736_v39, 23  ;;  %v7877_v51 = vpop.f32.mrf.mxu3 }
 0x248   : > { %v2502_v22 = vsel %vm2500_vm12, %v7706_v16, %v13269_v29  ;;  %v13271_v17 = vxor.u32 2147483648, %v7706_v16  ;;  %v3729_v29 = vmul.f32 -0.00019511016, %v7826_v18  ;;  %v7870_v19 = vsel %vm5021_vm4, %v5028_v31, %v5030_v7  ;;  %13272 = vst [vmem:[#allocation10_spill] sm:$0xff] %v7877_v51  ;;  %v13273_v31 = vld [vmem:[#allocation15_spill] sm:$0xff] }
 0x249   : > { %v7874_v9 = vsel %vm5021_vm4, %v5032_v38, %v5034_v40  ;;  %v1402_v53 = vadd.f32 1.0, %v7746_v60  ;;  %v2629_v36 = vmul.f32 %v2628_v30, %v2626_v12  ;;  %v7879_v39 = vsel %vm6263_vm1, 0, %v6262_v0  ;;  %v7890_v38 = vpop.f32.mrf.mxu2 }
 0x24a   : > { %v2505_v49 = vsel %vm2503_vm0, %v13271_v17, %v7713_v28  ;;  %v7881_v16 = vshll.u32 %v4996_v25, 8  ;;  %v3718_v1 = vsel %vm3595_vm15, %v3717_v43, %v13270_v59  ;;  %vm2510_vm5 = vcmp.lt.s32.totalorder %v13273_v31, 0  ;;  %13274 = vst [vmem:[#allocation18_spill] sm:$0xff] %v7890_v38 }
 0x24b   : > { %v2506_v28 = vsel %vm2499_vm11, %v2502_v22, %v2505_v49  ;;  %v3847_v7 = vadd.s32 536870912, %v7857_v13  ;;  %v1416_v60 = vxor.u32 2147483648, %v1410_v11  ;;  %v13033_v12 = vshrl.u32 %v7874_v9, 16 }
 0x24c   : > { %v6201_v25 = vadd.s32 4294967169, %v1737_v50  ;;  %vm1414_vm7 = vcmp.lt.s32.totalorder %v7734_v34, 2  ;;  %v3730_v21 = vadd.f32 0.008332121, %v3729_v29  ;;  %v13275_v40 = vand.u32 2147483647, %v13273_v31 }
 0x24d   : > { %v4947_v59 = vsub.s32 4294967266, %v7879_v39  ;;  %v2507_v43 = vsel %vm2496_vm3, nan, %v2506_v28  ;;  %v1419_v30 = vxor.u32 2147483648, %v1402_v53  ;;  %v2630_v17 = vxor.u32 2147483648, %v2629_v36 }
 0x24e   : > { %vm7897_vm10 = vcmp.le.f32.partialorder %v13275_v40, 0.7853982  ;;  %v5037_v49 = vand.u32 65535, %v7881_v16  ;;  %vm1415_vm15 = vcmp.eq.s32.totalorder %v7734_v34, 0  ;;  %v3720_v50 = vsel %vm7719_vm14, 0, %v3718_v1 }
 0x24f   : > { %v3722_v29 = vmul.f32 -0.001358992, %v7826_v18  ;;  %v7909_v40 = vshrl.u32 %v3847_v7, 30  ;;  %v1417_v0 = vsel %vm1415_vm15, %v1402_v53, %v1416_v60  ;;  %v13279_v6 = vshrl.u32 %v7870_v19, 16 }
 0x250   : > { %v7913_v38 = vmul.u32 %v13033_v12, %v5037_v49  ;;  %v1743_v33 = vadd.s32 1, %v6201_v25  ;;  %v7920_v51 = vmul.f32 %v2507_v43, %v7571_v45  ;;  %vm1418_vm6 = vcmp.eq.s32.totalorder %v7734_v34, 2  ;;  %v7931_v43 = vpop.f32.mrf.mxu3 }
 0x251   : > { %13278 = vst [vmem:[#allocation15_spill] sm:$0xff] %v7909_v40  ;;  %v7917_v28 = vmul.u32 %v13279_v6, %v5037_v49  ;;  %v3731_v57 = vmul.f32 %v3730_v21, %v7826_v18  ;;  %v4948_v1 = vadd.s32 127, %v4947_v59  ;;  %v1420_v7 = vsel %vm1418_vm6, %v1419_v30, %v1410_v11 }
 0x252   : > { %v2631_v53 = vsel %vm2510_vm5, %v2630_v17, %v2629_v36  ;;  %v5039_v60 = vand.u32 65535, %v7874_v9  ;;  %v5061_v12 = vand.u32 65535, %v7870_v19  ;;  %v1421_v6 = vsel %vm1414_vm7, %v1417_v0, %v1420_v7  ;;  %13280 = vst [vmem:[#allocation30_spill] sm:$0xff] %v7931_v43  ;;  %v7942_v17 = vpop.f32.mrf.mxu2 }
 0x253   : > { %v3723_v25 = vadd.f32 0.041655596, %v3722_v29  ;;  %v3737_v56 = vadd.s32 3, %v3720_v50  ;;  %v3849_v45 = vshll.u32 %v7909_v40, 30  ;;  %v5038_v21 = vshrl.u32 %v7881_v16, 16  ;;  %13281 = vst [vmem:[#allocation31_spill] sm:$0xff] %v7942_v17 }
 0x254   : > { %v5045_v11 = vshll.u32 %v7913_v38, 16  ;;  %v5067_v59 = vshll.u32 %v7917_v28, 16  ;;  %vm1744_vm14 = vcmp.gt.s32.totalorder %v1743_v33, 0  ;;  %v3732_v36 = vadd.f32 -0.16666654, %v3731_v57 }
 0x255   : > { %v7939_v30 = vsel %vm7897_vm10, %v13273_v31, %v2631_v53  ;;  %v4943_v34 = vsub.s32 32, %v7879_v39  ;;  %v4949_v0 = vshll.u32 %v4948_v1, 23  ;;  %v5041_v50 = vmul.u32 %v5039_v60, %v5037_v49 }
 0x256   : > { %v7944_v29 = vmul.u32 %v5039_v60, %v5038_v21  ;;  %v5063_v7 = vmul.u32 %v5061_v12, %v5037_v49  ;;  %v7946_v43 = vmul.u32 %v5061_v12, %v5038_v21  ;;  %vm1411_vm12 = vweird.f32 %v6785_v27 }
 0x257   : > { %v3724_v57 = vmul.f32 %v3723_v25, %v7826_v18  ;;  %v4927_v15 = vadd.s32 %v7599_v23, %v7579_v2  ;;  %v7953_v53 = vsub.s32 %v7857_v13, %v3849_v45  ;;  %v1745_v26 = vsel %vm1744_vm14, %v1743_v33, 0 }
 0x258   : > { %vm5049_vm0 = vc.u32 %v5041_v50, %v5045_v11  ;;  %v5051_v1 = vadd.s32 %v5045_v11, %v5041_v50  ;;  %vm5071_vm2 = vc.u32 %v5063_v7, %v5067_v59  ;;  %v7955_v17 = vadd.s32 %v5067_v59, %v5063_v7  ;;  %v7978_v62 = vpop.f32.mrf.mxu3 }
 0x259   : > { %v3733_v49 = vmul.f32 %v3732_v36, %v7826_v18  ;;  %v7960_v12 = vmul.f32 %v7939_v30, %v7939_v30  ;;  %v4944_v60 = vshll.u32 %v7724_v48, %v7879_v39  ;;  %v4945_v25 = vshrl.u32 %v4927_v15, %v4943_v34  ;;  %13284 = vst [vmem:[#allocation32_spill] sm:$0xff] %v7978_v62 }
 0x25a   : > { %v4950_v2 = vor.u32 4788187, %v4949_v0  ;;  %v5047_v23 = vshll.u32 %v7944_v29, 16  ;;  %v13041_v33 = vshll.u32 %v7946_v43, 16  ;;  %v1747_v13 = vand.u32 31, %v1745_v26 }
 0x25b   : > { %vm3851_vm11 = vcmp.lt.s32.totalorder %v7953_v53, 0  ;;  %v3852_v45 = vsub.s32 0, %v7953_v53  ;;  %v5050_v11 = vsel %vm5049_vm0, 1, %v13223_v58  ;;  %v5072_v59 = vsel %vm5071_vm2, 1, %v13223_v58 }
 0x25c   : > { %v13282_v36 = vshrl.u32 %v7874_v9, 16  ;;  %vm5053_vm3 = vc.u32 %v5051_v1, %v5047_v23  ;;  %v13283_v48 = vshrl.u32 %v7870_v19, 16  ;;  %vm5075_vm1 = vc.u32 %v7955_v17, %v13041_v33 }
 0x25d   : > { %v3725_v39 = vadd.f32 -0.4999988, %v3724_v57  ;;  %v3734_v34 = vadd.f32 1.0, %v3733_v49  ;;  %v2644_v0 = vmul.f32 -0.00019511016, %v7960_v12  ;;  %v4946_v7 = vor.u32 %v4945_v25, %v4944_v60  ;;  %v7988_v49 = vpop.f32.mrf.mxu2 }
 0x25e   : > { %v5044_v50 = vmul.u32 %v13282_v36, %v5038_v21  ;;  %v5066_v15 = vmul.u32 %v13283_v48, %v5038_v21  ;;  %v4951_v40 = vand.u32 2147483647, %v4950_v2  ;;  %v7980_v9 = vsub.s32 32, %v1747_v13  ;;  %13285 = vst [vmem:[#allocation33_spill] sm:$0xff] %v7988_v49 }
 0x25f   : > { %v3853_v19 = vsel %vm3851_vm11, %v3852_v45, %v7953_v53  ;;  %v5054_v21 = vsel %vm5053_vm3, 1, %v13223_v58  ;;  %v5076_v1 = vsel %vm5075_vm1, 1, %v13223_v58  ;;  %v13040_v57 = vand.u32 2147483647, %v7812_v24 }
 0x260   : > { %v5052_v42 = vadd.s32 %v5050_v11, %v5044_v50  ;;  %v5074_v61 = vadd.s32 %v5072_v59, %v5066_v15  ;;  %v7992_v60 = vadd.f32 %v7920_v51, %v7727_v5  ;;  %v7996_v25 = vsel %vm1411_vm12, nan, %v1421_v6 }
 0x261   : > { %v7998_v2 = vand.u32 3, %v3737_v56  ;;  %v3726_v45 = vmul.f32 %v3725_v39, %v7826_v18  ;;  %v8003_v11 = vmul.f32 %v3734_v34, %v7760_v52  ;;  %v8006_v59 = vmul.f32 -0.001358992, %v7960_v12 }
 0x262   : > { %v4953_v36 = vcvt.s32.f32 %v4946_v7  ;;  %v3854_v50 = vclz %v3853_v19  ;;  %v5056_v5 = vadd.s32 %v5054_v21, %v5052_v42  ;;  %v5078_v51 = vadd.s32 %v5076_v1, %v5074_v61  ;;  %v13286_v61 = vld [vmem:[#allocation16_spill] sm:$0xff] }
 0x263   : > { %v1760_v27 = vshrl.u32 %v13261_v44, %v7980_v9  ;;  %v2645_v6 = vadd.f32 0.008332121, %v2644_v0  ;;  %v1740_v48 = vand.u32 8388607, %v13040_v57  ;;  %v1763_v18 = vshrl.u32 %v13262_v8, %v7980_v9 }
 0x264   : > { %v4954_v56 = vmul.f32 %v4953_v36, %v4951_v40  ;;  %v5046_v52 = vshrl.u32 %v7913_v38, 16  ;;  %v5068_v15 = vshrl.u32 %v7917_v28, 16  ;;  %v8016_v39 = vshrl.u32 %v1745_v26, 5 }
 0x265   : > { %v1759_v42 = vshll.u32 %v13263_v20, %v1747_v13  ;;  %vm4835_vm7 = vcmp.lt.s32.totalorder %v13286_v61, 0  ;;  %v1751_v34 = vshrl.u32 %v13227_v14, %v7980_v9  ;;  %v1754_v40 = vshrl.u32 %v13228_v3, %v7980_v9 }
 0x266   : > { %v1757_v0 = vshrl.u32 %v13263_v20, %v7980_v9  ;;  %v1762_v7 = vshll.u32 %v13261_v44, %v1747_v13  ;;  %v6241_v38 = vadd.s32 4294967294, %v3854_v50  ;;  %v5057_v19 = vadd.s32 %v5056_v5, %v5046_v52 }
 0x267   : > { %v5079_v28 = vadd.s32 %v5078_v51, %v5068_v15  ;;  %v1761_v26 = vor.u32 %v1760_v27, %v1759_v42  ;;  %v1750_v21 = vshll.u32 %v13224_v32, %v1747_v13  ;;  %v1753_v1 = vshll.u32 %v13227_v14, %v1747_v13  ;;  %v8041_v27 = vpop.f32.mrf.mxu3 }
 0x268   : > { %v1756_v36 = vshll.u32 %v13228_v3, %v1747_v13  ;;  %v1764_v57 = vor.u32 %v1763_v18, %v1762_v7  ;;  %v13287_v23 = vand.u32 2147483647, %v13286_v61  ;;  %v4955_v49 = vxor.u32 2147483648, %v4954_v56  ;;  %13290 = vst [vmem:[#allocation16_spill] sm:$0xff] %v8041_v27 }
 0x269   : > { %v5025_v50 = vsel %vm5023_vm13, %v7821_v37, 2102212464  ;;  %v5048_v5 = vshrl.u32 %v7944_v29, 16  ;;  %v5070_v51 = vshrl.u32 %v7946_v43, 16  ;;  %v8043_v52 = vor.u32 %v1751_v34, %v1750_v21 }
 0x26a   : > { %vm8032_vm15 = vcmp.le.f32.partialorder %v13287_v23, 0.7853982  ;;  %v8045_v13 = vor.u32 %v1754_v40, %v1753_v1  ;;  %v8047_v18 = vor.u32 %v1757_v0, %v1756_v36  ;;  %vm1768_vm6 = vcmp.lt.s32.totalorder %v8016_v39, 4  ;;  %v8050_v23 = vpop.f32.mrf.mxu2 }
 0x26b   : > { %13291 = vst [vmem:[#allocation34_spill] sm:$0xff] %v8050_v23  ;;  %vm6242_vm14 = vcmp.lt.s32.totalorder %v6241_v38, 0  ;;  %v5004_v37 = vshrl.u32 %v13224_v32, %v7741_v47  ;;  %v5080_v15 = vadd.s32 %v5079_v28, %v5070_v51  ;;  %v1774_v29 = vsel %vm1768_vm6, %v1761_v26, 920167782 }
 0x26c   : > { %v8056_v42 = vadd.s32 %v5057_v19, %v5048_v5  ;;  %v1741_v34 = vor.u32 8388608, %v1740_v48  ;;  %v1778_v40 = vsel %vm1768_vm6, %v1764_v57, 1326507024  ;;  %v961_v0 = vand.u32 2139095040, %v8041_v27 }
 0x26d   : > { %v5024_v7 = vsel %vm5020_vm8, %v5004_v37, %v7817_v4  ;;  %v5026_v47 = vsel %vm5022_vm9, %v7819_v46, %v5025_v50  ;;  %vm1765_vm13 = vcmp.lt.s32.totalorder %v8016_v39, 1  ;;  %vm1767_vm12 = vcmp.lt.s32.totalorder %v8016_v39, 3 }
 0x26e   : > { %v8069_v19 = vsel %vm6242_vm14, 0, %v6241_v38  ;;  %v13292_v48 = vshll.u32 %v7946_v43, 16  ;;  %v1773_v4 = vsel %vm1765_vm13, %v8043_v52, %v8045_v13  ;;  %v1775_v46 = vsel %vm1767_vm12, %v8047_v18, %v1774_v29 }
 0x26f   : > { %v4956_v28 = vsel %vm4835_vm7, %v4955_v49, %v4954_v56  ;;  %v5084_v21 = vadd.s32 1, %v5080_v15  ;;  %v1777_v43 = vsel %vm1765_vm13, %v8045_v13, %v8047_v18  ;;  %v3727_v38 = vadd.f32 1.0, %v3726_v45 }
 0x270   : > { %v8074_v57 = vadd.s32 %v7955_v17, %v13292_v48  ;;  %v1779_v17 = vsel %vm1767_vm12, %v1761_v26, %v1778_v40  ;;  %vm1766_vm9 = vcmp.lt.s32.totalorder %v8016_v39, 2  ;;  %v962_v1 = vshrl.u32 %v961_v0, 23 }
 0x271   : > { %v13293_v36 = vsub.s32 4, %v7491_v41  ;;  %v3862_v56 = vsub.s32 4294967266, %v8069_v19  ;;  %v5027_v50 = vsel %vm5021_vm4, %v5024_v7, %v5026_v47  ;;  %v8104_v45 = vsel %vm1766_vm9, %v1773_v4, %v1775_v46 }
 0x272   : > { %vm5083_vm8 = vc.u32 %v8056_v42, %v8074_v57  ;;  %v2646_v26 = vmul.f32 %v2645_v6, %v7960_v12  ;;  %v8110_v5 = vsel %vm8032_vm15, %v13286_v61, %v4956_v28  ;;  %v8114_v51 = vsel %vm1766_vm9, %v1777_v43, %v1779_v17  ;;  %v8125_v48 = vpop.f32.mrf.mxu2 }
 0x273   : > { %v2633_v49 = vsel %vm2510_vm5, %v13293_v36, %v7491_v41  ;;  %v8116_v41 = vshll.u32 %v1741_v34, 8  ;;  %vm3739_vm5 = vcmp.lt.s32.totalorder %v7998_v2, 2  ;;  %v3741_v63 = vxor.u32 2147483648, %v8003_v11  ;;  %13294 = vst [vmem:[#allocation35_spill] sm:$0xff] %v8125_v48 }
 0x274   : > { %v2638_v37 = vadd.f32 0.041655596, %v8006_v59  ;;  %v5085_v29 = vsel %vm5083_vm8, %v5084_v21, %v5080_v15  ;;  %v3744_v40 = vxor.u32 2147483648, %v3727_v38  ;;  %v5081_v6 = vmul.u32 %v7881_v16, %v5027_v50 }
 0x275   : > { %v13043_v0 = vshrl.u32 %v8104_v45, 16  ;;  %v6186_v7 = vadd.s32 4294967169, %v962_v1  ;;  %v2635_v47 = vsel %vm7897_vm10, 0, %v2633_v49  ;;  %v8129_v34 = vmul.f32 %v8110_v5, %v8110_v5 }
 0x276   : > { %v3863_v4 = vadd.s32 127, %v3862_v56  ;;  %v13042_v46 = vshrl.u32 %v8114_v51, 16  ;;  %vm3740_vm4 = vcmp.eq.s32.totalorder %v7998_v2, 0  ;;  %v2647_v59 = vadd.f32 -0.16666654, %v2646_v26 }
 0x277   : > { %v8133_v15 = vadd.s32 %v5085_v29, %v5081_v6  ;;  %v1782_v16 = vand.u32 65535, %v8116_v41  ;;  %v3742_v28 = vsel %vm3740_vm4, %v3727_v38, %v3741_v63  ;;  %vm3743_vm0 = vcmp.eq.s32.totalorder %v7998_v2, 2 }
 0x278   : > { %v2639_v22 = vmul.f32 %v2638_v37, %v7960_v12  ;;  %v3858_v21 = vsub.s32 32, %v8069_v19  ;;  %v3745_v43 = vsel %vm3743_vm0, %v3744_v40, %v8003_v11  ;;  %v2652_v17 = vadd.s32 3, %v2635_v47 }
 0x279   : > { %v8142_v1 = vmul.u32 %v13043_v0, %v1782_v16  ;;  %v968_v36 = vadd.s32 1, %v6186_v7  ;;  %v4969_v49 = vmul.f32 -0.00019511016, %v8129_v34  ;;  %v3842_v56 = vadd.s32 %v7796_v10, %v7779_v54 }
 0x27a   : > { %v3864_v38 = vshll.u32 %v3863_v4, 23  ;;  %v8149_v50 = vmul.u32 %v13042_v46, %v1782_v16  ;;  %v3746_v26 = vsel %vm3739_vm5, %v3742_v28, %v3745_v43  ;;  %v2648_v11 = vmul.f32 %v2647_v59, %v7960_v12  ;;  %v8169_v0 = vpop.f32.mrf.mxu2 }
 0x27b   : > { %v5087_v63 = vadd.s32 536870912, %v8133_v15  ;;  %v1806_v37 = vand.u32 65535, %v8104_v45  ;;  %v2640_v29 = vadd.f32 -0.4999988, %v2639_v22  ;;  %v4957_v40 = vsub.s32 4, %v7688_v35  ;;  %13295 = vst [vmem:[#allocation36_spill] sm:$0xff] %v8169_v0 }
 0x27c   : > { %v3860_v6 = vshrl.u32 %v3842_v56, %v3858_v21  ;;  %v1784_v54 = vand.u32 65535, %v8114_v51  ;;  %v4962_v10 = vmul.f32 -0.001358992, %v8129_v34  ;;  %v1783_v7 = vshrl.u32 %v8116_v41, 16 }
 0x27d   : > { %v1812_v47 = vshll.u32 %v8142_v1, 16  ;;  %vm969_vm10 = vcmp.gt.s32.totalorder %v968_v36, 0  ;;  %v4970_v2 = vadd.f32 0.008332121, %v4969_v49  ;;  %v3859_v4 = vshll.u32 %v7953_v53, %v8069_v19 }
 0x27e   : > { %v3865_v59 = vor.u32 4788187, %v3864_v38  ;;  %v1790_v28 = vshll.u32 %v8149_v50, 16  ;;  %vm3736_vm2 = vweird.f32 %v13254_v55  ;;  %v2649_v22 = vadd.f32 1.0, %v2648_v11 }
 0x27f   : > { %v8165_v21 = vshrl.u32 %v5087_v63, 30  ;;  %v1808_v43 = vmul.u32 %v1806_v37, %v1782_v16  ;;  %v8167_v56 = vmul.u32 %v1806_v37, %v1783_v7  ;;  %v3861_v46 = vor.u32 %v3860_v6, %v3859_v4 }
 0x280   : > { %v1786_v48 = vmul.u32 %v1784_v54, %v1782_v16  ;;  %v8171_v23 = vmul.u32 %v1784_v54, %v1783_v7  ;;  %v970_v49 = vsel %vm969_vm10, %v968_v36, 0  ;;  %v2641_v53 = vmul.f32 %v2640_v29, %v7960_v12 }
 0x281   : > { %v4963_v19 = vadd.f32 0.041655596, %v4962_v10  ;;  %vm1816_vm11 = vc.u32 %v1808_v43, %v1812_v47  ;;  %v8174_v38 = vadd.s32 %v1812_v47, %v1808_v43  ;;  %v4971_v11 = vmul.f32 %v4970_v2, %v8129_v34 }
 0x282   : > { %v3866_v63 = vand.u32 2147483647, %v3865_v59  ;;  %vm1794_vm3 = vc.u32 %v1786_v48, %v1790_v28  ;;  %v1796_v62 = vadd.s32 %v1790_v28, %v1786_v48  ;;  %v8180_v37 = vsel %vm4835_vm7, %v4957_v40, %v7688_v35  ;;  %v13298_v59 = vld [vmem:[#allocation22_spill] sm:$0xff] }
 0x283   : > { %v5089_v16 = vshll.u32 %v8165_v21, 30  ;;  %v13044_v36 = vshll.u32 %v8167_v56, 16  ;;  %v972_v6 = vand.u32 31, %v970_v49  ;;  %v8185_v12 = vmul.f32 %v2649_v22, %v7939_v30 }
 0x284   : > { %v3868_v29 = vcvt.s32.f32 %v3861_v46  ;;  %v1792_v54 = vshll.u32 %v8171_v23, 16  ;;  %v1817_v10 = vsel %vm1816_vm11, 1, %v13223_v58  ;;  %v4964_v48 = vmul.f32 %v4963_v19, %v8129_v34 }
 0x285   : > { %v1795_v47 = vsel %vm1794_vm3, 1, %v13223_v58  ;;  %v13296_v35 = vshrl.u32 %v8104_v45, 16  ;;  %vm1820_vm1 = vc.u32 %v8174_v38, %v13044_v36  ;;  %v4972_v2 = vadd.f32 -0.16666654, %v4971_v11 }
 0x286   : > { %v3869_v4 = vmul.f32 %v3868_v29, %v3866_v63  ;;  %v13297_v30 = vshrl.u32 %v8114_v51, 16  ;;  %vm1798_vm7 = vc.u32 %v1796_v62, %v1792_v54  ;;  %v8200_v28 = vmul.f32 %v7996_v25, %v13298_v59  ;;  %v8225_v54 = vpop.f32.mrf.mxu2 }
 0x287   : > { %v1811_v40 = vmul.u32 %v13296_v35, %v1783_v7  ;;  %v8203_v22 = vsub.s32 %v8133_v15, %v5089_v16  ;;  %v8205_v45 = vsub.s32 32, %v972_v6  ;;  %v8209_v19 = vsel %vm3736_vm2, nan, %v3746_v26  ;;  %v13300_v26 = vld [vmem:[#allocation17_spill] sm:$0xff]  ;;  %13301 = vst [vmem:[#allocation37_spill] sm:$0xff] %v8225_v54 }
 0x288   : > { %v1789_v46 = vmul.u32 %v13297_v30, %v1783_v7  ;;  %13299 = vst [vmem:[#allocation22_spill] sm:$0xff] %v8200_v28  ;;  %v8211_v11 = vand.u32 3, %v2652_v17  ;;  %v1821_v51 = vsel %vm1820_vm1, 1, %v13223_v58  ;;  %v8214_v62 = vadd.f32 1.0, %v2641_v53 }
 0x289   : > { %v1819_v43 = vadd.s32 %v1817_v10, %v1811_v40  ;;  %v1799_v7 = vsel %vm1798_vm7, 1, %v13223_v58  ;;  %v4965_v16 = vadd.f32 -0.4999988, %v4964_v48  ;;  %v4973_v55 = vmul.f32 %v4972_v2, %v8129_v34 }
 0x28a   : > { %v1797_v63 = vadd.s32 %v1795_v47, %v1789_v46  ;;  %vm3750_vm14 = vcmp.lt.s32.totalorder %v13300_v26, 0  ;;  %v3870_v17 = vxor.u32 2147483648, %v3869_v4  ;;  %v1749_v29 = vshrl.u32 %v13224_v32, %v7980_v9 }
 0x28b   : > { %v5092_v53 = vsub.s32 0, %v8203_v22  ;;  %v1770_v10 = vsel %vm1768_vm6, %v8047_v18, 2102212464  ;;  %v1823_v47 = vadd.s32 %v1821_v51, %v1819_v43  ;;  %v988_v48 = vshrl.u32 %v13262_v8, %v8205_v45 }
 0x28c   : > { %vm5091_vm8 = vcmp.lt.s32.totalorder %v8203_v22, 0  ;;  %v1791_v35 = vshrl.u32 %v8149_v50, 16  ;;  %v1801_v40 = vadd.s32 %v1799_v7, %v1797_v63  ;;  %v985_v9 = vshrl.u32 %v13261_v44, %v8205_v45 }
 0x28d   : > { %v1813_v2 = vshrl.u32 %v8142_v1, 16  ;;  %v987_v46 = vshll.u32 %v13261_v44, %v972_v6  ;;  %v1426_v18 = vand.u32 2139095040, %v8225_v54  ;;  %v8241_v59 = vshrl.u32 %v970_v49, 5 }
 0x28e   : > { %v979_v43 = vshrl.u32 %v13228_v3, %v8205_v45  ;;  %v982_v50 = vshrl.u32 %v13263_v20, %v8205_v45  ;;  %v984_v63 = vshll.u32 %v13263_v20, %v972_v6  ;;  %v5093_v51 = vsel %vm5091_vm8, %v5092_v53, %v8203_v22 }
 0x28f   : > { %v1824_v7 = vadd.s32 %v1823_v47, %v1813_v2  ;;  %v976_v1 = vshrl.u32 %v13227_v14, %v8205_v45  ;;  %v989_v15 = vor.u32 %v988_v48, %v987_v46  ;;  %v13302_v25 = vand.u32 2147483647, %v13300_v26 }
 0x290   : > { %v1802_v36 = vadd.s32 %v1801_v40, %v1791_v35  ;;  %v978_v30 = vshll.u32 %v13227_v14, %v972_v6  ;;  %v981_v0 = vshll.u32 %v13228_v3, %v972_v6  ;;  %v986_v28 = vor.u32 %v985_v9, %v984_v63 }
 0x291   : > { %vm8253_vm6 = vcmp.le.f32.partialorder %v13302_v25, 0.7853982  ;;  %v1793_v24 = vshrl.u32 %v8171_v23, 16  ;;  %v1815_v53 = vshrl.u32 %v8167_v56, 16  ;;  %v975_v47 = vshll.u32 %v13224_v32, %v972_v6 }
 0x292   : > { %v1427_v2 = vshrl.u32 %v1426_v18, 23  ;;  %vm2655_vm5 = vcmp.eq.s32.totalorder %v8211_v11, 0  ;;  %v13305_v25 = vand.u32 2147483647, %v8041_v27  ;;  %v8265_v46 = vor.u32 %v979_v43, %v978_v30 }
 0x293   : > { %v8267_v35 = vor.u32 %v982_v50, %v981_v0  ;;  %vm993_vm4 = vcmp.lt.s32.totalorder %v8241_v59, 4  ;;  %v3871_v40 = vsel %vm3750_vm14, %v3870_v17, %v3869_v4  ;;  %v1825_v23 = vadd.s32 %v1824_v7, %v1815_v53 }
 0x294   : > { %v965_v48 = vand.u32 8388607, %v13305_v25  ;;  %v8272_v9 = vor.u32 %v976_v1, %v975_v47  ;;  %v1003_v6 = vsel %vm993_vm4, %v989_v15, 1326507024  ;;  %v5094_v18 = vclz %v5093_v51 }
 0x295   : > { %v1769_v63 = vsel %vm1765_vm13, %v1749_v29, %v8043_v52  ;;  %v8279_v30 = vadd.s32 %v1802_v36, %v1793_v24  ;;  %v999_v0 = vsel %vm993_vm4, %v986_v28, 920167782  ;;  %v1771_v4 = vsel %vm1767_vm12, %v8045_v13, %v1770_v10 }
 0x296   : > { %vm990_vm0 = vcmp.lt.s32.totalorder %v8241_v59, 1  ;;  %vm992_vm10 = vcmp.lt.s32.totalorder %v8241_v59, 3  ;;  %v6195_v17 = vadd.s32 4294967169, %v1427_v2  ;;  %v13307_v15 = vshll.u32 %v8167_v56, 16 }
 0x297   : > { %13306 = vst [vmem:[#allocation38_spill] sm:$0xff] %v8279_v30  ;;  %v966_v52 = vor.u32 8388608, %v965_v48  ;;  %v1002_v24 = vsel %vm990_vm0, %v8265_v46, %v8267_v35  ;;  %v1004_v36 = vsel %vm992_vm10, %v986_v28, %v1003_v6  ;;  %v4966_v13 = vmul.f32 %v4965_v16, %v8129_v34 }
 0x298   : > { %v8291_v43 = vadd.s32 %v8174_v38, %v13307_v15  ;;  %v1829_v29 = vadd.s32 1, %v1825_v23  ;;  %v998_v56 = vsel %vm990_vm0, %v8272_v9, %v8265_v46  ;;  %v1000_v38 = vsel %vm992_vm10, %v8267_v35, %v999_v0 }
 0x299   : > { %v4974_v10 = vadd.f32 1.0, %v4973_v55  ;;  %v6265_v50 = vadd.s32 4294967294, %v5094_v18  ;;  %vm991_vm12 = vcmp.lt.s32.totalorder %v8241_v59, 2  ;;  %v8313_v34 = vsel %vm8253_vm6, %v13300_v26, %v3871_v40  ;;  %v13309_v55 = vld [vmem:[#allocation25_spill] sm:$0xff] }
 0x29a   : > { %13308 = vst [vmem:[#allocation39_spill] sm:$0xff] %v8291_v43  ;;  %vm1828_vm13 = vc.u32 %v8279_v30, %v8291_v43  ;;  %v1772_v28 = vsel %vm1766_vm9, %v1769_v63, %v1771_v4  ;;  %v8319_v16 = vsel %vm991_vm12, %v1002_v24, %v1004_v36  ;;  %v1433_v51 = vadd.s32 1, %v6195_v17 }
 0x29b   : > { %v5935_v7 = vmul.f32 %v8209_v19, %v13309_v55  ;;  %v2659_v1 = vxor.u32 2147483648, %v8214_v62  ;;  %v8326_v53 = vsel %vm991_vm12, %v998_v56, %v1000_v38  ;;  %v8328_v47 = vshll.u32 %v966_v52, 8  ;;  %v13312_v19 = vld [vmem:[#allocation15_spill] sm:$0xff] }
 0x29c   : > { %v13310_v2 = vxor.u32 2147483648, %v8185_v12  ;;  %v13311_v25 = vsel %vm8032_vm15, 0, %v8180_v37  ;;  %v3872_v40 = vsub.s32 4, %v13312_v19  ;;  %v1830_v6 = vsel %vm1828_vm13, %v1829_v29, %v1825_v23 }
 0x29d   : > { %v4977_v48 = vadd.s32 3, %v13311_v25  ;;  %v8342_v18 = vmul.f32 %v8313_v34, %v8313_v34  ;;  %vm6266_vm9 = vcmp.lt.s32.totalorder %v6265_v50, 0  ;;  %v1826_v63 = vmul.u32 %v8116_v41, %v1772_v28 }
 0x29e   : > { %v2657_v39 = vsel %vm2655_vm5, %v8214_v62, %v13310_v2  ;;  %v1010_v0 = vshrl.u32 %v8319_v16, 16  ;;  %v4967_v4 = vadd.f32 1.0, %v4966_v13  ;;  %v4975_v62 = vmul.f32 %v4974_v10, %v8110_v5 }
 0x29f   : > { %v1032_v33 = vshrl.u32 %v8326_v53, 16  ;;  %vm1434_vm2 = vcmp.gt.s32.totalorder %v1433_v51, 0  ;;  %vm2654_vm15 = vcmp.lt.s32.totalorder %v8211_v11, 2  ;;  %vm2658_vm11 = vcmp.eq.s32.totalorder %v8211_v11, 2 }
 0x2a0   : > { %v8350_v37 = vadd.s32 %v1830_v6, %v1826_v63  ;;  %v1007_v23 = vand.u32 65535, %v8328_v47  ;;  %v8354_v17 = vadd.f32 %v7992_v60, %v5935_v7  ;;  %v2660_v41 = vsel %vm2658_vm11, %v2659_v1, %v8185_v12  ;;  %v8384_v6 = vpop.f32.mrf.mxu0 }
 0x2a1   : > { %v4978_v15 = vand.u32 3, %v4977_v48  ;;  %v8357_v52 = vsel %vm6266_vm9, 0, %v6265_v50  ;;  %v8359_v5 = vsel %vm2654_vm15, %v2657_v39, %v2660_v41  ;;  %v3877_v24 = vmul.f32 -0.001358992, %v8342_v18  ;;  %13315 = vst [vmem:[#allocation40_spill] sm:$0xff] %v8384_v6 }
 0x2a2   : > { %13313 = vst [vmem:[#allocation25_spill] sm:$0xff] %v8354_v17  ;;  %v8362_v36 = vmul.u32 %v1010_v0, %v1007_v23  ;;  %v1435_v13 = vsel %vm1434_vm2, %v1433_v51, 0  ;;  %v4981_v11 = vxor.u32 2147483648, %v4975_v62  ;;  %v4984_v29 = vxor.u32 2147483648, %v4967_v4 }
 0x2a3   : > { %v8367_v56 = vsel %vm3750_vm14, %v3872_v40, %v13312_v19  ;;  %v8369_v60 = vmul.u32 %v1032_v33, %v1007_v23  ;;  %v3884_v12 = vmul.f32 -0.00019511016, %v8342_v18  ;;  %v5102_v38 = vsub.s32 4294967266, %v8357_v52 }
 0x2a4   : > { %v1832_v10 = vadd.s32 536870912, %v8350_v37  ;;  %v1009_v50 = vand.u32 65535, %v8319_v16  ;;  %vm4979_vm3 = vcmp.lt.s32.totalorder %v4978_v15, 2  ;;  %vm4980_vm1 = vcmp.eq.s32.totalorder %v4978_v15, 0 }
 0x2a5   : > { %v1031_v28 = vand.u32 65535, %v8326_v53  ;;  %v1437_v51 = vand.u32 31, %v1435_v13  ;;  %vm4983_vm7 = vcmp.eq.s32.totalorder %v4978_v15, 2  ;;  %v3878_v7 = vadd.f32 0.041655596, %v3877_v24 }
 0x2a6   : > { %v1015_v1 = vshll.u32 %v8362_v36, 16  ;;  %v4982_v2 = vsel %vm4980_vm1, %v4967_v4, %v4981_v11  ;;  %v4985_v39 = vsel %vm4983_vm7, %v4984_v29, %v4975_v62  ;;  %v1008_v25 = vshrl.u32 %v8328_v47, 16 }
 0x2a7   : > { %v1037_v48 = vshll.u32 %v8369_v60, 16  ;;  %v3885_v16 = vadd.f32 0.008332121, %v3884_v12  ;;  %v5103_v19 = vadd.s32 127, %v5102_v38  ;;  %v8382_v40 = vshrl.u32 %v1832_v10, 30 }
 0x2a8   : > { %v1011_v53 = vmul.u32 %v1009_v50, %v1007_v23  ;;  %v8386_v63 = vmul.u32 %v1009_v50, %v1008_v25  ;;  %v1033_v41 = vmul.u32 %v1031_v28, %v1007_v23  ;;  %v8388_v55 = vmul.u32 %v1031_v28, %v1008_v25 }
 0x2a9   : > { %13314 = vst [vmem:[#allocation15_spill] sm:$0xff] %v8382_v40  ;;  %v8390_v24 = vsub.s32 32, %v1437_v51  ;;  %v8393_v4 = vsel %vm4979_vm3, %v4982_v2, %v4985_v39  ;;  %v8396_v62 = vmul.f32 %v3878_v7, %v8342_v18  ;;  %v5082_v11 = vadd.s32 %v8074_v57, %v8056_v42 }
 0x2aa   : > { %vm1019_vm14 = vc.u32 %v1011_v53, %v1015_v1  ;;  %v1021_v29 = vadd.s32 %v1015_v1, %v1011_v53  ;;  %vm1041_vm8 = vc.u32 %v1033_v41, %v1037_v48  ;;  %v8400_v12 = vadd.s32 %v1037_v48, %v1033_v41 }
 0x2ab   : > { %13316 = vst [vmem:[#allocation41_spill] sm:$0xff] %v8390_v24  ;;  %v2976_v23 = vand.u32 2139095040, %v8384_v6  ;;  %v3886_v38 = vmul.f32 %v3885_v16, %v8342_v18  ;;  %v5098_v10 = vsub.s32 32, %v8357_v52  ;;  %v5104_v15 = vshll.u32 %v5103_v19, 23 }
 0x2ac   : > { %v1834_v28 = vshll.u32 %v8382_v40, 30  ;;  %v1017_v7 = vshll.u32 %v8386_v63, 16  ;;  %v13047_v42 = vshll.u32 %v8388_v55, 16  ;;  %v1450_v57 = vshrl.u32 %v13261_v44, %v8390_v24 }
 0x2ad   : > { %v1014_v1 = vmul.u32 %v1010_v0, %v1008_v25  ;;  %v1020_v2 = vsel %vm1019_vm14, 1, %v13223_v58  ;;  %v1036_v39 = vmul.u32 %v1032_v33, %v1008_v25  ;;  %v1042_v48 = vsel %vm1041_vm8, 1, %v13223_v58 }
 0x2ae   : > { %vm8413_vm5 = vc.u32 %v1021_v29, %v1017_v7  ;;  %vm1045_vm13 = vc.u32 %v8400_v12, %v13047_v42  ;;  %v1449_v19 = vshll.u32 %v13263_v20, %v1437_v51  ;;  %v2977_v53 = vshrl.u32 %v2976_v23, 23 }
 0x2af   : > { %v8421_v41 = vshrl.u32 %v1435_v13, 5  ;;  %v1441_v0 = vshrl.u32 %v13227_v14, %v8390_v24  ;;  %v1444_v33 = vshrl.u32 %v13228_v3, %v8390_v24  ;;  %v1447_v25 = vshrl.u32 %v13263_v20, %v8390_v24 }
 0x2b0   : > { %v1022_v29 = vadd.s32 %v1020_v2, %v1014_v1  ;;  %v1044_v7 = vadd.s32 %v1042_v48, %v1036_v39  ;;  %v1451_v50 = vor.u32 %v1450_v57, %v1449_v19  ;;  %v1453_v42 = vshrl.u32 %v13262_v8, %v8390_v24 }
 0x2b1   : > { %v1046_v27 = vsel %vm1045_vm13, 1, %v13223_v58  ;;  %v1440_v13 = vshll.u32 %v13224_v32, %v1437_v51  ;;  %v1443_v23 = vshll.u32 %v13227_v14, %v1437_v51  ;;  %v1446_v40 = vshll.u32 %v13228_v3, %v1437_v51 }
 0x2b2   : > { %v1024_v26 = vsel %vm8413_vm5, 1, %v13223_v58  ;;  %v13319_v43 = vand.u32 2147483647, %v8225_v54  ;;  %v1452_v57 = vshll.u32 %v13261_v44, %v1437_v51  ;;  %v6225_v2 = vadd.s32 4294967169, %v2977_v53 }
 0x2b3   : > { %v8441_v39 = vor.u32 %v1441_v0, %v1440_v13  ;;  %v8443_v48 = vor.u32 %v1444_v33, %v1443_v23  ;;  %v8445_v19 = vor.u32 %v1447_v25, %v1446_v40  ;;  %vm1458_vm9 = vcmp.lt.s32.totalorder %v8421_v41, 4 }
 0x2b4   : > { %v1430_v1 = vand.u32 8388607, %v13319_v43  ;;  %v5100_v24 = vshrl.u32 %v5082_v11, %v5098_v10  ;;  %v1048_v30 = vadd.s32 %v1046_v27, %v1044_v7  ;;  %v1454_v17 = vor.u32 %v1453_v42, %v1452_v57 }
 0x2b5   : > { %v1464_v16 = vsel %vm1458_vm9, %v1451_v50, 920167782  ;;  %v5099_v43 = vshll.u32 %v8203_v22, %v8357_v52  ;;  %v5105_v54 = vor.u32 4788187, %v5104_v15  ;;  %v8453_v51 = vsub.s32 %v8350_v37, %v1834_v28 }
 0x2b6   : > { %v1026_v53 = vadd.s32 %v1024_v26, %v1022_v29  ;;  %v1038_v0 = vshrl.u32 %v8369_v60, 16  ;;  %vm1455_vm2 = vcmp.lt.s32.totalorder %v8421_v41, 1  ;;  %vm1457_vm15 = vcmp.lt.s32.totalorder %v8421_v41, 3 }
 0x2b7   : > { %v2983_v40 = vadd.s32 1, %v6225_v2  ;;  %vm2651_vm11 = vweird.f32 %v13273_v31  ;;  %v1016_v27 = vshrl.u32 %v8362_v36, 16  ;;  %v1431_v11 = vor.u32 8388608, %v1430_v1 }
 0x2b8   : > { %v1463_v22 = vsel %vm1455_vm2, %v8441_v39, %v8443_v48  ;;  %v1465_v26 = vsel %vm1457_vm15, %v8445_v19, %v1464_v16  ;;  %v3887_v37 = vadd.f32 -0.16666654, %v3886_v38  ;;  %v5101_v52 = vor.u32 %v5100_v24, %v5099_v43 }
 0x2b9   : > { %v1049_v60 = vadd.s32 %v1048_v30, %v1038_v0  ;;  %v1468_v10 = vsel %vm1458_vm9, %v1454_v17, 1326507024  ;;  %vm4976_vm3 = vweird.f32 %v13286_v61  ;;  %v5106_v15 = vand.u32 2147483647, %v5105_v54 }
 0x2ba   : > { %vm1836_vm1 = vcmp.lt.s32.totalorder %v8453_v51, 0  ;;  %v1027_v36 = vadd.s32 %v1026_v53, %v1016_v27  ;;  %vm1456_vm7 = vcmp.lt.s32.totalorder %v8421_v41, 2  ;;  %v1837_v28 = vsub.s32 0, %v8453_v51 }
 0x2bb   : > { %v1040_v42 = vshrl.u32 %v8388_v55, 16  ;;  %v1466_v38 = vsel %vm1456_vm7, %v1463_v22, %v1465_v26  ;;  %vm2984_vm14 = vcmp.gt.s32.totalorder %v2983_v40, 0  ;;  %v1018_v30 = vshrl.u32 %v8386_v63, 16 }
 0x2bc   : > { %v1467_v54 = vsel %vm1455_vm2, %v8443_v48, %v8445_v19  ;;  %v1469_v17 = vsel %vm1457_vm15, %v1451_v50, %v1468_v10  ;;  %v8483_v24 = vshll.u32 %v1431_v11, 8  ;;  %v3880_v33 = vadd.f32 -0.4999988, %v8396_v62 }
 0x2bd   : > { %v5108_v25 = vcvt.s32.f32 %v5101_v52  ;;  %v995_v29 = vsel %vm993_vm4, %v8267_v35, 2102212464  ;;  %v1050_v7 = vadd.s32 %v1049_v60, %v1040_v42  ;;  %v974_v63 = vshrl.u32 %v13224_v32, %v8205_v45  ;;  %v13322_v60 = vld [vmem:[#allocation24_spill] sm:$0xff]  ;;  %v13324_v42 = vld [vmem:[#allocation26_spill] sm:$0xff] }
 0x2be   : > { %v8491_v13 = vadd.s32 %v1027_v36, %v1018_v30  ;;  %v1497_v23 = vshrl.u32 %v1466_v38, 16  ;;  %v2985_v1 = vsel %vm2984_vm14, %v2983_v40, 0  ;;  %v3888_v57 = vmul.f32 %v3887_v37, %v8342_v18 }
 0x2bf   : > { %v5109_v50 = vmul.f32 %v5108_v25, %v5106_v15  ;;  %v1838_v62 = vsel %vm1836_vm1, %v1837_v28, %v8453_v51  ;;  %v8499_v2 = vsel %vm1456_vm7, %v1467_v54, %v1469_v17  ;;  %v994_v35 = vsel %vm990_vm0, %v974_v63, %v8272_v9  ;;  %v13323_v15 = vld [vmem:[#allocation23_spill] sm:$0xff] }
 0x2c0   : > { %v996_v45 = vsel %vm992_vm10, %v8265_v46, %v995_v29  ;;  %v13320_v16 = vshll.u32 %v8388_v55, 16  ;;  %v1472_v53 = vand.u32 65535, %v8483_v24  ;;  %v2662_v0 = vsel %vm2651_vm11, nan, %v8359_v5 }
 0x2c1   : > { %v13321_v40 = vsel %vm8253_vm6, 0, %v8367_v56  ;;  %v1054_v27 = vadd.s32 1, %v1050_v7  ;;  %v2987_v11 = vand.u32 31, %v2985_v1  ;;  %v1474_v46 = vand.u32 65535, %v8499_v2 }
 0x2c2   : > { %v8510_v43 = vadd.s32 %v8400_v12, %v13320_v16  ;;  %v3892_v9 = vadd.s32 3, %v13321_v40  ;;  %v1475_v55 = vshrl.u32 %v8499_v2, 16  ;;  %v8524_v12 = vmul.u32 %v1497_v23, %v1472_v53 }
 0x2c3   : > { %v4987_v31 = vsel %vm4976_vm3, nan, %v8393_v4  ;;  %v3881_v49 = vmul.f32 %v3880_v33, %v8342_v18  ;;  %v1839_v5 = vclz %v1838_v62  ;;  %v997_v56 = vsel %vm991_vm12, %v994_v35, %v996_v45 }
 0x2c4   : > { %vm1053_vm4 = vc.u32 %v8491_v13, %v8510_v43  ;;  %v3889_v22 = vadd.f32 1.0, %v3888_v57  ;;  %v5110_v26 = vxor.u32 2147483648, %v5109_v50  ;;  %v1473_v37 = vshrl.u32 %v8483_v24, 16 }
 0x2c5   : > { %v1496_v52 = vand.u32 65535, %v1466_v38  ;;  %v8534_v10 = vmul.f32 %v2662_v0, %v13322_v60  ;;  %vm4990_vm6 = vcmp.lt.s32.totalorder %v13323_v15, 0  ;;  %v1055_v36 = vsel %vm1053_vm4, %v1054_v27, %v1050_v7 }
 0x2c6   : > { %v8537_v28 = vsub.s32 32, %v2987_v11  ;;  %v1051_v61 = vmul.u32 %v8328_v47, %v997_v56  ;;  %v8542_v18 = vmul.u32 %v1475_v55, %v1472_v53  ;;  %v8544_v59 = vmul.u32 %v1474_v46, %v1473_v37 }
 0x2c7   : > { %v1502_v4 = vshll.u32 %v8524_v12, 16  ;;  %v8548_v38 = vmul.f32 %v4987_v31, %v13324_v42  ;;  %v8550_v30 = vadd.f32 1.0, %v3881_v49  ;;  %v8552_v54 = vand.u32 3, %v3892_v9 }
 0x2c8   : > { %v6202_v17 = vadd.s32 4294967294, %v1839_v5  ;;  %v8555_v33 = vmul.f32 %v3889_v22, %v8313_v34  ;;  %v5111_v47 = vsel %vm4990_vm6, %v5110_v26, %v5109_v50  ;;  %v8559_v25 = vadd.s32 %v1055_v36, %v1051_v61  ;;  %v8573_v50 = vpop.f32.mrf.mxu1 }
 0x2c9   : > { %v1498_v29 = vmul.u32 %v1496_v52, %v1472_v53  ;;  %v1476_v7 = vmul.u32 %v1474_v46, %v1472_v53  ;;  %v8561_v63 = vmul.u32 %v1496_v52, %v1473_v37  ;;  %v3000_v57 = vshrl.u32 %v13261_v44, %v8537_v28  ;;  %13327 = vst [vmem:[#allocation24_spill] sm:$0xff] %v8573_v50 }
 0x2ca   : > { %v3003_v62 = vshrl.u32 %v13262_v8, %v8537_v28  ;;  %v1480_v35 = vshll.u32 %v8542_v18, 16  ;;  %v1482_v34 = vshll.u32 %v8544_v59, 16  ;;  %v1501_v45 = vmul.u32 %v1497_v23, %v1473_v37 }
 0x2cb   : > { %vm8569_vm0 = vc.u32 %v1498_v29, %v1502_v4  ;;  %vm6203_vm10 = vcmp.lt.s32.totalorder %v6202_v17, 0  ;;  %v8575_v53 = vadd.s32 %v1502_v4, %v1498_v29  ;;  %v13058_v0 = vand.u32 2147483647, %v8384_v6 }
 0x2cc   : > { %v2999_v40 = vshll.u32 %v13263_v20, %v2987_v11  ;;  %v3002_v9 = vshll.u32 %v13261_v44, %v2987_v11  ;;  %v13328_v27 = vand.u32 2147483647, %v13323_v15  ;;  %v8586_v23 = vshrl.u32 %v2985_v1, 5 }
 0x2cd   : > { %v2991_v31 = vshrl.u32 %v13227_v14, %v8537_v28  ;;  %v2994_v49 = vshrl.u32 %v13228_v3, %v8537_v28  ;;  %v2997_v5 = vshrl.u32 %v13263_v20, %v8537_v28  ;;  %v13059_v56 = vshll.u32 %v8561_v63, 16 }
 0x2ce   : > { %vm8582_vm12 = vcmp.le.f32.partialorder %v13328_v27, 0.7853982  ;;  %v3001_v22 = vor.u32 %v3000_v57, %v2999_v40  ;;  %v3004_v26 = vor.u32 %v3003_v62, %v3002_v9  ;;  %v1891_v52 = vand.u32 2139095040, %v8573_v50 }
 0x2cf   : > { %v1486_v60 = vadd.s32 %v1480_v35, %v1476_v7  ;;  %v2990_v36 = vshll.u32 %v13224_v32, %v2987_v11  ;;  %v2993_v1 = vshll.u32 %v13227_v14, %v2987_v11  ;;  %v2996_v61 = vshll.u32 %v13228_v3, %v2987_v11 }
 0x2d0   : > { %vm1484_vm8 = vc.u32 %v1476_v7, %v1480_v35  ;;  %v1507_v4 = vsel %vm8569_vm0, 1, %v13223_v58  ;;  %vm1510_vm5 = vc.u32 %v8575_v53, %v13059_v56  ;;  %v2980_v42 = vand.u32 8388607, %v13058_v0 }
 0x2d1   : > { %v8607_v29 = vor.u32 %v2991_v31, %v2990_v36  ;;  %v8609_v57 = vor.u32 %v2994_v49, %v2993_v1  ;;  %v8611_v62 = vor.u32 %v2997_v5, %v2996_v61  ;;  %vm3008_vm13 = vcmp.lt.s32.totalorder %v8586_v23, 4 }
 0x2d2   : > { %v1057_v11 = vadd.s32 536870912, %v8559_v25  ;;  %v3014_v7 = vsel %vm3008_vm13, %v3001_v22, 920167782  ;;  %v3018_v35 = vsel %vm3008_vm13, %v3004_v26, 1326507024  ;;  %v1892_v16 = vshrl.u32 %v1891_v52, 23 }
 0x2d3   : > { %v1479_v40 = vmul.u32 %v1475_v55, %v1473_v37  ;;  %v1485_v9 = vsel %vm1484_vm8, 1, %v13223_v58  ;;  %vm8622_vm11 = vc.u32 %v1486_v60, %v1482_v34  ;;  %v1509_v31 = vadd.s32 %v1507_v4, %v1501_v45 }
 0x2d4   : > { %v1511_v49 = vsel %vm1510_vm5, 1, %v13223_v58  ;;  %v2981_v5 = vor.u32 8388608, %v2980_v42  ;;  %vm3005_vm3 = vcmp.lt.s32.totalorder %v8586_v23, 1  ;;  %vm3007_vm1 = vcmp.lt.s32.totalorder %v8586_v23, 3 }
 0x2d5   : > { %v3013_v2 = vsel %vm3005_vm3, %v8607_v29, %v8609_v57  ;;  %v3015_v55 = vsel %vm3007_vm1, %v8611_v62, %v3014_v7  ;;  %v3017_v37 = vsel %vm3005_vm3, %v8609_v57, %v8611_v62  ;;  %v3019_v34 = vsel %vm3007_vm1, %v3001_v22, %v3018_v35  ;;  %v13334_v7 = vld [vmem:[#allocation25_spill] sm:$0xff] }
 0x2d6   : > { %v3899_v45 = vxor.u32 2147483648, %v8550_v30  ;;  %v8646_v26 = vsel %vm8582_vm12, %v13323_v15, %v5111_v47  ;;  %v1487_v52 = vadd.s32 %v1485_v9, %v1479_v40  ;;  %v6204_v60 = vadd.s32 4294967169, %v1892_v16 }
 0x2d7   : > { %v5112_v36 = vsub.s32 4, %v8165_v21  ;;  %v1842_v1 = vsel %vm6203_vm10, 0, %v6202_v17  ;;  %v1489_v61 = vsel %vm8622_vm11, 1, %v13223_v58  ;;  %vm3006_vm14 = vcmp.lt.s32.totalorder %v8586_v23, 2 }
 0x2d8   : > { %v8654_v22 = vshrl.u32 %v1057_v11, 30  ;;  %v1513_v4 = vadd.s32 %v1511_v49, %v1509_v31  ;;  %v8658_v42 = vsel %vm3006_vm14, %v3013_v2, %v3015_v55  ;;  %v8662_v47 = vsel %vm3006_vm14, %v3017_v37, %v3019_v34 }
 0x2d9   : > { %v8666_v17 = vadd.f32 %v13334_v7, %v8548_v38  ;;  %vm3898_vm4 = vcmp.eq.s32.totalorder %v8552_v54, 2  ;;  %v8671_v35 = vmul.f32 %v8646_v26, %v8646_v26  ;;  %v8673_v11 = vshll.u32 %v2981_v5, 8 }
 0x2da   : > { %13333 = vst [vmem:[#allocation26_spill] sm:$0xff] %v8654_v22  ;;  %v1847_v16 = vsub.s32 4294967266, %v1842_v1  ;;  %v1491_v40 = vadd.s32 %v1489_v61, %v1487_v52  ;;  %v1503_v9 = vshrl.u32 %v8524_v12, 16  ;;  %v1898_v27 = vadd.s32 1, %v6204_v60  ;;  %v13335_v52 = vld [vmem:[#allocation38_spill] sm:$0xff]  ;;  %v13336_v60 = vld [vmem:[#allocation39_spill] sm:$0xff] }
 0x2db   : > { %v8678_v49 = vsel %vm3898_vm4, %v3899_v45, %v8555_v33  ;;  %v3025_v38 = vshrl.u32 %v8662_v47, 16  ;;  %v13065_v2 = vshrl.u32 %v8658_v42, 16  ;;  %v8685_v55 = vsel %vm4990_vm6, %v5112_v36, %v8165_v21  ;;  %v13337_v36 = vld [vmem:[#allocation41_spill] sm:$0xff] }
 0x2dc   : > { %v1059_v5 = vshll.u32 %v8654_v22, 30  ;;  %v1481_v37 = vshrl.u32 %v8542_v18, 16  ;;  %v1514_v12 = vadd.s32 %v1513_v4, %v1503_v9  ;;  %v5117_v34 = vmul.f32 -0.001358992, %v8671_v35 }
 0x2dd   : > { %v1827_v45 = vadd.s32 %v13336_v60, %v13335_v52  ;;  %v1843_v61 = vsub.s32 32, %v1842_v1  ;;  %v3022_v7 = vand.u32 65535, %v8673_v11  ;;  %v1848_v0 = vadd.s32 127, %v1847_v16 }
 0x2de   : > { %v1492_v31 = vadd.s32 %v1491_v40, %v1481_v37  ;;  %v1505_v56 = vshrl.u32 %v8561_v63, 16  ;;  %vm1899_vm0 = vcmp.gt.s32.totalorder %v1898_v27, 0  ;;  %v8695_v21 = vmul.f32 -0.00019511016, %v8671_v35 }
 0x2df   : > { %v1439_v18 = vshrl.u32 %v13224_v32, %v13337_v36  ;;  %v8699_v4 = vmul.u32 %v3025_v38, %v3022_v7  ;;  %v8703_v9 = vmul.u32 %v13065_v2, %v3022_v7  ;;  %v8706_v52 = vsub.s32 %v8559_v25, %v1059_v5 }
 0x2e0   : > { %v1460_v16 = vsel %vm1458_vm9, %v8445_v19, 2102212464  ;;  %v1483_v40 = vshrl.u32 %v8544_v59, 16  ;;  %v1515_v37 = vadd.s32 %v1514_v12, %v1505_v56  ;;  %v1844_v60 = vshll.u32 %v8453_v51, %v1842_v1 }
 0x2e1   : > { %v3024_v36 = vand.u32 65535, %v8662_v47  ;;  %v3046_v6 = vand.u32 65535, %v8658_v42  ;;  %v1900_v22 = vsel %vm1899_vm0, %v1898_v27, 0  ;;  %v1845_v15 = vshrl.u32 %v1827_v45, %v1843_v61 }
 0x2e2   : > { %v1849_v2 = vshll.u32 %v1848_v0, 23  ;;  %v1459_v25 = vsel %vm1455_vm2, %v1439_v18, %v8441_v39  ;;  %v8718_v5 = vadd.s32 %v1492_v31, %v1483_v40  ;;  %v1461_v19 = vsel %vm1457_vm15, %v8443_v48, %v1460_v16 }
 0x2e3   : > { %v3023_v59 = vshrl.u32 %v8673_v11, 16  ;;  %v3030_v51 = vshll.u32 %v8699_v4, 16  ;;  %v3052_v56 = vshll.u32 %v8703_v9, 16  ;;  %v1062_v1 = vsub.s32 0, %v8706_v52 }
 0x2e4   : > { %v13338_v0 = vshll.u32 %v8561_v63, 16  ;;  %v1519_v39 = vadd.s32 1, %v1515_v37  ;;  %v1902_v27 = vand.u32 31, %v1900_v22  ;;  %v3026_v31 = vmul.u32 %v3024_v36, %v3022_v7 }
 0x2e5   : > { %v8732_v12 = vmul.u32 %v3024_v36, %v3023_v59  ;;  %v3048_v45 = vmul.u32 %v3046_v6, %v3022_v7  ;;  %v8734_v48 = vmul.u32 %v3046_v6, %v3023_v59  ;;  %v1846_v61 = vor.u32 %v1845_v15, %v1844_v60 }
 0x2e6   : > { %v8730_v47 = vadd.s32 %v8575_v53, %v13338_v0  ;;  %vm1061_vm9 = vcmp.lt.s32.totalorder %v8706_v52, 0  ;;  %v1462_v18 = vsel %vm1456_vm7, %v1459_v25, %v1461_v19  ;;  %vm3034_vm15 = vc.u32 %v3026_v31, %v3030_v51 }
 0x2e7   : > { %v3036_v63 = vadd.s32 %v3030_v51, %v3026_v31  ;;  %vm3056_vm6 = vc.u32 %v3048_v45, %v3052_v56  ;;  %v8741_v53 = vadd.s32 %v3052_v56, %v3048_v45  ;;  %v5118_v6 = vadd.f32 0.041655596, %v5117_v34 }
 0x2e8   : > { %13339 = vst [vmem:[#allocation25_spill] sm:$0xff] %v8730_v47  ;;  %vm1518_vm2 = vc.u32 %v8718_v5, %v8730_v47  ;;  %v1850_v16 = vor.u32 4788187, %v1849_v2  ;;  %v8746_v15 = vsub.s32 32, %v1902_v27  ;;  %v1063_v40 = vsel %vm1061_vm9, %v1062_v1, %v8706_v52 }
 0x2e9   : > { %v1520_v41 = vsel %vm1518_vm2, %v1519_v39, %v1515_v37  ;;  %v3032_v60 = vshll.u32 %v8732_v12, 16  ;;  %v13066_v36 = vshll.u32 %v8734_v48, 16  ;;  %v1853_v25 = vcvt.s32.f32 %v1846_v61 }
 0x2ea   : > { %v1516_v19 = vmul.u32 %v8483_v24, %v1462_v18  ;;  %v3035_v51 = vsel %vm3034_vm15, 1, %v13223_v58  ;;  %v3057_v56 = vsel %vm3056_vm6, 1, %v13223_v58  ;;  %v3029_v0 = vmul.u32 %v3025_v38, %v3023_v59 }
 0x2eb   : > { %vm3038_vm7 = vc.u32 %v3036_v63, %v3032_v60  ;;  %v13340_v2 = vshrl.u32 %v8658_v42, 16  ;;  %vm3060_vm10 = vc.u32 %v8741_v53, %v13066_v36  ;;  %v1851_v37 = vand.u32 2147483647, %v1850_v16 }
 0x2ec   : > { %v1064_v1 = vclz %v1063_v40  ;;  %v8759_v39 = vadd.s32 %v1520_v41, %v1516_v19  ;;  %v1915_v24 = vshrl.u32 %v13261_v44, %v8746_v15  ;;  %v3037_v31 = vadd.s32 %v3035_v51, %v3029_v0  ;;  %v13341_v51 = vld [vmem:[#allocation28_spill] sm:$0xff] }
 0x2ed   : > { %v3051_v34 = vmul.u32 %v13340_v2, %v3023_v59  ;;  %v1918_v38 = vshrl.u32 %v13262_v8, %v8746_v15  ;;  %v3039_v42 = vsel %vm3038_vm7, 1, %v13223_v58  ;;  %v3061_v59 = vsel %vm3060_vm10, 1, %v13223_v58 }
 0x2ee   : > { %v8768_v18 = vshrl.u32 %v1900_v22, 5  ;;  %v1914_v63 = vshll.u32 %v13263_v20, %v1902_v27  ;;  %v1906_v16 = vshrl.u32 %v13227_v14, %v8746_v15  ;;  %v1909_v40 = vshrl.u32 %v13228_v3, %v8746_v15 }
 0x2ef   : > { %v3059_v45 = vadd.s32 %v3057_v56, %v3051_v34  ;;  %v1912_v41 = vshrl.u32 %v13263_v20, %v8746_v15  ;;  %v1917_v60 = vshll.u32 %v13261_v44, %v1902_v27  ;;  %vm3895_vm8 = vcmp.eq.s32.totalorder %v8552_v54, 0 }
 0x2f0   : > { %v5125_v19 = vadd.f32 0.008332121, %v8695_v21  ;;  %vm1735_vm5 = vcmp.lt.s32.totalorder %v13341_v51, 0  ;;  %v1854_v22 = vmul.f32 %v1853_v25, %v1851_v37  ;;  %v1522_v56 = vadd.s32 536870912, %v8759_v39 }
 0x2f1   : > { %v1916_v0 = vor.u32 %v1915_v24, %v1914_v63  ;;  %v1905_v2 = vshll.u32 %v13224_v32, %v1902_v27  ;;  %v1908_v34 = vshll.u32 %v13227_v14, %v1902_v27  ;;  %v1911_v7 = vshll.u32 %v13228_v3, %v1902_v27 }
 0x2f2   : > { %v1919_v36 = vor.u32 %v1918_v38, %v1917_v60  ;;  %v6187_v61 = vadd.s32 4294967294, %v1064_v1  ;;  %v3041_v20 = vadd.s32 %v3039_v42, %v3037_v31  ;;  %v3063_v8 = vadd.s32 %v3061_v59, %v3059_v45 }
 0x2f3   : > { %v13342_v44 = vand.u32 2147483647, %v8573_v50  ;;  %vm3894_vm11 = vcmp.lt.s32.totalorder %v8552_v54, 2  ;;  %v8788_v21 = vor.u32 %v1906_v16, %v1905_v2  ;;  %v8790_v25 = vor.u32 %v1909_v40, %v1908_v34 }
 0x2f4   : > { %v8792_v37 = vor.u32 %v1912_v41, %v1911_v7  ;;  %vm1923_vm4 = vcmp.lt.s32.totalorder %v8768_v18, 4  ;;  %v5119_v24 = vmul.f32 %v5118_v6, %v8671_v35  ;;  %v8796_v27 = vshrl.u32 %v1522_v56, 30 }
 0x2f5   : > { %v1895_v47 = vand.u32 8388607, %v13342_v44  ;;  %v3053_v1 = vshrl.u32 %v8703_v9, 16  ;;  %v1929_v31 = vsel %vm1923_vm4, %v1916_v0, 920167782  ;;  %v5126_v44 = vmul.f32 %v5125_v19, %v8671_v35  ;;  %v13346_v9 = vld [vmem:[#allocation17_spill] sm:$0xff] }
 0x2f6   : > { %v13343_v45 = vand.u32 2147483647, %v13341_v51  ;;  %v1855_v7 = vxor.u32 2147483648, %v1854_v22  ;;  %v3031_v42 = vshrl.u32 %v8699_v4, 16  ;;  %v1933_v6 = vsel %vm1923_vm4, %v1919_v36, 1326507024 }
 0x2f7   : > { %vm6188_vm9 = vcmp.lt.s32.totalorder %v6187_v61, 0  ;;  %v3064_v59 = vadd.s32 %v3063_v8, %v3053_v1  ;;  %vm1920_vm2 = vcmp.lt.s32.totalorder %v8768_v18, 1  ;;  %vm1922_vm15 = vcmp.lt.s32.totalorder %v8768_v18, 3 }
 0x2f8   : > { %vm8804_vm0 = vcmp.le.f32.partialorder %v13343_v45, 0.7853982  ;;  %vm3891_vm6 = vweird.f32 %v13346_v9  ;;  %v3042_v63 = vadd.s32 %v3041_v20, %v3031_v42  ;;  %v1896_v16 = vor.u32 8388608, %v1895_v47  ;;  %v8912_v9 = vpop.f32.mrf.mxu3 }
 0x2f9   : > { %v1928_v40 = vsel %vm1920_vm2, %v8788_v21, %v8790_v25  ;;  %v1930_v4 = vsel %vm1922_vm15, %v8792_v37, %v1929_v31  ;;  %v1524_v36 = vshll.u32 %v8796_v27, 30  ;;  %v3055_v8 = vshrl.u32 %v8734_v48, 16  ;;  %13351 = vst [vmem:[#allocation38_spill] sm:$0xff] %v8912_v9 }
 0x2fa   : > { %v1932_v41 = vsel %vm1920_vm2, %v8790_v25, %v8792_v37  ;;  %v1934_v20 = vsel %vm1922_vm15, %v1916_v0, %v1933_v6  ;;  %v13347_v47 = vxor.u32 2147483648, %v8555_v33  ;;  %v1856_v19 = vsel %vm1735_vm5, %v1855_v7, %v1854_v22 }
 0x2fb   : > { %v3033_v56 = vshrl.u32 %v8732_v12, 16  ;;  %vm1921_vm7 = vcmp.lt.s32.totalorder %v8768_v18, 2  ;;  %v8839_v2 = vsel %vm6188_vm9, 0, %v6187_v61  ;;  %v3010_v0 = vsel %vm3008_vm13, %v8611_v62, 2102212464 }
 0x2fc   : > { %v3897_v60 = vsel %vm3895_vm8, %v8550_v30, %v13347_v47  ;;  %v3065_v34 = vadd.s32 %v3064_v59, %v3055_v8  ;;  %v8846_v33 = vsel %vm1921_vm7, %v1928_v40, %v1930_v4  ;;  %v2989_v30 = vshrl.u32 %v13224_v32, %v8537_v28 }
 0x2fd   : > { %v8850_v22 = vadd.s32 %v3042_v63, %v3033_v56  ;;  %v8854_v12 = vsel %vm1921_vm7, %v1932_v41, %v1934_v20  ;;  %v8856_v61 = vshll.u32 %v1896_v16, 8  ;;  %v3901_v62 = vsel %vm3894_vm11, %v3897_v60, %v8678_v49 }
 0x2fe   : > { %v5120_v1 = vadd.f32 -0.4999988, %v5119_v24  ;;  %v5127_v31 = vadd.f32 -0.16666654, %v5126_v44  ;;  %v8862_v45 = vsub.s32 %v8759_v39, %v1524_v36  ;;  %v3009_v28 = vsel %vm3005_vm3, %v2989_v30, %v8607_v29  ;;  %v13349_v44 = vld [vmem:[#allocation22_spill] sm:$0xff] }
 0x2ff   : > { %v3011_v7 = vsel %vm3007_vm1, %v8609_v57, %v3010_v0  ;;  %v13348_v42 = vshll.u32 %v8734_v48, 16  ;;  %v1962_v54 = vshrl.u32 %v8846_v33, 16  ;;  %v8879_v49 = vsel %vm8804_vm0, %v13341_v51, %v1856_v19 }
 0x300   : > { %v1072_v39 = vsub.s32 4294967266, %v8839_v2  ;;  %v3069_v24 = vadd.s32 1, %v3065_v34  ;;  %v1940_v29 = vshrl.u32 %v8854_v12, 16  ;;  %v8885_v57 = vadd.f32 %v8534_v10, %v13349_v44 }
 0x301   : > { %v8873_v6 = vadd.s32 %v8741_v53, %v13348_v42  ;;  %v13350_v48 = vsel %vm8582_vm12, 0, %v8685_v55  ;;  %v1937_v59 = vand.u32 65535, %v8856_v61  ;;  %v5962_v63 = vrot.slane %v8666_v17, 4 }
 0x302   : > { %v5132_v53 = vadd.s32 3, %v13350_v48  ;;  %v8897_v16 = vsel %vm3891_vm6, nan, %v3901_v62  ;;  %v5121_v40 = vmul.f32 %v5120_v1, %v8671_v35  ;;  %v3012_v10 = vsel %vm3006_vm14, %v3009_v28, %v3011_v7 }
 0x303   : > { %vm3068_vm13 = vc.u32 %v8850_v22, %v8873_v6  ;;  %v5128_v46 = vmul.f32 %v5127_v31, %v8671_v35  ;;  %v8905_v55 = vmul.f32 %v8879_v49, %v8879_v49  ;;  %v1527_v4 = vsub.s32 0, %v8862_v45 }
 0x304   : > { %v8910_v36 = vmul.u32 %v1962_v54, %v1937_v59  ;;  %v1073_v8 = vadd.s32 127, %v1072_v39  ;;  %vm1526_vm12 = vcmp.lt.s32.totalorder %v8862_v45, 0  ;;  %v3070_v41 = vsel %vm3068_vm13, %v3069_v24, %v3065_v34 }
 0x305   : > { %v8917_v23 = vmul.u32 %v1940_v29, %v1937_v59  ;;  %v8919_v35 = vand.u32 3, %v5132_v53  ;;  %v1068_v20 = vsub.s32 32, %v8839_v2  ;;  %v3066_v47 = vmul.u32 %v8673_v11, %v3012_v10 }
 0x306   : > { %v1961_v60 = vand.u32 65535, %v8846_v33  ;;  %v8924_v19 = vadd.f32 1.0, %v5121_v40  ;;  %v1052_v56 = vadd.s32 %v8510_v43, %v8491_v13  ;;  %v1939_v0 = vand.u32 65535, %v8854_v12 }
 0x307   : > { %v2201_v34 = vand.u32 2139095040, %v8912_v9  ;;  %v1528_v30 = vsel %vm1526_vm12, %v1527_v4, %v8862_v45  ;;  %v8931_v62 = vadd.s32 %v3070_v41, %v3066_v47  ;;  %v1938_v1 = vshrl.u32 %v8856_v61, 16 }
 0x308   : > { %v1967_v31 = vshll.u32 %v8910_v36, 16  ;;  %v5129_v11 = vadd.f32 1.0, %v5128_v46  ;;  %v1862_v28 = vmul.f32 -0.001358992, %v8905_v55  ;;  %v1074_v7 = vshll.u32 %v1073_v8, 23 }
 0x309   : > { %v1945_v42 = vshll.u32 %v8917_v23, 16  ;;  %v1869_v13 = vmul.f32 -0.00019511016, %v8905_v55  ;;  %v1070_v43 = vshrl.u32 %v1052_v56, %v1068_v20  ;;  %v1963_v39 = vmul.u32 %v1961_v60, %v1937_v59 }
 0x30a   : > { %v8938_v24 = vmul.u32 %v1961_v60, %v1938_v1  ;;  %v1529_v44 = vclz %v1528_v30  ;;  %v1941_v48 = vmul.u32 %v1939_v0, %v1937_v59  ;;  %v8940_v53 = vmul.u32 %v1939_v0, %v1938_v1 }
 0x30b   : > { %v2202_v40 = vshrl.u32 %v2201_v34, 23  ;;  %vm5135_vm3 = vcmp.eq.s32.totalorder %v8919_v35, 0  ;;  %v1069_v10 = vshll.u32 %v8706_v52, %v8839_v2  ;;  %v3072_v46 = vadd.s32 536870912, %v8931_v62 }
 0x30c   : > { %vm1971_vm1 = vc.u32 %v1963_v39, %v1967_v31  ;;  %v8946_v4 = vadd.s32 %v1967_v31, %v1963_v39  ;;  %v5130_v8 = vmul.f32 %v5129_v11, %v8646_v26  ;;  %v1075_v41 = vor.u32 4788187, %v1074_v7 }
 0x30d   : > { %vm1949_vm14 = vc.u32 %v1941_v48, %v1945_v42  ;;  %v1951_v20 = vadd.s32 %v1945_v42, %v1941_v48  ;;  %v1863_v47 = vadd.f32 0.041655596, %v1862_v28  ;;  %v1870_v59 = vadd.f32 0.008332121, %v1869_v13  ;;  %v13352_v42 = vld [vmem:[#allocation23_spill] sm:$0xff] }
 0x30e   : > { %v1071_v60 = vor.u32 %v1070_v43, %v1069_v10  ;;  %v1969_v56 = vshll.u32 %v8938_v24, 16  ;;  %v6196_v0 = vadd.s32 4294967294, %v1529_v44  ;;  %v1947_v34 = vshll.u32 %v8940_v53, 16  ;;  %v13353_v43 = vld [vmem:[#allocation15_spill] sm:$0xff] }
 0x30f   : > { %v1972_v52 = vsel %vm1971_vm1, 1, %v13223_v58  ;;  %v6210_v2 = vadd.s32 4294967169, %v2202_v40  ;;  %v8952_v30 = vshrl.u32 %v3072_v46, 30  ;;  %v1950_v31 = vsel %vm1949_vm14, 1, %v13223_v58 }
 0x310   : > { %v1966_v26 = vmul.u32 %v1962_v54, %v1938_v1  ;;  %vm1975_vm10 = vc.u32 %v8946_v4, %v1969_v56  ;;  %v5136_v11 = vxor.u32 2147483648, %v5130_v8  ;;  %v1076_v28 = vand.u32 2147483647, %v1075_v41 }
 0x311   : > { %v1944_v7 = vmul.u32 %v1940_v29, %v1938_v1  ;;  %vm1953_vm8 = vc.u32 %v1951_v20, %v1947_v34  ;;  %vm5131_vm11 = vweird.f32 %v13352_v42  ;;  %v5139_v13 = vxor.u32 2147483648, %v8924_v19  ;;  %v13354_v1 = vld [vmem:[#allocation5_spill] sm:$0xff] }
 0x312   : > { %v1857_v39 = vsub.s32 4, %v13353_v43  ;;  %v1871_v44 = vmul.f32 %v1870_v59, %v8905_v55  ;;  %v1974_v33 = vadd.s32 %v1972_v52, %v1966_v26  ;;  %v1078_v54 = vcvt.s32.f32 %v1071_v60 }
 0x313   : > { %v1952_v48 = vadd.s32 %v1950_v31, %v1944_v7  ;;  %v1976_v40 = vsel %vm1975_vm10, 1, %v13223_v58  ;;  %v2208_v10 = vadd.s32 1, %v6210_v2  ;;  %v1864_v46 = vmul.f32 %v1863_v47, %v8905_v55 }
 0x314   : > { %vm6197_vm9 = vcmp.lt.s32.totalorder %v6196_v0, 0  ;;  %v3074_v12 = vshll.u32 %v8952_v30, 30  ;;  %v1954_v29 = vsel %vm1953_vm8, 1, %v13223_v58  ;;  %v5936_v41 = vmul.f32 %v8897_v16, %v13354_v1 }
 0x315   : > { %v5137_v20 = vsel %vm5135_vm3, %v8924_v19, %v5136_v11  ;;  %vm5138_vm6 = vcmp.eq.s32.totalorder %v8919_v35, 2  ;;  %v1079_v59 = vmul.f32 %v1078_v54, %v1076_v28  ;;  %vm5134_vm13 = vcmp.lt.s32.totalorder %v8919_v35, 2 }
 0x316   : > { %v5140_v60 = vsel %vm5138_vm6, %v5139_v13, %v5130_v8  ;;  %v1858_v47 = vsel %vm1735_vm5, %v1857_v39, %v13353_v43  ;;  %v1978_v34 = vadd.s32 %v1976_v40, %v1974_v33  ;;  %v1872_v52 = vadd.f32 -0.16666654, %v1871_v44  ;;  %v13356_v44 = vld [vmem:[#allocation16_spill] sm:$0xff] }
 0x317   : > { %v8980_v2 = vsel %vm6197_vm9, 0, %v6196_v0  ;;  %v1956_v31 = vadd.s32 %v1954_v29, %v1952_v48  ;;  %vm2209_vm12 = vcmp.gt.s32.totalorder %v2208_v10, 0  ;;  %v5141_v16 = vsel %vm5134_vm13, %v5137_v20, %v5140_v60  ;;  %v13357_v48 = vld [vmem:[#allocation14_spill] sm:$0xff] }
 0x318   : > { %v1865_v26 = vadd.f32 -0.4999988, %v1864_v46  ;;  %v8983_v19 = vsub.s32 %v8931_v62, %v3074_v12  ;;  %v1968_v11 = vshrl.u32 %v8910_v36, 16  ;;  %v8989_v35 = vadd.f32 %v5962_v63, %v8666_v17 }
 0x319   : > { %v1860_v8 = vsel %vm8804_vm0, 0, %v1858_v47  ;;  %v1080_v28 = vxor.u32 2147483648, %v1079_v59  ;;  %v1946_v0 = vshrl.u32 %v8917_v23, 16  ;;  %v5969_v7 = vadd.f32 %v8885_v57, %v5936_v41 }
 0x31a   : > { %13355 = vst [vmem:[#allocation39_spill] sm:$0xff] %v8989_v35  ;;  %v1537_v13 = vsub.s32 4294967266, %v8980_v2  ;;  %v1979_v43 = vadd.s32 %v1978_v34, %v1968_v11  ;;  %v2210_v62 = vsel %vm2209_vm12, %v2208_v10, 0  ;;  %v5142_v36 = vsel %vm5131_vm11, nan, %v5141_v16 }
 0x31b   : > { %v1873_v39 = vmul.f32 %v1872_v52, %v8905_v55  ;;  %vm960_vm5 = vcmp.lt.s32.totalorder %v13356_v44, 0  ;;  %v1957_v17 = vadd.s32 %v1956_v31, %v1946_v0  ;;  %v1866_v38 = vmul.f32 %v1865_v26, %v8905_v55 }
 0x31c   : > { %v1877_v63 = vadd.s32 3, %v1860_v8  ;;  %v3077_v33 = vsub.s32 0, %v8983_v19  ;;  %v1970_v23 = vshrl.u32 %v8938_v24, 16  ;;  %v1081_v57 = vsel %vm960_vm5, %v1080_v28, %v1079_v59  ;;  %v9054_v24 = vpop.f32.mrf.mxu2 }
 0x31d   : > { %vm3076_vm0 = vcmp.lt.s32.totalorder %v8983_v19, 0  ;;  %v1948_v42 = vshrl.u32 %v8940_v53, 16  ;;  %v2212_v54 = vand.u32 31, %v2210_v62  ;;  %v5944_v40 = vmul.f32 %v5142_v36, %v13357_v48  ;;  %13362 = vst [vmem:[#allocation41_spill] sm:$0xff] %v9054_v24 }
 0x31e   : > { %v1538_v10 = vadd.s32 127, %v1537_v13  ;;  %v1925_v55 = vsel %vm1923_vm4, %v8792_v37, 2102212464  ;;  %v1980_v46 = vadd.s32 %v1979_v43, %v1970_v23  ;;  %v1874_v12 = vadd.f32 1.0, %v1873_v39 }
 0x31f   : > { %v13358_v29 = vand.u32 2147483647, %v13356_v44  ;;  %v1904_v41 = vshrl.u32 %v13224_v32, %v8746_v15  ;;  %v9019_v53 = vadd.s32 %v1957_v17, %v1948_v42  ;;  %v9021_v20 = vadd.f32 1.0, %v1866_v38 }
 0x320   : > { %v1533_v37 = vsub.s32 32, %v8980_v2  ;;  %v3078_v60 = vsel %vm3076_vm0, %v3077_v33, %v8983_v19  ;;  %v1926_v15 = vsel %vm1922_vm15, %v8790_v25, %v1925_v55  ;;  %v9039_v34 = vadd.s32 %v8946_v4, %v1969_v56  ;;  %v13363_v56 = vld [vmem:[#allocation26_spill] sm:$0xff] }
 0x321   : > { %vm9013_vm3 = vcmp.le.f32.partialorder %v13358_v29, 0.7853982  ;;  %v1924_v47 = vsel %vm1920_vm2, %v1904_v41, %v8788_v21  ;;  %v9041_v52 = vsub.s32 32, %v2212_v54  ;;  %v9043_v31 = vadd.f32 %v5969_v7, %v5944_v40  ;;  %v13361_v21 = vld [vmem:[#allocation25_spill] sm:$0xff] }
 0x322   : > { %v9026_v59 = vsel %vm9013_vm3, %v13356_v44, %v1081_v57  ;;  %v9045_v16 = vand.u32 3, %v1877_v63  ;;  %v1539_v26 = vshll.u32 %v1538_v10, 23  ;;  %v1984_v11 = vadd.s32 1, %v1980_v46 }
 0x323   : > { %v9048_v8 = vmul.f32 %v1874_v12, %v8879_v49  ;;  %v1517_v28 = vadd.s32 %v13361_v21, %v8718_v5  ;;  %v3079_v25 = vclz %v3078_v60  ;;  %vm1983_vm4 = vc.u32 %v9019_v53, %v9039_v34 }
 0x324   : > { %v1884_v4 = vxor.u32 2147483648, %v9021_v20  ;;  %v1082_v0 = vsub.s32 4, %v13363_v56  ;;  %v9060_v7 = vmul.f32 %v9026_v59, %v9026_v59  ;;  %v1927_v49 = vsel %vm1921_vm7, %v1924_v47, %v1926_v15 }
 0x325   : > { %v1534_v5 = vshll.u32 %v8862_v45, %v8980_v2  ;;  %v1535_v13 = vshrl.u32 %v1517_v28, %v1533_v37  ;;  %v13364_v43 = vmov 920167782   ;;  %v13365_v39 = vmov 1326507024  }
 0x326   : > { %v2225_v36 = vshrl.u32 %v13364_v43, %v9041_v52  ;;  %v2228_v17 = vshrl.u32 %v13365_v39, %v9041_v52  ;;  %v1540_v38 = vor.u32 4788187, %v1539_v26  ;;  %v1985_v63 = vsel %vm1983_vm4, %v1984_v11, %v1980_v46 }
 0x327   : > { %v13071_v33 = vand.u32 2147483647, %v8912_v9  ;;  %v2666_v23 = vand.u32 2139095040, %v9054_v24  ;;  %v6226_v57 = vadd.s32 4294967294, %v3079_v25  ;;  %v1981_v18 = vmul.u32 %v8856_v61, %v1927_v49 }
 0x328   : > { %v13366_v42 = vmov 2102212464   ;;  %v2227_v45 = vshll.u32 %v13364_v43, %v2212_v54  ;;  %v9075_v2 = vshrl.u32 %v2210_v62, 5  ;;  %v2216_v40 = vshrl.u32 %v13227_v14, %v9041_v52 }
 0x329   : > { %v2224_v48 = vshll.u32 %v13366_v42, %v2212_v54  ;;  %v2219_v10 = vshrl.u32 %v13228_v3, %v9041_v52  ;;  %v2222_v55 = vshrl.u32 %v13366_v42, %v9041_v52  ;;  %v1536_v46 = vor.u32 %v1535_v13, %v1534_v5 }
 0x32a   : > { %v9083_v12 = vadd.s32 %v1985_v63, %v1981_v18  ;;  %v2229_v61 = vor.u32 %v2228_v17, %v2227_v45  ;;  %v2215_v41 = vshll.u32 %v13224_v32, %v2212_v54  ;;  %v2218_v37 = vshll.u32 %v13227_v14, %v2212_v54 }
 0x32b   : > { %v2226_v29 = vor.u32 %v2225_v36, %v2224_v48  ;;  %v2221_v62 = vshll.u32 %v13228_v3, %v2212_v54  ;;  %v2667_v60 = vshrl.u32 %v2666_v23, 23  ;;  %v1881_v47 = vxor.u32 2147483648, %v9048_v8 }
 0x32c   : > { %v1541_v15 = vand.u32 2147483647, %v1540_v38  ;;  %vm6227_vm2 = vcmp.lt.s32.totalorder %v6226_v57, 0  ;;  %v2205_v26 = vand.u32 8388607, %v13071_v33  ;;  %vm1879_vm15 = vcmp.lt.s32.totalorder %v9045_v16, 2 }
 0x32d   : > { %v9092_v11 = vor.u32 %v2216_v40, %v2215_v41  ;;  %v9094_v21 = vor.u32 %v2219_v10, %v2218_v37  ;;  %v9096_v28 = vor.u32 %v2222_v55, %v2221_v62  ;;  %vm2233_vm7 = vcmp.lt.s32.totalorder %v9075_v2, 4 }
 0x32e   : > { %v1083_v54 = vsel %vm960_vm5, %v1082_v0, %v13363_v56  ;;  %v1987_v25 = vadd.s32 536870912, %v9083_v12  ;;  %v2239_v49 = vsel %vm2233_vm7, %v2226_v29, 920167782  ;;  %v2243_v5 = vsel %vm2233_vm7, %v2229_v61, 1326507024  ;;  %v13367_v61 = vld [vmem:[#allocation37_spill] sm:$0xff] }
 0x32f   : > { %v1087_v13 = vmul.f32 -0.001358992, %v9060_v7  ;;  %v1094_v36 = vmul.f32 -0.00019511016, %v9060_v7  ;;  %v1543_v17 = vcvt.s32.f32 %v1536_v46  ;;  %v6219_v38 = vadd.s32 4294967169, %v2667_v60 }
 0x330   : > { %vm1876_vm1 = vweird.f32 %v13341_v51  ;;  %v9111_v63 = vsel %vm6227_vm2, 0, %v6226_v57  ;;  %v2206_v56 = vor.u32 8388608, %v2205_v26  ;;  %vm2230_vm14 = vcmp.lt.s32.totalorder %v9075_v2, 1 }
 0x331   : > { %vm2232_vm10 = vcmp.lt.s32.totalorder %v9075_v2, 3  ;;  %v2238_v0 = vsel %vm2230_vm14, %v9092_v11, %v9094_v21  ;;  %v2242_v57 = vsel %vm2230_vm14, %v9094_v21, %v9096_v28  ;;  %vm1880_vm8 = vcmp.eq.s32.totalorder %v9045_v16, 0 }
 0x332   : > { %v2240_v23 = vsel %vm2232_vm10, %v9096_v28, %v2239_v49  ;;  %v2244_v18 = vsel %vm2232_vm10, %v2226_v29, %v2243_v5  ;;  %vm1883_vm11 = vcmp.eq.s32.totalorder %v9045_v16, 2  ;;  %v1544_v48 = vmul.f32 %v1543_v17, %v1541_v15 }
 0x333   : > { %v9130_v45 = vshrl.u32 %v1987_v25, 30  ;;  %v1882_v40 = vsel %vm1880_vm8, %v9021_v20, %v1881_v47  ;;  %v1085_v10 = vsel %vm9013_vm3, 0, %v1083_v54  ;;  %vm2231_vm9 = vcmp.lt.s32.totalorder %v9075_v2, 2 }
 0x334   : > { %v2673_v55 = vadd.s32 1, %v6219_v38  ;;  %v5971_v46 = vrot.slane %v9043_v31, 4  ;;  %v13368_v41 = vand.u32 2147483647, %v13367_v61  ;;  %v3087_v37 = vsub.s32 4294967266, %v9111_v63 }
 0x335   : > { %v9146_v62 = vsel %vm2231_vm9, %v2238_v0, %v2240_v23  ;;  %v9150_v1 = vsel %vm2231_vm9, %v2242_v57, %v2244_v18  ;;  %v1885_v60 = vsel %vm1883_vm11, %v1884_v4, %v9048_v8  ;;  %v1088_v47 = vadd.f32 0.041655596, %v1087_v13 }
 0x336   : > { %vm9139_vm6 = vcmp.le.f32.partialorder %v13368_v41, 0.7853982  ;;  %v1095_v15 = vadd.f32 0.008332121, %v1094_v36  ;;  %v9155_v26 = vshll.u32 %v2206_v56, 8  ;;  %v1886_v54 = vsel %vm1879_vm15, %v1882_v40, %v1885_v60  ;;  %v13372_v41 = vld [vmem:[#allocation27_spill] sm:$0xff] }
 0x337   : > { %v1102_v25 = vadd.s32 3, %v1085_v10  ;;  %v1545_v49 = vxor.u32 2147483648, %v1544_v48  ;;  %v1989_v5 = vshll.u32 %v9130_v45, 30  ;;  %v1547_v17 = vsub.s32 4, %v8796_v27 }
 0x338   : > { %v2250_v38 = vshrl.u32 %v9150_v1, 16  ;;  %v2272_v0 = vshrl.u32 %v9146_v62, 16  ;;  %vm2674_vm13 = vcmp.gt.s32.totalorder %v2673_v55, 0  ;;  %v9164_v20 = vadd.f32 %v5971_v46, %v9043_v31 }
 0x339   : > { %vm1425_vm12 = vcmp.lt.s32.totalorder %v13367_v61, 0  ;;  %v3083_v8 = vsub.s32 32, %v9111_v63  ;;  %v3088_v16 = vadd.s32 127, %v3087_v37  ;;  %v1887_v4 = vsel %vm1876_vm1, nan, %v1886_v54 }
 0x33a   : > { %13371 = vst [vmem:[#allocation28_spill] sm:$0xff] %v9164_v20  ;;  %v1089_v13 = vmul.f32 %v1088_v47, %v9060_v7  ;;  %v1096_v36 = vmul.f32 %v1095_v15, %v9060_v7  ;;  %v2247_v56 = vand.u32 65535, %v9155_v26  ;;  %v1546_v23 = vsel %vm1425_vm12, %v1545_v49, %v1544_v48 }
 0x33b   : > { %v3067_v57 = vadd.s32 %v8873_v6, %v8850_v22  ;;  %v9176_v31 = vsub.s32 %v9083_v12, %v1989_v5  ;;  %v2675_v18 = vsel %vm2674_vm13, %v2673_v55, 0  ;;  %v9178_v40 = vand.u32 3, %v1102_v25 }
 0x33c   : > { %v1548_v10 = vsel %vm1425_vm12, %v1547_v17, %v8796_v27  ;;  %v9183_v51 = vmul.u32 %v2250_v38, %v2247_v56  ;;  %v9185_v46 = vmul.u32 %v2272_v0, %v2247_v56  ;;  %v9188_v37 = vmul.f32 %v1887_v4, %v13372_v41 }
 0x33d   : > { %v3085_v48 = vshrl.u32 %v3067_v57, %v3083_v8  ;;  %v3089_v60 = vshll.u32 %v3088_v16, 23  ;;  %v2271_v22 = vand.u32 65535, %v9146_v62  ;;  %v1090_v6 = vadd.f32 -0.4999988, %v1089_v13 }
 0x33e   : > { %13373 = vst [vmem:[#allocation17_spill] sm:$0xff] %v9188_v37  ;;  %v9194_v12 = vsel %vm9139_vm6, %v13367_v61, %v1546_v23  ;;  %v2249_v27 = vand.u32 65535, %v9150_v1  ;;  %v2677_v55 = vand.u32 31, %v2675_v18  ;;  %v1097_v47 = vadd.f32 -0.16666654, %v1096_v36 }
 0x33f   : > { %v1550_v15 = vsel %vm9139_vm6, 0, %v1548_v10  ;;  %v3084_v54 = vshll.u32 %v8983_v19, %v9111_v63  ;;  %v1992_v25 = vsub.s32 0, %v9176_v31  ;;  %vm1991_vm5 = vcmp.lt.s32.totalorder %v9176_v31, 0 }
 0x340   : > { %v2248_v62 = vshrl.u32 %v9155_v26, 16  ;;  %v2255_v49 = vshll.u32 %v9183_v51, 16  ;;  %v2277_v5 = vshll.u32 %v9185_v46, 16  ;;  %v9208_v17 = vmul.f32 %v9194_v12, %v9194_v12 }
 0x341   : > { %v3086_v8 = vor.u32 %v3085_v48, %v3084_v54  ;;  %v3090_v29 = vor.u32 4788187, %v3089_v60  ;;  %v2273_v16 = vmul.u32 %v2271_v22, %v2247_v56  ;;  %v2251_v4 = vmul.u32 %v2249_v27, %v2247_v56 }
 0x342   : > { %v9210_v13 = vmul.u32 %v2249_v27, %v2248_v62  ;;  %v9212_v19 = vmul.u32 %v2271_v22, %v2248_v62  ;;  %v9214_v63 = vsub.s32 32, %v2677_v55  ;;  %v1091_v36 = vmul.f32 %v1090_v6, %v9060_v7 }
 0x343   : > { %v1098_v23 = vmul.f32 %v1097_v47, %v9060_v7  ;;  %v1993_v57 = vsel %vm1991_vm5, %v1992_v25, %v9176_v31  ;;  %v13072_v10 = vand.u32 2147483647, %v9054_v24  ;;  %vm2259_vm0 = vc.u32 %v2251_v4, %v2255_v49 }
 0x344   : > { %v2261_v41 = vadd.s32 %v2255_v49, %v2251_v4  ;;  %vm2281_vm3 = vc.u32 %v2273_v16, %v2277_v5  ;;  %v9220_v48 = vadd.s32 %v2277_v5, %v2273_v16  ;;  %v1559_v56 = vmul.f32 -0.00019511016, %v9208_v17 }
 0x345   : > { %v1567_v60 = vadd.s32 3, %v1550_v15  ;;  %v3091_v22 = vand.u32 2147483647, %v3090_v29  ;;  %v3093_v27 = vcvt.s32.f32 %v3086_v8  ;;  %v1994_v54 = vclz %v1993_v57 }
 0x346   : > { %v2257_v33 = vshll.u32 %v9210_v13, 16  ;;  %v13073_v6 = vshll.u32 %v9212_v19, 16  ;;  %v2690_v7 = vshrl.u32 %v13364_v43, %v9214_v63  ;;  %v2260_v47 = vsel %vm2259_vm0, 1, %v13223_v58 }
 0x347   : > { %v2276_v25 = vmul.u32 %v2272_v0, %v2248_v62  ;;  %v2282_v49 = vsel %vm2281_vm3, 1, %v13223_v58  ;;  %v2670_v5 = vand.u32 8388607, %v13072_v10  ;;  %v2689_v29 = vshll.u32 %v13366_v42, %v2677_v55 }
 0x348   : > { %vm9231_vm4 = vc.u32 %v2261_v41, %v2257_v33  ;;  %vm9238_vm2 = vc.u32 %v9220_v48, %v13073_v6  ;;  %v2693_v0 = vshrl.u32 %v13365_v39, %v9214_v63  ;;  %v9245_v16 = vshrl.u32 %v2675_v18, 5 }
 0x349   : > { %v2681_v33 = vshrl.u32 %v13227_v14, %v9214_v63  ;;  %v2684_v4 = vshrl.u32 %v13228_v3, %v9214_v63  ;;  %v2687_v57 = vshrl.u32 %v13366_v42, %v9214_v63  ;;  %v6205_v41 = vadd.s32 4294967294, %v1994_v54 }
 0x34a   : > { %v2254_v10 = vmul.u32 %v2250_v38, %v2248_v62  ;;  %v2691_v6 = vor.u32 %v2690_v7, %v2689_v29  ;;  %v2692_v20 = vshll.u32 %v13364_v43, %v2677_v55  ;;  %v2284_v35 = vadd.s32 %v2282_v49, %v2276_v25  ;;  %v13378_v62 = vld [vmem:[#allocation40_spill] sm:$0xff] }
 0x34b   : > { %v2680_v18 = vshll.u32 %v13224_v32, %v2677_v55  ;;  %v2683_v37 = vshll.u32 %v13227_v14, %v2677_v55  ;;  %v2686_v24 = vshll.u32 %v13228_v3, %v2677_v55  ;;  %v2264_v61 = vsel %vm9231_vm4, 1, %v13223_v58 }
 0x34c   : > { %v2262_v9 = vadd.s32 %v2260_v47, %v2254_v10  ;;  %v2286_v1 = vsel %vm9238_vm2, 1, %v13223_v58  ;;  %v2694_v38 = vor.u32 %v2693_v0, %v2692_v20  ;;  %vm2975_vm15 = vcmp.lt.s32.totalorder %v13378_v62, 0 }
 0x34d   : > { %v9266_v54 = vor.u32 %v2681_v33, %v2680_v18  ;;  %v9268_v7 = vor.u32 %v2684_v4, %v2683_v37  ;;  %v9270_v25 = vor.u32 %v2687_v57, %v2686_v24  ;;  %vm2698_vm1 = vcmp.lt.s32.totalorder %v9245_v16, 4 }
 0x34e   : > { %v9273_v55 = vadd.f32 1.0, %v1091_v36  ;;  %v1099_v10 = vadd.f32 1.0, %v1098_v23  ;;  %v3094_v47 = vmul.f32 %v3093_v27, %v3091_v22  ;;  %v2704_v49 = vsel %vm2698_vm1, %v2691_v6, 920167782 }
 0x34f   : > { %v1552_v15 = vmul.f32 -0.001358992, %v9208_v17  ;;  %v1560_v20 = vadd.f32 0.008332121, %v1559_v56  ;;  %vm6206_vm8 = vcmp.lt.s32.totalorder %v6205_v41, 0  ;;  %v2288_v8 = vadd.s32 %v2286_v1, %v2284_v35 }
 0x350   : > { %v13379_v29 = vand.u32 2147483647, %v13378_v62  ;;  %v2266_v24 = vadd.s32 %v2264_v61, %v2262_v9  ;;  %vm2695_vm6 = vcmp.lt.s32.totalorder %v9245_v16, 1  ;;  %vm2697_vm13 = vcmp.lt.s32.totalorder %v9245_v16, 3 }
 0x351   : > { %v2708_v36 = vsel %vm2698_vm1, %v2694_v38, 1326507024  ;;  %v2278_v23 = vshrl.u32 %v9185_v46, 16  ;;  %v2671_v22 = vor.u32 8388608, %v2670_v5  ;;  %v2703_v35 = vsel %vm2695_vm6, %v9266_v54, %v9268_v7 }
 0x352   : > { %vm9280_vm11 = vcmp.le.f32.partialorder %v13379_v29, 0.7853982  ;;  %v2705_v56 = vsel %vm2697_vm13, %v9270_v25, %v2704_v49  ;;  %v9296_v9 = vand.u32 3, %v1567_v60  ;;  %v3095_v61 = vxor.u32 2147483648, %v3094_v47 }
 0x353   : > { %v9298_v27 = vsel %vm6206_vm8, 0, %v6205_v41  ;;  %v2256_v0 = vshrl.u32 %v9183_v51, 16  ;;  %v2289_v33 = vadd.s32 %v2288_v8, %v2278_v23  ;;  %vm2696_vm12 = vcmp.lt.s32.totalorder %v9245_v16, 2  ;;  %v9313_v51 = vpop.f32.mrf.mxu0 }
 0x354   : > { %v2707_v46 = vsel %vm2695_vm6, %v9268_v7, %v9270_v25  ;;  %v2709_v5 = vsel %vm2697_vm13, %v2691_v6, %v2708_v36  ;;  %v1553_v4 = vadd.f32 0.041655596, %v1552_v15  ;;  %v1561_v60 = vmul.f32 %v1560_v20, %v9208_v17  ;;  %13382 = vst [vmem:[#allocation22_spill] sm:$0xff] %v9313_v51 }
 0x355   : > { %v2267_v57 = vadd.s32 %v2266_v24, %v2256_v0  ;;  %v9311_v41 = vsel %vm2696_vm12, %v2703_v35, %v2705_v56  ;;  %v9316_v18 = vmul.f32 %v1099_v10, %v9026_v59  ;;  %vm1108_vm5 = vcmp.eq.s32.totalorder %v9178_v40, 2 }
 0x356   : > { %v2002_v1 = vsub.s32 4294967266, %v9298_v27  ;;  %v2280_v38 = vshrl.u32 %v9212_v19, 16  ;;  %v9321_v6 = vshll.u32 %v2671_v22, 8  ;;  %v1109_v49 = vxor.u32 2147483648, %v9273_v55 }
 0x357   : > { %v3096_v15 = vsel %vm2975_vm15, %v3095_v61, %v3094_v47  ;;  %v2258_v20 = vshrl.u32 %v9210_v13, 16  ;;  %v9329_v8 = vsel %vm2696_vm12, %v2707_v46, %v2709_v5  ;;  %v2235_v59 = vsel %vm2233_vm7, %v9096_v28, 2102212464 }
 0x358   : > { %v2290_v10 = vadd.s32 %v2289_v33, %v2280_v38  ;;  %v2737_v29 = vshrl.u32 %v9311_v41, 16  ;;  %v4216_v24 = vand.u32 2139095040, %v9313_v51  ;;  %v1554_v36 = vmul.f32 %v1553_v4, %v9208_v17 }
 0x359   : > { %v1562_v23 = vadd.f32 -0.16666654, %v1561_v60  ;;  %v2214_v47 = vshrl.u32 %v13224_v32, %v9041_v52  ;;  %v9339_v13 = vadd.s32 %v2267_v57, %v2258_v20  ;;  %v9344_v22 = vsel %vm9280_vm11, %v13378_v62, %v3096_v15 }
 0x35a   : > { %v2003_v35 = vadd.s32 127, %v2002_v1  ;;  %v2712_v28 = vand.u32 65535, %v9321_v6  ;;  %v13081_v56 = vshrl.u32 %v9329_v8, 16  ;;  %v1998_v61 = vsub.s32 32, %v9298_v27 }
 0x35b   : > { %v2234_v0 = vsel %vm2230_vm14, %v2214_v47, %v9092_v11  ;;  %v2236_v52 = vsel %vm2232_vm10, %v9094_v21, %v2235_v59  ;;  %v13383_v33 = vshll.u32 %v9212_v19, 16  ;;  %vm1105_vm7 = vcmp.eq.s32.totalorder %v9178_v40, 0 }
 0x35c   : > { %v1106_v5 = vxor.u32 2147483648, %v9316_v18  ;;  %v2294_v4 = vadd.s32 1, %v2290_v10  ;;  %v9364_v60 = vmul.u32 %v2737_v29, %v2712_v28  ;;  %v4217_v57 = vshrl.u32 %v4216_v24, 23 }
 0x35d   : > { %v9358_v46 = vadd.s32 %v9220_v48, %v13383_v33  ;;  %v1555_v11 = vadd.f32 -0.4999988, %v1554_v36  ;;  %v9368_v1 = vmul.f32 %v9344_v22, %v9344_v22  ;;  %v1982_v21 = vadd.s32 %v9039_v34, %v9019_v53 }
 0x35e   : > { %v2004_v19 = vshll.u32 %v2003_v35, 23  ;;  %v2237_v48 = vsel %vm2231_vm9, %v2234_v0, %v2236_v52  ;;  %v9378_v38 = vmul.u32 %v13081_v56, %v2712_v28  ;;  %v2736_v15 = vand.u32 65535, %v9311_v41 }
 0x35f   : > { %vm2293_vm14 = vc.u32 %v9339_v13, %v9358_v46  ;;  %v1110_v20 = vsel %vm1108_vm5, %v1109_v49, %v9316_v18  ;;  %v1563_v59 = vmul.f32 %v1562_v23, %v9208_v17  ;;  %v2000_v53 = vshrl.u32 %v1982_v21, %v1998_v61 }
 0x360   : > { %v2714_v34 = vand.u32 65535, %v9329_v8  ;;  %vm1104_vm10 = vcmp.lt.s32.totalorder %v9178_v40, 2  ;;  %v2295_v24 = vsel %vm2293_vm14, %v2294_v4, %v2290_v10  ;;  %v2713_v2 = vshrl.u32 %v9321_v6, 16 }
 0x361   : > { %v2742_v36 = vshll.u32 %v9364_v60, 16  ;;  %v6249_v47 = vadd.s32 4294967169, %v4217_v57  ;;  %v1556_v35 = vmul.f32 %v1555_v11, %v9208_v17  ;;  %v3109_v0 = vmul.f32 -0.00019511016, %v9368_v1 }
 0x362   : > { %v1999_v18 = vshll.u32 %v9176_v31, %v9298_v27  ;;  %v2291_v49 = vmul.u32 %v9155_v26, %v2237_v48  ;;  %v2005_v23 = vor.u32 4788187, %v2004_v19  ;;  %v2720_v61 = vshll.u32 %v9378_v38, 16 }
 0x363   : > { %v2738_v52 = vmul.u32 %v2736_v15, %v2712_v28  ;;  %v9395_v33 = vmul.u32 %v2736_v15, %v2713_v2  ;;  %v1564_v10 = vadd.f32 1.0, %v1563_v59  ;;  %v2716_v57 = vmul.u32 %v2714_v34, %v2712_v28 }
 0x364   : > { %v2001_v4 = vor.u32 %v2000_v53, %v1999_v18  ;;  %v9397_v21 = vadd.s32 %v2295_v24, %v2291_v49  ;;  %v9399_v56 = vmul.u32 %v2714_v34, %v2713_v2  ;;  %v4223_v11 = vadd.s32 1, %v6249_v47 }
 0x365   : > { %vm2746_vm9 = vc.u32 %v2738_v52, %v2742_v36  ;;  %v9401_v17 = vadd.s32 %v2742_v36, %v2738_v52  ;;  %vm1101_vm0 = vweird.f32 %v13356_v44  ;;  %v1107_v26 = vsel %vm1105_vm7, %v9273_v55, %v1106_v5  ;;  %v9418_v5 = vpop.f32.mrf.mxu1 }
 0x366   : > { %v1557_v31 = vadd.f32 1.0, %v1556_v35  ;;  %v3097_v27 = vsub.s32 4, %v8952_v30  ;;  %v3110_v19 = vadd.f32 0.008332121, %v3109_v0  ;;  %v2006_v48 = vand.u32 2147483647, %v2005_v23 }
 0x367   : > { %vm2724_vm3 = vc.u32 %v2716_v57, %v2720_v61  ;;  %v2726_v15 = vadd.s32 %v2720_v61, %v2716_v57  ;;  %v2744_v28 = vshll.u32 %v9395_v33, 16  ;;  %v1565_v59 = vmul.f32 %v1564_v10, %v9194_v12  ;;  %13384 = vst [vmem:[#allocation23_spill] sm:$0xff] %v9418_v5 }
 0x368   : > { %v2008_v53 = vcvt.s32.f32 %v2001_v4  ;;  %v2297_v34 = vadd.s32 536870912, %v9397_v21  ;;  %v2747_v24 = vsel %vm2746_vm9, 1, %v13223_v58  ;;  %v2722_v36 = vshll.u32 %v9399_v56, 16 }
 0x369   : > { %v2741_v55 = vmul.u32 %v2737_v29, %v2713_v2  ;;  %vm2750_vm4 = vc.u32 %v9401_v17, %v2744_v28  ;;  %vm4224_vm2 = vcmp.gt.s32.totalorder %v4223_v11, 0  ;;  %v1111_v12 = vsel %vm1104_vm10, %v1107_v26, %v1110_v20 }
 0x36a   : > { %v3102_v47 = vmul.f32 -0.001358992, %v9368_v1  ;;  %v3111_v35 = vmul.f32 %v3110_v19, %v9368_v1  ;;  %v2725_v0 = vsel %vm2724_vm3, 1, %v13223_v58  ;;  %vm1890_vm8 = vcmp.lt.s32.totalorder %v8573_v50, 0 }
 0x36b   : > { %v2009_v41 = vmul.f32 %v2008_v53, %v2006_v48  ;;  %v13385_v29 = vshrl.u32 %v9329_v8, 16  ;;  %vm2728_vm5 = vc.u32 %v2726_v15, %v2722_v36  ;;  %v2749_v49 = vadd.s32 %v2747_v24, %v2741_v55 }
 0x36c   : > { %v9428_v23 = vshrl.u32 %v2297_v34, 30  ;;  %v2751_v61 = vsel %vm2750_vm4, 1, %v13223_v58  ;;  %v4225_v40 = vsel %vm4224_vm2, %v4223_v11, 0  ;;  %v3131_v20 = vand.u32 2139095040, %v9418_v5 }
 0x36d   : > { %v2719_v18 = vmul.u32 %v13385_v29, %v2713_v2  ;;  %vm1569_vm7 = vcmp.lt.s32.totalorder %v9296_v9, 2  ;;  %v1571_v52 = vxor.u32 2147483648, %v1565_v59  ;;  %v1574_v10 = vxor.u32 2147483648, %v1557_v31 }
 0x36e   : > { %13386 = vst [vmem:[#allocation15_spill] sm:$0xff] %v9428_v23  ;;  %v3098_v4 = vsel %vm2975_vm15, %v3097_v27, %v8952_v30  ;;  %vm1570_vm14 = vcmp.eq.s32.totalorder %v9296_v9, 0  ;;  %v3103_v8 = vadd.f32 0.041655596, %v3102_v47  ;;  %v3112_v2 = vadd.f32 -0.16666654, %v3111_v35 }
 0x36f   : > { %v2727_v57 = vadd.s32 %v2725_v0, %v2719_v18  ;;  %v13387_v26 = vand.u32 2147483647, %v8573_v50  ;;  %v2729_v11 = vsel %vm2728_vm5, 1, %v13223_v58  ;;  %v9446_v48 = vsel %vm1101_vm0, nan, %v1111_v12 }
 0x370   : > { %vm1573_vm9 = vcmp.eq.s32.totalorder %v9296_v9, 2  ;;  %v2753_v30 = vadd.s32 %v2751_v61, %v2749_v49  ;;  %v4227_v27 = vand.u32 31, %v4225_v40  ;;  %v3100_v15 = vsel %vm9280_vm11, 0, %v3098_v4 }
 0x371   : > { %vm9439_vm10 = vcmp.le.f32.partialorder %v13387_v26, 0.7853982  ;;  %v2010_v53 = vxor.u32 2147483648, %v2009_v41  ;;  %v2299_v34 = vshll.u32 %v9428_v23, 30  ;;  %v3132_v24 = vshrl.u32 %v3131_v20, 23 }
 0x372   : > { %v1572_v36 = vsel %vm1570_vm14, %v1557_v31, %v1571_v52  ;;  %v1575_v55 = vsel %vm1573_vm9, %v1574_v10, %v1565_v59  ;;  %v2731_v47 = vadd.s32 %v2729_v11, %v2727_v57  ;;  %v2743_v35 = vshrl.u32 %v9364_v60, 16 }
 0x373   : > { %v3104_v44 = vmul.f32 %v3103_v8, %v9368_v1  ;;  %v3113_v12 = vmul.f32 %v3112_v2, %v9368_v1  ;;  %v2012_v0 = vsub.s32 4, %v9130_v45  ;;  %v2700_v37 = vsel %vm2698_vm1, %v9270_v25, 2102212464 }
 0x374   : > { %v2679_v29 = vshrl.u32 %v13224_v32, %v9214_v63  ;;  %v2721_v18 = vshrl.u32 %v9378_v38, 16  ;;  %v2754_v31 = vadd.s32 %v2753_v30, %v2743_v35  ;;  %v9462_v59 = vsub.s32 32, %v4227_v27 }
 0x375   : > { %v3117_v49 = vadd.s32 3, %v3100_v15  ;;  %v2011_v60 = vsel %vm1890_vm8, %v2010_v53, %v2009_v41  ;;  %v9467_v61 = vsub.s32 %v9397_v21, %v2299_v34  ;;  %v6228_v20 = vadd.s32 4294967169, %v3132_v24  ;;  %v13392_v15 = vld [vmem:[#allocation37_spill] sm:$0xff] }
 0x376   : > { %v2699_v25 = vsel %vm2695_vm6, %v2679_v29, %v9266_v54  ;;  %v2701_v63 = vsel %vm2697_vm13, %v9268_v7, %v2700_v37  ;;  %v2732_v38 = vadd.s32 %v2731_v47, %v2721_v18  ;;  %v2745_v52 = vshrl.u32 %v9395_v33, 16 }
 0x377   : > { %v1576_v10 = vsel %vm1569_vm7, %v1572_v36, %v1575_v55  ;;  %v3105_v4 = vadd.f32 -0.4999988, %v3104_v44  ;;  %v3114_v41 = vadd.f32 1.0, %v3113_v12  ;;  %v2013_v21 = vsel %vm1890_vm8, %v2012_v0, %v9130_v45 }
 0x378   : > { %v9484_v54 = vsel %vm9439_vm10, %v8573_v50, %v2011_v60  ;;  %v2723_v57 = vshrl.u32 %v9399_v56, 16  ;;  %v2755_v7 = vadd.s32 %v2754_v31, %v2745_v52  ;;  %v4240_v8 = vshrl.u32 %v13364_v43, %v9462_v59 }
 0x379   : > { %13390 = vst [vmem:[#allocation5_spill] sm:$0xff] %v9484_v54  ;;  %vm2301_vm15 = vcmp.lt.s32.totalorder %v9467_v61, 0  ;;  %v2302_v9 = vsub.s32 0, %v9467_v61  ;;  %v2702_v2 = vsel %vm2696_vm12, %v2699_v25, %v2701_v63  ;;  %v3138_v26 = vadd.s32 1, %v6228_v20 }
 0x37a   : > { %v9493_v45 = vadd.s32 %v2732_v38, %v2723_v57  ;;  %v13083_v11 = vand.u32 2147483647, %v9313_v51  ;;  %v4239_v30 = vshll.u32 %v13366_v42, %v4227_v27  ;;  %v4243_v56 = vshrl.u32 %v13365_v39, %v9462_v59 }
 0x37b   : > { %vm1566_vm1 = vweird.f32 %v13392_v15  ;;  %v9500_v53 = vshrl.u32 %v4225_v40, 5  ;;  %v4231_v34 = vshrl.u32 %v13227_v14, %v9462_v59  ;;  %v4234_v16 = vshrl.u32 %v13228_v3, %v9462_v59  ;;  %v13395_v15 = vld [vmem:[#allocation2_spill] sm:$0xff] }
 0x37c   : > { %13391 = vst [vmem:[#allocation16_spill] sm:$0xff] %v9493_v45  ;;  %v4237_v24 = vshrl.u32 %v13366_v42, %v9462_v59  ;;  %v9511_v36 = vadd.s32 %v9401_v17, %v2744_v28  ;;  %v2759_v55 = vadd.s32 1, %v2755_v7  ;;  %v4241_v47 = vor.u32 %v4240_v8, %v4239_v30 }
 0x37d   : > { %v4242_v35 = vshll.u32 %v13364_v43, %v4227_v27  ;;  %v4230_v40 = vshll.u32 %v13224_v32, %v4227_v27  ;;  %v4233_v44 = vshll.u32 %v13227_v14, %v4227_v27  ;;  %v4236_v12 = vshll.u32 %v13228_v3, %v4227_v27 }
 0x37e   : > { %13393 = vst [vmem:[#allocation14_spill] sm:$0xff] %v9511_v36  ;;  %vm3139_vm11 = vcmp.gt.s32.totalorder %v3138_v26, 0  ;;  %v2303_v0 = vsel %vm2301_vm15, %v2302_v9, %v9467_v61  ;;  %vm2758_vm6 = vc.u32 %v9493_v45, %v9511_v36  ;;  %v4220_v33 = vand.u32 8388607, %v13083_v11 }
 0x37f   : > { %v4244_v17 = vor.u32 %v4243_v56, %v4242_v35  ;;  %v9524_v28 = vor.u32 %v4231_v34, %v4230_v40  ;;  %v9526_v37 = vor.u32 %v4234_v16, %v4233_v44  ;;  %v9528_v29 = vor.u32 %v4237_v24, %v4236_v12  ;;  %v13397_v12 = vld [vmem:[#allocation4_spill] sm:$0xff] }
 0x380   : > { %vm4248_vm13 = vcmp.lt.s32.totalorder %v9500_v53, 4  ;;  %v3106_v27 = vmul.f32 %v3105_v4, %v9368_v1  ;;  %v2015_v18 = vsel %vm9439_vm10, 0, %v2013_v21  ;;  %v3140_v60 = vsel %vm3139_vm11, %v3138_v26, 0  ;;  %v9570_v26 = vpop.f32.mrf.mxu3 }
 0x381   : > { %v4254_v31 = vsel %vm4248_vm13, %v4241_v47, 920167782  ;;  %v9537_v20 = vmul.f32 %v3114_v41, %v9344_v22  ;;  %v9541_v25 = vmul.f32 %v9484_v54, %v9484_v54  ;;  %v2304_v63 = vclz %v2303_v0  ;;  %13394 = vst [vmem:[#allocation25_spill] sm:$0xff] %v9570_v26 }
 0x382   : > { %v2760_v38 = vsel %vm2758_vm6, %v2759_v55, %v2755_v7  ;;  %v2756_v52 = vmul.u32 %v9321_v6, %v2702_v2  ;;  %vm4245_vm12 = vcmp.lt.s32.totalorder %v9500_v53, 1  ;;  %vm4247_vm0 = vcmp.lt.s32.totalorder %v9500_v53, 3 }
 0x383   : > { %v4258_v1 = vsel %vm4248_vm13, %v4244_v17, 1326507024  ;;  %v4221_v19 = vor.u32 8388608, %v4220_v33  ;;  %v4253_v22 = vsel %vm4245_vm12, %v9524_v28, %v9526_v37  ;;  %v4255_v4 = vsel %vm4247_vm0, %v9528_v29, %v4254_v31 }
 0x384   : > { %v3142_v41 = vand.u32 31, %v3140_v60  ;;  %v1577_v6 = vsel %vm1566_vm1, nan, %v1576_v10  ;;  %v9557_v21 = vand.u32 3, %v3117_v49  ;;  %v2032_v57 = vadd.s32 3, %v2015_v18 }
 0x385   : > { %v9559_v7 = vadd.s32 %v2760_v38, %v2756_v52  ;;  %v9561_v8 = vadd.f32 1.0, %v3106_v27  ;;  %vm4246_vm3 = vcmp.lt.s32.totalorder %v9500_v53, 2  ;;  %v4257_v9 = vsel %vm4245_vm12, %v9526_v37, %v9528_v29 }
 0x386   : > { %v4259_v2 = vsel %vm4247_vm0, %v4241_v47, %v4258_v1  ;;  %v3121_v49 = vxor.u32 2147483648, %v9537_v20  ;;  %v2017_v10 = vmul.f32 -0.001358992, %v9541_v25  ;;  %v2024_v30 = vmul.f32 -0.00019511016, %v9541_v25 }
 0x387   : > { %v9577_v56 = vsel %vm4246_vm3, %v4253_v22, %v4255_v4  ;;  %v9581_v34 = vmul.f32 %v9446_v48, %v13395_v15  ;;  %v6211_v16 = vadd.s32 4294967294, %v2304_v63  ;;  %v9583_v24 = vshll.u32 %v4221_v19, 8 }
 0x388   : > { %v9585_v55 = vsub.s32 32, %v3142_v41  ;;  %v2762_v47 = vadd.s32 536870912, %v9559_v7  ;;  %v9590_v35 = vsel %vm4246_vm3, %v4257_v9, %v4259_v2  ;;  %v13082_v40 = vand.u32 2147483647, %v9418_v5 }
 0x389   : > { %13396 = vst [vmem:[#allocation26_spill] sm:$0xff] %v9581_v34  ;;  %v3441_v44 = vand.u32 2139095040, %v9570_v26  ;;  %v9595_v0 = vmul.f32 %v1577_v6, %v13397_v12  ;;  %vm3120_vm4 = vcmp.eq.s32.totalorder %v9557_v21, 0  ;;  %v9598_v48 = vand.u32 3, %v2032_v57 }
 0x38a   : > { %v4287_v33 = vshrl.u32 %v9577_v56, 16  ;;  %v9602_v17 = vsel %vm3120_vm4, %v9561_v8, %v3121_v49  ;;  %v9605_v18 = vadd.f32 0.041655596, %v2017_v10  ;;  %v9607_v31 = vadd.f32 0.008332121, %v2024_v30 }
 0x38b   : > { %13398 = vst [vmem:[#allocation27_spill] sm:$0xff] %v9595_v0  ;;  %v4262_v63 = vand.u32 65535, %v9583_v24  ;;  %v13088_v38 = vshrl.u32 %v9590_v35, 16  ;;  %v3155_v52 = vshrl.u32 %v13364_v43, %v9585_v55  ;;  %v3158_v1 = vshrl.u32 %v13365_v39, %v9585_v55 }
 0x38c   : > { %13399 = vst [vmem:[#allocation37_spill] sm:$0xff] %v9598_v48  ;;  %vm6212_vm2 = vcmp.lt.s32.totalorder %v6211_v16, 0  ;;  %v9615_v19 = vshrl.u32 %v2762_v47, 30  ;;  %v3135_v22 = vand.u32 8388607, %v13082_v40  ;;  %v3442_v4 = vshrl.u32 %v3441_v44, 23 }
 0x38d   : > { %v4286_v6 = vand.u32 65535, %v9577_v56  ;;  %v9620_v57 = vmul.u32 %v4287_v33, %v4262_v63  ;;  %v3154_v9 = vshll.u32 %v13366_v42, %v3142_v41  ;;  %v3157_v2 = vshll.u32 %v13364_v43, %v3142_v41 }
 0x38e   : > { %13400 = vst [vmem:[#allocation2_spill] sm:$0xff] %v9615_v19  ;;  %v9624_v49 = vshrl.u32 %v3140_v60, 5  ;;  %v3146_v10 = vshrl.u32 %v13227_v14, %v9585_v55  ;;  %v3149_v30 = vshrl.u32 %v13228_v3, %v9585_v55  ;;  %v3152_v15 = vshrl.u32 %v13366_v42, %v9585_v55 }
 0x38f   : > { %v4264_v47 = vand.u32 65535, %v9590_v35  ;;  %v9635_v56 = vmul.u32 %v13088_v38, %v4262_v63  ;;  %v3156_v44 = vor.u32 %v3155_v52, %v3154_v9  ;;  %v3159_v12 = vor.u32 %v3158_v1, %v3157_v2 }
 0x390   : > { %v3145_v60 = vshll.u32 %v13224_v32, %v3142_v41  ;;  %v3148_v40 = vshll.u32 %v13227_v14, %v3142_v41  ;;  %v3151_v11 = vshll.u32 %v13228_v3, %v3142_v41  ;;  %v6234_v27 = vadd.s32 4294967169, %v3442_v4 }
 0x391   : > { %v9641_v0 = vsel %vm6212_vm2, 0, %v6211_v16  ;;  %v2764_v34 = vshll.u32 %v9615_v19, 30  ;;  %v4263_v5 = vshrl.u32 %v9583_v24, 16  ;;  %v4292_v51 = vshll.u32 %v9620_v57, 16 }
 0x392   : > { %v9646_v38 = vor.u32 %v3146_v10, %v3145_v60  ;;  %v9648_v52 = vor.u32 %v3149_v30, %v3148_v40  ;;  %v9650_v1 = vor.u32 %v3152_v15, %v3151_v11  ;;  %vm3163_vm8 = vcmp.lt.s32.totalorder %v9624_v49, 4 }
 0x393   : > { %v4288_v9 = vmul.u32 %v4286_v6, %v4262_v63  ;;  %v9653_v41 = vmul.u32 %v4286_v6, %v4263_v5  ;;  %v3169_v16 = vsel %vm3163_vm8, %v3156_v44, 920167782  ;;  %v3173_v4 = vsel %vm3163_vm8, %v3159_v12, 1326507024 }
 0x394   : > { %v4266_v2 = vmul.u32 %v4264_v47, %v4262_v63  ;;  %v4270_v50 = vshll.u32 %v9635_v56, 16  ;;  %v3136_v10 = vor.u32 8388608, %v3135_v22  ;;  %v3448_v60 = vadd.s32 1, %v6234_v27 }
 0x395   : > { %vm4296_vm5 = vc.u32 %v4288_v9, %v4292_v51  ;;  %v9660_v40 = vadd.s32 %v4292_v51, %v4288_v9  ;;  %vm3160_vm7 = vcmp.lt.s32.totalorder %v9624_v49, 1  ;;  %vm3162_vm14 = vcmp.lt.s32.totalorder %v9624_v49, 3 }
 0x396   : > { %v3168_v11 = vsel %vm3160_vm7, %v9646_v38, %v9648_v52  ;;  %v3170_v63 = vsel %vm3162_vm14, %v9650_v1, %v3169_v16  ;;  %v3172_v27 = vsel %vm3160_vm7, %v9648_v52, %v9650_v1  ;;  %v3174_v51 = vsel %vm3162_vm14, %v3156_v44, %v3173_v4 }
 0x397   : > { %v9678_v22 = vsub.s32 %v9559_v7, %v2764_v34  ;;  %v9680_v6 = vmul.u32 %v4264_v47, %v4263_v5  ;;  %v4291_v30 = vmul.u32 %v4287_v33, %v4263_v5  ;;  %v4294_v15 = vshll.u32 %v9653_v41, 16 }
 0x398   : > { %vm9683_vm10 = vc.u32 %v4266_v2, %v4270_v50  ;;  %v4297_v9 = vsel %vm4296_vm5, 1, %v13223_v58  ;;  %vm3161_vm9 = vcmp.lt.s32.totalorder %v9624_v49, 2  ;;  %vm3449_vm15 = vcmp.gt.s32.totalorder %v3448_v60, 0 }
 0x399   : > { %13401 = vst [vmem:[#allocation4_spill] sm:$0xff] %v9678_v22  ;;  %v4276_v16 = vadd.s32 %v4270_v50, %v4266_v2  ;;  %vm4300_vm1 = vc.u32 %v9660_v40, %v4294_v15  ;;  %v9692_v7 = vsel %vm3161_vm9, %v3168_v11, %v3170_v63  ;;  %v9696_v34 = vsel %vm3161_vm9, %v3172_v27, %v3174_v51 }
 0x39a   : > { %v2019_v33 = vmul.f32 %v9605_v18, %v9541_v25  ;;  %v2292_v47 = vadd.s32 %v9358_v46, %v9339_v13  ;;  %v2312_v44 = vsub.s32 4294967266, %v9641_v0  ;;  %v9703_v4 = vshll.u32 %v3136_v10, 8 }
 0x39b   : > { %v9707_v50 = vmul.f32 %v9607_v31, %v9541_v25  ;;  %v4272_v2 = vshll.u32 %v9680_v6, 16  ;;  %v4299_v11 = vadd.s32 %v4297_v9, %v4291_v30  ;;  %v3450_v63 = vsel %vm3449_vm15, %v3448_v60, 0 }
 0x39c   : > { %13404 = vst [vmem:[#allocation42_spill] sm:$0xff] %v9703_v4  ;;  %v4275_v27 = vsel %vm9683_vm10, 1, %v13223_v58  ;;  %v4301_v18 = vsel %vm4300_vm1, 1, %v13223_v58  ;;  %v2308_v10 = vsub.s32 32, %v9641_v0  ;;  %v2767_v51 = vsub.s32 0, %v9678_v22 }
 0x39d   : > { %v13405_v31 = vshrl.u32 %v9590_v35, 16  ;;  %vm4278_vm11 = vc.u32 %v4276_v16, %v4272_v2  ;;  %v9720_v30 = vadd.s32 127, %v2312_v44  ;;  %vm2766_vm6 = vcmp.lt.s32.totalorder %v9678_v22, 0 }
 0x39e   : > { %v3177_v60 = vand.u32 65535, %v9703_v4  ;;  %v3452_v12 = vand.u32 31, %v3450_v63  ;;  %v9724_v9 = vadd.f32 -0.4999988, %v2019_v33  ;;  %v4303_v48 = vadd.s32 %v4301_v18, %v4299_v11 }
 0x39f   : > { %v4269_v19 = vmul.u32 %v13405_v31, %v4263_v5  ;;  %v3179_v46 = vand.u32 65535, %v9696_v34  ;;  %v4229_v54 = vshrl.u32 %v13224_v32, %v9462_v59  ;;  %v4279_v35 = vsel %vm4278_vm11, 1, %v13223_v58 }
 0x3a0   : > { %v13406_v5 = vshrl.u32 %v9696_v34, 16  ;;  %v13407_v44 = vshrl.u32 %v9692_v7, 16  ;;  %v9739_v33 = vsel %vm2766_vm6, %v2767_v51, %v9678_v22  ;;  %v4293_v11 = vshrl.u32 %v9620_v57, 16 }
 0x3a1   : > { %v4277_v13 = vadd.s32 %v4275_v27, %v4269_v19  ;;  %v4250_v19 = vsel %vm4248_vm13, %v9528_v29, 2102212464  ;;  %v3178_v59 = vshrl.u32 %v9703_v4, 16  ;;  %v9746_v27 = vshrl.u32 %v2292_v47, %v2308_v10 }
 0x3a2   : > { %v9732_v16 = vmul.u32 %v13406_v5, %v3177_v60  ;;  %v9736_v2 = vmul.u32 %v13407_v44, %v3177_v60  ;;  %v3201_v31 = vand.u32 65535, %v9692_v7  ;;  %v9750_v5 = vsub.s32 32, %v3452_v12 }
 0x3a3   : > { %v9755_v51 = vsel %vm4245_vm12, %v4229_v54, %v9524_v28  ;;  %v4281_v44 = vadd.s32 %v4279_v35, %v4277_v13  ;;  %v4304_v62 = vadd.s32 %v4303_v48, %v4293_v11  ;;  %v9757_v29 = vmul.u32 %v3179_v46, %v3178_v59 }
 0x3a4   : > { %13408 = vst [vmem:[#allocation43_spill] sm:$0xff] %v9750_v5  ;;  %v4251_v47 = vsel %vm4247_vm0, %v9526_v37, %v4250_v19  ;;  %v3185_v10 = vshll.u32 %v9732_v16, 16  ;;  %v3207_v18 = vshll.u32 %v9736_v2, 16  ;;  %v4271_v22 = vshrl.u32 %v9635_v56, 16 }
 0x3a5   : > { %v4273_v4 = vshrl.u32 %v9680_v6, 16  ;;  %v4295_v54 = vshrl.u32 %v9653_v41, 16  ;;  %v9769_v28 = vadd.s32 %v9660_v40, %v4294_v15  ;;  %v3181_v48 = vmul.u32 %v3179_v46, %v3177_v60 }
 0x3a6   : > { %v3203_v13 = vmul.u32 %v3201_v31, %v3177_v60  ;;  %v9771_v35 = vmul.u32 %v3201_v31, %v3178_v59  ;;  %v3465_v37 = vshrl.u32 %v13364_v43, %v9750_v5  ;;  %v4282_v19 = vadd.s32 %v4281_v44, %v4271_v22  ;;  %v9796_v31 = vpop.f32.mrf.mxu2 }
 0x3a7   : > { %v4305_v11 = vadd.s32 %v4304_v62, %v4295_v54  ;;  %v3187_v57 = vshll.u32 %v9757_v29, 16  ;;  %vm9777_vm13 = vc.u32 %v3181_v48, %v3185_v10  ;;  %v3464_v40 = vshll.u32 %v13366_v42, %v3452_v12  ;;  %13413 = vst [vmem:[#allocation44_spill] sm:$0xff] %v9796_v31 }
 0x3a8   : > { %vm9781_vm12 = vc.u32 %v3203_v13, %v3207_v18  ;;  %v3468_v15 = vshrl.u32 %v13365_v39, %v9750_v5  ;;  %v9788_v46 = vshrl.u32 %v3450_v63, 5  ;;  %v3456_v62 = vshrl.u32 %v13227_v14, %v9750_v5 }
 0x3a9   : > { %v3459_v22 = vshrl.u32 %v13228_v3, %v9750_v5  ;;  %v3462_v60 = vshrl.u32 %v13366_v42, %v9750_v5  ;;  %v3191_v44 = vadd.s32 %v3185_v10, %v3181_v48  ;;  %v3466_v56 = vor.u32 %v3465_v37, %v3464_v40 }
 0x3aa   : > { %v3467_v36 = vshll.u32 %v13364_v43, %v3452_v12  ;;  %v9800_v39 = vadd.s32 %v3207_v18, %v3203_v13  ;;  %v3455_v63 = vshll.u32 %v13224_v32, %v3452_v12  ;;  %v3458_v45 = vshll.u32 %v13227_v14, %v3452_v12 }
 0x3ab   : > { %v3461_v23 = vshll.u32 %v13228_v3, %v3452_v12  ;;  %v3212_v5 = vsel %vm9781_vm12, 1, %v13223_v58  ;;  %v13414_v42 = vand.u32 2147483647, %v9570_v26  ;;  %v3906_v37 = vand.u32 2139095040, %v9796_v31 }
 0x3ac   : > { %v3469_v48 = vor.u32 %v3468_v15, %v3467_v36  ;;  %v9811_v40 = vor.u32 %v3456_v62, %v3455_v63  ;;  %v9813_v18 = vor.u32 %v3459_v22, %v3458_v45  ;;  %vm3473_vm0 = vcmp.lt.s32.totalorder %v9788_v46, 4 }
 0x3ad   : > { %v3445_v10 = vand.u32 8388607, %v13414_v42  ;;  %v9815_v13 = vor.u32 %v3462_v60, %v3461_v23  ;;  %vm3123_vm4 = vcmp.eq.s32.totalorder %v9557_v21, 2  ;;  %v9819_v12 = vadd.s32 %v4282_v19, %v4273_v4 }
 0x3ae   : > { %v4309_v41 = vadd.s32 1, %v4305_v11  ;;  %v13415_v54 = vshrl.u32 %v9692_v7, 16  ;;  %v3479_v42 = vsel %vm3473_vm0, %v3466_v56, 920167782  ;;  %vm3119_vm2 = vcmp.lt.s32.totalorder %v9557_v21, 2 }
 0x3af   : > { %v13416_v45 = vshrl.u32 %v9696_v34, 16  ;;  %v3190_v23 = vsel %vm9777_vm13, 1, %v13223_v58  ;;  %vm3193_vm5 = vc.u32 %v3191_v44, %v3187_v57  ;;  %v13417_v4 = vshll.u32 %v9771_v35, 16 }
 0x3b0   : > { %v3206_v26 = vmul.u32 %v13415_v54, %v3178_v59  ;;  %vm3470_vm15 = vcmp.lt.s32.totalorder %v9788_v46, 1  ;;  %vm3472_vm1 = vcmp.lt.s32.totalorder %v9788_v46, 3  ;;  %v3483_v7 = vsel %vm3473_vm0, %v3469_v48, 1326507024 }
 0x3b1   : > { %v3184_v36 = vmul.u32 %v13416_v45, %v3178_v59  ;;  %vm3215_vm10 = vc.u32 %v9800_v39, %v13417_v4  ;;  %v3446_v15 = vor.u32 8388608, %v3445_v10  ;;  %v3478_v34 = vsel %vm3470_vm15, %v9811_v40, %v9813_v18 }
 0x3b2   : > { %v3214_v19 = vadd.s32 %v3212_v5, %v3206_v26  ;;  %v3480_v59 = vsel %vm3472_vm1, %v9815_v13, %v3479_v42  ;;  %v3907_v57 = vshrl.u32 %v3906_v37, 23  ;;  %v4252_v26 = vsel %vm4246_vm3, %v9755_v51, %v4251_v47 }
 0x3b3   : > { %vm4308_vm11 = vc.u32 %v9819_v12, %v9769_v28  ;;  %v3192_v5 = vadd.s32 %v3190_v23, %v3184_v36  ;;  %v3216_v6 = vsel %vm3215_vm10, 1, %v13223_v58  ;;  %v3194_v62 = vsel %vm3193_vm5, 1, %v13223_v58 }
 0x3b4   : > { %vm3471_vm6 = vcmp.lt.s32.totalorder %v9788_v46, 2  ;;  %v3482_v22 = vsel %vm3470_vm15, %v9813_v18, %v9815_v13  ;;  %v3484_v60 = vsel %vm3472_vm1, %v3466_v56, %v3483_v7  ;;  %v2027_v53 = vadd.f32 -0.16666654, %v9707_v50 }
 0x3b5   : > { %v2309_v51 = vshll.u32 %v9467_v61, %v9641_v0  ;;  %v13418_v47 = vclz %v9739_v33  ;;  %v9866_v54 = vsel %vm3471_vm6, %v3478_v34, %v3480_v59  ;;  %v4310_v63 = vsel %vm4308_vm11, %v4309_v41, %v4305_v11 }
 0x3b6   : > { %v3218_v10 = vadd.s32 %v3216_v6, %v3214_v19  ;;  %v9868_v48 = vshll.u32 %v3446_v15, 8  ;;  %v6243_v37 = vadd.s32 4294967169, %v3907_v57  ;;  %v13419_v42 = vshll.u32 %v9720_v30, 23 }
 0x3b7   : > { %v6220_v44 = vadd.s32 4294967294, %v13418_v47  ;;  %v4306_v50 = vmul.u32 %v9583_v24, %v4252_v26  ;;  %v3196_v45 = vadd.s32 %v3194_v62, %v3192_v5  ;;  %v9875_v61 = vsel %vm3471_vm6, %v3482_v22, %v3484_v60 }
 0x3b8   : > { %v2315_v56 = vor.u32 4788187, %v13419_v42  ;;  %v13420_v0 = vxor.u32 2147483648, %v9561_v8  ;;  %v2311_v11 = vor.u32 %v9746_v27, %v2309_v51  ;;  %v3208_v41 = vshrl.u32 %v9736_v2, 16  ;;  %v13423_v42 = vld [vmem:[#allocation38_spill] sm:$0xff] }
 0x3b9   : > { %v3512_v30 = vshrl.u32 %v9866_v54, 16  ;;  %vm6221_vm3 = vcmp.lt.s32.totalorder %v6220_v44, 0  ;;  %v9890_v36 = vadd.s32 %v4310_v63, %v4306_v50  ;;  %v3186_v23 = vshrl.u32 %v9732_v16, 16 }
 0x3ba   : > { %v3125_v33 = vsel %vm3123_vm4, %v13420_v0, %v9537_v20  ;;  %v3219_v8 = vadd.s32 %v3218_v10, %v3208_v41  ;;  %v3487_v4 = vand.u32 65535, %v9868_v48  ;;  %v3490_v20 = vshrl.u32 %v9875_v61, 16 }
 0x3bb   : > { %v9888_v24 = vsel %vm3119_vm2, %v9602_v17, %v3125_v33  ;;  %v3913_v27 = vadd.s32 1, %v6243_v37  ;;  %v9897_v2 = vmul.f32 %v9724_v9, %v9541_v25  ;;  %v9900_v19 = vmul.f32 %v2027_v53, %v9541_v25 }
 0x3bc   : > { %v2316_v21 = vand.u32 2147483647, %v2315_v56  ;;  %v3197_v17 = vadd.s32 %v3196_v45, %v3186_v23  ;;  %v2318_v7 = vcvt.s32.f32 %v2311_v11  ;;  %v9902_v15 = vsel %vm6221_vm3, 0, %v6220_v44  ;;  %v13424_v23 = vld [vmem:[#allocation15_spill] sm:$0xff] }
 0x3bd   : > { %v3210_v16 = vshrl.u32 %v9771_v35, 16  ;;  %v9907_v34 = vmul.u32 %v3512_v30, %v3487_v4  ;;  %v4312_v59 = vadd.s32 536870912, %v9890_v36  ;;  %v3144_v9 = vshrl.u32 %v13224_v32, %v9585_v55 }
 0x3be   : > { %v3165_v25 = vsel %vm3163_vm8, %v9650_v1, 2102212464  ;;  %v3188_v57 = vshrl.u32 %v9757_v29, 16  ;;  %v9918_v5 = vmul.u32 %v3490_v20, %v3487_v4  ;;  %v3511_v6 = vand.u32 65535, %v9866_v54 }
 0x3bf   : > { %v3220_v26 = vadd.s32 %v3219_v8, %v3210_v16  ;;  %vm3914_vm13 = vcmp.gt.s32.totalorder %v3913_v27, 0  ;;  %v2319_v62 = vmul.f32 %v2318_v7, %v2316_v21  ;;  %v2777_v22 = vsub.s32 4294967266, %v9902_v15  ;;  %v13426_v21 = vld [vmem:[#allocation14_spill] sm:$0xff] }
 0x3c0   : > { %v9922_v60 = vadd.s32 %v3197_v17, %v3188_v57  ;;  %v3489_v55 = vand.u32 65535, %v9875_v61  ;;  %v3164_v1 = vsel %vm3160_vm7, %v3144_v9, %v9646_v38  ;;  %v3166_v29 = vsel %vm3162_vm14, %v9648_v52, %v3165_v25  ;;  %v13427_v25 = vld [vmem:[#allocation42_spill] sm:$0xff] }
 0x3c1   : > { %v3488_v53 = vshrl.u32 %v9868_v48, 16  ;;  %v3517_v51 = vshll.u32 %v9907_v34, 16  ;;  %v2773_v47 = vsub.s32 32, %v9902_v15  ;;  %v9934_v44 = vshrl.u32 %v4312_v59, 30 }
 0x3c2   : > { %v13422_v63 = vshll.u32 %v9771_v35, 16  ;;  %v3915_v37 = vsel %vm3914_vm13, %v3913_v27, 0  ;;  %vm2200_vm8 = vcmp.lt.s32.totalorder %v13423_v42, 0  ;;  %v3224_v38 = vadd.s32 1, %v3220_v26  ;;  %v13425_v27 = vld [vmem:[#allocation16_spill] sm:$0xff] }
 0x3c3   : > { %13421 = vst [vmem:[#allocation45_spill] sm:$0xff] %v9934_v44  ;;  %v3495_v56 = vshll.u32 %v9918_v5, 16  ;;  %v3513_v52 = vmul.u32 %v3511_v6, %v3487_v4  ;;  %v9943_v50 = vmul.u32 %v3511_v6, %v3488_v53  ;;  %v2778_v45 = vadd.s32 127, %v2777_v22 }
 0x3c4   : > { %v9939_v10 = vadd.s32 %v9800_v39, %v13422_v63  ;;  %v3167_v0 = vsel %vm3161_vm9, %v3164_v1, %v3166_v29  ;;  %v3491_v35 = vmul.u32 %v3489_v55, %v3487_v4  ;;  %v9949_v33 = vmul.u32 %v3489_v55, %v3488_v53  ;;  %v13428_v1 = vld [vmem:[#allocation4_spill] sm:$0xff] }
 0x3c5   : > { %vm3521_vm14 = vc.u32 %v3513_v52, %v3517_v51  ;;  %v9951_v39 = vadd.s32 %v3517_v51, %v3513_v52  ;;  %v3917_v11 = vand.u32 31, %v3915_v37  ;;  %v2320_v41 = vxor.u32 2147483648, %v2319_v62 }
 0x3c6   : > { %vm3223_vm7 = vc.u32 %v9922_v60, %v9939_v10  ;;  %v2322_v8 = vsub.s32 4, %v13424_v23  ;;  %v2757_v17 = vadd.s32 %v13426_v21, %v13425_v27  ;;  %v4314_v7 = vshll.u32 %v9934_v44, 30 }
 0x3c7   : > { %v3225_v49 = vsel %vm3223_vm7, %v3224_v38, %v3220_v26  ;;  %vm3499_vm9 = vc.u32 %v3491_v35, %v3495_v56  ;;  %v3501_v16 = vadd.s32 %v3495_v56, %v3491_v35  ;;  %v3519_v59 = vshll.u32 %v9943_v50, 16 }
 0x3c8   : > { %v2775_v4 = vshrl.u32 %v2757_v17, %v2773_v47  ;;  %v2779_v9 = vshll.u32 %v2778_v45, 23  ;;  %v3221_v57 = vmul.u32 %v13427_v25, %v3167_v0  ;;  %v3522_v6 = vsel %vm3521_vm14, 1, %v13223_v58 }
 0x3c9   : > { %v3497_v22 = vshll.u32 %v9949_v33, 16  ;;  %v3516_v55 = vmul.u32 %v3512_v30, %v3488_v53  ;;  %vm3525_vm12 = vc.u32 %v9951_v39, %v3519_v59  ;;  %v9966_v26 = vsub.s32 32, %v3917_v11 }
 0x3ca   : > { %v2774_v29 = vshll.u32 %v13428_v1, %v9902_v15  ;;  %v9971_v51 = vsub.s32 %v9890_v36, %v4314_v7  ;;  %v9973_v47 = vadd.s32 %v3225_v49, %v3221_v57  ;;  %v3500_v63 = vsel %vm3499_vm9, 1, %v13223_v58 }
 0x3cb   : > { %v3494_v54 = vmul.u32 %v3490_v20, %v3488_v53  ;;  %vm3503_vm4 = vc.u32 %v3501_v16, %v3497_v22  ;;  %v3524_v30 = vadd.s32 %v3522_v6, %v3516_v55  ;;  %v13107_v38 = vand.u32 2147483647, %v9796_v31 }
 0x3cc   : > { %v9980_v56 = vadd.f32 1.0, %v9900_v19  ;;  %v9984_v15 = vsel %vm2200_vm8, %v2320_v41, %v2319_v62  ;;  %v9989_v36 = vsel %vm2200_vm8, %v2322_v8, %v13424_v23  ;;  %v3526_v52 = vsel %vm3525_vm12, 1, %v13223_v58 }
 0x3cd   : > { %v2776_v61 = vor.u32 %v2775_v4, %v2774_v29  ;;  %v2780_v20 = vor.u32 4788187, %v2779_v9  ;;  %v3502_v53 = vadd.s32 %v3500_v63, %v3494_v54  ;;  %v3930_v45 = vshrl.u32 %v13364_v43, %v9966_v26 }
 0x3ce   : > { %vm4316_vm2 = vcmp.lt.s32.totalorder %v9971_v51, 0  ;;  %v4317_v19 = vsub.s32 0, %v9971_v51  ;;  %v3227_v62 = vadd.s32 536870912, %v9973_v47  ;;  %v3504_v0 = vsel %vm3503_vm4, 1, %v13223_v58 }
 0x3cf   : > { %v3528_v35 = vadd.s32 %v3526_v52, %v3524_v30  ;;  %v3910_v41 = vand.u32 8388607, %v13107_v38  ;;  %v13429_v23 = vmov 2102212464   ;;  %v13430_v27 = vmov 1326507024   ;;  %v10025_v52 = vpop.f32.mrf.mxu0 }
 0x3d0   : > { %v3929_v8 = vshll.u32 %v13429_v23, %v3917_v11  ;;  %v3933_v21 = vshrl.u32 %v13430_v27, %v9966_v26  ;;  %v10003_v17 = vshrl.u32 %v3915_v37, 5  ;;  %v3921_v7 = vshrl.u32 %v13227_v14, %v9966_v26  ;;  %13435 = vst [vmem:[#allocation15_spill] sm:$0xff] %v10025_v52 }
 0x3d1   : > { %v3924_v49 = vshrl.u32 %v13228_v3, %v9966_v26  ;;  %v3927_v16 = vshrl.u32 %v13429_v23, %v9966_v26  ;;  %v3506_v4 = vadd.s32 %v3504_v0, %v3502_v53  ;;  %v3518_v9 = vshrl.u32 %v9907_v34, 16 }
 0x3d2   : > { %v3931_v25 = vor.u32 %v3930_v45, %v3929_v8  ;;  %v3932_v57 = vshll.u32 %v13364_v43, %v3917_v11  ;;  %v10013_v6 = vshrl.u32 %v3227_v62, 30  ;;  %v3920_v37 = vshll.u32 %v13224_v32, %v3917_v11 }
 0x3d3   : > { %v3923_v22 = vshll.u32 %v13227_v14, %v3917_v11  ;;  %v3926_v55 = vshll.u32 %v13228_v3, %v3917_v11  ;;  %v13432_v1 = vand.u32 2147483647, %v13423_v42  ;;  %v2783_v63 = vcvt.s32.f32 %v2776_v61 }
 0x3d4   : > { %13431 = vst [vmem:[#allocation38_spill] sm:$0xff] %v10013_v6  ;;  %v3496_v34 = vshrl.u32 %v9918_v5, 16  ;;  %v3529_v54 = vadd.s32 %v3528_v35, %v3518_v9  ;;  %v3934_v30 = vor.u32 %v3933_v21, %v3932_v57  ;;  %v10027_v53 = vor.u32 %v3921_v7, %v3920_v37  ;;  %v13436_v35 = vld [vmem:[#allocation40_spill] sm:$0xff]  ;;  %v13437_v9 = vld [vmem:[#allocation41_spill] sm:$0xff] }
 0x3d5   : > { %vm10020_vm5 = vcmp.le.f32.partialorder %v13432_v1, 0.7853982  ;;  %v10029_v45 = vor.u32 %v3924_v49, %v3923_v22  ;;  %v10031_v62 = vor.u32 %v3927_v16, %v3926_v55  ;;  %vm3938_vm10 = vcmp.lt.s32.totalorder %v10003_v17, 4  ;;  %v13438_v22 = vld [vmem:[#allocation43_spill] sm:$0xff] }
 0x3d6   : > { %v2781_v11 = vand.u32 2147483647, %v2780_v20  ;;  %v4318_v0 = vsel %vm4316_vm2, %v4317_v19, %v9971_v51  ;;  %v3507_v61 = vadd.s32 %v3506_v4, %v3496_v34  ;;  %v3944_v5 = vsel %vm3938_vm10, %v3931_v25, 920167782 }
 0x3d7   : > { %vm3116_vm11 = vweird.f32 %v13436_v35  ;;  %v3229_v8 = vshll.u32 %v10013_v6, 30  ;;  %v3520_v21 = vshrl.u32 %v9943_v50, 16  ;;  %v3911_v7 = vor.u32 8388608, %v3910_v41 }
 0x3d8   : > { %v5456_v49 = vand.u32 2139095040, %v10025_v52  ;;  %v3498_v16 = vshrl.u32 %v9949_v33, 16  ;;  %vm3935_vm3 = vcmp.lt.s32.totalorder %v10003_v17, 1  ;;  %vm3937_vm13 = vcmp.lt.s32.totalorder %v10003_v17, 3 }
 0x3d9   : > { %v3948_v20 = vsel %vm3938_vm10, %v3934_v30, 1326507024  ;;  %v3475_v19 = vsel %vm3473_vm0, %v9815_v13, 2102212464  ;;  %v3530_v4 = vadd.s32 %v3529_v54, %v3520_v21  ;;  %v3943_v41 = vsel %vm3935_vm3, %v10027_v53, %v10029_v45 }
 0x3da   : > { %v3945_v33 = vsel %vm3937_vm13, %v10031_v62, %v3944_v5  ;;  %vm2665_vm8 = vcmp.lt.s32.totalorder %v13437_v9, 0  ;;  %v2784_v57 = vmul.f32 %v2783_v63, %v2781_v11  ;;  %v4319_v37 = vclz %v4318_v0 }
 0x3db   : > { %v3454_v55 = vshrl.u32 %v13224_v32, %v13438_v22  ;;  %v10061_v1 = vadd.s32 %v3507_v61, %v3498_v16  ;;  %vm3936_vm0 = vcmp.lt.s32.totalorder %v10003_v17, 2  ;;  %v3947_v13 = vsel %vm3935_vm3, %v10029_v45, %v10031_v62  ;;  %v13444_v22 = vld [vmem:[#allocation10_spill] sm:$0xff] }
 0x3dc   : > { %v3949_v34 = vsel %vm3937_vm13, %v3931_v25, %v3948_v20  ;;  %v5457_v54 = vshrl.u32 %v5456_v49, 23  ;;  %v3476_v30 = vsel %vm3472_vm1, %v9813_v18, %v3475_v19  ;;  %v10079_v11 = vadd.s32 %v9951_v39, %v3519_v59  ;;  %v13443_v20 = vld [vmem:[#allocation37_spill] sm:$0xff] }
 0x3dd   : > { %v3474_v63 = vsel %vm3470_vm15, %v3454_v55, %v9811_v40  ;;  %v10083_v0 = vsel %vm3936_vm0, %v3943_v41, %v3945_v33  ;;  %v10089_v25 = vsel %vm10020_vm5, %v13423_v42, %v9984_v15  ;;  %v13439_v40 = vand.u32 2147483647, %v13437_v9 }
 0x3de   : > { %v10098_v18 = vsub.s32 %v9973_v47, %v3229_v8  ;;  %v3534_v50 = vadd.s32 1, %v3530_v4  ;;  %v10100_v39 = vshll.u32 %v3911_v7, 8  ;;  %v2022_v59 = vadd.f32 1.0, %v9897_v2  ;;  %v13442_v2 = vld [vmem:[#allocation5_spill] sm:$0xff] }
 0x3df   : > { %vm10093_vm15 = vcmp.le.f32.partialorder %v13439_v40, 0.7853982  ;;  %v2785_v5 = vxor.u32 2147483648, %v2784_v57  ;;  %vm3533_vm1 = vc.u32 %v10061_v1, %v10079_v11  ;;  %v10107_v15 = vsel %vm3936_vm0, %v3947_v13, %v3949_v34 }
 0x3e0   : > { %v6250_v21 = vadd.s32 4294967294, %v4319_v37  ;;  %v3477_v49 = vsel %vm3471_vm6, %v3474_v63, %v3476_v30  ;;  %v13108_v47 = vshrl.u32 %v10083_v0, 16  ;;  %v6273_v8 = vadd.s32 4294967169, %v5457_v54 }
 0x3e1   : > { %v3127_v7 = vsel %vm3116_vm11, nan, %v9888_v24  ;;  %v2030_v16 = vmul.f32 %v9980_v56, %v13442_v2  ;;  %vm2035_vm7 = vcmp.eq.s32.totalorder %v13443_v20, 0  ;;  %v2325_v19 = vsel %vm10020_vm5, 0, %v9989_v36 }
 0x3e2   : > { %v10123_v46 = vmul.f32 %v10089_v25, %v10089_v25  ;;  %v3232_v41 = vsub.s32 0, %v10098_v18  ;;  %v3535_v33 = vsel %vm3533_vm1, %v3534_v50, %v3530_v4  ;;  %v3952_v37 = vand.u32 65535, %v10100_v39 }
 0x3e3   : > { %v3955_v24 = vshrl.u32 %v10107_v15, 16  ;;  %vm2038_vm6 = vcmp.eq.s32.totalorder %v13443_v20, 2  ;;  %v2039_v56 = vxor.u32 2147483648, %v2022_v59  ;;  %vm3231_vm14 = vcmp.lt.s32.totalorder %v10098_v18, 0 }
 0x3e4   : > { %v3531_v35 = vmul.u32 %v9868_v48, %v3477_v49  ;;  %v2786_v36 = vsel %vm2665_vm8, %v2785_v5, %v2784_v57  ;;  %vm6251_vm9 = vcmp.lt.s32.totalorder %v6250_v21, 0  ;;  %v10135_v29 = vmul.u32 %v13108_v47, %v3952_v37 }
 0x3e5   : > { %v5463_v4 = vadd.s32 1, %v6273_v8  ;;  %v10138_v55 = vmul.f32 %v3127_v7, %v13444_v22  ;;  %v2327_v13 = vmul.f32 -0.001358992, %v10123_v46  ;;  %v2342_v34 = vadd.s32 3, %v2325_v19 }
 0x3e6   : > { %v10141_v54 = vadd.s32 %v3535_v33, %v3531_v35  ;;  %v2036_v63 = vxor.u32 2147483648, %v2030_v16  ;;  %v3233_v48 = vsel %vm3231_vm14, %v3232_v41, %v10098_v18  ;;  %v10144_v30 = vmul.u32 %v3955_v24, %v3952_v37 }
 0x3e7   : > { %13445 = vst [vmem:[#allocation16_spill] sm:$0xff] %v10138_v55  ;;  %v3976_v57 = vand.u32 65535, %v10083_v0  ;;  %v2040_v40 = vsel %vm2038_vm6, %v2039_v56, %v2030_v16  ;;  %v2334_v50 = vmul.f32 -0.00019511016, %v10123_v46  ;;  %v10153_v5 = vsel %vm10093_vm15, %v13437_v9, %v2786_v36 }
 0x3e8   : > { %v4322_v49 = vsel %vm6251_vm9, 0, %v6250_v21  ;;  %v3953_v8 = vshrl.u32 %v10100_v39, 16  ;;  %v3954_v7 = vand.u32 65535, %v10107_v15  ;;  %v3982_v2 = vshll.u32 %v10135_v29, 16 }
 0x3e9   : > { %vm5464_vm12 = vcmp.gt.s32.totalorder %v5463_v4, 0  ;;  %v2328_v19 = vadd.f32 0.041655596, %v2327_v13  ;;  %v10158_v41 = vand.u32 3, %v2342_v34  ;;  %v3234_v33 = vclz %v3233_v48 }
 0x3ea   : > { %v3537_v16 = vadd.s32 536870912, %v10141_v54  ;;  %vm2034_vm4 = vcmp.lt.s32.totalorder %v13443_v20, 2  ;;  %v2037_v56 = vsel %vm2035_vm7, %v2022_v59, %v2036_v63  ;;  %v3960_v21 = vshll.u32 %v10144_v30, 16 }
 0x3eb   : > { %v3978_v35 = vmul.u32 %v3976_v57, %v3952_v37  ;;  %v10165_v36 = vmul.u32 %v3976_v57, %v3953_v8  ;;  %v2335_v15 = vadd.f32 0.008332121, %v2334_v50  ;;  %v10169_v22 = vmul.f32 %v10153_v5, %v10153_v5 }
 0x3ec   : > { %v4327_v13 = vsub.s32 4294967266, %v4322_v49  ;;  %v5465_v34 = vsel %vm5464_vm12, %v5463_v4, 0  ;;  %v3956_v48 = vmul.u32 %v3954_v7, %v3952_v37  ;;  %v10171_v38 = vmul.u32 %v3954_v7, %v3953_v8 }
 0x3ed   : > { %vm3986_vm2 = vc.u32 %v3978_v35, %v3982_v2  ;;  %v10173_v47 = vadd.s32 %v3982_v2, %v3978_v35  ;;  %v2329_v59 = vmul.f32 %v2328_v19, %v10123_v46  ;;  %v4323_v63 = vsub.s32 32, %v4322_v49 }
 0x3ee   : > { %v6229_v31 = vadd.s32 4294967294, %v3234_v33  ;;  %v10176_v55 = vshrl.u32 %v3537_v16, 30  ;;  %vm3964_vm5 = vc.u32 %v3956_v48, %v3960_v21  ;;  %v3966_v57 = vadd.s32 %v3960_v21, %v3956_v48 }
 0x3ef   : > { %v13115_v50 = vshll.u32 %v10165_v36, 16  ;;  %v5467_v6 = vand.u32 31, %v5465_v34  ;;  %v2336_v44 = vmul.f32 %v2335_v15, %v10123_v46  ;;  %v4307_v37 = vadd.s32 %v9769_v28, %v9819_v12 }
 0x3f0   : > { %13446 = vst [vmem:[#allocation14_spill] sm:$0xff] %v10176_v55  ;;  %v4328_v4 = vadd.s32 127, %v4327_v13  ;;  %v3987_v7 = vsel %vm3986_vm2, 1, %v13223_v58  ;;  %v2799_v2 = vmul.f32 -0.00019511016, %v10169_v22  ;;  %v3962_v19 = vshll.u32 %v10171_v38, 16 }
 0x3f1   : > { %v13447_v33 = vshrl.u32 %v10083_v0, 16  ;;  %vm3990_vm11 = vc.u32 %v10173_v47, %v13115_v50  ;;  %v4325_v21 = vshrl.u32 %v4307_v37, %v4323_v63  ;;  %vm6230_vm1 = vcmp.lt.s32.totalorder %v6229_v31, 0 }
 0x3f2   : > { %v3539_v35 = vshll.u32 %v10176_v55, 30  ;;  %v3965_v28 = vsel %vm3964_vm5, 1, %v13223_v58  ;;  %v3959_v12 = vmul.u32 %v3955_v24, %v3953_v8  ;;  %vm3968_vm7 = vc.u32 %v3966_v57, %v3962_v19 }
 0x3f3   : > { %v3981_v16 = vmul.u32 %v13447_v33, %v3953_v8  ;;  %v10192_v13 = vsub.s32 32, %v5467_v6  ;;  %v10196_v48 = vsel %vm2034_vm4, %v2037_v56, %v2040_v40  ;;  %v10198_v0 = vadd.f32 -0.4999988, %v2329_v59  ;;  %v13449_v8 = vld [vmem:[#allocation2_spill] sm:$0xff] }
 0x3f4   : > { %v4329_v33 = vshll.u32 %v4328_v4, 23  ;;  %v3991_v50 = vsel %vm3990_vm11, 1, %v13223_v58  ;;  %v10201_v63 = vadd.f32 -0.16666654, %v2336_v44  ;;  %v4324_v37 = vshll.u32 %v9971_v51, %v4322_v49 }
 0x3f5   : > { %v3989_v15 = vadd.s32 %v3987_v7, %v3981_v16  ;;  %13448 = vst [vmem:[#allocation42_spill] sm:$0xff] %v10192_v13  ;;  %v10204_v55 = vsel %vm6230_vm1, 0, %v6229_v31  ;;  %v3967_v24 = vadd.s32 %v3965_v28, %v3959_v12  ;;  %v10208_v7 = vmul.f32 -0.001358992, %v10169_v22 }
 0x3f6   : > { %v10210_v20 = vadd.f32 0.008332121, %v2799_v2  ;;  %v3969_v40 = vsel %vm3968_vm7, 1, %v13223_v58  ;;  %v10213_v56 = vor.u32 %v4325_v21, %v4324_v37  ;;  %v10216_v59 = vsub.s32 %v10141_v54, %v3539_v35 }
 0x3f7   : > { %v3993_v44 = vadd.s32 %v3991_v50, %v3989_v15  ;;  %v5480_v31 = vshrl.u32 %v13364_v43, %v10192_v13  ;;  %v10220_v51 = vor.u32 4788187, %v4329_v33  ;;  %v3242_v49 = vsub.s32 4294967266, %v10204_v55 }
 0x3f8   : > { %v5483_v2 = vshrl.u32 %v13430_v27, %v10192_v13  ;;  %v3971_v19 = vadd.s32 %v3969_v40, %v3967_v24  ;;  %v3983_v16 = vshrl.u32 %v10135_v29, 16  ;;  %v10227_v21 = vshrl.u32 %v5465_v34, 5 }
 0x3f9   : > { %v5479_v54 = vshll.u32 %v13429_v23, %v5467_v6  ;;  %v5471_v50 = vshrl.u32 %v13227_v14, %v10192_v13  ;;  %v5474_v35 = vshrl.u32 %v13228_v3, %v10192_v13  ;;  %v5477_v28 = vshrl.u32 %v13429_v23, %v10192_v13  ;;  %v13451_v13 = vld [vmem:[#allocation24_spill] sm:$0xff] }
 0x3fa   : > { %v5482_v12 = vshll.u32 %v13364_v43, %v5467_v6  ;;  %v3542_v15 = vsub.s32 0, %v10216_v59  ;;  %v3961_v33 = vshrl.u32 %v10144_v30, 16  ;;  %v3994_v29 = vadd.s32 %v3993_v44, %v3983_v16 }
 0x3fb   : > { %v5481_v34 = vor.u32 %v5480_v31, %v5479_v54  ;;  %v5470_v37 = vshll.u32 %v13224_v32, %v5467_v6  ;;  %v5473_v24 = vshll.u32 %v13227_v14, %v5467_v6  ;;  %v5476_v40 = vshll.u32 %v13228_v3, %v5467_v6 }
 0x3fc   : > { %v5484_v57 = vor.u32 %v5483_v2, %v5482_v12  ;;  %vm3541_vm6 = vcmp.lt.s32.totalorder %v10216_v59, 0  ;;  %v3972_v4 = vadd.s32 %v3971_v19, %v3961_v33  ;;  %v3985_v23 = vshrl.u32 %v10165_v36, 16 }
 0x3fd   : > { %v13450_v43 = vand.u32 2147483647, %v10025_v52  ;;  %vm2031_vm14 = vweird.f32 %v13451_v13  ;;  %v10247_v30 = vor.u32 %v5471_v50, %v5470_v37  ;;  %v10249_v44 = vor.u32 %v5474_v35, %v5473_v24 }
 0x3fe   : > { %v10251_v31 = vor.u32 %v5477_v28, %v5476_v40  ;;  %vm5488_vm9 = vcmp.lt.s32.totalorder %v10227_v21, 4  ;;  %v3919_v6 = vshrl.u32 %v13224_v32, %v9966_v26  ;;  %v3940_v2 = vsel %vm3938_vm10, %v10031_v62, 2102212464 }
 0x3ff   : > { %v5460_v27 = vand.u32 8388607, %v13450_v43  ;;  %v3963_v19 = vshrl.u32 %v10171_v38, 16  ;;  %v5494_v43 = vsel %vm5488_vm9, %v5481_v34, 920167782  ;;  %v3243_v16 = vadd.s32 127, %v3242_v49 }
 0x400   : > { %v3543_v54 = vsel %vm3541_vm6, %v3542_v15, %v10216_v59  ;;  %v3995_v50 = vadd.s32 %v3994_v29, %v3985_v23  ;;  %v5498_v35 = vsel %vm5488_vm9, %v5484_v57, 1326507024  ;;  %v3939_v26 = vsel %vm3935_vm3, %v3919_v6, %v10027_v53 }
 0x401   : > { %v10268_v28 = vadd.s32 %v3972_v4, %v3963_v19  ;;  %vm5485_vm10 = vcmp.lt.s32.totalorder %v10227_v21, 1  ;;  %vm5487_vm12 = vcmp.lt.s32.totalorder %v10227_v21, 3  ;;  %v3941_v38 = vsel %vm3937_vm13, %v10029_v45, %v3940_v2 }
 0x402   : > { %v5461_v62 = vor.u32 8388608, %v5460_v27  ;;  %v5493_v23 = vsel %vm5485_vm10, %v10247_v30, %v10249_v44  ;;  %v5495_v53 = vsel %vm5487_vm12, %v10251_v31, %v5494_v43  ;;  %v3544_v57 = vclz %v3543_v54 }
 0x403   : > { %v13452_v49 = vshll.u32 %v10165_v36, 16  ;;  %v5497_v27 = vsel %vm5485_vm10, %v10249_v44, %v10251_v31  ;;  %v5499_v45 = vsel %vm5487_vm12, %v5481_v34, %v5498_v35  ;;  %v4331_v12 = vand.u32 2147483647, %v10220_v51 }
 0x404   : > { %v3238_v15 = vsub.s32 32, %v10204_v55  ;;  %v3999_v33 = vadd.s32 1, %v3995_v50  ;;  %vm5486_vm3 = vcmp.lt.s32.totalorder %v10227_v21, 2  ;;  %v4333_v36 = vcvt.s32.f32 %v10213_v56 }
 0x405   : > { %v10285_v4 = vadd.s32 %v10173_v47, %v13452_v49  ;;  %v3222_v47 = vadd.s32 %v9939_v10, %v9922_v60  ;;  %v10303_v29 = vsel %vm5486_vm3, %v5493_v23, %v5495_v53  ;;  %v3244_v34 = vshll.u32 %v3243_v16, 23 }
 0x406   : > { %v3942_v51 = vsel %vm3936_vm0, %v3939_v26, %v3941_v38  ;;  %v10309_v37 = vsel %vm5486_vm3, %v5497_v27, %v5499_v45  ;;  %v10311_v24 = vshll.u32 %v5461_v62, 8  ;;  %v10316_v60 = vsel %vm2031_vm14, nan, %v10196_v48 }
 0x407   : > { %vm3998_vm13 = vc.u32 %v10268_v28, %v10285_v4  ;;  %v2338_v10 = vmul.f32 %v10201_v63, %v10123_v46  ;;  %v2793_v56 = vadd.f32 0.041655596, %v10208_v7  ;;  %v6235_v40 = vadd.s32 4294967294, %v3544_v57 }
 0x408   : > { %v4334_v6 = vmul.f32 %v4333_v36, %v4331_v12  ;;  %v3240_v17 = vshrl.u32 %v3222_v47, %v3238_v15  ;;  %v4000_v2 = vsel %vm3998_vm13, %v3999_v33, %v3995_v50  ;;  %v5527_v19 = vshrl.u32 %v10303_v29, 16 }
 0x409   : > { %v2331_v43 = vmul.f32 %v10198_v0, %v10123_v46  ;;  %v13453_v16 = vsub.s32 4, %v13449_v8  ;;  %v3996_v48 = vmul.u32 %v10100_v39, %v3942_v51  ;;  %v5505_v63 = vshrl.u32 %v10309_v37, 16 }
 0x40a   : > { %v2801_v7 = vmul.f32 %v10210_v20, %v10169_v22  ;;  %v3239_v54 = vshll.u32 %v10098_v18, %v10204_v55  ;;  %v3245_v50 = vor.u32 4788187, %v3244_v34  ;;  %v5502_v35 = vand.u32 65535, %v10311_v24 }
 0x40b   : > { %v2788_v13 = vsel %vm2665_vm8, %v13453_v16, %v13449_v8  ;;  %v2339_v46 = vadd.f32 1.0, %v2338_v10  ;;  %v2794_v0 = vmul.f32 %v2793_v56, %v10169_v22  ;;  %vm6236_vm0 = vcmp.lt.s32.totalorder %v6235_v40, 0  ;;  %v13454_v8 = vld [vmem:[#allocation22_spill] sm:$0xff] }
 0x40c   : > { %v10337_v26 = vadd.s32 %v4000_v2, %v3996_v48  ;;  %vm4215_vm8 = vcmp.lt.s32.totalorder %v13454_v8, 0  ;;  %v4335_v39 = vxor.u32 2147483648, %v4334_v6  ;;  %v3241_v38 = vor.u32 %v3240_v17, %v3239_v54 }
 0x40d   : > { %v10342_v62 = vmul.u32 %v5527_v19, %v5502_v35  ;;  %v10344_v20 = vadd.f32 1.0, %v2331_v43  ;;  %v2790_v18 = vsel %vm10093_vm15, 0, %v2788_v13  ;;  %v13455_v55 = vand.u32 2147483647, %v13454_v8 }
 0x40e   : > { %v10356_v53 = vmul.u32 %v5505_v63, %v5502_v35  ;;  %v2802_v57 = vadd.f32 -0.16666654, %v2801_v7  ;;  %v3246_v49 = vand.u32 2147483647, %v3245_v50  ;;  %v10358_v27 = vsel %vm6236_vm0, 0, %v6235_v40 }
 0x40f   : > { %vm10350_vm4 = vcmp.le.f32.partialorder %v13455_v55, 0.7853982  ;;  %v5526_v45 = vand.u32 65535, %v10303_v29  ;;  %v2340_v12 = vmul.f32 %v2339_v46, %v10089_v25  ;;  %v2795_v61 = vadd.f32 -0.4999988, %v2794_v0  ;;  %v13459_v0 = vld [vmem:[#allocation23_spill] sm:$0xff] }
 0x410   : > { %v4002_v15 = vadd.s32 536870912, %v10337_v26  ;;  %v5504_v33 = vand.u32 65535, %v10309_v37  ;;  %v4336_v36 = vsel %vm4215_vm8, %v4335_v39, %v4334_v6  ;;  %v3248_v47 = vcvt.s32.f32 %v3241_v38  ;;  %v10375_v6 = vpop.f32.mrf.mxu1 }
 0x411   : > { %v5503_v34 = vshrl.u32 %v10311_v24, 16  ;;  %v5532_v51 = vshll.u32 %v10342_v62, 16  ;;  %vm2345_vm15 = vcmp.eq.s32.totalorder %v10158_v41, 0  ;;  %v2349_v10 = vxor.u32 2147483648, %v10344_v20  ;;  %13458 = vst [vmem:[#allocation4_spill] sm:$0xff] %v10375_v6 }
 0x412   : > { %v2807_v56 = vadd.s32 3, %v2790_v18  ;;  %v3552_v25 = vsub.s32 4294967266, %v10358_v27  ;;  %v5510_v40 = vshll.u32 %v10356_v53, 16  ;;  %v2803_v17 = vmul.f32 %v2802_v57, %v10169_v22 }
 0x413   : > { %v3249_v2 = vmul.f32 %v3248_v47, %v3246_v49  ;;  %v5528_v43 = vmul.u32 %v5526_v45, %v5502_v35  ;;  %v10373_v16 = vmul.u32 %v5526_v45, %v5503_v34  ;;  %vm2348_vm2 = vcmp.eq.s32.totalorder %v10158_v41, 2 }
 0x414   : > { %v10381_v13 = vsel %vm10350_vm4, %v13454_v8, %v4336_v36  ;;  %v10383_v48 = vshrl.u32 %v4002_v15, 30  ;;  %v5506_v7 = vmul.u32 %v5504_v33, %v5502_v35  ;;  %v10385_v54 = vmul.u32 %v5504_v33, %v5503_v34 }
 0x415   : > { %v2346_v50 = vxor.u32 2147483648, %v2340_v12  ;;  %v2796_v46 = vmul.f32 %v2795_v61, %v10169_v22  ;;  %vm3130_vm5 = vcmp.lt.s32.totalorder %v13459_v0, 0  ;;  %vm5536_vm11 = vc.u32 %v5528_v43, %v5532_v51  ;;  %v13477_v61 = vld [vmem:[#allocation26_spill] sm:$0xff] }
 0x416   : > { %v10389_v39 = vadd.s32 %v5532_v51, %v5528_v43  ;;  %vm2344_vm1 = vcmp.lt.s32.totalorder %v10158_v41, 2  ;;  %v3553_v38 = vadd.s32 127, %v3552_v25  ;;  %vm5514_vm7 = vc.u32 %v5506_v7, %v5510_v40 }
 0x417   : > { %v5516_v18 = vadd.s32 %v5510_v40, %v5506_v7  ;;  %v4371_v55 = vand.u32 2139095040, %v10375_v6  ;;  %v2804_v57 = vadd.f32 1.0, %v2803_v17  ;;  %v10395_v35 = vmul.f32 %v10381_v13, %v10381_v13 }
 0x418   : > { %v3250_v49 = vxor.u32 2147483648, %v3249_v2  ;;  %v13124_v22 = vshll.u32 %v10373_v16, 16  ;;  %v13460_v45 = vand.u32 2147483647, %v13459_v0  ;;  %v3548_v15 = vsub.s32 32, %v10358_v27 }
 0x419   : > { %v4004_v33 = vshll.u32 %v10383_v48, 30  ;;  %v5512_v36 = vshll.u32 %v10385_v54, 16  ;;  %v5537_v47 = vsel %vm5536_vm11, 1, %v13223_v58  ;;  %v3532_v51 = vadd.s32 %v10079_v11, %v10061_v1 }
 0x41a   : > { %vm10400_vm6 = vcmp.le.f32.partialorder %v13460_v45, 0.7853982  ;;  %v5515_v25 = vsel %vm5514_vm7, 1, %v13223_v58  ;;  %v5531_v40 = vmul.u32 %v5527_v19, %v5503_v34  ;;  %vm5540_vm14 = vc.u32 %v10389_v39, %v13124_v22 }
 0x41b   : > { %vm2341_vm13 = vweird.f32 %v13423_v42  ;;  %v3554_v17 = vshll.u32 %v3553_v38, 23  ;;  %v5509_v43 = vmul.u32 %v5505_v63, %v5503_v34  ;;  %vm5518_vm0 = vc.u32 %v5516_v18, %v5512_v36 }
 0x41c   : > { %v4372_v7 = vshrl.u32 %v4371_v55, 23  ;;  %v2347_v1 = vsel %vm2345_vm15, %v10344_v20, %v2346_v50  ;;  %v2805_v11 = vmul.f32 %v2804_v57, %v10153_v5  ;;  %v2808_v29 = vand.u32 3, %v2807_v56  ;;  %v13463_v55 = vld [vmem:[#allocation45_spill] sm:$0xff] }
 0x41d   : > { %v5539_v19 = vadd.s32 %v5537_v47, %v5531_v40  ;;  %v3550_v45 = vshrl.u32 %v3532_v51, %v3548_v15  ;;  %v10424_v52 = vsub.s32 %v10337_v26, %v4004_v33  ;;  %v5517_v22 = vadd.s32 %v5515_v25, %v5509_v43 }
 0x41e   : > { %v5541_v38 = vsel %vm5540_vm14, 1, %v13223_v58  ;;  %v2350_v37 = vsel %vm2348_vm2, %v2349_v10, %v2340_v12  ;;  %v2797_v63 = vadd.f32 1.0, %v2796_v46  ;;  %v4349_v34 = vmul.f32 -0.00019511016, %v10395_v35 }
 0x41f   : > { %v5519_v18 = vsel %vm5518_vm0, 1, %v13223_v58  ;;  %v3251_v5 = vsel %vm3130_vm5, %v3250_v49, %v3249_v2  ;;  %v3549_v20 = vshll.u32 %v10216_v59, %v10358_v27  ;;  %v3555_v56 = vor.u32 4788187, %v3554_v17 }
 0x420   : > { %v6252_v26 = vadd.s32 4294967169, %v4372_v7  ;;  %v2351_v50 = vsel %vm2344_vm1, %v2347_v1, %v2350_v37  ;;  %vm2809_vm15 = vcmp.lt.s32.totalorder %v2808_v29, 2  ;;  %vm2810_vm11 = vcmp.eq.s32.totalorder %v2808_v29, 0 }
 0x421   : > { %v4337_v12 = vsub.s32 4, %v13463_v55  ;;  %v5543_v10 = vadd.s32 %v5541_v38, %v5539_v19  ;;  %v2811_v46 = vxor.u32 2147483648, %v2805_v11  ;;  %v3551_v57 = vor.u32 %v3550_v45, %v3549_v20 }
 0x422   : > { %v4007_v15 = vsub.s32 0, %v10424_v52  ;;  %v5521_v33 = vadd.s32 %v5519_v18, %v5517_v22  ;;  %v4350_v36 = vadd.f32 0.008332121, %v4349_v34  ;;  %v10442_v59 = vsel %vm10400_vm6, %v13459_v0, %v3251_v5 }
 0x423   : > { %vm4006_vm2 = vcmp.lt.s32.totalorder %v10424_v52, 0  ;;  %v5533_v41 = vshrl.u32 %v10342_v62, 16  ;;  %v2814_v27 = vxor.u32 2147483648, %v2797_v63  ;;  %v3556_v2 = vand.u32 2147483647, %v3555_v56  ;;  %v13464_v56 = vld [vmem:[#allocation42_spill] sm:$0xff] }
 0x424   : > { %v5511_v49 = vshrl.u32 %v10356_v53, 16  ;;  %v4378_v47 = vadd.s32 1, %v6252_v26  ;;  %v2352_v51 = vsel %vm2341_vm13, nan, %v2351_v50  ;;  %vm2806_vm1 = vweird.f32 %v13437_v9 }
 0x425   : > { %vm2813_vm7 = vcmp.eq.s32.totalorder %v2808_v29, 2  ;;  %v4342_v22 = vmul.f32 -0.001358992, %v10395_v35  ;;  %v5544_v25 = vadd.s32 %v5543_v10, %v5533_v41  ;;  %v10453_v40 = vmul.f32 %v10442_v59, %v10442_v59 }
 0x426   : > { %v3558_v17 = vcvt.s32.f32 %v3551_v57  ;;  %v4008_v62 = vsel %vm4006_vm2, %v4007_v15, %v10424_v52  ;;  %v5522_v43 = vadd.s32 %v5521_v33, %v5511_v49  ;;  %v2812_v53 = vsel %vm2810_vm11, %v2797_v63, %v2811_v46 }
 0x427   : > { %v4338_v42 = vsel %vm4215_vm8, %v4337_v12, %v13463_v55  ;;  %v4351_v7 = vmul.f32 %v4350_v36, %v10395_v35  ;;  %v5535_v1 = vshrl.u32 %v10373_v16, 16  ;;  %v2815_v19 = vsel %vm2813_vm7, %v2814_v27, %v2805_v11  ;;  %v13465_v55 = vld [vmem:[#allocation38_spill] sm:$0xff] }
 0x428   : > { %v3559_v45 = vmul.f32 %v3558_v17, %v3556_v2  ;;  %v5513_v38 = vshrl.u32 %v10385_v54, 16  ;;  %vm4379_vm14 = vcmp.gt.s32.totalorder %v4378_v47, 0  ;;  %v4343_v37 = vadd.f32 0.041655596, %v4342_v22 }
 0x429   : > { %v4009_v34 = vclz %v4008_v62  ;;  %v5490_v18 = vsel %vm5488_vm9, %v10251_v31, 2102212464  ;;  %v5545_v63 = vadd.s32 %v5544_v25, %v5535_v1  ;;  %v2816_v5 = vsel %vm2809_vm15, %v2812_v53, %v2815_v19  ;;  %v13469_v62 = vld [vmem:[#allocation6_spill] sm:$0xff] }
 0x42a   : > { %v3264_v20 = vmul.f32 -0.00019511016, %v10453_v40  ;;  %v5469_v26 = vshrl.u32 %v13224_v32, %v13464_v56  ;;  %v10470_v50 = vadd.s32 %v5522_v43, %v5513_v38  ;;  %v4352_v11 = vadd.f32 -0.16666654, %v4351_v7 }
 0x42b   : > { %v3252_v54 = vsub.s32 4, %v13465_v55  ;;  %v3257_v12 = vmul.f32 -0.001358992, %v10453_v40  ;;  %v4380_v10 = vsel %vm4379_vm14, %v4378_v47, 0  ;;  %v3560_v46 = vxor.u32 2147483648, %v3559_v45  ;;  %v13468_v47 = vld [vmem:[#allocation19_spill] sm:$0xff] }
 0x42c   : > { %v5489_v31 = vsel %vm5485_vm10, %v5469_v26, %v10247_v30  ;;  %v5491_v29 = vsel %vm5487_vm12, %v10249_v44, %v5490_v18  ;;  %v13466_v57 = vshll.u32 %v10373_v16, 16  ;;  %v4340_v33 = vsel %vm10350_vm4, 0, %v4338_v42  ;;  %v13473_v18 = vld [vmem:[#allocation17_spill] sm:$0xff] }
 0x42d   : > { %v4344_v36 = vmul.f32 %v4343_v37, %v10395_v35  ;;  %v6244_v41 = vadd.s32 4294967294, %v4009_v34  ;;  %v5549_v27 = vadd.s32 1, %v5545_v63  ;;  %v2817_v2 = vsel %vm2806_vm1, nan, %v2816_v5 }
 0x42e   : > { %v10483_v15 = vadd.s32 %v10389_v39, %v13466_v57  ;;  %v3265_v30 = vadd.f32 0.008332121, %v3264_v20  ;;  %v4382_v44 = vand.u32 31, %v4380_v10  ;;  %v4353_v16 = vmul.f32 %v4352_v11, %v10395_v35  ;;  %v13467_v39 = vld [vmem:[#allocation25_spill] sm:$0xff] }
 0x42f   : > { %v3258_v49 = vadd.f32 0.041655596, %v3257_v12  ;;  %vm3440_vm10 = vcmp.lt.s32.totalorder %v13467_v39, 0  ;;  %v5492_v23 = vsel %vm5486_vm3, %v5489_v31, %v5491_v29  ;;  %v5926_v22 = vmul.f32 %v2352_v51, %v13468_v47  ;;  %v13476_v20 = vld [vmem:[#allocation9_spill] sm:$0xff]  ;;  %v10544_v31 = vpop.f32.mrf.mxu3 }
 0x430   : > { %vm5548_vm9 = vc.u32 %v10470_v50, %v10483_v15  ;;  %v4357_v25 = vadd.s32 3, %v4340_v33  ;;  %v3253_v9 = vsel %vm3130_vm5, %v3252_v54, %v13465_v55  ;;  %v3561_v17 = vsel %vm3440_vm10, %v3560_v46, %v3559_v45  ;;  %v13478_v55 = vld [vmem:[#allocation27_spill] sm:$0xff]  ;;  %13480 = vst [vmem:[#allocation43_spill] sm:$0xff] %v10544_v31 }
 0x431   : > { %v5929_v43 = vmul.f32 %v2817_v2, %v13469_v62  ;;  %v4345_v53 = vadd.f32 -0.4999988, %v4344_v36  ;;  %vm6245_vm12 = vcmp.lt.s32.totalorder %v6244_v41, 0  ;;  %v5550_v42 = vsel %vm5548_vm9, %v5549_v27, %v5545_v63  ;;  %v13474_v63 = vld [vmem:[#allocation16_spill] sm:$0xff] }
 0x432   : > { %v3266_v7 = vmul.f32 %v3265_v30, %v10453_v40  ;;  %v13470_v21 = vand.u32 2147483647, %v13467_v39  ;;  %v5546_v51 = vmul.u32 %v10311_v24, %v5492_v23  ;;  %v10511_v19 = vsub.s32 32, %v4382_v44 }
 0x433   : > { %v4354_v38 = vadd.f32 1.0, %v4353_v16  ;;  %v3255_v45 = vsel %vm10400_vm6, 0, %v3253_v9  ;;  %v3259_v37 = vmul.f32 %v3258_v49, %v10453_v40  ;;  %v10523_v5 = vadd.f32 %v13474_v63, %v13473_v18 }
 0x434   : > { %vm10506_vm3 = vcmp.le.f32.partialorder %v13470_v21, 0.7853982  ;;  %v10527_v24 = vmul.f32 %v10316_v60, %v13476_v20  ;;  %v10529_v56 = vsel %vm6245_vm12, 0, %v6244_v41  ;;  %v10531_v26 = vadd.s32 %v5550_v42, %v5546_v51 }
 0x435   : > { %v10519_v34 = vsel %vm10506_vm3, %v13467_v39, %v3561_v17  ;;  %13475 = vst [vmem:[#allocation40_spill] sm:$0xff] %v10523_v5  ;;  %v10534_v11 = vadd.f32 %v5926_v22, %v13477_v61  ;;  %v10537_v54 = vadd.f32 %v5929_v43, %v13478_v55  ;;  %v10540_v12 = vmul.f32 %v4345_v53, %v10395_v35 }
 0x436   : > { %v10542_v46 = vand.u32 3, %v4357_v25  ;;  %v3267_v29 = vadd.f32 -0.16666654, %v3266_v7  ;;  %v10546_v60 = vadd.s32 3, %v3255_v45  ;;  %v10550_v57 = vmul.f32 %v10519_v34, %v10519_v34 }
 0x437   : > { %13479 = vst [vmem:[#allocation41_spill] sm:$0xff] %v10537_v54  ;;  %v13481_v33 = vmov 1326507024   ;;  %v10555_v41 = vmul.f32 %v4354_v38, %v10381_v13  ;;  %v3260_v27 = vadd.f32 -0.4999988, %v3259_v37  ;;  %v4017_v35 = vsub.s32 4294967266, %v10529_v56 }
 0x438   : > { %v4398_v36 = vshrl.u32 %v13481_v33, %v10511_v19  ;;  %v13482_v2 = vmov 920167782   ;;  %v5552_v16 = vadd.s32 536870912, %v10531_v26  ;;  %v13125_v49 = vand.u32 2147483647, %v10375_v6 }
 0x439   : > { %v4395_v30 = vshrl.u32 %v13482_v2, %v10511_v19  ;;  %v4397_v23 = vshll.u32 %v13482_v2, %v4382_v44  ;;  %v4681_v47 = vand.u32 2139095040, %v10544_v31  ;;  %v10564_v22 = vshrl.u32 %v4380_v10, 5 }
 0x43a   : > { %v4389_v13 = vshrl.u32 %v13228_v3, %v10511_v19  ;;  %v13483_v25 = vmov 2102212464   ;;  %v3268_v62 = vmul.f32 %v3267_v29, %v10453_v40  ;;  %v3574_v43 = vmul.f32 -0.00019511016, %v10550_v57 }
 0x43b   : > { %v4392_v9 = vshrl.u32 %v13483_v25, %v10511_v19  ;;  %v4394_v17 = vshll.u32 %v13483_v25, %v4382_v44  ;;  %v4386_v53 = vshrl.u32 %v13227_v14, %v10511_v19  ;;  %v4399_v42 = vor.u32 %v4398_v36, %v4397_v23 }
 0x43c   : > { %v4018_v7 = vadd.s32 127, %v4017_v35  ;;  %v4388_v10 = vshll.u32 %v13227_v14, %v4382_v44  ;;  %v4391_v21 = vshll.u32 %v13228_v3, %v4382_v44  ;;  %v4013_v38 = vsub.s32 32, %v10529_v56 }
 0x43d   : > { %v4396_v51 = vor.u32 %v4395_v30, %v4394_v17  ;;  %v10578_v45 = vshrl.u32 %v5552_v16, 30  ;;  %v4385_v37 = vshll.u32 %v13224_v32, %v4382_v44  ;;  %v4682_v18 = vshrl.u32 %v4681_v47, 23 }
 0x43e   : > { %v4375_v63 = vand.u32 8388607, %v13125_v49  ;;  %v10583_v20 = vor.u32 %v4389_v13, %v4388_v10  ;;  %v10585_v61 = vor.u32 %v4392_v9, %v4391_v21  ;;  %vm4403_vm8 = vcmp.lt.s32.totalorder %v10564_v22, 4 }
 0x43f   : > { %v3269_v55 = vadd.f32 1.0, %v3268_v62  ;;  %v3567_v29 = vmul.f32 -0.001358992, %v10550_v57  ;;  %v10589_v36 = vor.u32 %v4386_v53, %v4385_v37  ;;  %v4413_v35 = vsel %vm4403_vm8, %v4399_v42, 1326507024 }
 0x440   : > { %v3575_v30 = vadd.f32 0.008332121, %v3574_v43  ;;  %v3997_v44 = vadd.s32 %v10285_v4, %v10268_v28  ;;  %v4019_v16 = vshll.u32 %v4018_v7, 23  ;;  %v4409_v23 = vsel %vm4403_vm8, %v4396_v51, 920167782  ;;  %v13484_v43 = vld [vmem:[#allocation14_spill] sm:$0xff] }
 0x441   : > { %v5554_v47 = vshll.u32 %v10578_v45, 30  ;;  %vm4400_vm4 = vcmp.lt.s32.totalorder %v10564_v22, 1  ;;  %vm4402_vm5 = vcmp.lt.s32.totalorder %v10564_v22, 3  ;;  %v6258_v13 = vadd.s32 4294967169, %v4682_v18 }
 0x442   : > { %v4015_v9 = vshrl.u32 %v3997_v44, %v4013_v38  ;;  %v4376_v17 = vor.u32 8388608, %v4375_v63  ;;  %v4412_v62 = vsel %vm4400_vm4, %v10583_v20, %v10585_v61  ;;  %v4414_v28 = vsel %vm4402_vm5, %v4396_v51, %v4413_v35 }
 0x443   : > { %v3261_v4 = vmul.f32 %v3260_v27, %v10453_v40  ;;  %v3562_v53 = vsub.s32 4, %v13484_v43  ;;  %v4408_v42 = vsel %vm4400_vm4, %v10589_v36, %v10583_v20  ;;  %v4410_v7 = vsel %vm4402_vm5, %v10585_v61, %v4409_v23 }
 0x444   : > { %v3270_v10 = vmul.f32 %v3269_v55, %v10442_v59  ;;  %v4014_v21 = vshll.u32 %v10424_v52, %v10529_v56  ;;  %v4020_v38 = vor.u32 4788187, %v4019_v16  ;;  %vm4401_vm6 = vcmp.lt.s32.totalorder %v10564_v22, 2 }
 0x445   : > { %vm4360_vm13 = vcmp.eq.s32.totalorder %v10542_v46, 0  ;;  %v3568_v40 = vadd.f32 0.041655596, %v3567_v29  ;;  %v10621_v27 = vsub.s32 %v10531_v26, %v5554_v47  ;;  %v10625_v51 = vsel %vm4401_vm6, %v4412_v62, %v4414_v28  ;;  %v13485_v28 = vld [vmem:[#allocation44_spill] sm:$0xff] }
 0x446   : > { %v4688_v37 = vadd.s32 1, %v6258_v13  ;;  %v3576_v18 = vmul.f32 %v3575_v30, %v10550_v57  ;;  %v4016_v59 = vor.u32 %v4015_v9, %v4014_v21  ;;  %v10630_v52 = vsel %vm4401_vm6, %v4408_v42, %v4410_v7 }
 0x447   : > { %v10632_v56 = vshll.u32 %v4376_v17, 8  ;;  %v4347_v63 = vadd.f32 1.0, %v10540_v12  ;;  %v4361_v55 = vxor.u32 2147483648, %v10555_v41  ;;  %v3262_v26 = vadd.f32 1.0, %v3261_v4 }
 0x448   : > { %v3273_v29 = vand.u32 3, %v10546_v60  ;;  %vm4363_vm0 = vcmp.eq.s32.totalorder %v10542_v46, 2  ;;  %v3276_v35 = vxor.u32 2147483648, %v3270_v10  ;;  %v3563_v30 = vsel %vm3440_vm10, %v3562_v53, %v13484_v43 }
 0x449   : > { %v4021_v44 = vand.u32 2147483647, %v4020_v38  ;;  %v13127_v16 = vshrl.u32 %v10625_v51, 16  ;;  %vm4359_vm15 = vcmp.lt.s32.totalorder %v10542_v46, 2  ;;  %v3569_v23 = vmul.f32 %v3568_v40, %v10550_v57 }
 0x44a   : > { %v5557_v12 = vsub.s32 0, %v10621_v27  ;;  %v13126_v47 = vshrl.u32 %v10630_v52, 16  ;;  %vm4689_vm11 = vcmp.gt.s32.totalorder %v4688_v37, 0  ;;  %v3577_v60 = vadd.f32 -0.16666654, %v3576_v18 }
 0x44b   : > { %v4023_v13 = vcvt.s32.f32 %v4016_v59  ;;  %vm5556_vm2 = vcmp.lt.s32.totalorder %v10621_v27, 0  ;;  %v4417_v9 = vand.u32 65535, %v10632_v56  ;;  %v4364_v17 = vxor.u32 2147483648, %v4347_v63 }
 0x44c   : > { %vm3271_vm1 = vweird.f32 %v13459_v0  ;;  %vm3274_vm7 = vcmp.lt.s32.totalorder %v3273_v29, 2  ;;  %vm3275_vm14 = vcmp.eq.s32.totalorder %v3273_v29, 0  ;;  %v3279_v62 = vxor.u32 2147483648, %v3262_v26 }
 0x44d   : > { %vm3905_vm9 = vcmp.lt.s32.totalorder %v13485_v28, 0  ;;  %v3565_v4 = vsel %vm10506_vm3, 0, %v3563_v30  ;;  %v4024_v43 = vmul.f32 %v4023_v13, %v4021_v44  ;;  %v10654_v53 = vmul.u32 %v13127_v16, %v4417_v9 }
 0x44e   : > { %v4690_v42 = vsel %vm4689_vm11, %v4688_v37, 0  ;;  %vm3278_vm10 = vcmp.eq.s32.totalorder %v3273_v29, 2  ;;  %v3570_v7 = vadd.f32 -0.4999988, %v3569_v23  ;;  %v5558_v21 = vsel %vm5556_vm2, %v5557_v12, %v10621_v27 }
 0x44f   : > { %v10659_v38 = vmul.u32 %v13126_v47, %v4417_v9  ;;  %v4362_v40 = vsel %vm4360_vm13, %v4347_v63, %v4361_v55  ;;  %v3277_v18 = vsel %vm3275_vm14, %v3262_v26, %v3276_v35  ;;  %v3578_v1 = vmul.f32 %v3577_v60, %v10550_v57 }
 0x450   : > { %v13486_v59 = vand.u32 2147483647, %v13485_v28  ;;  %v4419_v37 = vand.u32 65535, %v10625_v51  ;;  %v3280_v44 = vsel %vm3278_vm10, %v3279_v62, %v3270_v10  ;;  %v3582_v23 = vadd.s32 3, %v3565_v4 }
 0x451   : > { %v4441_v12 = vand.u32 65535, %v10630_v52  ;;  %v10672_v13 = vand.u32 31, %v4690_v42  ;;  %v4025_v49 = vxor.u32 2147483648, %v4024_v43  ;;  %v5559_v47 = vclz %v5558_v21 }
 0x452   : > { %vm10666_vm12 = vcmp.le.f32.partialorder %v13486_v59, 0.7853982  ;;  %v4418_v63 = vshrl.u32 %v10632_v56, 16  ;;  %v4425_v55 = vshll.u32 %v10654_v53, 16  ;;  %v4365_v26 = vsel %vm4363_vm0, %v4364_v17, %v10555_v41 }
 0x453   : > { %v3281_v35 = vsel %vm3274_vm7, %v3277_v18, %v3280_v44  ;;  %v3571_v60 = vmul.f32 %v3570_v7, %v10550_v57  ;;  %v4447_v10 = vshll.u32 %v10659_v38, 16  ;;  %v10684_v62 = vsel %vm4359_vm15, %v4362_v40, %v4365_v26 }
 0x454   : > { %v3579_v4 = vadd.f32 1.0, %v3578_v1  ;;  %v4421_v21 = vmul.u32 %v4419_v37, %v4417_v9  ;;  %v10686_v59 = vmul.u32 %v4419_v37, %v4418_v63  ;;  %v10688_v16 = vand.u32 3, %v3582_v23  ;;  %v10709_v37 = vpop.f32.mrf.mxu2 }
 0x455   : > { %v4443_v54 = vmul.u32 %v4441_v12, %v4417_v9  ;;  %v10690_v5 = vmul.u32 %v4441_v12, %v4418_v63  ;;  %v10693_v41 = vsub.s32 32, %v10672_v13  ;;  %v10697_v57 = vsel %vm3271_vm1, nan, %v3281_v35  ;;  %13489 = vst [vmem:[#allocation5_spill] sm:$0xff] %v10709_v37 }
 0x456   : > { %v4026_v46 = vsel %vm3905_vm9, %v4025_v49, %v4024_v43  ;;  %v6274_v29 = vadd.s32 4294967294, %v5559_v47  ;;  %v4431_v17 = vadd.s32 %v4425_v55, %v4421_v21  ;;  %v10701_v7 = vadd.f32 1.0, %v3571_v60 }
 0x457   : > { %v4027_v40 = vsub.s32 4, %v10383_v48  ;;  %vm4429_vm3 = vc.u32 %v4421_v21, %v4425_v55  ;;  %v10704_v9 = vadd.s32 %v4447_v10, %v4443_v54  ;;  %v3580_v18 = vmul.f32 %v3579_v4, %v10519_v34 }
 0x458   : > { %v4427_v1 = vshll.u32 %v10686_v59, 16  ;;  %vm4451_vm13 = vc.u32 %v4443_v54, %v4447_v10  ;;  %v13131_v0 = vand.u32 2147483647, %v10544_v31  ;;  %v10714_v49 = vsel %vm10666_vm12, %v13485_v28, %v4026_v46 }
 0x459   : > { %v13490_v47 = vshrl.u32 %v10625_v51, 16  ;;  %v13128_v44 = vshll.u32 %v10690_v5, 16  ;;  %v4708_v34 = vshrl.u32 %v13481_v33, %v10693_v41  ;;  %vm6275_vm0 = vcmp.lt.s32.totalorder %v6274_v29, 0 }
 0x45a   : > { %v4430_v54 = vsel %vm4429_vm3, 1, %v13223_v58  ;;  %vm4433_vm15 = vc.u32 %v4431_v17, %v4427_v1  ;;  %v13491_v23 = vshrl.u32 %v10630_v52, 16  ;;  %v4452_v55 = vsel %vm4451_vm13, 1, %v13223_v58 }
 0x45b   : > { %v4424_v43 = vmul.u32 %v13490_v47, %v4418_v63  ;;  %vm10728_vm11 = vc.u32 %v10704_v9, %v13128_v44  ;;  %v4707_v26 = vshll.u32 %v13482_v2, %v10672_v13  ;;  %v5146_v35 = vand.u32 2139095040, %v10709_v37 }
 0x45c   : > { %v4446_v12 = vmul.u32 %v13491_v23, %v4418_v63  ;;  %vm3588_vm2 = vcmp.eq.s32.totalorder %v10688_v16, 2  ;;  %v10736_v60 = vshrl.u32 %v4690_v42, 5  ;;  %v4699_v52 = vshrl.u32 %v13228_v3, %v10693_v41 }
 0x45d   : > { %v4702_v63 = vshrl.u32 %v13483_v25, %v10693_v41  ;;  %v4705_v10 = vshrl.u32 %v13482_v2, %v10693_v41  ;;  %vm3585_vm1 = vcmp.eq.s32.totalorder %v10688_v16, 0  ;;  %v10745_v4 = vsel %vm6275_vm0, 0, %v6274_v29 }
 0x45e   : > { %v4432_v21 = vadd.s32 %v4430_v54, %v4424_v43  ;;  %v4434_v46 = vsel %vm4433_vm15, 1, %v13223_v58  ;;  %v4709_v17 = vor.u32 %v4708_v34, %v4707_v26  ;;  %v4454_v1 = vadd.s32 %v4452_v55, %v4446_v12 }
 0x45f   : > { %v4698_v42 = vshll.u32 %v13227_v14, %v10672_v13  ;;  %v4701_v47 = vshll.u32 %v13228_v3, %v10672_v13  ;;  %v4704_v23 = vshll.u32 %v13483_v25, %v10672_v13  ;;  %v4456_v44 = vsel %vm10728_vm11, 1, %v13223_v58 }
 0x460   : > { %v4685_v29 = vand.u32 8388607, %v13131_v0  ;;  %v4696_v43 = vshrl.u32 %v13227_v14, %v10693_v41  ;;  %v5147_v34 = vshrl.u32 %v5146_v35, 23  ;;  %vm4713_vm7 = vcmp.lt.s32.totalorder %v10736_v60, 4 }
 0x461   : > { %v10761_v54 = vor.u32 %v4699_v52, %v4698_v42  ;;  %v10763_v12 = vor.u32 %v4702_v63, %v4701_v47  ;;  %v4706_v55 = vor.u32 %v4705_v10, %v4704_v23  ;;  %v3586_v26 = vxor.u32 2147483648, %v3580_v18 }
 0x462   : > { %v3589_v6 = vxor.u32 2147483648, %v10701_v7  ;;  %v10769_v51 = vmul.f32 %v10714_v49, %v10714_v49  ;;  %v4723_v0 = vsel %vm4713_vm7, %v4709_v17, 1326507024  ;;  %v5567_v31 = vsub.s32 4294967266, %v10745_v4 }
 0x463   : > { %v4448_v35 = vshrl.u32 %v10659_v38, 16  ;;  %v4458_v52 = vadd.s32 %v4456_v44, %v4454_v1  ;;  %v4695_v63 = vshll.u32 %v13224_v32, %v10672_v13  ;;  %vm3584_vm14 = vcmp.lt.s32.totalorder %v10688_v16, 2 }
 0x464   : > { %v4436_v10 = vadd.s32 %v4434_v46, %v4432_v21  ;;  %vm4710_vm10 = vcmp.lt.s32.totalorder %v10736_v60, 1  ;;  %vm4712_vm3 = vcmp.lt.s32.totalorder %v10736_v60, 3  ;;  %v6267_v42 = vadd.s32 4294967169, %v5147_v34 }
 0x465   : > { %v4686_v47 = vor.u32 8388608, %v4685_v29  ;;  %v10780_v23 = vor.u32 %v4696_v43, %v4695_v63  ;;  %v4722_v38 = vsel %vm4710_vm10, %v10761_v54, %v10763_v12  ;;  %v4724_v44 = vsel %vm4712_vm3, %v4706_v55, %v4723_v0 }
 0x466   : > { %v3590_v13 = vsel %vm3588_vm2, %v3589_v6, %v3580_v18  ;;  %v4028_v21 = vsel %vm3905_vm9, %v4027_v40, %v10383_v48  ;;  %v4426_v46 = vshrl.u32 %v10654_v53, 16  ;;  %v4719_v17 = vsel %vm4713_vm7, %v4706_v55, 920167782 }
 0x467   : > { %v3587_v1 = vsel %vm3585_vm1, %v10701_v7, %v3586_v26  ;;  %v4032_v29 = vmul.f32 -0.001358992, %v10769_v51  ;;  %v4459_v43 = vadd.s32 %v4458_v52, %v4448_v35  ;;  %vm4711_vm13 = vcmp.lt.s32.totalorder %v10736_v60, 2 }
 0x468   : > { %vm4356_vm0 = vweird.f32 %v13454_v8  ;;  %v5568_v6 = vadd.s32 127, %v5567_v31  ;;  %v4437_v18 = vadd.s32 %v4436_v10, %v4426_v46  ;;  %v10804_v48 = vsel %vm4711_vm13, %v4722_v38, %v4724_v44 }
 0x469   : > { %v5153_v53 = vadd.s32 1, %v6267_v42  ;;  %vm3581_vm9 = vweird.f32 %v13467_v39  ;;  %v4450_v40 = vshrl.u32 %v10690_v5, 16  ;;  %v4718_v7 = vsel %vm4710_vm10, %v10780_v23, %v10761_v54 }
 0x46a   : > { %v4720_v0 = vsel %vm4712_vm3, %v10763_v12, %v4719_v17  ;;  %v10815_v31 = vshll.u32 %v4686_v47, 8  ;;  %v5547_v34 = vadd.s32 %v10483_v15, %v10470_v50  ;;  %v5563_v55 = vsub.s32 32, %v10745_v4 }
 0x46b   : > { %v4384_v26 = vshrl.u32 %v13224_v32, %v10511_v19  ;;  %v4428_v35 = vshrl.u32 %v10686_v59, 16  ;;  %v4039_v52 = vmul.f32 -0.00019511016, %v10769_v51  ;;  %v4405_v63 = vsel %vm4403_vm8, %v10585_v61, 2102212464 }
 0x46c   : > { %v4460_v10 = vadd.s32 %v4459_v43, %v4450_v40  ;;  %v4730_v42 = vshrl.u32 %v10804_v48, 16  ;;  %v5569_v47 = vshll.u32 %v5568_v6, 23  ;;  %v10832_v50 = vsel %vm4711_vm13, %v4718_v7, %v4720_v0  ;;  %v10867_v0 = vpop.f32.mrf.mxu1 }
 0x46d   : > { %v10828_v38 = vadd.s32 %v4437_v18, %v4428_v35  ;;  %vm5154_vm15 = vcmp.gt.s32.totalorder %v5153_v53, 0  ;;  %v3591_v15 = vsel %vm3584_vm14, %v3587_v1, %v3590_v13  ;;  %v4030_v19 = vsel %vm10666_vm12, 0, %v4028_v21  ;;  %13496 = vst [vmem:[#allocation37_spill] sm:$0xff] %v10867_v0 }
 0x46e   : > { %v4033_v59 = vadd.f32 0.041655596, %v4032_v29  ;;  %v4727_v61 = vand.u32 65535, %v10815_v31  ;;  %v5565_v44 = vshrl.u32 %v5547_v34, %v5563_v55  ;;  %v4404_v46 = vsel %vm4400_vm4, %v4384_v26, %v10589_v36 }
 0x46f   : > { %v4406_v17 = vsel %vm4402_vm5, %v10583_v20, %v4405_v63  ;;  %v13494_v43 = vshll.u32 %v10690_v5, 16  ;;  %v4464_v13 = vadd.s32 1, %v4460_v10  ;;  %v4752_v21 = vshrl.u32 %v10832_v50, 16  ;;  %v13495_v20 = vld [vmem:[#allocation11_spill] sm:$0xff] }
 0x470   : > { %v10850_v30 = vmul.u32 %v4730_v42, %v4727_v61  ;;  %v5155_v1 = vsel %vm5154_vm15, %v5153_v53, 0  ;;  %v4040_v29 = vadd.f32 0.008332121, %v4039_v52  ;;  %v5564_v6 = vshll.u32 %v10621_v27, %v10745_v4 }
 0x471   : > { %v10848_v16 = vadd.s32 %v10704_v9, %v13494_v43  ;;  %v5570_v36 = vor.u32 4788187, %v5569_v47  ;;  %v4367_v5 = vsel %vm4356_vm0, nan, %v10684_v62  ;;  %v5932_v9 = vmul.f32 %v10697_v57, %v13495_v20  ;;  %v13501_v43 = vld [vmem:[#allocation20_spill] sm:$0xff] }
 0x472   : > { %v4407_v18 = vsel %vm4401_vm6, %v4404_v46, %v4406_v17  ;;  %v4729_v53 = vand.u32 65535, %v10804_v48  ;;  %v3592_v40 = vsel %vm3581_vm9, nan, %v3591_v15  ;;  %v4047_v27 = vadd.s32 3, %v4030_v19 }
 0x473   : > { %vm4463_vm8 = vc.u32 %v10828_v38, %v10848_v16  ;;  %v5566_v4 = vor.u32 %v5565_v44, %v5564_v6  ;;  %v5157_v7 = vand.u32 31, %v5155_v1  ;;  %v4728_v8 = vshrl.u32 %v10815_v31, 16 }
 0x474   : > { %v4465_v34 = vsel %vm4463_vm8, %v4464_v13, %v4460_v10  ;;  %v4735_v62 = vshll.u32 %v10850_v30, 16  ;;  %v10873_v57 = vmul.u32 %v4752_v21, %v4727_v61  ;;  %v4034_v22 = vmul.f32 %v4033_v59, %v10769_v51  ;;  %v13497_v10 = vld [vmem:[#allocation30_spill] sm:$0xff] }
 0x475   : > { %v4041_v48 = vmul.f32 %v4040_v29, %v10769_v51  ;;  %v5571_v39 = vand.u32 2147483647, %v5570_v36  ;;  %v4461_v55 = vmul.u32 %v10632_v56, %v4407_v18  ;;  %v4731_v26 = vmul.u32 %v4729_v53, %v4727_v61 }
 0x476   : > { %v10878_v35 = vmul.u32 %v4729_v53, %v4728_v8  ;;  %v4751_v52 = vand.u32 65535, %v10832_v50  ;;  %v5611_v63 = vand.u32 2139095040, %v10867_v0  ;;  %v10883_v47 = vmul.f32 %v4367_v5, %v13497_v10 }
 0x477   : > { %v10886_v15 = vadd.f32 %v5932_v9, %v10527_v24  ;;  %v10888_v19 = vadd.s32 %v4465_v34, %v4461_v55  ;;  %v10890_v59 = vsub.s32 32, %v5157_v7  ;;  %v10892_v44 = vand.u32 3, %v4047_v27 }
 0x478   : > { %13498 = vst [vmem:[#allocation10_spill] sm:$0xff] %v10883_v47  ;;  %v5573_v56 = vcvt.s32.f32 %v5566_v4  ;;  %v4741_v46 = vadd.s32 %v4735_v62, %v4731_v26  ;;  %v4757_v17 = vshll.u32 %v10873_v57, 16  ;;  %v10896_v13 = vmul.f32 %v3592_v40, %v13501_v43 }
 0x479   : > { %13499 = vst [vmem:[#allocation2_spill] sm:$0xff] %v10886_v15  ;;  %v4035_v29 = vadd.f32 -0.4999988, %v4034_v22  ;;  %v4042_v6 = vadd.f32 -0.16666654, %v4041_v48  ;;  %vm4739_vm4 = vc.u32 %v4731_v26, %v4735_v62  ;;  %v4737_v24 = vshll.u32 %v10878_v35, 16 }
 0x47a   : > { %13500 = vst [vmem:[#allocation24_spill] sm:$0xff] %v10890_v59  ;;  %v5574_v36 = vmul.f32 %v5573_v56, %v5571_v39  ;;  %v4753_v5 = vmul.u32 %v4751_v52, %v4727_v61  ;;  %v5612_v20 = vshrl.u32 %v5611_v63, 23  ;;  %v4467_v9 = vadd.s32 536870912, %v10888_v19  ;;  %v13504_v39 = vld [vmem:[#allocation15_spill] sm:$0xff] }
 0x47b   : > { %v10900_v18 = vmul.u32 %v4751_v52, %v4728_v8  ;;  %v13139_v53 = vand.u32 2147483647, %v10709_v37  ;;  %v5170_v27 = vshrl.u32 %v13482_v2, %v10890_v59  ;;  %v4734_v4 = vmul.u32 %v4730_v42, %v4728_v8 }
 0x47c   : > { %v4740_v40 = vsel %vm4739_vm4, 1, %v13223_v58  ;;  %vm10906_vm5 = vc.u32 %v4741_v46, %v4737_v24  ;;  %vm4761_vm6 = vc.u32 %v4753_v5, %v4757_v17  ;;  %v10910_v62 = vadd.s32 %v4757_v17, %v4753_v5 }
 0x47d   : > { %v5161_v61 = vshrl.u32 %v13227_v14, %v10890_v59  ;;  %v5169_v22 = vshll.u32 %v13483_v25, %v5157_v7  ;;  %v5173_v48 = vshrl.u32 %v13481_v33, %v10890_v59  ;;  %vm5455_vm12 = vcmp.lt.s32.totalorder %v13504_v39, 0 }
 0x47e   : > { %v10918_v42 = vshrl.u32 %v5155_v1, 5  ;;  %v5164_v55 = vshrl.u32 %v13228_v3, %v10890_v59  ;;  %v5167_v26 = vshrl.u32 %v13483_v25, %v10890_v59  ;;  %v6276_v52 = vadd.s32 4294967169, %v5612_v20 }
 0x47f   : > { %v13134_v63 = vshll.u32 %v10900_v18, 16  ;;  %v5160_v10 = vshll.u32 %v13224_v32, %v5157_v7  ;;  %v5171_v56 = vor.u32 %v5170_v27, %v5169_v22  ;;  %v5172_v46 = vshll.u32 %v13482_v2, %v5157_v7 }
 0x480   : > { %v4756_v17 = vmul.u32 %v4752_v21, %v4728_v8  ;;  %v4762_v1 = vsel %vm4761_vm6, 1, %v13223_v58  ;;  %v5163_v43 = vshll.u32 %v13227_v14, %v5157_v7  ;;  %v5166_v24 = vshll.u32 %v13228_v3, %v5157_v7 }
 0x481   : > { %v13505_v5 = vand.u32 2147483647, %v13504_v39  ;;  %vm10941_vm2 = vc.u32 %v10910_v62, %v13134_v63  ;;  %v5150_v50 = vand.u32 8388607, %v13139_v53  ;;  %v10947_v21 = vor.u32 %v5161_v61, %v5160_v10 }
 0x482   : > { %v5174_v8 = vor.u32 %v5173_v48, %v5172_v46  ;;  %v10949_v7 = vor.u32 %v5164_v55, %v5163_v43  ;;  %v10951_v22 = vor.u32 %v5167_v26, %v5166_v24  ;;  %vm5178_vm1 = vcmp.lt.s32.totalorder %v10918_v42, 4 }
 0x483   : > { %vm10934_vm11 = vcmp.le.f32.partialorder %v13505_v5, 0.7853982  ;;  %v5618_v5 = vadd.s32 1, %v6276_v52  ;;  %v5575_v15 = vxor.u32 2147483648, %v5574_v36  ;;  %v10954_v47 = vshrl.u32 %v4467_v9, 30 }
 0x484   : > { %v4742_v63 = vadd.s32 %v4740_v40, %v4734_v4  ;;  %v5184_v59 = vsel %vm5178_vm1, %v5171_v56, 920167782  ;;  %v4043_v37 = vmul.f32 %v4042_v6, %v10769_v51  ;;  %v5577_v61 = vsub.s32 4, %v10578_v45 }
 0x485   : > { %v4744_v48 = vsel %vm10906_vm5, 1, %v13223_v58  ;;  %v4764_v55 = vadd.s32 %v4762_v1, %v4756_v17  ;;  %v4766_v26 = vsel %vm10941_vm2, 1, %v13223_v58  ;;  %vm5175_vm14 = vcmp.lt.s32.totalorder %v10918_v42, 1 }
 0x486   : > { %vm5177_vm0 = vcmp.lt.s32.totalorder %v10918_v42, 3  ;;  %v5188_v9 = vsel %vm5178_vm1, %v5174_v8, 1326507024  ;;  %v5151_v4 = vor.u32 8388608, %v5150_v50  ;;  %v5183_v6 = vsel %vm5175_vm14, %v10947_v21, %v10949_v7 }
 0x487   : > { %v5185_v40 = vsel %vm5177_vm0, %v10951_v22, %v5184_v59  ;;  %vm5619_vm9 = vcmp.gt.s32.totalorder %v5618_v5, 0  ;;  %v4036_v34 = vmul.f32 %v4035_v29, %v10769_v51  ;;  %v5576_v52 = vsel %vm5455_vm12, %v5575_v15, %v5574_v36 }
 0x488   : > { %v4469_v10 = vshll.u32 %v10954_v47, 30  ;;  %v4746_v46 = vadd.s32 %v4744_v48, %v4742_v63  ;;  %v4715_v17 = vsel %vm4713_vm7, %v10763_v12, 2102212464  ;;  %vm5176_vm15 = vcmp.lt.s32.totalorder %v10918_v42, 2 }
 0x489   : > { %v5187_v59 = vsel %vm5175_vm14, %v10949_v7, %v10951_v22  ;;  %v5189_v51 = vsel %vm5177_vm0, %v5171_v56, %v5188_v9  ;;  %v4736_v29 = vshrl.u32 %v10850_v30, 16  ;;  %v4768_v15 = vadd.s32 %v4766_v26, %v4764_v55 }
 0x48a   : > { %v10994_v36 = vsel %vm5176_vm15, %v5183_v6, %v5185_v40  ;;  %v5620_v63 = vsel %vm5619_vm9, %v5618_v5, 0  ;;  %v4044_v1 = vadd.f32 1.0, %v4043_v37  ;;  %v10999_v12 = vsel %vm10934_vm11, %v13504_v39, %v5576_v52 }
 0x48b   : > { %13510 = vst [vmem:[#allocation22_spill] sm:$0xff] %v10999_v12  ;;  %v4694_v43 = vshrl.u32 %v13224_v32, %v10693_v41  ;;  %v11003_v24 = vshll.u32 %v5151_v4, 8  ;;  %v11006_v56 = vsub.s32 %v10888_v19, %v4469_v10  ;;  %v4747_v30 = vadd.s32 %v4746_v46, %v4736_v29 }
 0x48c   : > { %v4758_v27 = vshrl.u32 %v10873_v57, 16  ;;  %v11011_v50 = vsel %vm5176_vm15, %v5187_v59, %v5189_v51  ;;  %v4716_v41 = vsel %vm4712_vm3, %v10761_v54, %v4715_v17  ;;  %v13141_v8 = vshrl.u32 %v10994_v36, 16 }
 0x48d   : > { %v4714_v37 = vsel %vm4710_vm10, %v4694_v43, %v10780_v23  ;;  %v5622_v5 = vand.u32 31, %v5620_v63  ;;  %v11020_v19 = vadd.f32 1.0, %v4036_v34  ;;  %v11025_v57 = vsel %vm5455_vm12, %v5577_v61, %v10578_v45 }
 0x48e   : > { %v4738_v48 = vshrl.u32 %v10878_v35, 16  ;;  %v4769_v55 = vadd.s32 %v4768_v15, %v4758_v27  ;;  %v11029_v26 = vmul.f32 %v4044_v1, %v10714_v49  ;;  %v11033_v23 = vmul.f32 %v10999_v12, %v10999_v12 }
 0x48f   : > { %v5192_v54 = vand.u32 65535, %v11003_v24  ;;  %v13140_v9 = vshrl.u32 %v11011_v50, 16  ;;  %v4472_v4 = vsub.s32 0, %v11006_v56  ;;  %v11040_v45 = vsel %vm4711_vm13, %v4714_v37, %v4716_v41 }
 0x490   : > { %v11042_v61 = vadd.s32 %v4747_v30, %v4738_v48  ;;  %v4760_v35 = vshrl.u32 %v10900_v18, 16  ;;  %vm4471_vm7 = vcmp.lt.s32.totalorder %v11006_v56, 0  ;;  %v13138_v6 = vand.u32 2147483647, %v10867_v0 }
 0x491   : > { %v11048_v49 = vmul.u32 %v13141_v8, %v5192_v54  ;;  %v11051_v40 = vsub.s32 32, %v5622_v5  ;;  %v13511_v34 = vshll.u32 %v10900_v18, 16  ;;  %v5194_v10 = vand.u32 65535, %v11011_v50 }
 0x492   : > { %v4770_v52 = vadd.s32 %v4769_v55, %v4760_v35  ;;  %v5216_v46 = vand.u32 65535, %v10994_v36  ;;  %v11067_v29 = vmul.u32 %v13140_v9, %v5192_v54  ;;  %v11070_v18 = vmul.f32 -0.001358992, %v11033_v23 }
 0x493   : > { %v11056_v60 = vadd.s32 %v10910_v62, %v13511_v34  ;;  %v11073_v62 = vsel %vm4471_vm7, %v4472_v4, %v11006_v56  ;;  %v4771_v15 = vmul.u32 %v10815_v31, %v11040_v45  ;;  %v5193_v1 = vshrl.u32 %v11003_v24, 16 }
 0x494   : > { %v5222_v43 = vshll.u32 %v11048_v49, 16  ;;  %v11083_v30 = vand.u32 8388607, %v13138_v6  ;;  %v5635_v27 = vshrl.u32 %v13482_v2, %v11051_v40  ;;  %v4774_v37 = vadd.s32 1, %v4770_v52 }
 0x495   : > { %vm4773_vm10 = vc.u32 %v11042_v61, %v11056_v60  ;;  %v5196_v41 = vmul.u32 %v5194_v10, %v5192_v54  ;;  %v5218_v48 = vmul.u32 %v5216_v46, %v5192_v54  ;;  %v5638_v31 = vshrl.u32 %v13481_v33, %v11051_v40 }
 0x496   : > { %v5200_v55 = vshll.u32 %v11067_v29, 16  ;;  %v11090_v4 = vmul.u32 %v5216_v46, %v5193_v1  ;;  %v11092_v45 = vshrl.u32 %v5620_v63, 5  ;;  %v5634_v35 = vshll.u32 %v13483_v25, %v5622_v5 }
 0x497   : > { %v5626_v34 = vshrl.u32 %v13227_v14, %v11051_v40  ;;  %v5629_v6 = vshrl.u32 %v13228_v3, %v11051_v40  ;;  %v5632_v54 = vshrl.u32 %v13483_v25, %v11051_v40  ;;  %v5637_v53 = vshll.u32 %v13482_v2, %v5622_v5 }
 0x498   : > { %vm4050_vm3 = vcmp.eq.s32.totalorder %v10892_v44, 0  ;;  %v11103_v59 = vmul.u32 %v5194_v10, %v5193_v1  ;;  %vm11105_vm13 = vc.u32 %v5218_v48, %v5222_v43  ;;  %v11109_v46 = vadd.s32 %v5222_v43, %v5218_v48 }
 0x499   : > { %v5636_v51 = vor.u32 %v5635_v27, %v5634_v35  ;;  %v5625_v17 = vshll.u32 %v13224_v32, %v5622_v5  ;;  %v5628_v9 = vshll.u32 %v13227_v14, %v5622_v5  ;;  %v5631_v8 = vshll.u32 %v13228_v3, %v5622_v5 }
 0x49a   : > { %v5639_v0 = vor.u32 %v5638_v31, %v5637_v53  ;;  %vm4053_vm8 = vcmp.eq.s32.totalorder %v10892_v44, 2  ;;  %vm5204_vm4 = vc.u32 %v5196_v41, %v5200_v55  ;;  %v5206_v39 = vadd.s32 %v5200_v55, %v5196_v41 }
 0x49b   : > { %v5224_v10 = vshll.u32 %v11090_v4, 16  ;;  %v5616_v12 = vor.u32 8388608, %v11083_v30  ;;  %vm4049_vm5 = vcmp.lt.s32.totalorder %v10892_v44, 2  ;;  %v11118_v43 = vor.u32 %v5626_v34, %v5625_v17 }
 0x49c   : > { %v11120_v27 = vor.u32 %v5629_v6, %v5628_v9  ;;  %v11122_v48 = vor.u32 %v5632_v54, %v5631_v8  ;;  %vm5643_vm6 = vcmp.lt.s32.totalorder %v11092_v45, 4  ;;  %v4775_v53 = vsel %vm4773_vm10, %v4774_v37, %v4770_v52 }
 0x49d   : > { %v5202_v5 = vshll.u32 %v11103_v59, 16  ;;  %v5227_v30 = vsel %vm11105_vm13, 1, %v13223_v58  ;;  %v5649_v17 = vsel %vm5643_vm6, %v5636_v51, 920167782  ;;  %v5205_v9 = vsel %vm5204_vm4, 1, %v13223_v58 }
 0x49e   : > { %v13514_v8 = vshrl.u32 %v10994_v36, 16  ;;  %vm5230_vm12 = vc.u32 %v11109_v46, %v5224_v10  ;;  %v5653_v52 = vsel %vm5643_vm6, %v5639_v0, 1326507024  ;;  %vm4046_vm2 = vweird.f32 %v13485_v28 }
 0x49f   : > { %v13515_v37 = vshrl.u32 %v11011_v50, 16  ;;  %vm5208_vm9 = vc.u32 %v5206_v39, %v5202_v5  ;;  %vm5640_vm7 = vcmp.lt.s32.totalorder %v11092_v45, 1  ;;  %vm5642_vm10 = vcmp.lt.s32.totalorder %v11092_v45, 3 }
 0x4a0   : > { %v5221_v6 = vmul.u32 %v13514_v8, %v5193_v1  ;;  %v11147_v31 = vadd.s32 %v4775_v53, %v4771_v15  ;;  %v5648_v55 = vsel %vm5640_vm7, %v11118_v43, %v11120_v27  ;;  %v5650_v0 = vsel %vm5642_vm10, %v11122_v48, %v5649_v17 }
 0x4a1   : > { %v5199_v41 = vmul.u32 %v13515_v37, %v5193_v1  ;;  %v5231_v50 = vsel %vm5230_vm12, 1, %v13223_v58  ;;  %v5652_v39 = vsel %vm5640_vm7, %v11120_v27, %v11122_v48  ;;  %v5654_v15 = vsel %vm5642_vm10, %v5636_v51, %v5653_v52 }
 0x4a2   : > { %v5229_v36 = vadd.s32 %v5227_v30, %v5221_v6  ;;  %v13516_v1 = vxor.u32 2147483648, %v11029_v26  ;;  %v4474_v54 = vclz %v11073_v62  ;;  %v5209_v63 = vsel %vm5208_vm9, 1, %v13223_v58  ;;  %v11184_v62 = vpop.f32.mrf.mxu3 }
 0x4a3   : > { %v5207_v35 = vadd.s32 %v5205_v9, %v5199_v41  ;;  %vm5641_vm13 = vcmp.lt.s32.totalorder %v11092_v45, 2  ;;  %v11173_v53 = vadd.f32 %v10534_v11, %v10896_v13  ;;  %v5589_v5 = vmul.f32 -0.00019511016, %v11033_v23  ;;  %13519 = vst [vmem:[#allocation45_spill] sm:$0xff] %v11184_v62 }
 0x4a4   : > { %v4052_v34 = vsel %vm4050_vm3, %v11020_v19, %v13516_v1  ;;  %v13518_v51 = vsel %vm10934_vm11, 0, %v11025_v57  ;;  %v11182_v17 = vsel %vm5641_vm13, %v5648_v55, %v5650_v0  ;;  %v13520_v9 = vxor.u32 2147483648, %v11020_v19 }
 0x4a5   : > { %13517 = vst [vmem:[#allocation23_spill] sm:$0xff] %v11173_v53  ;;  %v5597_v30 = vadd.s32 3, %v13518_v51  ;;  %v5233_v13 = vadd.s32 %v5231_v50, %v5229_v36  ;;  %v11193_v8 = vsel %vm5641_vm13, %v5652_v39, %v5654_v15  ;;  %v11195_v20 = vshll.u32 %v5616_v12, 8 }
 0x4a6   : > { %v4055_v11 = vsel %vm4053_vm8, %v13520_v9, %v11029_v26  ;;  %v5583_v6 = vadd.f32 0.041655596, %v11070_v18  ;;  %v4777_v52 = vadd.s32 536870912, %v11147_v31  ;;  %v5211_v37 = vadd.s32 %v5209_v63, %v5207_v35 }
 0x4a7   : > { %v4056_v57 = vsel %vm4049_vm5, %v4052_v34, %v4055_v11  ;;  %v6253_v41 = vadd.s32 4294967294, %v4474_v54  ;;  %v5223_v19 = vshrl.u32 %v11048_v49, 16  ;;  %v5682_v26 = vshrl.u32 %v11182_v17, 16 }
 0x4a8   : > { %v1581_v36 = vand.u32 2139095040, %v11184_v62  ;;  %v5590_v55 = vadd.f32 0.008332121, %v5589_v5  ;;  %v11204_v0 = vand.u32 3, %v5597_v30  ;;  %v5201_v12 = vshrl.u32 %v11067_v29, 16  ;;  %v13522_v5 = vld [vmem:[#allocation24_spill] sm:$0xff] }
 0x4a9   : > { %v5660_v44 = vshrl.u32 %v11193_v8, 16  ;;  %v11210_v18 = vsel %vm4046_vm2, nan, %v4056_v57  ;;  %v5234_v50 = vadd.s32 %v5233_v13, %v5223_v19  ;;  %v5657_v35 = vand.u32 65535, %v11195_v20 }
 0x4aa   : > { %v1582_v39 = vshrl.u32 %v1581_v36, 23  ;;  %v11214_v49 = vmul.f32 %v5583_v6, %v11033_v23  ;;  %v11218_v15 = vadd.s32 %v10848_v16, %v10828_v38  ;;  %v11220_v1 = vshrl.u32 %v4777_v52, 30 }
 0x4ab   : > { %v5212_v29 = vadd.s32 %v5211_v37, %v5201_v12  ;;  %vm6254_vm11 = vcmp.lt.s32.totalorder %v6253_v41, 0  ;;  %v5225_v34 = vshrl.u32 %v11090_v4, 16  ;;  %v11225_v28 = vmul.u32 %v5682_v26, %v5657_v35 }
 0x4ac   : > { %13521 = vst [vmem:[#allocation42_spill] sm:$0xff] %v11220_v1  ;;  %v6198_v54 = vadd.s32 4294967169, %v1582_v39  ;;  %v5591_v63 = vmul.f32 %v5590_v55, %v11033_v23  ;;  %v5159_v51 = vshrl.u32 %v13224_v32, %v13522_v5  ;;  %v5203_v30 = vshrl.u32 %v11103_v59, 16 }
 0x4ad   : > { %v11231_v38 = vmul.u32 %v5660_v44, %v5657_v35  ;;  %v5180_v16 = vsel %vm5178_vm1, %v10951_v22, 2102212464  ;;  %v5235_v9 = vadd.s32 %v5234_v50, %v5225_v34  ;;  %v5681_v11 = vand.u32 65535, %v11182_v17 }
 0x4ae   : > { %v1588_v13 = vadd.s32 1, %v6198_v54  ;;  %v11237_v57 = vsel %vm6254_vm11, 0, %v6253_v41  ;;  %v4779_v6 = vshll.u32 %v11220_v1, 30  ;;  %v11240_v52 = vadd.s32 %v5212_v29, %v5203_v30 }
 0x4af   : > { %v5659_v37 = vand.u32 65535, %v11193_v8  ;;  %v5179_v59 = vsel %vm5175_vm14, %v5159_v51, %v10947_v21  ;;  %v5658_v19 = vshrl.u32 %v11195_v20, 16  ;;  %v5687_v22 = vshll.u32 %v11225_v28, 16 }
 0x4b0   : > { %vm1589_vm1 = vcmp.gt.s32.totalorder %v1588_v13, 0  ;;  %v5181_v41 = vsel %vm5177_vm0, %v10949_v7, %v5180_v16  ;;  %v11254_v36 = vadd.s32 %v11109_v46, %v5224_v10  ;;  %v5665_v8 = vshll.u32 %v11231_v38, 16 }
 0x4b1   : > { %v1590_v55 = vsel %vm1589_vm1, %v1588_v13, 0  ;;  %v5239_v12 = vadd.s32 1, %v5235_v9  ;;  %v5683_v50 = vmul.u32 %v5681_v11, %v5657_v35  ;;  %v11257_v21 = vmul.u32 %v5681_v11, %v5658_v19 }
 0x4b2   : > { %v1592_v39 = vand.u32 31, %v1590_v55  ;;  %v4482_v29 = vsub.s32 4294967266, %v11237_v57  ;;  %v11261_v34 = vsub.s32 %v11147_v31, %v4779_v6  ;;  %vm5238_vm14 = vc.u32 %v11240_v52, %v11254_v36 }
 0x4b3   : > { %v5661_v7 = vmul.u32 %v5659_v37, %v5657_v35  ;;  %v11265_v4 = vadd.f32 -0.16666654, %v5591_v63  ;;  %v5182_v46 = vsel %vm5176_vm15, %v5179_v59, %v5181_v41  ;;  %v11269_v10 = vmul.u32 %v5659_v37, %v5658_v19 }
 0x4b4   : > { %v11271_v54 = vadd.s32 %v5687_v22, %v5683_v50  ;;  %v4478_v5 = vsub.s32 32, %v11237_v57  ;;  %vm5691_vm3 = vc.u32 %v5683_v50, %v5687_v22  ;;  %v5240_v31 = vsel %vm5238_vm14, %v5239_v12, %v5235_v9 }
 0x4b5   : > { %vm5669_vm0 = vc.u32 %v5661_v7, %v5665_v8  ;;  %v5671_v30 = vadd.s32 %v5665_v8, %v5661_v7  ;;  %v13146_v35 = vshll.u32 %v11257_v21, 16  ;;  %v11277_v63 = vsub.s32 32, %v1592_v39 }
 0x4b6   : > { %v4483_v16 = vadd.s32 127, %v4482_v29  ;;  %vm4781_vm15 = vcmp.lt.s32.totalorder %v11261_v34, 0  ;;  %v4782_v42 = vsub.s32 0, %v11261_v34  ;;  %v5236_v11 = vmul.u32 %v11003_v24, %v5182_v46 }
 0x4b7   : > { %v5667_v13 = vshll.u32 %v11269_v10, 16  ;;  %v5670_v6 = vsel %vm5669_vm0, 1, %v13223_v58  ;;  %v5692_v37 = vsel %vm5691_vm3, 1, %v13223_v58  ;;  %vm5695_vm8 = vc.u32 %v11271_v54, %v13146_v35 }
 0x4b8   : > { %v11288_v9 = vadd.s32 %v5240_v31, %v5236_v11  ;;  %v5664_v59 = vmul.u32 %v5660_v44, %v5658_v19  ;;  %v5686_v22 = vmul.u32 %v5682_v26, %v5658_v19  ;;  %v13149_v41 = vand.u32 2147483647, %v11184_v62 }
 0x4b9   : > { %vm5673_vm4 = vc.u32 %v5671_v30, %v5667_v13  ;;  %v1596_v24 = vshrl.u32 %v13227_v14, %v11277_v63  ;;  %v1599_v8 = vshrl.u32 %v13228_v3, %v11277_v63  ;;  %v1605_v12 = vshrl.u32 %v13482_v2, %v11277_v63 }
 0x4ba   : > { %v5672_v50 = vadd.s32 %v5670_v6, %v5664_v59  ;;  %v5694_v29 = vadd.s32 %v5692_v37, %v5686_v22  ;;  %v5696_v7 = vsel %vm5695_vm8, 1, %v13223_v58  ;;  %v1602_v17 = vshrl.u32 %v13483_v25, %v11277_v63 }
 0x4bb   : > { %v1595_v26 = vshll.u32 %v13224_v32, %v1592_v39  ;;  %v1598_v44 = vshll.u32 %v13227_v14, %v1592_v39  ;;  %v1604_v19 = vshll.u32 %v13483_v25, %v1592_v39  ;;  %v1608_v46 = vshrl.u32 %v13481_v33, %v11277_v63 }
 0x4bc   : > { %v5674_v31 = vsel %vm5673_vm4, 1, %v13223_v58  ;;  %v1585_v30 = vand.u32 8388607, %v13149_v41  ;;  %v11310_v11 = vshrl.u32 %v1590_v55, 5  ;;  %v1601_v13 = vshll.u32 %v13228_v3, %v1592_v39 }
 0x4bd   : > { %v11313_v6 = vor.u32 %v1596_v24, %v1595_v26  ;;  %v11315_v37 = vor.u32 %v1599_v8, %v1598_v44  ;;  %v1606_v59 = vor.u32 %v1605_v12, %v1604_v19  ;;  %v1607_v22 = vshll.u32 %v13482_v2, %v1592_v39 }
 0x4be   : > { %v4480_v35 = vshrl.u32 %v11218_v15, %v4478_v5  ;;  %v4484_v51 = vshll.u32 %v4483_v16, 23  ;;  %v5698_v53 = vadd.s32 %v5696_v7, %v5694_v29  ;;  %v11319_v1 = vor.u32 %v1602_v17, %v1601_v13  ;;  %v11348_v17 = vpop.f32.mrf.mxu2 }
 0x4bf   : > { %v4783_v55 = vsel %vm4781_vm15, %v4782_v42, %v11261_v34  ;;  %v5242_v41 = vadd.s32 536870912, %v11288_v9  ;;  %v5676_v62 = vadd.s32 %v5674_v31, %v5672_v50  ;;  %v1609_v24 = vor.u32 %v1608_v46, %v1607_v22  ;;  %13523 = vst [vmem:[#allocation38_spill] sm:$0xff] %v11348_v17 }
 0x4c0   : > { %v5666_v8 = vshrl.u32 %v11231_v38, 16  ;;  %v5688_v12 = vshrl.u32 %v11225_v28, 16  ;;  %vm1610_vm5 = vcmp.lt.s32.totalorder %v11310_v11, 1  ;;  %vm1613_vm12 = vcmp.lt.s32.totalorder %v11310_v11, 4 }
 0x4c1   : > { %v1586_v15 = vor.u32 8388608, %v1585_v30  ;;  %vm1612_vm2 = vcmp.lt.s32.totalorder %v11310_v11, 3  ;;  %v1618_v39 = vsel %vm1610_vm5, %v11313_v6, %v11315_v37  ;;  %v1619_v5 = vsel %vm1613_vm12, %v1606_v59, 920167782 }
 0x4c2   : > { %v4784_v16 = vclz %v4783_v55  ;;  %v5699_v42 = vadd.s32 %v5698_v53, %v5688_v12  ;;  %v1620_v28 = vsel %vm1612_vm2, %v11319_v1, %v1619_v5  ;;  %v1622_v38 = vsel %vm1610_vm5, %v11315_v37, %v11319_v1  ;;  %v13526_v5 = vld [vmem:[#allocation7_spill] sm:$0xff] }
 0x4c3   : > { %v11343_v50 = vshrl.u32 %v5242_v41, 30  ;;  %v5677_v29 = vadd.s32 %v5676_v62, %v5666_v8  ;;  %vm1611_vm9 = vcmp.lt.s32.totalorder %v11310_v11, 2  ;;  %v1623_v7 = vsel %vm1613_vm12, %v1609_v24, 1326507024 }
 0x4c4   : > { %v4485_v53 = vor.u32 4788187, %v4484_v51  ;;  %v5690_v26 = vshrl.u32 %v11257_v21, 16  ;;  %v11353_v44 = vsel %vm1611_vm9, %v1618_v39, %v1620_v28  ;;  %v1624_v19 = vsel %vm1612_vm2, %v1606_v59, %v1623_v7 }
 0x4c5   : > { %v13524_v62 = vshll.u32 %v11006_v56, %v11237_v57  ;;  %v5668_v46 = vshrl.u32 %v11269_v10, 16  ;;  %v11363_v31 = vsel %vm1611_vm9, %v1622_v38, %v1624_v19  ;;  %v11365_v51 = vshll.u32 %v1586_v15, 8  ;;  %v13527_v38 = vld [vmem:[#allocation4_spill] sm:$0xff] }
 0x4c6   : > { %v6259_v30 = vadd.s32 4294967294, %v4784_v16  ;;  %v5645_v13 = vsel %vm5643_vm6, %v11122_v48, 2102212464  ;;  %v5700_v22 = vadd.s32 %v5699_v42, %v5690_v26  ;;  %v2046_v59 = vand.u32 2139095040, %v11348_v17 }
 0x4c7   : > { %v4481_v41 = vor.u32 %v4480_v35, %v13524_v62  ;;  %v5244_v55 = vshll.u32 %v11343_v50, 30  ;;  %v5624_v56 = vshrl.u32 %v13224_v32, %v11051_v40  ;;  %v11374_v57 = vadd.s32 %v5677_v29, %v5668_v46 }
 0x4c8   : > { %v1652_v10 = vshrl.u32 %v11353_v44, 16  ;;  %v5585_v35 = vadd.f32 -0.4999988, %v11214_v49  ;;  %v5593_v24 = vmul.f32 %v11265_v4, %v11033_v23  ;;  %v4486_v8 = vand.u32 2147483647, %v4485_v53  ;;  %v13529_v53 = vld [vmem:[#allocation40_spill] sm:$0xff] }
 0x4c9   : > { %v1630_v48 = vshrl.u32 %v11363_v31, 16  ;;  %v5644_v12 = vsel %vm5640_vm7, %v5624_v56, %v11118_v43  ;;  %v5646_v40 = vsel %vm5642_vm10, %v11120_v27, %v5645_v13  ;;  %v13525_v15 = vshll.u32 %v11257_v21, 16 }
 0x4ca   : > { %v1627_v49 = vand.u32 65535, %v11365_v51  ;;  %v11395_v4 = vmul.f32 %v11210_v18, %v13526_v5  ;;  %v4488_v16 = vcvt.s32.f32 %v4481_v41  ;;  %v5704_v42 = vadd.s32 1, %v5700_v22 }
 0x4cb   : > { %v11390_v39 = vadd.s32 %v11271_v54, %v13525_v15  ;;  %v2047_v28 = vshrl.u32 %v2046_v59, 23  ;;  %vm4370_vm6 = vcmp.lt.s32.totalorder %v13527_v38, 0  ;;  %vm6260_vm7 = vcmp.lt.s32.totalorder %v6259_v30, 0 }
 0x4cc   : > { %v11399_v43 = vsub.s32 %v11288_v9, %v5244_v55  ;;  %v11405_v27 = vmul.u32 %v1652_v10, %v1627_v49  ;;  %v5594_v21 = vadd.f32 1.0, %v5593_v24  ;;  %v4489_v54 = vmul.f32 %v4488_v16, %v4486_v8  ;;  %v13528_v9 = vld [vmem:[#allocation10_spill] sm:$0xff] }
 0x4cd   : > { %vm5703_vm10 = vc.u32 %v11374_v57, %v11390_v39  ;;  %v5647_v18 = vsel %vm5641_vm13, %v5644_v12, %v5646_v40  ;;  %v11411_v29 = vmul.u32 %v1630_v48, %v1627_v49  ;;  %v5586_v7 = vmul.f32 %v5585_v35, %v11033_v23  ;;  %v13530_v35 = vld [vmem:[#allocation22_spill] sm:$0xff]  ;;  %v13549_v12 = vld [vmem:[#allocation5_spill] sm:$0xff] }
 0x4ce   : > { %v11416_v26 = vadd.f32 %v13529_v53, %v13528_v9  ;;  %v1651_v62 = vand.u32 65535, %v11353_v44  ;;  %v4787_v41 = vsel %vm6260_vm7, 0, %v6259_v30  ;;  %v5705_v46 = vsel %vm5703_vm10, %v5704_v42, %v5700_v22 }
 0x4cf   : > { %v1629_v13 = vand.u32 65535, %v11363_v31  ;;  %v6207_v45 = vadd.s32 4294967169, %v2047_v28  ;;  %v5247_v59 = vsub.s32 0, %v11399_v43  ;;  %v5701_v55 = vmul.u32 %v11195_v20, %v5647_v18 }
 0x4d0   : > { %v1628_v56 = vshrl.u32 %v11365_v51, 16  ;;  %v1657_v23 = vshll.u32 %v11405_v27, 16  ;;  %v11426_v24 = vmul.f32 %v5594_v21, %v13530_v35  ;;  %v4490_v8 = vxor.u32 2147483648, %v4489_v54 }
 0x4d1   : > { %vm5246_vm13 = vcmp.lt.s32.totalorder %v11399_v43, 0  ;;  %v1635_v30 = vshll.u32 %v11411_v29, 16  ;;  %v13531_v22 = vand.u32 2147483647, %v13527_v38  ;;  %v4788_v40 = vsub.s32 32, %v4787_v41 }
 0x4d2   : > { %v11436_v20 = vadd.s32 %v5705_v46, %v5701_v55  ;;  %v1653_v15 = vmul.u32 %v1651_v62, %v1627_v49  ;;  %v11438_v5 = vmul.u32 %v1651_v62, %v1628_v56  ;;  %v4792_v16 = vsub.s32 4294967266, %v4787_v41 }
 0x4d3   : > { %vm11432_vm11 = vcmp.le.f32.partialorder %v13531_v22, 0.7853982  ;;  %v1631_v42 = vmul.u32 %v1629_v13, %v1627_v49  ;;  %v11440_v28 = vmul.u32 %v1629_v13, %v1628_v56  ;;  %v2053_v21 = vadd.s32 1, %v6207_v45 }
 0x4d4   : > { %v4772_v18 = vadd.s32 %v11056_v60, %v11042_v61  ;;  %v5248_v9 = vsel %vm5246_vm13, %v5247_v59, %v11399_v43  ;;  %vm1661_vm1 = vc.u32 %v1653_v15, %v1657_v23  ;;  %v11445_v53 = vadd.s32 %v1657_v23, %v1653_v15 }
 0x4d5   : > { %v4491_v46 = vsel %vm4370_vm6, %v4490_v8, %v4489_v54  ;;  %vm1639_vm14 = vc.u32 %v1631_v42, %v1635_v30  ;;  %v1641_v55 = vadd.s32 %v1635_v30, %v1631_v42  ;;  %vm2054_vm0 = vcmp.gt.s32.totalorder %v2053_v21, 0 }
 0x4d6   : > { %v4790_v62 = vshrl.u32 %v4772_v18, %v4788_v40  ;;  %v5707_v49 = vadd.s32 536870912, %v11436_v20  ;;  %v13153_v13 = vshll.u32 %v11438_v5, 16  ;;  %v2055_v45 = vsel %vm2054_vm0, %v2053_v21, 0 }
 0x4d7   : > { %v4793_v35 = vadd.s32 127, %v4792_v16  ;;  %v5249_v22 = vclz %v5248_v9  ;;  %v1637_v61 = vshll.u32 %v11440_v28, 16  ;;  %v1662_v60 = vsel %vm1661_vm1, 1, %v13223_v58 }
 0x4d8   : > { %v1640_v59 = vsel %vm1639_vm14, 1, %v13223_v58  ;;  %v1656_v54 = vmul.u32 %v1652_v10, %v1628_v56  ;;  %vm1665_vm3 = vc.u32 %v11445_v53, %v13153_v13  ;;  %v2057_v23 = vand.u32 31, %v2055_v45 }
 0x4d9   : > { %v11459_v8 = vadd.f32 1.0, %v5586_v7  ;;  %v1634_v30 = vmul.u32 %v1630_v48, %v1628_v56  ;;  %vm1643_vm15 = vc.u32 %v1641_v55, %v1637_v61  ;;  %v13152_v40 = vand.u32 2147483647, %v11348_v17 }
 0x4da   : > { %v4789_v15 = vshll.u32 %v11261_v34, %v4787_v41  ;;  %v11465_v16 = vshrl.u32 %v5707_v49, 30  ;;  %v1664_v42 = vadd.s32 %v1662_v60, %v1656_v54  ;;  %v11467_v44 = vsub.s32 32, %v2057_v23 }
 0x4db   : > { %v11473_v7 = vsel %vm11432_vm11, %v13527_v38, %v4491_v46  ;;  %v1642_v21 = vadd.s32 %v1640_v59, %v1634_v30  ;;  %v1666_v31 = vsel %vm1665_vm3, 1, %v13223_v58  ;;  %v4794_v56 = vshll.u32 %v4793_v35, 23 }
 0x4dc   : > { %13534 = vst [vmem:[#allocation25_spill] sm:$0xff] %v11465_v16  ;;  %v11476_v48 = vor.u32 %v4790_v62, %v4789_v15  ;;  %v6268_v18 = vadd.s32 4294967294, %v5249_v22  ;;  %v1644_v34 = vsel %vm1643_vm15, 1, %v13223_v58  ;;  %v2050_v41 = vand.u32 8388607, %v13152_v40 }
 0x4dd   : > { %v2061_v9 = vshrl.u32 %v13227_v14, %v11467_v44  ;;  %v2064_v55 = vshrl.u32 %v13228_v3, %v11467_v44  ;;  %v2070_v46 = vshrl.u32 %v13482_v2, %v11467_v44  ;;  %v5709_v49 = vshll.u32 %v11465_v16, 30 }
 0x4de   : > { %v1668_v62 = vadd.s32 %v1666_v31, %v1664_v42  ;;  %v2067_v35 = vshrl.u32 %v13483_v25, %v11467_v44  ;;  %v2069_v22 = vshll.u32 %v13483_v25, %v2057_v23  ;;  %v1646_v61 = vadd.s32 %v1644_v34, %v1642_v21 }
 0x4df   : > { %v11491_v60 = vshrl.u32 %v2055_v45, 5  ;;  %v2060_v59 = vshll.u32 %v13224_v32, %v2057_v23  ;;  %v2063_v54 = vshll.u32 %v13227_v14, %v2057_v23  ;;  %v1658_v30 = vshrl.u32 %v11405_v27, 16 }
 0x4e0   : > { %v2066_v15 = vshll.u32 %v13228_v3, %v2057_v23  ;;  %v2071_v40 = vor.u32 %v2070_v46, %v2069_v22  ;;  %v2073_v42 = vshrl.u32 %v13481_v33, %v11467_v44  ;;  %v1636_v31 = vshrl.u32 %v11411_v29, 16 }
 0x4e1   : > { %v11500_v10 = vor.u32 %v2061_v9, %v2060_v59  ;;  %v11502_v19 = vor.u32 %v2064_v55, %v2063_v54  ;;  %v2072_v45 = vshll.u32 %v13482_v2, %v2057_v23  ;;  %v4795_v21 = vor.u32 4788187, %v4794_v56 }
 0x4e2   : > { %v1669_v34 = vadd.s32 %v1668_v62, %v1658_v30  ;;  %v2051_v13 = vor.u32 8388608, %v2050_v41  ;;  %v11505_v17 = vor.u32 %v2067_v35, %v2066_v15  ;;  %vm6269_vm8 = vcmp.lt.s32.totalorder %v6268_v18, 0 }
 0x4e3   : > { %v1647_v27 = vadd.s32 %v1646_v61, %v1636_v31  ;;  %v2074_v16 = vor.u32 %v2073_v42, %v2072_v45  ;;  %vm2078_vm4 = vcmp.lt.s32.totalorder %v11491_v60, 4  ;;  %v1594_v46 = vshrl.u32 %v13224_v32, %v11277_v63  ;;  %v13537_v31 = vld [vmem:[#allocation43_spill] sm:$0xff] }
 0x4e4   : > { %v1660_v29 = vshrl.u32 %v11438_v5, 16  ;;  %vm2075_vm7 = vcmp.lt.s32.totalorder %v11491_v60, 1  ;;  %v2084_v23 = vsel %vm2078_vm4, %v2071_v40, 920167782  ;;  %vm5600_vm10 = vcmp.eq.s32.totalorder %v11204_v0, 0 }
 0x4e5   : > { %v11516_v56 = vsub.s32 %v11436_v20, %v5709_v49  ;;  %v1638_v41 = vshrl.u32 %v11440_v28, 16  ;;  %vm2077_vm13 = vcmp.lt.s32.totalorder %v11491_v60, 3  ;;  %v2083_v63 = vsel %vm2075_vm7, %v11500_v10, %v11502_v19 }
 0x4e6   : > { %v1615_v9 = vsel %vm1613_vm12, %v11319_v1, 2102212464  ;;  %v1670_v55 = vadd.s32 %v1669_v34, %v1660_v29  ;;  %v2085_v62 = vsel %vm2077_vm13, %v11505_v17, %v2084_v23  ;;  %v11530_v20 = vshll.u32 %v2051_v13, 8  ;;  %v13538_v34 = vld [vmem:[#allocation41_spill] sm:$0xff] }
 0x4e7   : > { %v11532_v49 = vadd.s32 %v1647_v27, %v1638_v41  ;;  %vm2076_vm1 = vcmp.lt.s32.totalorder %v11491_v60, 2  ;;  %v2087_v28 = vsel %vm2075_vm7, %v11502_v19, %v11505_v17  ;;  %v2088_v35 = vsel %vm2078_vm4, %v2074_v16, 1326507024 }
 0x4e8   : > { %vm5603_vm12 = vcmp.eq.s32.totalorder %v11204_v0, 2  ;;  %v4796_v1 = vand.u32 2147483647, %v4795_v21  ;;  %v11543_v22 = vsel %vm6269_vm8, 0, %v6268_v18  ;;  %v11547_v13 = vsel %vm2076_vm1, %v2083_v63, %v2085_v62 }
 0x4e9   : > { %v2089_v61 = vsel %vm2077_vm13, %v2071_v40, %v2088_v35  ;;  %vm5599_vm14 = vcmp.lt.s32.totalorder %v11204_v0, 2  ;;  %v1614_v59 = vsel %vm1610_vm5, %v1594_v46, %v11313_v6  ;;  %v1616_v16 = vsel %vm1612_vm2, %v11315_v37, %v1615_v9 }
 0x4ea   : > { %v13535_v18 = vshll.u32 %v11438_v5, 16  ;;  %v11565_v30 = vsel %vm2076_vm1, %v2087_v28, %v2089_v61  ;;  %v11569_v40 = vmul.f32 %v11473_v7, %v11473_v7  ;;  %v4798_v15 = vcvt.s32.f32 %v11476_v48 }
 0x4eb   : > { %v5712_v6 = vsub.s32 0, %v11516_v56  ;;  %v1674_v42 = vadd.s32 1, %v1670_v55  ;;  %vm4680_vm5 = vcmp.lt.s32.totalorder %v13537_v31, 0  ;;  %v2092_v37 = vand.u32 65535, %v11530_v20 }
 0x4ec   : > { %v11561_v54 = vadd.s32 %v11445_v53, %v13535_v18  ;;  %v2095_v5 = vshrl.u32 %v11565_v30, 16  ;;  %v2117_v53 = vshrl.u32 %v11547_v13, 16  ;;  %v4799_v45 = vmul.f32 %v4798_v15, %v4796_v1 }
 0x4ed   : > { %v5257_v21 = vsub.s32 4294967266, %v11543_v22  ;;  %vm5711_vm0 = vcmp.lt.s32.totalorder %v11516_v56, 0  ;;  %v1617_v48 = vsel %vm1611_vm9, %v1614_v59, %v1616_v16  ;;  %v11585_v27 = vadd.f32 %v13538_v34, %v11395_v4  ;;  %v13545_v34 = vld [vmem:[#allocation15_spill] sm:$0xff] }
 0x4ee   : > { %13536 = vst [vmem:[#allocation19_spill] sm:$0xff] %v11561_v54  ;;  %vm1673_vm2 = vc.u32 %v11532_v49, %v11561_v54  ;;  %v5604_v46 = vxor.u32 2147483648, %v11459_v8  ;;  %v13540_v29 = vsub.s32 4, %v10954_v47  ;;  %v11595_v41 = vmul.u32 %v2095_v5, %v2092_v37 }
 0x4ef   : > { %13539 = vst [vmem:[#allocation6_spill] sm:$0xff] %v11585_v27  ;;  %v13541_v63 = vxor.u32 2147483648, %v11426_v24  ;;  %v1675_v9 = vsel %vm1673_vm2, %v1674_v42, %v1670_v55  ;;  %v2116_v4 = vand.u32 65535, %v11547_v13  ;;  %v11603_v62 = vmul.u32 %v2117_v53, %v2092_v37 }
 0x4f0   : > { %v11593_v23 = vsel %vm4370_vm6, %v13540_v29, %v10954_v47  ;;  %v4504_v28 = vmul.f32 -0.00019511016, %v11569_v40  ;;  %v5713_v35 = vsel %vm5711_vm0, %v5712_v6, %v11516_v56  ;;  %v1671_v47 = vmul.u32 %v11365_v51, %v1617_v48 }
 0x4f1   : > { %v5602_v11 = vsel %vm5600_vm10, %v11459_v8, %v13541_v63  ;;  %v2094_v1 = vand.u32 65535, %v11565_v30  ;;  %v4497_v61 = vmul.f32 -0.001358992, %v11569_v40  ;;  %v13542_v59 = vand.u32 2147483647, %v13537_v31 }
 0x4f2   : > { %v4800_v8 = vxor.u32 2147483648, %v4799_v45  ;;  %v5258_v55 = vadd.s32 127, %v5257_v21  ;;  %v2093_v13 = vshrl.u32 %v11530_v20, 16  ;;  %v5605_v18 = vsel %vm5603_vm12, %v5604_v46, %v11426_v24 }
 0x4f3   : > { %vm11612_vm9 = vcmp.le.f32.partialorder %v13542_v59, 0.7853982  ;;  %v5253_v51 = vsub.s32 32, %v11543_v22  ;;  %v11621_v15 = vadd.s32 %v1675_v9, %v1671_v47  ;;  %v2100_v30 = vshll.u32 %v11595_v41, 16 }
 0x4f4   : > { %v5606_v6 = vsel %vm5599_vm14, %v5602_v11, %v5605_v18  ;;  %v5714_v42 = vclz %v5713_v35  ;;  %v11626_v48 = vmul.u32 %v2116_v4, %v2093_v13  ;;  %v2122_v21 = vshll.u32 %v11603_v62, 16 }
 0x4f5   : > { %vm5596_vm6 = vweird.f32 %v13545_v34  ;;  %v4505_v29 = vadd.f32 0.008332121, %v4504_v28  ;;  %v5237_v24 = vadd.s32 %v11254_v36, %v11240_v52  ;;  %v2096_v46 = vmul.u32 %v2094_v1, %v2092_v37 }
 0x4f6   : > { %v11632_v63 = vmul.u32 %v2094_v1, %v2093_v13  ;;  %v4498_v9 = vadd.f32 0.041655596, %v4497_v61  ;;  %v4801_v47 = vsel %vm4680_vm5, %v4800_v8, %v4799_v45  ;;  %v5259_v0 = vshll.u32 %v5258_v55, 23 }
 0x4f7   : > { %v2118_v11 = vmul.u32 %v2116_v4, %v2092_v37  ;;  %v5255_v35 = vshrl.u32 %v5237_v24, %v5253_v51  ;;  %v1677_v59 = vadd.s32 536870912, %v11621_v15  ;;  %vm2104_vm3 = vc.u32 %v2096_v46, %v2100_v30  ;;  %v11645_v4 = vpop.f32.mrf.mxu3 }
 0x4f8   : > { %v2106_v18 = vadd.s32 %v2100_v30, %v2096_v46  ;;  %v6277_v27 = vadd.s32 4294967294, %v5714_v42  ;;  %v13159_v28 = vshll.u32 %v11626_v48, 16  ;;  %v4506_v52 = vmul.f32 %v4505_v29, %v11569_v40  ;;  %13546 = vst [vmem:[#allocation17_spill] sm:$0xff] %v11645_v4 }
 0x4f9   : > { %vm2126_vm15 = vc.u32 %v2118_v11, %v2122_v21  ;;  %v11638_v54 = vadd.s32 %v2122_v21, %v2118_v11  ;;  %v5254_v36 = vshll.u32 %v11399_v43, %v11543_v22  ;;  %v2102_v45 = vshll.u32 %v11632_v63, 16 }
 0x4fa   : > { %v2127_v37 = vsel %vm2126_vm15, 1, %v13223_v58  ;;  %v5260_v1 = vor.u32 4788187, %v5259_v0  ;;  %v2105_v61 = vsel %vm2104_vm3, 1, %v13223_v58  ;;  %v2121_v8 = vmul.u32 %v2117_v53, %v2093_v13 }
 0x4fb   : > { %vm2130_vm8 = vc.u32 %v11638_v54, %v13159_v28  ;;  %v11654_v55 = vsel %vm11612_vm9, %v13537_v31, %v4801_v47  ;;  %v11656_v43 = vshrl.u32 %v1677_v59, 30  ;;  %v2099_v22 = vmul.u32 %v2095_v5, %v2093_v13  ;;  %v13547_v59 = vld [vmem:[#allocation42_spill] sm:$0xff] }
 0x4fc   : > { %vm2108_vm10 = vc.u32 %v2106_v18, %v2102_v45  ;;  %v5256_v51 = vor.u32 %v5255_v35, %v5254_v36  ;;  %vm6278_vm12 = vcmp.lt.s32.totalorder %v6277_v27, 0  ;;  %v2129_v30 = vadd.s32 %v2127_v37, %v2121_v8  ;;  %v13548_v36 = vld [vmem:[#allocation32_spill] sm:$0xff] }
 0x4fd   : > { %v2821_v42 = vand.u32 2139095040, %v11645_v4  ;;  %v4499_v53 = vmul.f32 %v4498_v9, %v11569_v40  ;;  %v4507_v21 = vadd.f32 -0.16666654, %v4506_v52  ;;  %v2107_v29 = vadd.s32 %v2105_v61, %v2099_v22 }
 0x4fe   : > { %v2131_v24 = vsel %vm2130_vm8, 1, %v13223_v58  ;;  %v5607_v46 = vsel %vm5596_vm6, nan, %v5606_v6  ;;  %v5261_v47 = vand.u32 2147483647, %v5260_v1  ;;  %v2109_v0 = vsel %vm2108_vm10, 1, %v13223_v58 }
 0x4ff   : > { %v2822_v11 = vshrl.u32 %v2821_v42, 23  ;;  %v4495_v5 = vsel %vm11432_vm11, 0, %v11593_v23  ;;  %v11669_v13 = vmul.f32 %v11654_v55, %v11654_v55  ;;  %v11671_v9 = vsel %vm6278_vm12, 0, %v6277_v27 }
 0x500   : > { %v1679_v35 = vshll.u32 %v11656_v43, 30  ;;  %v4802_v18 = vsub.s32 4, %v13547_v59  ;;  %v5263_v34 = vcvt.s32.f32 %v5256_v51  ;;  %v2133_v6 = vadd.s32 %v2131_v24, %v2129_v30 }
 0x501   : > { %v6222_v52 = vadd.s32 4294967169, %v2822_v11  ;;  %v5947_v45 = vmul.f32 %v5607_v46, %v13548_v36  ;;  %v4500_v37 = vadd.f32 -0.4999988, %v4499_v53  ;;  %v4508_v1 = vmul.f32 %v4507_v21, %v11569_v40 }
 0x502   : > { %vm5145_vm11 = vcmp.lt.s32.totalorder %v13549_v12, 0  ;;  %v2111_v23 = vadd.s32 %v2109_v0, %v2107_v29  ;;  %v5264_v61 = vmul.f32 %v5263_v34, %v5261_v47  ;;  %v5722_v8 = vsub.s32 4294967266, %v11671_v9 }
 0x503   : > { %v2123_v27 = vshrl.u32 %v11603_v62, 16  ;;  %v2828_v22 = vadd.s32 1, %v6222_v52  ;;  %v4512_v42 = vadd.s32 3, %v4495_v5  ;;  %v4807_v28 = vmul.f32 -0.001358992, %v11669_v13 }
 0x504   : > { %v11682_v51 = vsub.s32 %v11621_v15, %v1679_v35  ;;  %v2101_v30 = vshrl.u32 %v11595_v41, 16  ;;  %v4803_v53 = vsel %vm4680_vm5, %v4802_v18, %v13547_v59  ;;  %v4814_v21 = vmul.f32 -0.00019511016, %v11669_v13 }
 0x505   : > { %v2134_v29 = vadd.s32 %v2133_v6, %v2123_v27  ;;  %vm2829_vm14 = vcmp.gt.s32.totalorder %v2828_v22, 0  ;;  %v11690_v24 = vadd.f32 %v11416_v26, %v5947_v45  ;;  %v4501_v62 = vmul.f32 %v4500_v37, %v11569_v40 }
 0x506   : > { %v4509_v46 = vadd.f32 1.0, %v4508_v1  ;;  %v13551_v47 = vand.u32 2147483647, %v13549_v12  ;;  %v2112_v41 = vadd.s32 %v2111_v23, %v2101_v30  ;;  %v5265_v0 = vxor.u32 2147483648, %v5264_v61 }
 0x507   : > { %13550 = vst [vmem:[#allocation16_spill] sm:$0xff] %v11690_v24  ;;  %v5723_v11 = vadd.s32 127, %v5722_v8  ;;  %v2125_v5 = vshrl.u32 %v11626_v48, 16  ;;  %v2830_v35 = vsel %vm2829_vm14, %v2828_v22, 0  ;;  %v4805_v59 = vsel %vm11612_vm9, 0, %v4803_v53 }
 0x508   : > { %vm11695_vm2 = vcmp.le.f32.partialorder %v13551_v47, 0.7853982  ;;  %v4808_v26 = vadd.f32 0.041655596, %v4807_v28  ;;  %v1682_v18 = vsub.s32 0, %v11682_v51  ;;  %v2103_v40 = vshrl.u32 %v11632_v63, 16 }
 0x509   : > { %v4815_v34 = vadd.f32 0.008332121, %v4814_v21  ;;  %vm1681_vm5 = vcmp.lt.s32.totalorder %v11682_v51, 0  ;;  %v2080_v6 = vsel %vm2078_vm4, %v11505_v17, 2102212464  ;;  %v2135_v52 = vadd.s32 %v2134_v29, %v2125_v5 }
 0x50a   : > { %v5718_v36 = vsub.s32 32, %v11671_v9  ;;  %v2059_v45 = vshrl.u32 %v13224_v32, %v11467_v44  ;;  %v11711_v16 = vadd.s32 %v2112_v41, %v2103_v40  ;;  %v2832_v28 = vand.u32 31, %v2830_v35 }
 0x50b   : > { %v11713_v37 = vadd.f32 1.0, %v4501_v62  ;;  %v5266_v63 = vsel %vm5145_vm11, %v5265_v0, %v5264_v61  ;;  %v5702_v1 = vadd.s32 %v11390_v39, %v11374_v57  ;;  %v5724_v23 = vshll.u32 %v5723_v11, 23 }
 0x50c   : > { %v1683_v17 = vsel %vm1681_vm5, %v1682_v18, %v11682_v51  ;;  %v2079_v8 = vsel %vm2075_vm7, %v2059_v45, %v11500_v10  ;;  %v2081_v44 = vsel %vm2077_vm13, %v11502_v19, %v2080_v6  ;;  %v13554_v27 = vshll.u32 %v11626_v48, 16 }
 0x50d   : > { %v11732_v61 = vmul.f32 %v4509_v46, %v11473_v7  ;;  %v4816_v57 = vmul.f32 %v4815_v34, %v11669_v13  ;;  %v4822_v39 = vadd.s32 3, %v4805_v59  ;;  %v2139_v30 = vadd.s32 1, %v2135_v52 }
 0x50e   : > { %v11729_v22 = vadd.s32 %v11638_v54, %v13554_v27  ;;  %v4809_v53 = vmul.f32 %v4808_v26, %v11669_v13  ;;  %v5720_v21 = vshrl.u32 %v5702_v1, %v5718_v36  ;;  %v11738_v10 = vsub.s32 32, %v2832_v28 }
 0x50f   : > { %v11743_v19 = vsel %vm11695_vm2, %v13549_v12, %v5266_v63  ;;  %v5725_v54 = vor.u32 4788187, %v5724_v23  ;;  %v1684_v7 = vclz %v1683_v17  ;;  %v2082_v48 = vsel %vm2076_vm1, %v2079_v8, %v2081_v44  ;;  %v13555_v44 = vld [vmem:[#allocation37_spill] sm:$0xff] }
 0x510   : > { %vm2138_vm4 = vc.u32 %v11711_v16, %v11729_v22  ;;  %v11748_v62 = vand.u32 3, %v4512_v42  ;;  %v4519_v46 = vxor.u32 2147483648, %v11713_v37  ;;  %v5719_v47 = vshll.u32 %v11516_v56, %v11671_v9 }
 0x511   : > { %v4516_v41 = vxor.u32 2147483648, %v11732_v61  ;;  %v4817_v0 = vadd.f32 -0.16666654, %v4816_v57  ;;  %v11754_v11 = vand.u32 3, %v4822_v39  ;;  %v2140_v5 = vsel %vm2138_vm4, %v2139_v30, %v2135_v52 }
 0x512   : > { %v11758_v59 = vmul.f32 %v11743_v19, %v11743_v19  ;;  %v5721_v60 = vor.u32 %v5720_v21, %v5719_v47  ;;  %v2136_v26 = vmul.u32 %v11530_v20, %v2082_v48  ;;  %v2845_v42 = vshrl.u32 %v13482_v2, %v11738_v10 }
 0x513   : > { %v4810_v18 = vadd.f32 -0.4999988, %v4809_v53  ;;  %v5726_v40 = vand.u32 2147483647, %v5725_v54  ;;  %v6199_v34 = vadd.s32 4294967294, %v1684_v7  ;;  %v2848_v56 = vshrl.u32 %v13481_v33, %v11738_v10 }
 0x514   : > { %vm4515_vm7 = vcmp.eq.s32.totalorder %v11748_v62, 0  ;;  %v11766_v9 = vadd.s32 %v2140_v5, %v2136_v26  ;;  %v13160_v6 = vand.u32 2147483647, %v11645_v4  ;;  %v11769_v52 = vshrl.u32 %v2830_v35, 5  ;;  %v13565_v26 = vld [vmem:[#allocation12_spill] sm:$0xff] }
 0x515   : > { %v2844_v36 = vshll.u32 %v13483_v25, %v2832_v28  ;;  %v2836_v20 = vshrl.u32 %v13227_v14, %v11738_v10  ;;  %v2839_v45 = vshrl.u32 %v13228_v3, %v11738_v10  ;;  %v2842_v63 = vshrl.u32 %v13483_v25, %v11738_v10 }
 0x516   : > { %v2847_v1 = vshll.u32 %v13482_v2, %v2832_v28  ;;  %v4818_v23 = vmul.f32 %v4817_v0, %v11669_v13  ;;  %v5279_v17 = vmul.f32 -0.00019511016, %v11758_v59  ;;  %v5728_v8 = vcvt.s32.f32 %v5721_v60 }
 0x517   : > { %v2846_v35 = vor.u32 %v2845_v42, %v2844_v36  ;;  %vm5610_vm13 = vcmp.lt.s32.totalorder %v13555_v44, 0  ;;  %v2835_v27 = vshll.u32 %v13224_v32, %v2832_v28  ;;  %v2838_v57 = vshll.u32 %v13227_v14, %v2832_v28 }
 0x518   : > { %v2841_v39 = vshll.u32 %v13228_v3, %v2832_v28  ;;  %v2849_v30 = vor.u32 %v2848_v56, %v2847_v1  ;;  %vm4518_vm1 = vcmp.eq.s32.totalorder %v11748_v62, 2  ;;  %v5729_v53 = vmul.f32 %v5728_v8, %v5726_v40 }
 0x519   : > { %vm6200_vm0 = vcmp.lt.s32.totalorder %v6199_v34, 0  ;;  %v2142_v21 = vadd.s32 536870912, %v11766_v9  ;;  %v2825_v54 = vand.u32 8388607, %v13160_v6  ;;  %vm4514_vm9 = vcmp.lt.s32.totalorder %v11748_v62, 2 }
 0x51a   : > { %v11790_v7 = vor.u32 %v2836_v20, %v2835_v27  ;;  %v11792_v48 = vor.u32 %v2839_v45, %v2838_v57  ;;  %v11794_v47 = vor.u32 %v2842_v63, %v2841_v39  ;;  %vm2853_vm6 = vcmp.lt.s32.totalorder %v11769_v52, 4 }
 0x51b   : > { %v4811_v28 = vmul.f32 %v4810_v18, %v11669_v13  ;;  %v5267_v0 = vsub.s32 4, %v11343_v50  ;;  %v5272_v5 = vmul.f32 -0.001358992, %v11758_v59  ;;  %v13556_v60 = vand.u32 2147483647, %v13555_v44 }
 0x51c   : > { %v2859_v42 = vsel %vm2853_vm6, %v2846_v35, 920167782  ;;  %v4819_v40 = vadd.f32 1.0, %v4818_v23  ;;  %v5280_v56 = vadd.f32 0.008332121, %v5279_v17  ;;  %v11808_v36 = vsel %vm6200_vm0, 0, %v6199_v34 }
 0x51d   : > { %vm11802_vm3 = vcmp.le.f32.partialorder %v13556_v60, 0.7853982  ;;  %v2863_v13 = vsel %vm2853_vm6, %v2849_v30, 1326507024  ;;  %v5730_v18 = vxor.u32 2147483648, %v5729_v53  ;;  %v11812_v20 = vshrl.u32 %v2142_v21, 30  ;;  %v11864_v60 = vpop.f32.mrf.mxu2 }
 0x51e   : > { %vm2850_vm15 = vcmp.lt.s32.totalorder %v11769_v52, 1  ;;  %vm2852_vm8 = vcmp.lt.s32.totalorder %v11769_v52, 3  ;;  %vm4511_vm10 = vweird.f32 %v13527_v38  ;;  %v4517_v45 = vsel %vm4515_vm7, %v11713_v37, %v4516_v41  ;;  %13559 = vst [vmem:[#allocation9_spill] sm:$0xff] %v11864_v60 }
 0x51f   : > { %v2826_v63 = vor.u32 8388608, %v2825_v54  ;;  %v2858_v34 = vsel %vm2850_vm15, %v11790_v7, %v11792_v48  ;;  %v2860_v1 = vsel %vm2852_vm8, %v11794_v47, %v2859_v42  ;;  %v4812_v23 = vadd.f32 1.0, %v4811_v28 }
 0x520   : > { %v1692_v17 = vsub.s32 4294967266, %v11808_v36  ;;  %v2862_v8 = vsel %vm2850_vm15, %v11792_v48, %v11794_v47  ;;  %v2864_v41 = vsel %vm2852_vm8, %v2846_v35, %v2863_v13  ;;  %v4820_v27 = vmul.f32 %v4819_v40, %v11654_v55 }
 0x521   : > { %v5268_v57 = vsel %vm5145_vm11, %v5267_v0, %v11343_v50  ;;  %v5273_v39 = vadd.f32 0.041655596, %v5272_v5  ;;  %vm2851_vm12 = vcmp.lt.s32.totalorder %v11769_v52, 2  ;;  %v5281_v30 = vmul.f32 %v5280_v56, %v11758_v59 }
 0x522   : > { %v5731_v21 = vsel %vm5610_vm13, %v5730_v18, %v5729_v53  ;;  %v2144_v54 = vshll.u32 %v11812_v20, 30  ;;  %v11845_v28 = vsel %vm2851_vm12, %v2858_v34, %v2860_v1  ;;  %v4520_v50 = vsel %vm4518_vm1, %v4519_v46, %v11732_v61 }
 0x523   : > { %vm4825_vm11 = vcmp.eq.s32.totalorder %v11754_v11, 0  ;;  %v11855_v55 = vsel %vm2851_vm12, %v2862_v8, %v2864_v41  ;;  %v11857_v35 = vshll.u32 %v2826_v63, 8  ;;  %v4521_v53 = vsel %vm4514_vm9, %v4517_v45, %v4520_v50 }
 0x524   : > { %vm4824_vm14 = vcmp.lt.s32.totalorder %v11754_v11, 2  ;;  %v4829_v0 = vxor.u32 2147483648, %v4812_v23  ;;  %v5270_v37 = vsel %vm11695_vm2, 0, %v5268_v57  ;;  %v1693_v5 = vadd.s32 127, %v1692_v17 }
 0x525   : > { %v4826_v61 = vxor.u32 2147483648, %v4820_v27  ;;  %v5274_v46 = vmul.f32 %v5273_v39, %v11758_v59  ;;  %v11870_v42 = vsel %vm11802_vm3, %v13555_v44, %v5731_v21  ;;  %v13162_v62 = vshrl.u32 %v11845_v28, 16 }
 0x526   : > { %v5282_v40 = vadd.f32 -0.16666654, %v5281_v30  ;;  %v1688_v56 = vsub.s32 32, %v11808_v36  ;;  %v11875_v13 = vsub.s32 %v11766_v9, %v2144_v54  ;;  %v13161_v15 = vshrl.u32 %v11855_v55, 16  ;;  %v13560_v9 = vld [vmem:[#allocation19_spill] sm:$0xff] }
 0x527   : > { %vm4828_vm2 = vcmp.eq.s32.totalorder %v11754_v11, 2  ;;  %v5287_v18 = vadd.s32 3, %v5270_v37  ;;  %v2867_v45 = vand.u32 65535, %v11857_v35  ;;  %v3286_v63 = vand.u32 2139095040, %v11864_v60 }
 0x528   : > { %v11883_v34 = vsel %vm4511_vm10, nan, %v4521_v53  ;;  %v11887_v1 = vmul.f32 %v11870_v42, %v11870_v42  ;;  %v1672_v17 = vadd.s32 %v13560_v9, %v11532_v49  ;;  %v1694_v8 = vshll.u32 %v1693_v5, 23 }
 0x529   : > { %v4827_v41 = vsel %vm4825_vm11, %v4812_v23, %v4826_v61  ;;  %v4830_v57 = vsel %vm4828_vm2, %v4829_v0, %v4820_v27  ;;  %v5275_v39 = vadd.f32 -0.4999988, %v5274_v46  ;;  %v11895_v30 = vmul.u32 %v13162_v62, %v2867_v45 }
 0x52a   : > { %v5283_v38 = vmul.f32 %v5282_v40, %v11758_v59  ;;  %v1690_v21 = vshrl.u32 %v1672_v17, %v1688_v56  ;;  %v2147_v54 = vsub.s32 0, %v11875_v13  ;;  %v11901_v50 = vmul.u32 %v13161_v15, %v2867_v45 }
 0x52b   : > { %v11903_v49 = vand.u32 3, %v5287_v18  ;;  %vm2146_vm5 = vcmp.lt.s32.totalorder %v11875_v13, 0  ;;  %v2891_v23 = vand.u32 65535, %v11845_v28  ;;  %v3287_v27 = vshrl.u32 %v3286_v63, 23 }
 0x52c   : > { %v5744_v53 = vmul.f32 -0.00019511016, %v11887_v1  ;;  %v1689_v0 = vshll.u32 %v11682_v51, %v11808_v36  ;;  %v1695_v37 = vor.u32 4788187, %v1694_v8  ;;  %v2869_v5 = vand.u32 65535, %v11855_v55 }
 0x52d   : > { %v4831_v61 = vsel %vm4824_vm14, %v4827_v41, %v4830_v57  ;;  %v5276_v46 = vmul.f32 %v5275_v39, %v11758_v59  ;;  %v2868_v40 = vshrl.u32 %v11857_v35, 16  ;;  %v2897_v56 = vshll.u32 %v11895_v30, 16  ;;  %v13561_v39 = vld [vmem:[#allocation25_spill] sm:$0xff] }
 0x52e   : > { %v5284_v18 = vadd.f32 1.0, %v5283_v38  ;;  %v1691_v9 = vor.u32 %v1690_v21, %v1689_v0  ;;  %v2148_v63 = vsel %vm2146_vm5, %v2147_v54, %v11875_v13  ;;  %v2875_v17 = vshll.u32 %v11901_v50, 16 }
 0x52f   : > { %v5737_v51 = vmul.f32 -0.001358992, %v11887_v1  ;;  %v2893_v36 = vmul.u32 %v2891_v23, %v2867_v45  ;;  %v11919_v8 = vmul.u32 %v2891_v23, %v2868_v40  ;;  %v6231_v29 = vadd.s32 4294967169, %v3287_v27 }
 0x530   : > { %v5745_v11 = vadd.f32 0.008332121, %v5744_v53  ;;  %v1696_v41 = vand.u32 2147483647, %v1695_v37  ;;  %v2871_v57 = vmul.u32 %v2869_v5, %v2867_v45  ;;  %v11921_v59 = vmul.u32 %v2869_v5, %v2868_v40 }
 0x531   : > { %vm4821_vm4 = vweird.f32 %v13537_v31  ;;  %v5732_v38 = vsub.s32 4, %v13561_v39  ;;  %v2149_v21 = vclz %v2148_v63  ;;  %vm2901_vm7 = vc.u32 %v2893_v36, %v2897_v56 }
 0x532   : > { %v11925_v54 = vadd.s32 %v2897_v56, %v2893_v36  ;;  %v5285_v0 = vmul.f32 %v5284_v18, %v11743_v19  ;;  %v1698_v6 = vcvt.s32.f32 %v1691_v9  ;;  %vm2879_vm1 = vc.u32 %v2871_v57, %v2875_v17 }
 0x533   : > { %v2881_v23 = vadd.s32 %v2875_v17, %v2871_v57  ;;  %v5277_v15 = vadd.f32 1.0, %v5276_v46  ;;  %v5738_v27 = vadd.f32 0.041655596, %v5737_v51  ;;  %v2899_v53 = vshll.u32 %v11919_v8, 16 }
 0x534   : > { %v3293_v45 = vadd.s32 1, %v6231_v29  ;;  %v5746_v37 = vmul.f32 %v5745_v11, %v11887_v1  ;;  %v1699_v5 = vmul.f32 %v1698_v6, %v1696_v41  ;;  %v2877_v62 = vshll.u32 %v11921_v59, 16 }
 0x535   : > { %v2902_v63 = vsel %vm2901_vm7, 1, %v13223_v58  ;;  %v6208_v24 = vadd.s32 4294967294, %v2149_v21  ;;  %v2880_v56 = vsel %vm2879_vm1, 1, %v13223_v58  ;;  %v13562_v19 = vshrl.u32 %v11845_v28, 16 }
 0x536   : > { %vm2905_vm0 = vc.u32 %v11925_v54, %v2899_v53  ;;  %vm5289_vm9 = vcmp.lt.s32.totalorder %v11903_v49, 2  ;;  %v5291_v29 = vxor.u32 2147483648, %v5285_v0  ;;  %v13563_v46 = vshrl.u32 %v11855_v55, 16 }
 0x537   : > { %v2896_v18 = vmul.u32 %v13562_v19, %v2868_v40  ;;  %vm2883_vm10 = vc.u32 %v2881_v23, %v2877_v62  ;;  %vm5286_vm11 = vweird.f32 %v13549_v12  ;;  %v5294_v9 = vxor.u32 2147483648, %v5277_v15  ;;  %v13564_v23 = vld [vmem:[#allocation45_spill] sm:$0xff] }
 0x538   : > { %v2874_v6 = vmul.u32 %v13563_v46, %v2868_v40  ;;  %v5733_v17 = vsel %vm5610_vm13, %v5732_v38, %v13561_v39  ;;  %vm3294_vm14 = vcmp.gt.s32.totalorder %v3293_v45, 0  ;;  %v5739_v51 = vmul.f32 %v5738_v27, %v11887_v1 }
 0x539   : > { %v2904_v28 = vadd.s32 %v2902_v63, %v2896_v18  ;;  %v1700_v36 = vxor.u32 2147483648, %v1699_v5  ;;  %v2906_v41 = vsel %vm2905_vm0, 1, %v13223_v58  ;;  %vm5290_vm2 = vcmp.eq.s32.totalorder %v11903_v49, 0 }
 0x53a   : > { %v2882_v11 = vadd.s32 %v2880_v56, %v2874_v6  ;;  %v5747_v55 = vadd.f32 -0.16666654, %v5746_v37  ;;  %vm6209_vm5 = vcmp.lt.s32.totalorder %v6208_v24, 0  ;;  %v2884_v62 = vsel %vm2883_vm10, 1, %v13223_v58 }
 0x53b   : > { %v4832_v40 = vsel %vm4821_vm4, nan, %v4831_v61  ;;  %v5292_v57 = vsel %vm5290_vm2, %v5277_v15, %v5291_v29  ;;  %vm5293_vm13 = vcmp.eq.s32.totalorder %v11903_v49, 2  ;;  %v3295_v39 = vsel %vm3294_vm14, %v3293_v45, 0 }
 0x53c   : > { %v5295_v38 = vsel %vm5293_vm13, %v5294_v9, %v5285_v0  ;;  %v5735_v21 = vsel %vm11802_vm3, 0, %v5733_v17  ;;  %vm1580_vm7 = vcmp.lt.s32.totalorder %v13564_v23, 0  ;;  %v2908_v27 = vadd.s32 %v2906_v41, %v2904_v28 }
 0x53d   : > { %v5740_v63 = vadd.f32 -0.4999988, %v5739_v51  ;;  %v1701_v37 = vsel %vm1580_vm7, %v1700_v36, %v1699_v5  ;;  %v11957_v56 = vsel %vm6209_vm5, 0, %v6208_v24  ;;  %v2886_v19 = vadd.s32 %v2884_v62, %v2882_v11  ;;  %v13569_v5 = vld [vmem:[#allocation21_spill] sm:$0xff] }
 0x53e   : > { %v5296_v31 = vsel %vm5289_vm9, %v5292_v57, %v5295_v38  ;;  %v5748_v15 = vmul.f32 %v5747_v55, %v11887_v1  ;;  %v2898_v61 = vshrl.u32 %v11895_v30, 16  ;;  %v11963_v0 = vand.u32 31, %v3295_v39  ;;  %v13572_v38 = vld [vmem:[#allocation8_spill] sm:$0xff] }
 0x53f   : > { %v11967_v45 = vmul.f32 %v11883_v34, %v13565_v26  ;;  %v5752_v18 = vadd.s32 3, %v5735_v21  ;;  %v13566_v29 = vand.u32 2147483647, %v13564_v23  ;;  %v2876_v49 = vshrl.u32 %v11901_v50, 16  ;;  %v12037_v26 = vpop.f32.mrf.mxu3 }
 0x540   : > { %v11977_v46 = vmul.f32 %v4832_v40, %v13569_v5  ;;  %v2157_v34 = vsub.s32 4294967266, %v11957_v56  ;;  %v2909_v6 = vadd.s32 %v2908_v27, %v2898_v61  ;;  %v5297_v9 = vsel %vm5286_vm11, nan, %v5296_v31  ;;  %13575 = vst [vmem:[#allocation11_spill] sm:$0xff] %v12037_v26 }
 0x541   : > { %vm11971_vm3 = vcmp.le.f32.partialorder %v13566_v29, 0.7853982  ;;  %v5741_v17 = vmul.f32 %v5740_v63, %v11887_v1  ;;  %v2855_v50 = vsel %vm2853_vm6, %v11794_v47, 2102212464  ;;  %v2887_v28 = vadd.s32 %v2886_v19, %v2876_v49 }
 0x542   : > { %13570 = vst [vmem:[#allocation26_spill] sm:$0xff] %v11977_v46  ;;  %v11982_v30 = vsel %vm11971_vm3, %v13564_v23, %v1701_v37  ;;  %v5749_v51 = vadd.f32 1.0, %v5748_v15  ;;  %v2834_v36 = vshrl.u32 %v13224_v32, %v11738_v10  ;;  %v2900_v11 = vshrl.u32 %v11919_v8, 16 }
 0x543   : > { %13571 = vst [vmem:[#allocation27_spill] sm:$0xff] %v11982_v30  ;;  %v11995_v41 = vsub.s32 32, %v11963_v0  ;;  %v11997_v55 = vand.u32 3, %v5752_v18  ;;  %v12001_v12 = vmul.f32 %v11982_v30, %v11982_v30  ;;  %v2878_v1 = vshrl.u32 %v11921_v59, 16 }
 0x544   : > { %v13165_v47 = vand.u32 2147483647, %v11864_v60  ;;  %v2158_v62 = vadd.s32 127, %v2157_v34  ;;  %v2854_v10 = vsel %vm2850_vm15, %v2834_v36, %v11790_v7  ;;  %v2856_v40 = vsel %vm2852_vm8, %v11792_v48, %v2855_v50 }
 0x545   : > { %v2910_v57 = vadd.s32 %v2909_v6, %v2900_v11  ;;  %v12012_v21 = vmul.f32 %v5297_v9, %v13572_v38  ;;  %v12014_v27 = vadd.f32 1.0, %v5741_v17  ;;  %v1702_v63 = vsub.s32 4, %v11656_v43 }
 0x546   : > { %v12017_v59 = vadd.s32 %v2887_v28, %v2878_v1  ;;  %v12020_v37 = vmul.f32 %v5749_v51, %v11870_v42  ;;  %v2137_v7 = vadd.s32 %v11729_v22, %v11711_v16  ;;  %v2153_v19 = vsub.s32 32, %v11957_v56 }
 0x547   : > { %v3313_v48 = vshrl.u32 %v13481_v33, %v11995_v41  ;;  %v1707_v31 = vmul.f32 -0.001358992, %v12001_v12  ;;  %v2857_v15 = vsel %vm2851_vm12, %v2854_v10, %v2856_v40  ;;  %v12033_v61 = vadd.s32 %v11925_v54, %v2899_v53 }
 0x548   : > { %13573 = vst [vmem:[#allocation14_spill] sm:$0xff] %v12017_v59  ;;  %v3290_v42 = vand.u32 8388607, %v13165_v47  ;;  %v2159_v16 = vshll.u32 %v2158_v62, 23  ;;  %v2914_v22 = vadd.s32 1, %v2910_v57  ;;  %v12039_v18 = vshrl.u32 %v3295_v39, 5 }
 0x549   : > { %13574 = vst [vmem:[#allocation44_spill] sm:$0xff] %v12033_v61  ;;  %v3312_v29 = vshll.u32 %v13482_v2, %v11963_v0  ;;  %vm2913_vm6 = vc.u32 %v12017_v59, %v12033_v61  ;;  %v3304_v52 = vshrl.u32 %v13228_v3, %v11995_v41  ;;  %v3307_v8 = vshrl.u32 %v13483_v25, %v11995_v41 }
 0x54a   : > { %v3310_v54 = vshrl.u32 %v13482_v2, %v11995_v41  ;;  %v1714_v53 = vmul.f32 -0.00019511016, %v12001_v12  ;;  %v2155_v49 = vshrl.u32 %v2137_v7, %v2153_v19  ;;  %v4061_v5 = vand.u32 2139095040, %v12037_v26 }
 0x54b   : > { %v3314_v39 = vor.u32 %v3313_v48, %v3312_v29  ;;  %v2154_v34 = vshll.u32 %v11875_v13, %v11957_v56  ;;  %v3303_v6 = vshll.u32 %v13227_v14, %v11963_v0  ;;  %v3306_v9 = vshll.u32 %v13228_v3, %v11963_v0 }
 0x54c   : > { %v3309_v17 = vshll.u32 %v13483_v25, %v11963_v0  ;;  %v2160_v50 = vor.u32 4788187, %v2159_v16  ;;  %v2911_v28 = vmul.u32 %v11857_v35, %v2857_v15  ;;  %v2915_v51 = vsel %vm2913_vm6, %v2914_v22, %v2910_v57 }
 0x54d   : > { %v4062_v36 = vshrl.u32 %v4061_v5, 23  ;;  %v12062_v11 = vor.u32 %v3304_v52, %v3303_v6  ;;  %v12064_v1 = vor.u32 %v3307_v8, %v3306_v9  ;;  %vm3318_vm15 = vcmp.lt.s32.totalorder %v12039_v18, 4  ;;  %v13577_v9 = vld [vmem:[#allocation6_spill] sm:$0xff] }
 0x54e   : > { %v3311_v62 = vor.u32 %v3310_v54, %v3309_v17  ;;  %v2156_v13 = vor.u32 %v2155_v49, %v2154_v34  ;;  %v3301_v56 = vshrl.u32 %v13227_v14, %v11995_v41  ;;  %v3328_v10 = vsel %vm3318_vm15, %v3314_v39, 1326507024 }
 0x54f   : > { %v6246_v40 = vadd.s32 4294967169, %v4062_v36  ;;  %vm5755_vm8 = vcmp.eq.s32.totalorder %v11997_v55, 0  ;;  %vm5758_vm12 = vcmp.eq.s32.totalorder %v11997_v55, 2  ;;  %v5759_v35 = vxor.u32 2147483648, %v12014_v27 }
 0x550   : > { %v1708_v57 = vadd.f32 0.041655596, %v1707_v31  ;;  %v12074_v38 = vadd.s32 %v2915_v51, %v2911_v28  ;;  %v3291_v7 = vor.u32 8388608, %v3290_v42  ;;  %v3300_v19 = vshll.u32 %v13224_v32, %v11963_v0  ;;  %v13579_v51 = vld [vmem:[#allocation2_spill] sm:$0xff] }
 0x551   : > { %vm3315_vm4 = vcmp.lt.s32.totalorder %v12039_v18, 1  ;;  %vm3317_vm1 = vcmp.lt.s32.totalorder %v12039_v18, 3  ;;  %v4068_v48 = vadd.s32 1, %v6246_v40  ;;  %v1715_v15 = vadd.f32 0.008332121, %v1714_v53 }
 0x552   : > { %v2161_v16 = vand.u32 2147483647, %v2160_v50  ;;  %v3327_v22 = vsel %vm3315_vm4, %v12062_v11, %v12064_v1  ;;  %v3329_v31 = vsel %vm3317_vm1, %v3311_v62, %v3328_v10  ;;  %v1703_v42 = vsel %vm1580_vm7, %v1702_v63, %v11656_v43 }
 0x553   : > { %v2163_v0 = vcvt.s32.f32 %v2156_v13  ;;  %v12089_v29 = vor.u32 %v3301_v56, %v3300_v19  ;;  %vm4069_vm0 = vcmp.gt.s32.totalorder %v4068_v48, 0  ;;  %v2917_v52 = vadd.s32 536870912, %v12074_v38 }
 0x554   : > { %vm3316_vm9 = vcmp.lt.s32.totalorder %v12039_v18, 2  ;;  %v3324_v8 = vsel %vm3318_vm15, %v3311_v62, 920167782  ;;  %v4070_v54 = vsel %vm4069_vm0, %v4068_v48, 0  ;;  %v5756_v53 = vxor.u32 2147483648, %v12020_v37 }
 0x555   : > { %v1709_v49 = vmul.f32 %v1708_v57, %v12001_v12  ;;  %v12099_v39 = vsel %vm3316_vm9, %v3327_v22, %v3329_v31  ;;  %v4072_v43 = vand.u32 31, %v4070_v54  ;;  %v1705_v63 = vsel %vm11971_vm3, 0, %v1703_v42 }
 0x556   : > { %v1716_v5 = vmul.f32 %v1715_v15, %v12001_v12  ;;  %v12104_v34 = vmul.f32 %v2163_v0, %v2161_v16  ;;  %v12106_v6 = vshll.u32 %v3291_v7, 8  ;;  %v12110_v17 = vadd.f32 %v13577_v9, %v12012_v21 }
 0x557   : > { %v3323_v50 = vsel %vm3315_vm4, %v12089_v29, %v12062_v11  ;;  %v3325_v24 = vsel %vm3317_vm1, %v12064_v1, %v3324_v8  ;;  %v12119_v28 = vsub.s32 32, %v4072_v43  ;;  %v12123_v36 = vadd.f32 %v13579_v51, %v11967_v45 }
 0x558   : > { %13576 = vst [vmem:[#allocation30_spill] sm:$0xff] %v12106_v6  ;;  %v12125_v62 = vshrl.u32 %v2917_v52, 30  ;;  %v13167_v21 = vshrl.u32 %v12099_v39, 16  ;;  %v13166_v13 = vand.u32 2147483647, %v12037_v26  ;;  %v12132_v56 = vsel %vm5755_vm8, %v12014_v27, %v5756_v53 }
 0x559   : > { %13578 = vst [vmem:[#allocation20_spill] sm:$0xff] %v12110_v17  ;;  %v12137_v10 = vsel %vm5758_vm12, %v5759_v35, %v12020_v37  ;;  %v12139_v40 = vadd.f32 -0.4999988, %v1709_v49  ;;  %v12141_v45 = vadd.s32 3, %v1705_v63  ;;  %v12143_v57 = vadd.f32 -0.16666654, %v1716_v5 }
 0x55a   : > { %13580 = vst [vmem:[#allocation24_spill] sm:$0xff] %v12123_v36  ;;  %v12148_v19 = vsel %vm3316_vm9, %v3323_v50, %v3325_v24  ;;  %v3332_v27 = vand.u32 65535, %v12106_v6  ;;  %v12152_v48 = vshrl.u32 %v12106_v6, 16  ;;  %v4076_v37 = vshrl.u32 %v13227_v14, %v12119_v28  ;;  %v12179_v50 = vpop.f32.mrf.mxu2 }
 0x55b   : > { %13581 = vst [vmem:[#allocation7_spill] sm:$0xff] %v12125_v62  ;;  %v4079_v35 = vshrl.u32 %v13228_v3, %v12119_v28  ;;  %v4085_v15 = vshrl.u32 %v13482_v2, %v12119_v28  ;;  %v2919_v16 = vshll.u32 %v12125_v62, 30  ;;  %v4065_v31 = vand.u32 8388607, %v13166_v13 }
 0x55c   : > { %v12163_v22 = vmul.u32 %v13167_v21, %v3332_v27  ;;  %v4082_v42 = vshrl.u32 %v13483_v25, %v12119_v28  ;;  %v3357_v0 = vshrl.u32 %v12148_v19, 16  ;;  %v4075_v52 = vshll.u32 %v13224_v32, %v4072_v43 }
 0x55d   : > { %v4078_v8 = vshll.u32 %v13227_v14, %v4072_v43  ;;  %v4084_v53 = vshll.u32 %v13483_v25, %v4072_v43  ;;  %v3334_v49 = vand.u32 65535, %v12099_v39  ;;  %v12174_v63 = vshrl.u32 %v4070_v54, 5 }
 0x55e   : > { %v4081_v5 = vshll.u32 %v13228_v3, %v4072_v43  ;;  %v4088_v9 = vshrl.u32 %v13481_v33, %v12119_v28  ;;  %v12183_v24 = vshrl.u32 %v13224_v32, %v11995_v41  ;;  %v12185_v51 = vor.u32 %v4076_v37, %v4075_v52 }
 0x55f   : > { %v12187_v47 = vor.u32 %v4079_v35, %v4078_v8  ;;  %v4086_v13 = vor.u32 %v4085_v15, %v4084_v53  ;;  %v3340_v7 = vshll.u32 %v12163_v22, 16  ;;  %v4066_v54 = vor.u32 8388608, %v4065_v31 }
 0x560   : > { %v12190_v21 = vor.u32 %v4082_v42, %v4081_v5  ;;  %v4087_v60 = vshll.u32 %v13482_v2, %v4072_v43  ;;  %v12194_v26 = vsub.s32 %v12074_v38, %v2919_v16  ;;  %v3356_v62 = vand.u32 65535, %v12148_v19 }
 0x561   : > { %v12197_v4 = vmul.u32 %v3357_v0, %v3332_v27  ;;  %v4526_v41 = vand.u32 2139095040, %v12179_v50  ;;  %v3336_v37 = vmul.u32 %v3334_v49, %v3332_v27  ;;  %vm4090_vm10 = vcmp.lt.s32.totalorder %v12174_v63, 1 }
 0x562   : > { %13582 = vst [vmem:[#allocation4_spill] sm:$0xff] %v12194_v26  ;;  %v4089_v35 = vor.u32 %v4088_v9, %v4087_v60  ;;  %vm4093_vm11 = vcmp.lt.s32.totalorder %v12174_v63, 4  ;;  %v12203_v15 = vmul.u32 %v3334_v49, %v12152_v48  ;;  %vm4092_vm14 = vcmp.lt.s32.totalorder %v12174_v63, 3 }
 0x563   : > { %v4098_v38 = vsel %vm4090_vm10, %v12185_v51, %v12187_v47  ;;  %v4099_v43 = vsel %vm4093_vm11, %v4086_v13, 920167782  ;;  %vm12212_vm2 = vc.u32 %v3336_v37, %v3340_v7  ;;  %v3346_v60 = vadd.s32 %v3340_v7, %v3336_v37 }
 0x564   : > { %v4100_v16 = vsel %vm4092_vm14, %v12190_v21, %v4099_v43  ;;  %v12219_v31 = vshll.u32 %v4066_v54, 8  ;;  %v3362_v42 = vshll.u32 %v12197_v4, 16  ;;  %vm4091_vm5 = vcmp.lt.s32.totalorder %v12174_v63, 2 }
 0x565   : > { %v4102_v52 = vsel %vm4090_vm10, %v12187_v47, %v12190_v21  ;;  %v4527_v8 = vshrl.u32 %v4526_v41, 23  ;;  %vm2921_vm13 = vcmp.lt.s32.totalorder %v12194_v26, 0  ;;  %v2922_v7 = vsub.s32 0, %v12194_v26 }
 0x566   : > { %v4101_v53 = vsel %vm4091_vm5, %v4098_v38, %v4100_v16  ;;  %v4103_v49 = vsel %vm4093_vm11, %v4089_v35, 1326507024  ;;  %v3342_v5 = vshll.u32 %v12203_v15, 16  ;;  %v3358_v9 = vmul.u32 %v3356_v62, %v3332_v27 }
 0x567   : > { %v12235_v54 = vmul.u32 %v3356_v62, %v12152_v48  ;;  %v4104_v37 = vsel %vm4092_vm14, %v4086_v13, %v4103_v49  ;;  %v3345_v41 = vsel %vm12212_vm2, 1, %v13223_v58  ;;  %v4107_v38 = vand.u32 65535, %v12219_v31 }
 0x568   : > { %v4105_v43 = vsel %vm4091_vm5, %v4102_v52, %v4104_v37  ;;  %v4132_v16 = vshrl.u32 %v4101_v53, 16  ;;  %vm12245_vm7 = vc.u32 %v3346_v60, %v3342_v5  ;;  %vm3366_vm3 = vc.u32 %v3358_v9, %v3362_v42 }
 0x569   : > { %v4131_v62 = vand.u32 65535, %v4101_v53  ;;  %v6255_v27 = vadd.s32 4294967169, %v4527_v8  ;;  %v4108_v36 = vshrl.u32 %v12219_v31, 16  ;;  %v4109_v13 = vand.u32 65535, %v4105_v43 }
 0x56a   : > { %v4110_v49 = vshrl.u32 %v4105_v43, 16  ;;  %v4134_v17 = vmul.u32 %v4132_v16, %v4107_v38  ;;  %v12253_v19 = vsel %vm2921_vm13, %v2922_v7, %v12194_v26  ;;  %v13587_v52 = vshrl.u32 %v12099_v39, 16 }
 0x56b   : > { %v3361_v5 = vmul.u32 %v3357_v0, %v12152_v48  ;;  %v12259_v37 = vadd.s32 %v3362_v42, %v3358_v9  ;;  %v13182_v8 = vshll.u32 %v12235_v54, 16  ;;  %v3367_v53 = vsel %vm3366_vm3, 1, %v13223_v58 }
 0x56c   : > { %v3339_v60 = vmul.u32 %v13587_v52, %v12152_v48  ;;  %v4112_v46 = vmul.u32 %v4110_v49, %v4107_v38  ;;  %v4113_v43 = vmul.u32 %v4109_v13, %v4108_v36  ;;  %v3349_v7 = vsel %vm12245_vm7, 1, %v13223_v58 }
 0x56d   : > { %v4135_v26 = vmul.u32 %v4131_v62, %v4108_v36  ;;  %v4137_v61 = vshll.u32 %v4134_v17, 16  ;;  %v4111_v59 = vmul.u32 %v4109_v13, %v4107_v38  ;;  %v4133_v52 = vmul.u32 %v4131_v62, %v4107_v38 }
 0x56e   : > { %v3347_v23 = vadd.s32 %v3345_v41, %v3339_v60  ;;  %v4115_v39 = vshll.u32 %v4112_v46, 16  ;;  %v4533_v30 = vadd.s32 1, %v6255_v27  ;;  %v3369_v48 = vadd.s32 %v3367_v53, %v3361_v5 }
 0x56f   : > { %vm12269_vm6 = vc.u32 %v12259_v37, %v13182_v8  ;;  %v4114_v42 = vmul.u32 %v4110_v49, %v4108_v36  ;;  %v4136_v9 = vmul.u32 %v4132_v16, %v4108_v36  ;;  %v4117_v41 = vshll.u32 %v4113_v43, 16 }
 0x570   : > { %vm4119_vm8 = vc.u32 %v4111_v59, %v4115_v39  ;;  %v4121_v35 = vadd.s32 %v4115_v39, %v4111_v59  ;;  %vm4141_vm12 = vc.u32 %v4133_v52, %v4137_v61  ;;  %v4139_v13 = vshll.u32 %v4135_v26, 16 }
 0x571   : > { %v4120_v60 = vsel %vm4119_vm8, 1, %v13223_v58  ;;  %v4142_v38 = vsel %vm4141_vm12, 1, %v13223_v58  ;;  %v4143_v62 = vadd.s32 %v4137_v61, %v4133_v52  ;;  %vm4534_vm2 = vcmp.gt.s32.totalorder %v4533_v30, 0 }
 0x572   : > { %v4122_v27 = vadd.s32 %v4120_v60, %v4114_v42  ;;  %vm4123_vm0 = vc.u32 %v4121_v35, %v4117_v41  ;;  %v4144_v5 = vadd.s32 %v4142_v38, %v4136_v9  ;;  %v3341_v53 = vshrl.u32 %v12163_v22, 16 }
 0x573   : > { %v3371_v36 = vsel %vm12269_vm6, 1, %v13223_v58  ;;  %v4124_v16 = vsel %vm4123_vm0, 1, %v13223_v58  ;;  %vm4145_vm13 = vc.u32 %v4143_v62, %v4139_v13  ;;  %v4116_v59 = vshrl.u32 %v4112_v46, 16 }
 0x574   : > { %v4126_v49 = vadd.s32 %v4124_v16, %v4122_v27  ;;  %v4146_v39 = vsel %vm4145_vm13, 1, %v13223_v58  ;;  %v4535_v8 = vsel %vm4534_vm2, %v4533_v30, 0  ;;  %v3351_v6 = vadd.s32 %v3349_v7, %v3347_v23 }
 0x575   : > { %v4138_v61 = vshrl.u32 %v4134_v17, 16  ;;  %v4148_v52 = vadd.s32 %v4146_v39, %v4144_v5  ;;  %v4537_v42 = vand.u32 31, %v4535_v8  ;;  %v3373_v9 = vadd.s32 %v3371_v36, %v3369_v48 }
 0x576   : > { %v4118_v41 = vshrl.u32 %v4113_v43, 16  ;;  %v4127_v35 = vadd.s32 %v4126_v49, %v4116_v59  ;;  %v13184_v22 = vand.u32 2147483647, %v12179_v50  ;;  %v4095_v0 = vsel %vm4093_vm11, %v12190_v21, 2102212464  ;;  %v13590_v59 = vld [vmem:[#allocation38_spill] sm:$0xff] }
 0x577   : > { %v4140_v60 = vshrl.u32 %v4135_v26, 16  ;;  %v4149_v38 = vadd.s32 %v4148_v52, %v4138_v61  ;;  %v12285_v46 = vsub.s32 32, %v4537_v42  ;;  %v3320_v23 = vsel %vm3318_vm15, %v12064_v1, 2102212464 }
 0x578   : > { %v3363_v30 = vshrl.u32 %v12197_v4, 16  ;;  %v4074_v17 = vshrl.u32 %v13224_v32, %v12119_v28  ;;  %v12293_v43 = vadd.s32 %v4127_v35, %v4118_v41  ;;  %v2924_v7 = vclz %v12253_v19 }
 0x579   : > { %v3343_v48 = vshrl.u32 %v12203_v15, 16  ;;  %v3352_v21 = vadd.s32 %v3351_v6, %v3341_v53  ;;  %v4150_v26 = vadd.s32 %v4149_v38, %v4140_v60  ;;  %v4096_v4 = vsel %vm4092_vm14, %v12187_v47, %v4095_v0 }
 0x57a   : > { %v3374_v27 = vadd.s32 %v3373_v9, %v3363_v30  ;;  %v4094_v5 = vsel %vm4090_vm10, %v4074_v17, %v12185_v51  ;;  %v12303_v1 = vadd.s32 %v4143_v62, %v4139_v13  ;;  %v4530_v36 = vand.u32 8388607, %v13184_v22 }
 0x57b   : > { %v4154_v28 = vadd.s32 1, %v4150_v26  ;;  %v4544_v15 = vshrl.u32 %v13228_v3, %v12285_v46  ;;  %v4547_v6 = vshrl.u32 %v13483_v25, %v12285_v46  ;;  %v4541_v51 = vshrl.u32 %v13227_v14, %v12285_v46 }
 0x57c   : > { %vm4153_vm15 = vc.u32 %v12293_v43, %v12303_v1  ;;  %v4549_v47 = vshll.u32 %v13483_v25, %v4537_v42  ;;  %v4550_v19 = vshrl.u32 %v13482_v2, %v12285_v46  ;;  %vm5754_vm10 = vcmp.lt.s32.totalorder %v11997_v55, 2 }
 0x57d   : > { %v4097_v13 = vsel %vm4091_vm5, %v4094_v5, %v4096_v4  ;;  %v12321_v62 = vshrl.u32 %v4535_v8, 5  ;;  %v4543_v53 = vshll.u32 %v13227_v14, %v4537_v42  ;;  %v4546_v16 = vshll.u32 %v13228_v3, %v4537_v42 }
 0x57e   : > { %vm2045_vm11 = vcmp.lt.s32.totalorder %v13590_v59, 0  ;;  %v4540_v49 = vshll.u32 %v13224_v32, %v4537_v42  ;;  %v4551_v39 = vor.u32 %v4550_v19, %v4549_v47  ;;  %v4552_v61 = vshll.u32 %v13482_v2, %v4537_v42 }
 0x57f   : > { %v4553_v52 = vshrl.u32 %v13481_v33, %v12285_v46  ;;  %v3365_v9 = vshrl.u32 %v12235_v54, 16  ;;  %v4155_v63 = vsel %vm4153_vm15, %v4154_v28, %v4150_v26  ;;  %v12331_v41 = vor.u32 %v4544_v15, %v4543_v53 }
 0x580   : > { %v12333_v8 = vor.u32 %v4547_v6, %v4546_v16  ;;  %vm5751_vm14 = vweird.f32 %v13555_v44  ;;  %v4151_v35 = vmul.u32 %v12219_v31, %v4097_v13  ;;  %v4531_v0 = vor.u32 8388608, %v4530_v36 }
 0x581   : > { %v12337_v60 = vor.u32 %v4541_v51, %v4540_v49  ;;  %v4554_v38 = vor.u32 %v4553_v52, %v4552_v61  ;;  %v3319_v42 = vsel %vm3315_vm4, %v12183_v24, %v12089_v29  ;;  %v3321_v30 = vsel %vm3317_vm1, %v12062_v11, %v3320_v23 }
 0x582   : > { %v3375_v17 = vadd.s32 %v3374_v27, %v3365_v9  ;;  %vm4558_vm5 = vcmp.lt.s32.totalorder %v12321_v62, 4  ;;  %v13591_v26 = vand.u32 2147483647, %v13590_v59  ;;  %v12353_v5 = vadd.s32 %v3352_v21, %v3343_v48 }
 0x583   : > { %v12355_v4 = vadd.s32 %v4155_v63, %v4151_v35  ;;  %vm4555_vm3 = vcmp.lt.s32.totalorder %v12321_v62, 1  ;;  %v4564_v29 = vsel %vm4558_vm5, %v4551_v39, 920167782  ;;  %v6223_v24 = vadd.s32 4294967294, %v2924_v7  ;;  %v13596_v63 = vld [vmem:[#allocation30_spill] sm:$0xff] }
 0x584   : > { %vm12349_vm7 = vcmp.le.f32.partialorder %v13591_v26, 0.7853982  ;;  %v13594_v11 = vshll.u32 %v12235_v54, 16  ;;  %vm4557_vm4 = vcmp.lt.s32.totalorder %v12321_v62, 3  ;;  %v4567_v48 = vsel %vm4555_vm3, %v12331_v41, %v12333_v8 }
 0x585   : > { %v4563_v21 = vsel %vm4555_vm3, %v12337_v60, %v12331_v41  ;;  %v4565_v7 = vsel %vm4557_vm4, %v12333_v8, %v4564_v29  ;;  %v4568_v54 = vsel %vm4558_vm5, %v4554_v38, 1326507024  ;;  %v1718_v27 = vmul.f32 %v12143_v57, %v12001_v12 }
 0x586   : > { %v12363_v23 = vadd.s32 %v12259_v37, %v13594_v11  ;;  %v12379_v37 = vshll.u32 %v4531_v0, 8  ;;  %v3379_v28 = vadd.s32 1, %v3375_v17  ;;  %vm4556_vm1 = vcmp.lt.s32.totalorder %v12321_v62, 2 }
 0x587   : > { %v4569_v36 = vsel %vm4557_vm4, %v4551_v39, %v4568_v54  ;;  %v5761_v15 = vsel %vm5754_vm10, %v12132_v56, %v12137_v10  ;;  %v4157_v6 = vadd.s32 536870912, %v12355_v4  ;;  %v1711_v57 = vmul.f32 %v12139_v40, %v12001_v12 }
 0x588   : > { %vm3378_vm6 = vc.u32 %v12353_v5, %v12363_v23  ;;  %v4570_v51 = vsel %vm4556_vm1, %v4567_v48, %v4569_v36  ;;  %v13595_v47 = vxor.u32 2147483648, %v12104_v34  ;;  %v3322_v55 = vsel %vm3316_vm9, %v3319_v42, %v3321_v30 }
 0x589   : > { %v4566_v56 = vsel %vm4556_vm1, %v4563_v21, %v4565_v7  ;;  %vm6224_vm8 = vcmp.lt.s32.totalorder %v6223_v24, 0  ;;  %v4572_v10 = vand.u32 65535, %v12379_v37  ;;  %v4574_v13 = vand.u32 65535, %v4570_v51 }
 0x58a   : > { %v2166_v19 = vsel %vm2045_vm11, %v13595_v47, %v12104_v34  ;;  %v4575_v53 = vshrl.u32 %v4570_v51, 16  ;;  %v5762_v12 = vsel %vm5751_vm14, nan, %v5761_v15  ;;  %v1719_v40 = vadd.f32 1.0, %v1718_v27 }
 0x58b   : > { %v12410_v16 = vand.u32 3, %v12141_v45  ;;  %v3380_v49 = vsel %vm3378_vm6, %v3379_v28, %v3375_v17  ;;  %v12412_v34 = vshrl.u32 %v4157_v6, 30  ;;  %v4573_v18 = vshrl.u32 %v12379_v37, 16  ;;  %v13597_v45 = vld [vmem:[#allocation13_spill] sm:$0xff]  ;;  %v13598_v17 = vld [vmem:[#allocation27_spill] sm:$0xff] }
 0x58c   : > { %v4577_v39 = vmul.u32 %v4575_v53, %v4572_v10  ;;  %v4597_v61 = vshrl.u32 %v4566_v56, 16  ;;  %v2167_v52 = vsub.s32 4, %v11812_v20  ;;  %v12419_v9 = vsel %vm12349_vm7, %v13590_v59, %v2166_v19 }
 0x58d   : > { %v12421_v44 = vsel %vm6224_vm8, 0, %v6223_v24  ;;  %v3376_v35 = vmul.u32 %v13596_v63, %v3322_v55  ;;  %v12425_v0 = vmul.f32 %v5762_v12, %v13597_v45  ;;  %v12427_v38 = vadd.f32 1.0, %v1711_v57 }
 0x58e   : > { %v4578_v42 = vmul.u32 %v4574_v13, %v4573_v18  ;;  %v4596_v30 = vand.u32 65535, %v4566_v56  ;;  %v12430_v26 = vmul.f32 %v1719_v40, %v13598_v17  ;;  %v4576_v11 = vmul.u32 %v4574_v13, %v4572_v10 }
 0x58f   : > { %v12432_v29 = vadd.s32 %v3380_v49, %v3376_v35  ;;  %v4580_v48 = vshll.u32 %v4577_v39, 16  ;;  %v12436_v24 = vmul.f32 %v12419_v9, %v12419_v9  ;;  %v2932_v21 = vsub.s32 4294967266, %v12421_v44 }
 0x590   : > { %v4159_v7 = vshll.u32 %v12412_v34, 30  ;;  %v4599_v54 = vmul.u32 %v4597_v61, %v4572_v10  ;;  %v12443_v27 = vsel %vm2045_vm11, %v2167_v52, %v11812_v20  ;;  %v4579_v28 = vmul.u32 %v4575_v53, %v4573_v18 }
 0x591   : > { %vm4584_vm9 = vc.u32 %v4576_v11, %v4580_v48  ;;  %v4586_v36 = vadd.s32 %v4580_v48, %v4576_v11  ;;  %v4582_v15 = vshll.u32 %v4578_v42, 16  ;;  %v4600_v51 = vmul.u32 %v4596_v30, %v4573_v18 }
 0x592   : > { %v4585_v6 = vsel %vm4584_vm9, 1, %v13223_v58  ;;  %v4602_v57 = vshll.u32 %v4599_v54, 16  ;;  %v1726_v47 = vxor.u32 2147483648, %v12430_v26  ;;  %v3382_v19 = vadd.s32 536870912, %v12432_v29 }
 0x593   : > { %v4587_v55 = vadd.s32 %v4585_v6, %v4579_v28  ;;  %v4598_v56 = vmul.u32 %v4596_v30, %v4572_v10  ;;  %v2172_v13 = vmul.f32 -0.001358992, %v12436_v24  ;;  %v2933_v12 = vadd.s32 127, %v2932_v21  ;;  %v13599_v10 = vld [vmem:[#allocation14_spill] sm:$0xff]  ;;  %v13600_v30 = vld [vmem:[#allocation44_spill] sm:$0xff] }
 0x594   : > { %v12450_v20 = vsub.s32 %v12355_v4, %v4159_v7  ;;  %vm4588_vm12 = vc.u32 %v4586_v36, %v4582_v15  ;;  %v4581_v53 = vshrl.u32 %v4577_v39, 16  ;;  %v4601_v49 = vmul.u32 %v4597_v61, %v4573_v18  ;;  %v12460_v39 = vpop.f32.mrf.mxu3 }
 0x595   : > { %v4589_v40 = vsel %vm4588_vm12, 1, %v13223_v58  ;;  %vm4606_vm0 = vc.u32 %v4598_v56, %v4602_v57  ;;  %v4604_v63 = vshll.u32 %v4600_v51, 16  ;;  %v4608_v45 = vadd.s32 %v4602_v57, %v4598_v56 }
 0x596   : > { %v4591_v52 = vadd.s32 %v4589_v40, %v4587_v55  ;;  %v4607_v35 = vsel %vm4606_vm0, 1, %v13223_v58  ;;  %vm1725_vm2 = vcmp.eq.s32.totalorder %v12410_v16, 0  ;;  %v2912_v17 = vadd.s32 %v13600_v30, %v13599_v10  ;;  %v13601_v40 = vld [vmem:[#allocation45_spill] sm:$0xff]  ;;  %v13602_v30 = vld [vmem:[#allocation4_spill] sm:$0xff] }
 0x597   : > { %v2928_v11 = vsub.s32 32, %v12421_v44  ;;  %v12458_v4 = vshrl.u32 %v3382_v19, 30  ;;  %v4609_v48 = vadd.s32 %v4607_v35, %v4601_v49  ;;  %v4162_v18 = vsub.s32 0, %v12450_v20 }
 0x598   : > { %v4560_v61 = vsel %vm4558_vm5, %v12333_v8, 2102212464  ;;  %v4592_v21 = vadd.s32 %v4591_v52, %v4581_v53  ;;  %vm4610_vm13 = vc.u32 %v4608_v45, %v4604_v63  ;;  %vm1728_vm15 = vcmp.eq.s32.totalorder %v12410_v16, 2 }
 0x599   : > { %vm4161_vm10 = vcmp.lt.s32.totalorder %v12450_v20, 0  ;;  %v4539_v7 = vshrl.u32 %v13224_v32, %v12285_v46  ;;  %v4583_v28 = vshrl.u32 %v4578_v42, 16  ;;  %v4611_v36 = vsel %vm4610_vm13, 1, %v13223_v58 }
 0x59a   : > { %vm1724_vm11 = vcmp.lt.s32.totalorder %v12410_v16, 2  ;;  %v2934_v15 = vshll.u32 %v2933_v12, 23  ;;  %v4603_v6 = vshrl.u32 %v4599_v54, 16  ;;  %v4613_v57 = vadd.s32 %v4611_v36, %v4609_v48 }
 0x59b   : > { %v5301_v19 = vand.u32 2139095040, %v12460_v39  ;;  %v3384_v8 = vshll.u32 %v12458_v4, 30  ;;  %v4559_v55 = vsel %vm4555_vm3, %v4539_v7, %v12337_v60  ;;  %v4561_v46 = vsel %vm4557_vm4, %v12331_v41, %v4560_v61 }
 0x59c   : > { %v12480_v42 = vadd.s32 %v4592_v21, %v4583_v28  ;;  %v4163_v56 = vsel %vm4161_vm10, %v4162_v18, %v12450_v20  ;;  %v4605_v53 = vshrl.u32 %v4600_v51, 16  ;;  %v4614_v12 = vadd.s32 %v4613_v57, %v4603_v6 }
 0x59d   : > { %v5302_v54 = vshrl.u32 %v5301_v19, 23  ;;  %vm1721_vm14 = vweird.f32 %v13601_v40  ;;  %v2173_v49 = vadd.f32 0.041655596, %v2172_v13  ;;  %v2179_v52 = vmul.f32 -0.00019511016, %v12436_v24 }
 0x59e   : > { %v2930_v35 = vshrl.u32 %v2912_v17, %v2928_v11  ;;  %v12485_v10 = vadd.s32 %v4608_v45, %v4604_v63  ;;  %v1729_v60 = vxor.u32 2147483648, %v12427_v38  ;;  %v2929_v41 = vshll.u32 %v13602_v30, %v12421_v44 }
 0x59f   : > { %v4615_v48 = vadd.s32 %v4614_v12, %v4605_v53  ;;  %v6270_v61 = vadd.s32 4294967169, %v5302_v54  ;;  %v2935_v21 = vor.u32 4788187, %v2934_v15  ;;  %v4164_v18 = vclz %v4163_v56 }
 0x5a0   : > { %v4562_v51 = vsel %vm4556_vm1, %v4559_v55, %v4561_v46  ;;  %vm4618_vm5 = vc.u32 %v12480_v42, %v12485_v10  ;;  %v1727_v13 = vsel %vm1725_vm2, %v12427_v38, %v1726_v47  ;;  %v12498_v63 = vsub.s32 %v12432_v29, %v3384_v8  ;;  %v13604_v46 = vld [vmem:[#allocation23_spill] sm:$0xff] }
 0x5a1   : > { %v4619_v45 = vadd.s32 1, %v4615_v48  ;;  %v5308_v17 = vadd.s32 1, %v6270_v61  ;;  %v2170_v44 = vsel %vm12349_vm7, 0, %v12443_v27  ;;  %v2174_v11 = vmul.f32 %v2173_v49, %v12436_v24  ;;  %v12534_v61 = vpop.f32.mrf.mxu2 }
 0x5a2   : > { %v2180_v62 = vadd.f32 0.008332121, %v2179_v52  ;;  %v2931_v7 = vor.u32 %v2930_v35, %v2929_v41  ;;  %v1730_v28 = vsel %vm1728_vm15, %v1729_v60, %v12430_v26  ;;  %v4616_v36 = vmul.u32 %v12379_v37, %v4562_v51  ;;  %v13603_v37 = vld [vmem:[#allocation26_spill] sm:$0xff]  ;;  %v13607_v52 = vld [vmem:[#allocation24_spill] sm:$0xff]  ;;  %v13610_v41 = vld [vmem:[#allocation17_spill] sm:$0xff]  ;;  %13611 = vst [vmem:[#allocation43_spill] sm:$0xff] %v12534_v61 }
 0x5a3   : > { %v4620_v38 = vsel %vm4618_vm5, %v4619_v45, %v4615_v48  ;;  %vm5309_vm3 = vcmp.gt.s32.totalorder %v5308_v17, 0  ;;  %v1731_v29 = vsel %vm1724_vm11, %v1727_v13, %v1730_v28  ;;  %v2936_v47 = vand.u32 2147483647, %v2935_v21  ;;  %v13612_v21 = vld [vmem:[#allocation3_spill] sm:$0xff] }
 0x5a4   : > { %v6247_v15 = vadd.s32 4294967294, %v4164_v18  ;;  %v5310_v6 = vsel %vm5309_vm3, %v5308_v17, 0  ;;  %v2187_v31 = vadd.s32 3, %v2170_v44  ;;  %v3387_v27 = vsub.s32 0, %v12498_v63  ;;  %v13614_v13 = vld [vmem:[#allocation7_spill] sm:$0xff] }
 0x5a5   : > { %v12511_v57 = vadd.s32 %v4620_v38, %v4616_v36  ;;  %v5312_v19 = vand.u32 31, %v5310_v6  ;;  %v2175_v8 = vadd.f32 -0.4999988, %v2174_v11  ;;  %v2181_v55 = vmul.f32 %v2180_v62, %v12436_v24 }
 0x5a6   : > { %v2938_v26 = vcvt.s32.f32 %v2931_v7  ;;  %vm3386_vm7 = vcmp.lt.s32.totalorder %v12498_v63, 0  ;;  %v12517_v56 = vadd.f32 %v13604_v46, %v13603_v37  ;;  %v1732_v16 = vsel %vm1721_vm14, nan, %v1731_v29 }
 0x5a7   : > { %v13185_v53 = vand.u32 2147483647, %v12460_v39  ;;  %v12522_v12 = vsub.s32 32, %v5312_v19  ;;  %v12527_v35 = vadd.f32 %v13607_v52, %v12425_v0  ;;  %vm6248_vm4 = vcmp.lt.s32.totalorder %v6247_v15, 0 }
 0x5a8   : > { %13605 = vst [vmem:[#allocation10_spill] sm:$0xff] %v12517_v56  ;;  %v2939_v60 = vmul.f32 %v2938_v26, %v2936_v47  ;;  %v12529_v30 = vand.u32 3, %v2187_v31  ;;  %vm2820_vm1 = vcmp.lt.s32.totalorder %v13610_v41, 0  ;;  %v3388_v48 = vsel %vm3386_vm7, %v3387_v27, %v12498_v63 }
 0x5a9   : > { %13608 = vst [vmem:[#allocation40_spill] sm:$0xff] %v12527_v35  ;;  %v4622_v40 = vadd.s32 536870912, %v12511_v57  ;;  %v12537_v18 = vmul.f32 %v1732_v16, %v13612_v21  ;;  %v12540_v51 = vmul.f32 %v2175_v8, %v12436_v24  ;;  %v2182_v0 = vadd.f32 -0.16666654, %v2181_v55 }
 0x5aa   : > { %13609 = vst [vmem:[#allocation22_spill] sm:$0xff] %v12529_v30  ;;  %v2942_v45 = vsub.s32 4, %v13614_v13  ;;  %v12543_v17 = vsel %vm6248_vm4, 0, %v6247_v15  ;;  %v5305_v44 = vand.u32 8388607, %v13185_v53  ;;  %v5316_v11 = vshrl.u32 %v13227_v14, %v12522_v12 }
 0x5ab   : > { %13613 = vst [vmem:[#allocation41_spill] sm:$0xff] %v12537_v18  ;;  %v5319_v62 = vshrl.u32 %v13228_v3, %v12522_v12  ;;  %v2940_v7 = vxor.u32 2147483648, %v2939_v60  ;;  %v3389_v28 = vclz %v3388_v48  ;;  %v5325_v36 = vshrl.u32 %v13482_v2, %v12522_v12 }
 0x5ac   : > { %v5766_v38 = vand.u32 2139095040, %v12534_v61  ;;  %v13615_v29 = vand.u32 2147483647, %v13610_v41  ;;  %v12560_v15 = vshrl.u32 %v4622_v40, 30  ;;  %v5315_v31 = vshll.u32 %v13224_v32, %v5312_v19 }
 0x5ad   : > { %v5318_v27 = vshll.u32 %v13227_v14, %v5312_v19  ;;  %v5322_v8 = vshrl.u32 %v13483_v25, %v12522_v12  ;;  %v4172_v55 = vsub.s32 4294967266, %v12543_v17  ;;  %v12567_v26 = vshrl.u32 %v5310_v6, 5 }
 0x5ae   : > { %vm12556_vm6 = vcmp.le.f32.partialorder %v13615_v29, 0.7853982  ;;  %13618 = vst [vmem:[#allocation15_spill] sm:$0xff] %v12560_v15  ;;  %v5324_v37 = vshll.u32 %v13483_v25, %v5312_v19  ;;  %v5328_v46 = vshrl.u32 %v13481_v33, %v12522_v12  ;;  %v5306_v16 = vor.u32 8388608, %v5305_v44 }
 0x5af   : > { %v12572_v52 = vor.u32 %v5316_v11, %v5315_v31  ;;  %v12574_v48 = vor.u32 %v5319_v62, %v5318_v27  ;;  %v5321_v40 = vshll.u32 %v13228_v3, %v5312_v19  ;;  %v12578_v21 = vmul.f32 %v2182_v0, %v12436_v24 }
 0x5b0   : > { %v5326_v29 = vor.u32 %v5325_v36, %v5324_v37  ;;  %v5327_v49 = vshll.u32 %v13482_v2, %v5312_v19  ;;  %v5767_v6 = vshrl.u32 %v5766_v38, 23  ;;  %v2941_v22 = vsel %vm2820_vm1, %v2940_v7, %v2939_v60 }
 0x5b1   : > { %v12586_v44 = vsel %vm2820_vm1, %v2942_v45, %v13614_v13  ;;  %v4624_v11 = vshll.u32 %v12560_v15, 30  ;;  %v5323_v62 = vor.u32 %v5322_v8, %v5321_v40  ;;  %v6232_v31 = vadd.s32 4294967294, %v3389_v28 }
 0x5b2   : > { %v4168_v27 = vsub.s32 32, %v12543_v17  ;;  %v5329_v24 = vor.u32 %v5328_v46, %v5327_v49  ;;  %vm5330_vm8 = vcmp.lt.s32.totalorder %v12567_v26, 1  ;;  %v4173_v0 = vadd.s32 127, %v4172_v55 }
 0x5b3   : > { %vm5333_vm9 = vcmp.lt.s32.totalorder %v12567_v26, 4  ;;  %v5338_v19 = vsel %vm5330_vm8, %v12572_v52, %v12574_v48  ;;  %v12596_v60 = vshll.u32 %v5306_v16, 8  ;;  %v12600_v13 = vadd.s32 %v12363_v23, %v12353_v5 }
 0x5b4   : > { %vm5332_vm12 = vcmp.lt.s32.totalorder %v12567_v26, 3  ;;  %v5339_v49 = vsel %vm5333_vm9, %v5326_v29, 920167782  ;;  %v6279_v45 = vadd.s32 4294967169, %v5767_v6  ;;  %v4152_v7 = vadd.s32 %v12303_v1, %v12293_v43 }
 0x5b5   : > { %v12608_v28 = vsub.s32 %v12511_v57, %v4624_v11  ;;  %vm5331_vm0 = vcmp.lt.s32.totalorder %v12567_v26, 2  ;;  %v5340_v36 = vsel %vm5332_vm12, %v5323_v62, %v5339_v49  ;;  %v12616_v5 = vsel %vm12556_vm6, %v13610_v41, %v2941_v22 }
 0x5b6   : > { %v5341_v23 = vsel %vm5331_vm0, %v5338_v19, %v5340_v36  ;;  %v5342_v43 = vsel %vm5330_vm8, %v12574_v48, %v5323_v62  ;;  %v5343_v1 = vsel %vm5333_vm9, %v5329_v24, 1326507024  ;;  %vm6233_vm2 = vcmp.lt.s32.totalorder %v6232_v31, 0 }
 0x5b7   : > { %v4170_v57 = vshrl.u32 %v4152_v7, %v4168_v27  ;;  %v4174_v38 = vshll.u32 %v4173_v0, 23  ;;  %v5347_v8 = vand.u32 65535, %v12596_v60  ;;  %v5344_v55 = vsel %vm5332_vm12, %v5326_v29, %v5343_v1 }
 0x5b8   : > { %v5371_v22 = vand.u32 65535, %v5341_v23  ;;  %v5372_v37 = vshrl.u32 %v5341_v23, 16  ;;  %v5773_v46 = vadd.s32 1, %v6279_v45  ;;  %v4169_v16 = vshll.u32 %v12450_v20, %v12543_v17 }
 0x5b9   : > { %v4627_v40 = vsub.s32 0, %v12608_v28  ;;  %v5345_v6 = vsel %vm5331_vm0, %v5342_v43, %v5344_v55  ;;  %v5348_v11 = vshrl.u32 %v12596_v60, 16  ;;  %vm4626_vm13 = vcmp.lt.s32.totalorder %v12608_v28, 0 }
 0x5ba   : > { %v5349_v27 = vand.u32 65535, %v5345_v6  ;;  %v5350_v24 = vshrl.u32 %v5345_v6, 16  ;;  %v5374_v0 = vmul.u32 %v5372_v37, %v5347_v8  ;;  %v12637_v29 = vmul.f32 %v12616_v5, %v12616_v5 }
 0x5bb   : > { %v12640_v19 = vsel %vm6233_vm2, 0, %v6232_v31  ;;  %v4171_v20 = vor.u32 %v4170_v57, %v4169_v16  ;;  %v5375_v17 = vmul.u32 %v5371_v22, %v5348_v11  ;;  %v4175_v49 = vor.u32 4788187, %v4174_v38 }
 0x5bc   : > { %v5352_v45 = vmul.u32 %v5350_v24, %v5347_v8  ;;  %v5353_v7 = vmul.u32 %v5349_v27, %v5348_v11  ;;  %vm5774_vm15 = vcmp.gt.s32.totalorder %v5773_v46, 0  ;;  %v4628_v36 = vsel %vm4626_vm13, %v4627_v40, %v12608_v28 }
 0x5bd   : > { %v5314_v23 = vshrl.u32 %v13224_v32, %v12522_v12  ;;  %v5373_v43 = vmul.u32 %v5371_v22, %v5347_v8  ;;  %v5377_v1 = vshll.u32 %v5374_v0, 16  ;;  %v5335_v55 = vsel %vm5333_vm9, %v5323_v62, 2102212464 }
 0x5be   : > { %v5351_v6 = vmul.u32 %v5349_v27, %v5347_v8  ;;  %v5355_v53 = vshll.u32 %v5352_v45, 16  ;;  %v5376_v31 = vmul.u32 %v5372_v37, %v5348_v11  ;;  %v5354_v56 = vmul.u32 %v5350_v24, %v5348_v11 }
 0x5bf   : > { %v5357_v57 = vshll.u32 %v5353_v7, 16  ;;  %v5379_v16 = vshll.u32 %v5375_v17, 16  ;;  %vm5381_vm10 = vc.u32 %v5373_v43, %v5377_v1  ;;  %v5383_v40 = vadd.s32 %v5377_v1, %v5373_v43 }
 0x5c0   : > { %vm5359_vm11 = vc.u32 %v5351_v6, %v5355_v53  ;;  %v5361_v38 = vadd.s32 %v5355_v53, %v5351_v6  ;;  %v5382_v35 = vsel %vm5381_vm10, 1, %v13223_v58  ;;  %v4629_v59 = vclz %v4628_v36 }
 0x5c1   : > { %v5334_v12 = vsel %vm5330_vm8, %v5314_v23, %v12572_v52  ;;  %v5360_v22 = vsel %vm5359_vm11, 1, %v13223_v58  ;;  %v5384_v62 = vadd.s32 %v5382_v35, %v5376_v31  ;;  %v5336_v8 = vsel %vm5332_vm12, %v12574_v48, %v5335_v55 }
 0x5c2   : > { %v5362_v37 = vadd.s32 %v5360_v22, %v5354_v56  ;;  %vm5363_vm14 = vc.u32 %v5361_v38, %v5357_v57  ;;  %vm5385_vm5 = vc.u32 %v5383_v40, %v5379_v16  ;;  %v5378_v11 = vshrl.u32 %v5374_v0, 16 }
 0x5c3   : > { %v5364_v53 = vsel %vm5363_vm14, 1, %v13223_v58  ;;  %v5386_v27 = vsel %vm5385_vm5, 1, %v13223_v58  ;;  %v5775_v24 = vsel %vm5774_vm15, %v5773_v46, 0  ;;  %v5356_v36 = vshrl.u32 %v5352_v45, 16 }
 0x5c4   : > { %v5366_v43 = vadd.s32 %v5364_v53, %v5362_v37  ;;  %v5388_v52 = vadd.s32 %v5386_v27, %v5384_v62  ;;  %v5777_v23 = vand.u32 31, %v5775_v24  ;;  %v3397_v35 = vsub.s32 4294967266, %v12640_v19 }
 0x5c5   : > { %v4176_v1 = vand.u32 2147483647, %v4175_v49  ;;  %v6256_v6 = vadd.s32 4294967294, %v4629_v59  ;;  %v13189_v48 = vand.u32 2147483647, %v12534_v61  ;;  %v5358_v56 = vshrl.u32 %v5353_v7, 16 }
 0x5c6   : > { %v5367_v55 = vadd.s32 %v5366_v43, %v5356_v36  ;;  %v5380_v31 = vshrl.u32 %v5375_v17, 16  ;;  %v5389_v57 = vadd.s32 %v5388_v52, %v5378_v11  ;;  %v2947_v0 = vmul.f32 -0.001358992, %v12637_v29 }
 0x5c7   : > { %v4178_v38 = vcvt.s32.f32 %v4171_v20  ;;  %v5337_v46 = vsel %vm5331_vm0, %v5334_v12, %v5336_v8  ;;  %v12663_v45 = vsub.s32 32, %v5777_v23  ;;  %v2954_v22 = vmul.f32 -0.00019511016, %v12637_v29  ;;  %v13619_v20 = vld [vmem:[#allocation11_spill] sm:$0xff] }
 0x5c8   : > { %v12666_v62 = vadd.s32 %v5367_v55, %v5358_v56  ;;  %v12668_v49 = vadd.s32 %v5383_v40, %v5379_v16  ;;  %v5390_v59 = vadd.s32 %v5389_v57, %v5380_v31  ;;  %v3393_v7 = vsub.s32 32, %v12640_v19 }
 0x5c9   : > { %v3398_v37 = vadd.s32 127, %v3397_v35  ;;  %v4179_v17 = vmul.f32 %v4178_v38, %v4176_v1  ;;  %v5770_v53 = vand.u32 8388607, %v13189_v48  ;;  %vm4060_vm3 = vcmp.lt.s32.totalorder %v13619_v20, 0 }
 0x5ca   : > { %vm6257_vm7 = vcmp.lt.s32.totalorder %v6256_v6, 0  ;;  %v5391_v26 = vmul.u32 %v12596_v60, %v5337_v46  ;;  %vm5393_vm4 = vc.u32 %v12666_v62, %v12668_v49  ;;  %v5394_v12 = vadd.s32 1, %v5390_v59 }
 0x5cb   : > { %v12677_v8 = vshrl.u32 %v5775_v24, 5  ;;  %v5783_v16 = vshll.u32 %v13227_v14, %v5777_v23  ;;  %v5784_v40 = vshrl.u32 %v13228_v3, %v12663_v45  ;;  %v5787_v11 = vshrl.u32 %v13483_v25, %v12663_v45 }
 0x5cc   : > { %v5395_v27 = vsel %vm5393_vm4, %v5394_v12, %v5390_v59  ;;  %v5781_v36 = vshrl.u32 %v13227_v14, %v12663_v45  ;;  %v5789_v60 = vshll.u32 %v13483_v25, %v5777_v23  ;;  %v5790_v43 = vshrl.u32 %v13482_v2, %v12663_v45 }
 0x5cd   : > { %v5396_v52 = vadd.s32 %v5395_v27, %v5391_v26  ;;  %v5786_v24 = vshll.u32 %v13228_v3, %v5777_v23  ;;  %v5792_v35 = vshll.u32 %v13482_v2, %v5777_v23  ;;  %v5793_v1 = vshrl.u32 %v13481_v33, %v12663_v45 }
 0x5ce   : > { %v4180_v56 = vxor.u32 2147483648, %v4179_v17  ;;  %v4632_v55 = vsel %vm6257_vm7, 0, %v6256_v6  ;;  %v5780_v31 = vshll.u32 %v13224_v32, %v5777_v23  ;;  %v5791_v57 = vor.u32 %v5790_v43, %v5789_v60 }
 0x5cf   : > { %v13620_v14 = vand.u32 2147483647, %v13619_v20  ;;  %v5397_v38 = vadd.s32 536870912, %v5396_v52  ;;  %v12701_v46 = vor.u32 %v5784_v40, %v5783_v16  ;;  %v12703_v3 = vor.u32 %v5787_v11, %v5786_v24 }
 0x5d0   : > { %v5794_v2 = vor.u32 %v5793_v1, %v5792_v35  ;;  %v12705_v59 = vadd.f32 0.041655596, %v2947_v0  ;;  %v3394_v33 = vshll.u32 %v12498_v63, %v12640_v19  ;;  %v3395_v23 = vshrl.u32 %v12600_v13, %v3393_v7 }
 0x5d1   : > { %vm12697_vm1 = vcmp.le.f32.partialorder %v13620_v14, 0.7853982  ;;  %v12710_v6 = vor.u32 %v5781_v36, %v5780_v31  ;;  %v4637_v26 = vsub.s32 4294967266, %v4632_v55  ;;  %v12712_v12 = vshrl.u32 %v5397_v38, 30 }
 0x5d2   : > { %v5771_v27 = vor.u32 8388608, %v5770_v53  ;;  %vm5798_vm8 = vcmp.lt.s32.totalorder %v12677_v8, 4  ;;  %v3399_v16 = vshll.u32 %v3398_v37, 23  ;;  %vm5795_vm9 = vcmp.lt.s32.totalorder %v12677_v8, 1 }
 0x5d3   : > { %v5804_v0 = vsel %vm5798_vm8, %v5791_v57, 920167782  ;;  %v5808_v40 = vsel %vm5798_vm8, %v5794_v2, 1326507024  ;;  %v4181_v63 = vsel %vm4060_vm3, %v4180_v56, %v4179_v17  ;;  %v5399_v13 = vshll.u32 %v12712_v12, 30 }
 0x5d4   : > { %vm5797_vm12 = vcmp.lt.s32.totalorder %v12677_v8, 3  ;;  %v5807_v19 = vsel %vm5795_vm9, %v12701_v46, %v12703_v3  ;;  %v4633_v7 = vsub.s32 32, %v4632_v55  ;;  %v5803_v37 = vsel %vm5795_vm9, %v12710_v6, %v12701_v46 }
 0x5d5   : > { %v5805_v53 = vsel %vm5797_vm12, %v12703_v3, %v5804_v0  ;;  %v5809_v17 = vsel %vm5797_vm12, %v5791_v57, %v5808_v40  ;;  %v4638_v11 = vadd.s32 127, %v4637_v26  ;;  %v5400_v36 = vsub.s32 %v5396_v52, %v5399_v13 }
 0x5d6   : > { %vm5796_vm0 = vcmp.lt.s32.totalorder %v12677_v8, 2  ;;  %v12738_v60 = vshll.u32 %v5771_v27, 8  ;;  %v2955_v43 = vadd.f32 0.008332121, %v2954_v22  ;;  %v3396_v24 = vor.u32 %v3395_v23, %v3394_v33 }
 0x5d7   : > { %v4617_v35 = vadd.s32 %v12485_v10, %v12480_v42  ;;  %v5810_v1 = vsel %vm5796_vm0, %v5807_v19, %v5809_v17  ;;  %v3400_v56 = vor.u32 4788187, %v3399_v16  ;;  %vm5401_vm2 = vcmp.lt.s32.totalorder %v5400_v36, 0 }
 0x5d8   : > { %v5402_v31 = vsub.s32 0, %v5400_v36  ;;  %v5806_v57 = vsel %vm5796_vm0, %v5803_v37, %v5805_v53  ;;  %v12749_v52 = vsel %vm12697_vm1, %v13619_v20, %v4181_v63  ;;  %v5814_v22 = vand.u32 65535, %v5810_v1 }
 0x5d9   : > { %v4635_v14 = vshrl.u32 %v4617_v35, %v4633_v7  ;;  %v5815_v38 = vshrl.u32 %v5810_v1, 16  ;;  %v4639_v2 = vshll.u32 %v4638_v11, 23  ;;  %v5812_v42 = vand.u32 65535, %v12738_v60 }
 0x5da   : > { %v5403_v33 = vsel %vm5401_vm2, %v5402_v31, %v5400_v36  ;;  %v5813_v10 = vshrl.u32 %v12738_v60, 16  ;;  %v12754_v23 = vmul.f32 %v2955_v43, %v12637_v29  ;;  %v4634_v26 = vshll.u32 %v12608_v28, %v4632_v55 }
 0x5db   : > { %v5404_v27 = vclz %v5403_v33  ;;  %v5837_v16 = vshrl.u32 %v5806_v57, 16  ;;  %v3403_v0 = vcvt.s32.f32 %v3396_v24  ;;  %v5817_v40 = vmul.u32 %v5815_v38, %v5812_v42 }
 0x5dc   : > { %v5818_v63 = vmul.u32 %v5814_v22, %v5813_v10  ;;  %v5836_v13 = vand.u32 65535, %v5806_v57  ;;  %v3401_v19 = vand.u32 2147483647, %v3400_v56  ;;  %v12759_v7 = vmul.f32 %v12749_v52, %v12749_v52 }
 0x5dd   : > { %v4636_v37 = vor.u32 %v4635_v14, %v4634_v26  ;;  %v6271_v53 = vadd.s32 4294967294, %v5404_v27  ;;  %v4640_v17 = vor.u32 4788187, %v4639_v2  ;;  %v5392_v11 = vadd.s32 %v12668_v49, %v12666_v62 }
 0x5de   : > { %v5816_v43 = vmul.u32 %v5814_v22, %v5812_v42  ;;  %v5820_v35 = vshll.u32 %v5817_v40, 16  ;;  %v5819_v28 = vmul.u32 %v5815_v38, %v5813_v10  ;;  %v5822_v55 = vshll.u32 %v5818_v63, 16 }
 0x5df   : > { %vm6272_vm13 = vcmp.lt.s32.totalorder %v6271_v53, 0  ;;  %v5839_v24 = vmul.u32 %v5837_v16, %v5812_v42  ;;  %v5840_v56 = vmul.u32 %v5836_v13, %v5813_v10  ;;  %v5821_v48 = vshrl.u32 %v5817_v40, 16 }
 0x5e0   : > { %v5407_v1 = vsel %vm6272_vm13, 0, %v6271_v53  ;;  %vm5824_vm15 = vc.u32 %v5816_v43, %v5820_v35  ;;  %v5826_v31 = vadd.s32 %v5820_v35, %v5816_v43  ;;  %v5838_v2 = vmul.u32 %v5836_v13, %v5812_v42  ;;  %v13623_v42 = vld [vmem:[#allocation9_spill] sm:$0xff] }
 0x5e1   : > { %v5408_v57 = vsub.s32 32, %v5407_v1  ;;  %v5412_v33 = vsub.s32 4294967266, %v5407_v1  ;;  %v5825_v14 = vsel %vm5824_vm15, 1, %v13223_v58  ;;  %v5842_v27 = vshll.u32 %v5839_v24, 16 }
 0x5e2   : > { %v5827_v26 = vadd.s32 %v5825_v14, %v5819_v28  ;;  %vm5828_vm10 = vc.u32 %v5826_v31, %v5822_v55  ;;  %v5409_v62 = vshll.u32 %v5400_v36, %v5407_v1  ;;  %v5841_v18 = vmul.u32 %v5837_v16, %v5813_v10 }
 0x5e3   : > { %v5410_v49 = vshrl.u32 %v5392_v11, %v5408_v57  ;;  %v5413_v22 = vadd.s32 127, %v5412_v33  ;;  %v5829_v38 = vsel %vm5828_vm10, 1, %v13223_v58  ;;  %v5844_v53 = vshll.u32 %v5840_v56, 16 }
 0x5e4   : > { %v5831_v54 = vadd.s32 %v5829_v38, %v5827_v26  ;;  %vm5846_vm11 = vc.u32 %v5838_v2, %v5842_v27  ;;  %v5848_v40 = vadd.s32 %v5842_v27, %v5838_v2  ;;  %v3404_v30 = vmul.f32 %v3403_v0, %v3401_v19 }
 0x5e5   : > { %v5411_v43 = vor.u32 %v5410_v49, %v5409_v62  ;;  %v5414_v35 = vshll.u32 %v5413_v22, 23  ;;  %v5847_v61 = vsel %vm5846_vm11, 1, %v13223_v58  ;;  %v4641_v15 = vand.u32 2147483647, %v4640_v17 }
 0x5e6   : > { %v5832_v28 = vadd.s32 %v5831_v54, %v5821_v48  ;;  %v5849_v55 = vadd.s32 %v5847_v61, %v5841_v18  ;;  %vm3285_vm14 = vcmp.lt.s32.totalorder %v13623_v42, 0  ;;  %v4194_v36 = vmul.f32 -0.00019511016, %v12759_v7 }
 0x5e7   : > { %v5415_v13 = vor.u32 4788187, %v5414_v35  ;;  %v5800_v10 = vsel %vm5798_vm8, %v12703_v3, 2102212464  ;;  %vm5850_vm5 = vc.u32 %v5848_v40, %v5844_v53  ;;  %v4643_v16 = vcvt.s32.f32 %v4636_v37 }
 0x5e8   : > { %v5779_v11 = vshrl.u32 %v13224_v32, %v12663_v45  ;;  %v5823_v1 = vshrl.u32 %v5818_v63, 16  ;;  %v5851_v0 = vsel %vm5850_vm5, 1, %v13223_v58  ;;  %v5418_v54 = vcvt.s32.f32 %v5411_v43 }
 0x5e9   : > { %v5416_v19 = vand.u32 2147483647, %v5415_v13  ;;  %v5843_v61 = vshrl.u32 %v5839_v24, 16  ;;  %v5853_v18 = vadd.s32 %v5851_v0, %v5849_v55  ;;  %v13624_v48 = vand.u32 2147483647, %v13623_v42 }
 0x5ea   : > { %v4644_v31 = vmul.f32 %v4643_v16, %v4641_v15  ;;  %v5799_v3 = vsel %vm5795_vm9, %v5779_v11, %v12710_v6  ;;  %v5801_v32 = vsel %vm5797_vm12, %v12701_v46, %v5800_v10  ;;  %v12786_v58 = vadd.s32 %v5832_v28, %v5823_v1 }
 0x5eb   : > { %vm12776_vm7 = vcmp.le.f32.partialorder %v13624_v48, 0.7853982  ;;  %v2957_v45 = vadd.f32 -0.16666654, %v12754_v23  ;;  %v5419_v63 = vmul.f32 %v5418_v54, %v5416_v19  ;;  %v5845_v37 = vshrl.u32 %v5840_v56, 16 }
 0x5ec   : > { %v5854_v24 = vadd.s32 %v5853_v18, %v5843_v61  ;;  %v2184_v57 = vadd.f32 1.0, %v12578_v21  ;;  %v2945_v15 = vsel %vm12556_vm6, 0, %v12586_v44  ;;  %v3405_v33 = vxor.u32 2147483648, %v3404_v30 }
 0x5ed   : > { %v12793_v14 = vadd.s32 %v5848_v40, %v5844_v53  ;;  %v2949_v6 = vmul.f32 %v12705_v59, %v12637_v29  ;;  %v5420_v46 = vxor.u32 2147483648, %v5419_v63  ;;  %v5802_v26 = vsel %vm5796_vm0, %v5799_v3, %v5801_v32 }
 0x5ee   : > { %v5855_v23 = vadd.s32 %v5854_v24, %v5845_v37  ;;  %v4195_v2 = vadd.f32 0.008332121, %v4194_v36  ;;  %v4645_v56 = vxor.u32 2147483648, %v4644_v31  ;;  %vm5300_vm4 = vcmp.lt.s32.totalorder %v12460_v39, 0 }
 0x5ef   : > { %vm5858_vm8 = vc.u32 %v12786_v58, %v12793_v14  ;;  %v2958_v47 = vmul.f32 %v2957_v45, %v12637_v29  ;;  %v13627_v21 = vand.u32 2147483647, %v12460_v39  ;;  %v5421_v8 = vsel %vm5300_vm4, %v5420_v46, %v5419_v63 }
 0x5f0   : > { %v5859_v59 = vadd.s32 1, %v5855_v23  ;;  %v3406_v27 = vsel %vm3285_vm14, %v3405_v33, %v3404_v30  ;;  %v4187_v62 = vmul.f32 -0.001358992, %v12759_v7  ;;  %v5856_v22 = vmul.u32 %v12738_v60, %v5802_v26 }
 0x5f1   : > { %vm12805_vm6 = vcmp.le.f32.partialorder %v13627_v21, 0.7853982  ;;  %v2950_v38 = vadd.f32 -0.4999988, %v2949_v6  ;;  %vm4525_vm9 = vcmp.lt.s32.totalorder %v12179_v50, 0  ;;  %v2962_v35 = vadd.s32 3, %v2945_v15 }
 0x5f2   : > { %v12817_v49 = vsel %vm12805_vm6, %v12460_v39, %v5421_v8  ;;  %v5860_v43 = vsel %vm5858_vm8, %v5859_v59, %v5855_v23  ;;  %v4196_v30 = vmul.f32 %v4195_v2, %v12759_v7  ;;  %v4646_v40 = vsel %vm4525_vm9, %v4645_v56, %v4644_v31 }
 0x5f3   : > { %v12823_v53 = vmul.f32 %v12817_v49, %v12817_v49  ;;  %v5861_v28 = vadd.s32 %v5860_v43, %v5856_v22  ;;  %v2959_v55 = vadd.f32 1.0, %v2958_v47  ;;  %v12831_v60 = vsel %vm12776_vm7, %v13623_v42, %v3406_v27 }
 0x5f4   : > { %v12836_v10 = vmul.f32 %v2184_v57, %v12419_v9  ;;  %v4188_v16 = vadd.f32 0.041655596, %v4187_v62  ;;  %v13630_v11 = vand.u32 2147483647, %v12179_v50  ;;  %v2951_v19 = vmul.f32 %v2950_v38, %v12637_v29 }
 0x5f5   : > { %v5427_v36 = vmul.f32 -0.001358992, %v12823_v53  ;;  %v5434_v13 = vmul.f32 -0.00019511016, %v12823_v53  ;;  %v5862_v0 = vadd.s32 536870912, %v5861_v28  ;;  %v3407_v54 = vsub.s32 4, %v12458_v4 }
 0x5f6   : > { %vm12840_vm12 = vcmp.le.f32.partialorder %v13630_v11, 0.7853982  ;;  %v2963_v9 = vand.u32 3, %v2962_v35  ;;  %v12853_v48 = vmul.f32 %v12831_v60, %v12831_v60  ;;  %v4197_v31 = vadd.f32 -0.16666654, %v4196_v30 }
 0x5f7   : > { %v12849_v61 = vsel %vm12840_vm12, %v12179_v50, %v4646_v40  ;;  %v5435_v18 = vadd.f32 0.008332121, %v5434_v13  ;;  %v12855_v3 = vshrl.u32 %v5862_v0, 30  ;;  %v2960_v32 = vmul.f32 %v2959_v55, %v12616_v5 }
 0x5f8   : > { %v4182_v29 = vsub.s32 4, %v12412_v34  ;;  %v5428_v45 = vadd.f32 0.041655596, %v5427_v36  ;;  %v12861_v37 = vadd.f32 1.0, %v12540_v51  ;;  %v4189_v24 = vmul.f32 %v4188_v16, %v12759_v7 }
 0x5f9   : > { %v5436_v63 = vmul.f32 %v5435_v18, %v12823_v53  ;;  %v12866_v57 = vmul.f32 %v12849_v61, %v12849_v61  ;;  %v5864_v15 = vshll.u32 %v12855_v3, 30  ;;  %v2191_v33 = vxor.u32 2147483648, %v12836_v10 }
 0x5fa   : > { %v2952_v6 = vadd.f32 1.0, %v2951_v19  ;;  %v3408_v5 = vsel %vm3285_vm14, %v3407_v54, %v12458_v4  ;;  %vm2964_vm0 = vcmp.lt.s32.totalorder %v2963_v9, 2  ;;  %v3419_v51 = vmul.f32 -0.00019511016, %v12853_v48 }
 0x5fb   : > { %v5437_v46 = vadd.f32 -0.16666654, %v5436_v63  ;;  %v4198_v26 = vmul.f32 %v4197_v31, %v12759_v7  ;;  %v5422_v23 = vsub.s32 4, %v12712_v12  ;;  %v5865_v2 = vsub.s32 %v5861_v28, %v5864_v15 }
 0x5fc   : > { %vm2965_vm2 = vcmp.eq.s32.totalorder %v2963_v9, 0  ;;  %v2966_v56 = vxor.u32 2147483648, %v2960_v32  ;;  %v4183_v47 = vsel %vm4060_vm3, %v4182_v29, %v12412_v34  ;;  %v5429_v21 = vmul.f32 %v5428_v45, %v12823_v53 }
 0x5fd   : > { %v4190_v8 = vadd.f32 -0.4999988, %v4189_v24  ;;  %v4659_v4 = vmul.f32 -0.00019511016, %v12866_v57  ;;  %vm5866_vm13 = vcmp.lt.s32.totalorder %v5865_v2, 0  ;;  %v5867_v59 = vsub.s32 0, %v5865_v2 }
 0x5fe   : > { %vm2968_vm15 = vcmp.eq.s32.totalorder %v2963_v9, 2  ;;  %v2969_v27 = vxor.u32 2147483648, %v2952_v6  ;;  %v3410_v62 = vsel %vm12776_vm7, 0, %v3408_v5  ;;  %v5438_v22 = vmul.f32 %v5437_v46, %v12823_v53 }
 0x5ff   : > { %v3420_v38 = vadd.f32 0.008332121, %v3419_v51  ;;  %v4199_v43 = vadd.f32 1.0, %v4198_v26  ;;  %v5423_v34 = vsel %vm5300_vm4, %v5422_v23, %v12712_v12  ;;  %v5868_v35 = vsel %vm5866_vm13, %v5867_v59, %v5865_v2 }
 0x600   : > { %vm2961_vm3 = vweird.f32 %v13610_v41  ;;  %v3412_v30 = vmul.f32 -0.001358992, %v12853_v48  ;;  %v4185_v40 = vsel %vm12697_vm1, 0, %v4183_v47  ;;  %v5430_v28 = vadd.f32 -0.4999988, %v5429_v21 }
 0x601   : > { %v5869_v55 = vclz %v5868_v35  ;;  %v2967_v17 = vsel %vm2965_vm2, %v2952_v6, %v2966_v56  ;;  %v12892_v36 = vadd.s32 3, %v3410_v62  ;;  %v4191_v13 = vmul.f32 %v4190_v8, %v12759_v7 }
 0x602   : > { %v4660_v16 = vadd.f32 0.008332121, %v4659_v4  ;;  %v2970_v11 = vsel %vm2968_vm15, %v2969_v27, %v2960_v32  ;;  %v5425_v12 = vsel %vm12805_vm6, 0, %v5423_v34  ;;  %v5439_v0 = vadd.f32 1.0, %v5438_v22  ;;  %v13633_v22 = vld [vmem:[#allocation15_spill] sm:$0xff] }
 0x603   : > { %v6280_v19 = vadd.s32 4294967294, %v5869_v55  ;;  %v3421_v54 = vmul.f32 %v3420_v38, %v12853_v48  ;;  %v4200_v25 = vmul.f32 %v4199_v43, %v12749_v52  ;;  %v4202_v18 = vadd.s32 3, %v4185_v40 }
 0x604   : > { %v4652_v31 = vmul.f32 -0.001358992, %v12866_v57  ;;  %v2971_v29 = vsel %vm2964_vm0, %v2967_v17, %v2970_v11  ;;  %v3413_v45 = vadd.f32 0.041655596, %v3412_v30  ;;  %v5431_v7 = vmul.f32 %v5430_v28, %v12823_v53 }
 0x605   : > { %vm6281_vm1 = vcmp.lt.s32.totalorder %v6280_v19, 0  ;;  %v4192_v63 = vadd.f32 1.0, %v4191_v13  ;;  %v4661_v32 = vmul.f32 %v4660_v16, %v12866_v57  ;;  %v5442_v44 = vadd.s32 3, %v5425_v12  ;;  %v13634_v13 = vld [vmem:[#allocation22_spill] sm:$0xff] }
 0x606   : > { %v5872_v24 = vsel %vm6281_vm1, 0, %v6280_v19  ;;  %v5440_v15 = vmul.f32 %v5439_v0, %v12817_v49  ;;  %v5857_v6 = vadd.s32 %v12793_v14, %v12786_v58  ;;  %v3422_v46 = vadd.f32 -0.16666654, %v3421_v54 }
 0x607   : > { %v5873_v52 = vsub.s32 32, %v5872_v24  ;;  %v5877_v5 = vsub.s32 4294967266, %v5872_v24  ;;  %v4203_v51 = vand.u32 3, %v4202_v18  ;;  %v4206_v9 = vxor.u32 2147483648, %v4200_v25 }
 0x608   : > { %v4653_v26 = vadd.f32 0.041655596, %v4652_v31  ;;  %v5432_v23 = vadd.f32 1.0, %v5431_v7  ;;  %v5874_v56 = vshll.u32 %v5865_v2, %v5872_v24  ;;  %v2972_v21 = vsel %vm2961_vm3, nan, %v2971_v29 }
 0x609   : > { %v5875_v53 = vshrl.u32 %v5857_v6, %v5873_v52  ;;  %v5878_v47 = vadd.s32 127, %v5877_v5  ;;  %v3414_v8 = vmul.f32 %v3413_v45, %v12853_v48  ;;  %v4209_v4 = vxor.u32 2147483648, %v4192_v63  ;;  %v13640_v52 = vld [vmem:[#allocation18_spill] sm:$0xff] }
 0x60a   : > { %v5443_v49 = vand.u32 3, %v5442_v44  ;;  %v4662_v59 = vadd.f32 -0.16666654, %v4661_v32  ;;  %v5446_v27 = vxor.u32 2147483648, %v5440_v15  ;;  %v3423_v62 = vmul.f32 %v3422_v46, %v12853_v48  ;;  %v13635_v32 = vld [vmem:[#allocation29_spill] sm:$0xff] }
 0x60b   : > { %v5876_v58 = vor.u32 %v5875_v53, %v5874_v56  ;;  %v5879_v14 = vshll.u32 %v5878_v47, 23  ;;  %vm4205_vm10 = vcmp.eq.s32.totalorder %v4203_v51, 0  ;;  %vm4208_vm11 = vcmp.eq.s32.totalorder %v4203_v51, 2  ;;  %v13642_v47 = vld [vmem:[#allocation31_spill] sm:$0xff] }
 0x60c   : > { %v4647_v38 = vsub.s32 4, %v13633_v22  ;;  %v4207_v2 = vsel %vm4205_vm10, %v4192_v63, %v4206_v9  ;;  %v4654_v43 = vmul.f32 %v4653_v26, %v12866_v57  ;;  %v5449_v34 = vxor.u32 2147483648, %v5432_v23 }
 0x60d   : > { %v5880_v41 = vor.u32 4788187, %v5879_v14  ;;  %v3415_v35 = vadd.f32 -0.4999988, %v3414_v8  ;;  %vm4204_vm14 = vcmp.lt.s32.totalorder %v4203_v51, 2  ;;  %v4210_v30 = vsel %vm4208_vm11, %v4209_v4, %v4200_v25 }
 0x60e   : > { %vm5445_vm5 = vcmp.eq.s32.totalorder %v5443_v49, 0  ;;  %v4663_v40 = vmul.f32 %v4662_v59, %v12866_v57  ;;  %v5883_v17 = vcvt.s32.f32 %v5876_v58  ;;  %vm2190_vm7 = vcmp.eq.s32.totalorder %v13634_v13, 0 }
 0x60f   : > { %v5447_v28 = vsel %vm5445_vm5, %v5432_v23, %v5446_v27  ;;  %v5881_v55 = vand.u32 2147483647, %v5880_v41  ;;  %v3424_v16 = vadd.f32 1.0, %v3423_v62  ;;  %v4211_v11 = vsel %vm4204_vm14, %v4207_v2, %v4210_v30  ;;  %v13641_v23 = vld [vmem:[#allocation41_spill] sm:$0xff] }
 0x610   : > { %v4648_v12 = vsel %vm4525_vm9, %v4647_v38, %v13633_v22  ;;  %vm5448_vm4 = vcmp.eq.s32.totalorder %v5443_v49, 2  ;;  %v4655_v0 = vadd.f32 -0.4999988, %v4654_v43  ;;  %vm5444_vm8 = vcmp.lt.s32.totalorder %v5443_v49, 2 }
 0x611   : > { %v5450_v19 = vsel %vm5448_vm4, %v5449_v34, %v5440_v15  ;;  %v5884_v54 = vmul.f32 %v5883_v17, %v5881_v55  ;;  %v3416_v25 = vmul.f32 %v3415_v35, %v12853_v48  ;;  %v3428_v18 = vand.u32 3, %v12892_v36  ;;  %v13636_v15 = vld [vmem:[#allocation43_spill] sm:$0xff] }
 0x612   : > { %vm4201_vm6 = vweird.f32 %v13619_v20  ;;  %v5451_v31 = vsel %vm5444_vm8, %v5447_v28, %v5450_v19  ;;  %v4650_v45 = vsel %vm12840_vm12, 0, %v4648_v12  ;;  %v4664_v7 = vadd.f32 1.0, %v4663_v40 }
 0x613   : > { %v4212_v29 = vsel %vm4201_vm6, nan, %v4211_v11  ;;  %v5885_v63 = vxor.u32 2147483648, %v5884_v54  ;;  %v5930_v44 = vmul.f32 %v2972_v21, %v13635_v32  ;;  %v3425_v24 = vmul.f32 %v3424_v16, %v12831_v60 }
 0x614   : > { %vm5441_vm9 = vweird.f32 %v12460_v39  ;;  %vm5765_vm0 = vcmp.lt.s32.totalorder %v13636_v15, 0  ;;  %v4656_v48 = vmul.f32 %v4655_v0, %v12866_v57  ;;  %v13637_v20 = vand.u32 2147483647, %v13636_v15  ;;  %v13643_v0 = vld [vmem:[#allocation20_spill] sm:$0xff] }
 0x615   : > { %v5452_v36 = vsel %vm5441_vm9, nan, %v5451_v31  ;;  %v5886_v1 = vsel %vm5765_vm0, %v5885_v63, %v5884_v54  ;;  %v5938_v5 = vmul.f32 %v4212_v29, %v13640_v52  ;;  %v4667_v46 = vadd.s32 3, %v4650_v45  ;;  %v13646_v31 = vld [vmem:[#allocation40_spill] sm:$0xff] }
 0x616   : > { %vm12930_vm2 = vcmp.le.f32.partialorder %v13637_v20, 0.7853982  ;;  %v5887_v60 = vsub.s32 4, %v12855_v3  ;;  %vm2193_vm12 = vcmp.eq.s32.totalorder %v13634_v13, 2  ;;  %v3417_v57 = vadd.f32 1.0, %v3416_v25  ;;  %v13645_v25 = vld [vmem:[#allocation38_spill] sm:$0xff] }
 0x617   : > { %v5889_v39 = vsel %vm12930_vm2, %v13636_v15, %v5886_v1  ;;  %v4665_v51 = vmul.f32 %v4664_v7, %v12849_v61  ;;  %v2194_v26 = vxor.u32 2147483648, %v12861_v37  ;;  %v5986_v56 = vadd.f32 %v5930_v44, %v13641_v23 }
 0x618   : > { %v5891_v9 = vmul.f32 %v5889_v39, %v5889_v39  ;;  %v3431_v53 = vxor.u32 2147483648, %v3425_v24  ;;  %v5946_v21 = vmul.f32 %v5452_v36, %v13642_v47  ;;  %v2192_v8 = vsel %vm2190_vm7, %v12861_v37, %v2191_v33 }
 0x619   : > { %v4657_v4 = vadd.f32 1.0, %v4656_v48  ;;  %vm3430_vm13 = vcmp.eq.s32.totalorder %v3428_v18, 0  ;;  %v4668_v27 = vand.u32 3, %v4667_v46  ;;  %v5987_v61 = vadd.f32 %v5986_v56, %v5938_v5  ;;  %v13647_v48 = vld [vmem:[#allocation16_spill] sm:$0xff]  ;;  %v13649_v5 = vld [vmem:[#allocation39_spill] sm:$0xff]  ;;  %v13653_v56 = vld [vmem:[#allocation33_spill] sm:$0xff] }
 0x61a   : > { %v5892_v49 = vmul.f32 -0.001358992, %v5891_v9  ;;  %v5899_v59 = vmul.f32 -0.00019511016, %v5891_v9  ;;  %v5888_v58 = vsel %vm5765_vm0, %v5887_v60, %v12855_v3  ;;  %v3434_v14 = vxor.u32 2147483648, %v3417_v57  ;;  %v13650_v46 = vld [vmem:[#allocation28_spill] sm:$0xff] }
 0x61b   : > { %v4671_v62 = vxor.u32 2147483648, %v4665_v51  ;;  %vm2189_vm15 = vcmp.lt.s32.totalorder %v13634_v13, 2  ;;  %v2195_v37 = vsel %vm2193_vm12, %v2194_v26, %v12836_v10  ;;  %v3432_v33 = vsel %vm3430_vm13, %v3417_v57, %v3431_v53  ;;  %v13651_v57 = vld [vmem:[#allocation10_spill] sm:$0xff] }
 0x61c   : > { %v5893_v22 = vadd.f32 0.041655596, %v5892_v49  ;;  %v5900_v38 = vadd.f32 0.008332121, %v5899_v59  ;;  %v5988_v2 = vadd.f32 %v5987_v61, %v5946_v21  ;;  %v4674_v43 = vxor.u32 2147483648, %v4657_v4  ;;  %v13654_v21 = vld [vmem:[#allocation35_spill] sm:$0xff] }
 0x61d   : > { %v5890_v34 = vsel %vm12930_vm2, 0, %v5888_v58  ;;  %v2196_v30 = vsel %vm2189_vm15, %v2192_v8, %v2195_v37  ;;  %vm3429_vm3 = vcmp.lt.s32.totalorder %v3428_v18, 2  ;;  %vm3433_vm1 = vcmp.eq.s32.totalorder %v3428_v18, 2  ;;  %v13655_v37 = vld [vmem:[#allocation36_spill] sm:$0xff] }
 0x61e   : > { %v5894_v41 = vmul.f32 %v5893_v22, %v5891_v9  ;;  %v5901_v35 = vmul.f32 %v5900_v38, %v5891_v9  ;;  %vm4670_vm10 = vcmp.eq.s32.totalorder %v4668_v27, 0  ;;  %v3435_v3 = vsel %vm3433_vm1, %v3434_v14, %v3425_v24 }
 0x61f   : > { %v4672_v40 = vsel %vm4670_vm10, %v4657_v4, %v4671_v62  ;;  %v3436_v17 = vsel %vm3429_vm3, %v3432_v33, %v3435_v3  ;;  %vm4673_vm11 = vcmp.eq.s32.totalorder %v4668_v27, 2  ;;  %v5989_v13 = vrot.slane %v5988_v2, 4 }
 0x620   : > { %v5895_v28 = vadd.f32 -0.4999988, %v5894_v41  ;;  %v5902_v55 = vadd.f32 -0.16666654, %v5901_v35  ;;  %v5907_v10 = vadd.s32 3, %v5890_v34  ;;  %vm4669_vm14 = vcmp.lt.s32.totalorder %v4668_v27, 2 }
 0x621   : > { %v4675_v16 = vsel %vm4673_vm11, %v4674_v43, %v4665_v51  ;;  %v13644_v19 = vrot.slane %v13643_v0, 4  ;;  %vm2186_vm5 = vweird.f32 %v13645_v25  ;;  %vm3426_vm7 = vweird.f32 %v13623_v42 }
 0x622   : > { %v5896_v11 = vmul.f32 %v5895_v28, %v5891_v9  ;;  %v5903_v12 = vmul.f32 %v5902_v55, %v5891_v9  ;;  %v4676_v18 = vsel %vm4669_vm14, %v4672_v40, %v4675_v16  ;;  %v6007_v29 = vrot.slane %v13646_v31, 4  ;;  %v13652_v9 = vld [vmem:[#allocation34_spill] sm:$0xff] }
 0x623   : > { %v5981_v54 = vadd.f32 %v13644_v19, %v13643_v0  ;;  %v3437_v45 = vsel %vm3426_vm7, nan, %v3436_v17  ;;  %v2197_v32 = vsel %vm2186_vm5, nan, %v2196_v30  ;;  %vm4666_vm4 = vweird.f32 %v12179_v50 }
 0x624   : > { %v5897_v7 = vadd.f32 1.0, %v5896_v11  ;;  %v5904_v63 = vadd.f32 1.0, %v5903_v12  ;;  %v5990_v44 = vadd.f32 %v5989_v13, %v5988_v2  ;;  %v5908_v24 = vand.u32 3, %v5907_v10 }
 0x625   : > { %v13648_v36 = vrot.slane %v13647_v48, 4  ;;  %v4677_v6 = vsel %vm4666_vm4, nan, %v4676_v18  ;;  %v5964_v42 = vrot.slane %v13649_v5, 2  ;;  %v5973_v60 = vrot.slane %v13650_v46, 2 }
 0x626   : > { %v5905_v1 = vmul.f32 %v5904_v63, %v5889_v39  ;;  %v5914_v52 = vxor.u32 2147483648, %v5897_v7  ;;  %v5953_v51 = vrot.slane %v13651_v57, 4  ;;  %v5933_v26 = vmul.f32 %v3437_v45, %v13652_v9 }
 0x627   : > { %v5999_v20 = vadd.f32 %v13648_v36, %v13647_v48  ;;  %v5982_v23 = vrot.slane %v5981_v54, 2  ;;  %v6008_v50 = vadd.f32 %v6007_v29, %v13646_v31  ;;  %v5925_v53 = vmul.f32 %v2197_v32, %v13653_v56 }
 0x628   : > { %v5911_v47 = vxor.u32 2147483648, %v5905_v1  ;;  %v5941_v8 = vmul.f32 %v4677_v6, %v13654_v21  ;;  %v5991_v4 = vrot.slane %v5990_v44, 2  ;;  %vm5910_vm8 = vcmp.eq.s32.totalorder %v5908_v24, 0 }
 0x629   : > { %vm5913_vm6 = vcmp.eq.s32.totalorder %v5908_v24, 2  ;;  %v6000_v39 = vrot.slane %v5999_v20, 2  ;;  %vm5909_vm9 = vcmp.lt.s32.totalorder %v5908_v24, 2  ;;  %v5954_v27 = vadd.f32 %v5953_v51, %v13651_v57 }
 0x62a   : > { %v5912_v49 = vsel %vm5910_vm8, %v5897_v7, %v5911_v47  ;;  %v5915_v59 = vsel %vm5913_vm6, %v5914_v52, %v5905_v1  ;;  %v6013_v61 = vadd.f32 %v5933_v26, %v5925_v53  ;;  %vm5906_vm0 = vweird.f32 %v13636_v15 }
 0x62b   : > { %v5916_v58 = vsel %vm5909_vm9, %v5912_v49, %v5915_v59  ;;  %v5983_v14 = vadd.f32 %v5982_v23, %v5981_v54  ;;  %v6009_v22 = vrot.slane %v6008_v50, 2  ;;  %v5992_v38 = vadd.f32 %v5991_v4, %v5990_v44 }
 0x62c   : > { %v5917_v62 = vsel %vm5906_vm0, nan, %v5916_v58  ;;  %v6014_v2 = vadd.f32 %v6013_v61, %v5941_v8  ;;  %v5974_v43 = vadd.f32 %v5973_v60, %v13650_v46  ;;  %v5965_v34 = vadd.f32 %v5964_v42, %v13649_v5 }
 0x62d   : > { %v5949_v33 = vmul.f32 %v5917_v62, %v13655_v37  ;;  %v6001_v41 = vadd.f32 %v6000_v39, %v5999_v20  ;;  %v5955_v35 = vrot.slane %v5954_v27, 2  ;;  %v5984_v3 = vrot.slane %v5983_v14, 1 }
 0x62e   : > { %v6010_v40 = vadd.f32 %v6009_v22, %v6008_v50  ;;  %v5993_v28 = vrot.slane %v5992_v38, 1  ;;  %v5975_v15 = vrot.slane %v5974_v43, 1  ;;  %v5966_v17 = vrot.slane %v5965_v34, 1 }
 0x62f   : > { %v6015_v30 = vadd.f32 %v6014_v2, %v5949_v33  ;;  %v6002_v13 = vrot.slane %v6001_v41, 1  ;;  %v5956_v10 = vadd.f32 %v5955_v35, %v5954_v27  ;;  %v5985_v11 = vadd.f32 %v5984_v3, %v5983_v14 }
 0x630   : > { %v6011_v12 = vrot.slane %v6010_v40, 1  ;;  %v5994_v0 = vadd.f32 %v5993_v28, %v5992_v38  ;;  %v5976_v54 = vadd.f32 %v5975_v15, %v5974_v43  ;;  %v5967_v25 = vadd.f32 %v5966_v17, %v5965_v34 }
 0x631   : > { %v6016_v55 = vrot.slane %v6015_v30, 4  ;;  %v6003_v18 = vadd.f32 %v6002_v13, %v6001_v41  ;;  %v5957_v31 = vrot.slane %v5956_v10, 1  ;;  %v6032_v45 = vrot.slane %v5985_v11, 5 }
 0x632   : > { %vm6039_vm2 = vcmask 1042434   ;;  %v6012_v7 = vadd.f32 %v6011_v12, %v6010_v40  ;;  %v6033_v63 = vrot.slane %v5994_v0, 4  ;;  %v6031_v44 = vrot.slane %v5976_v54, 6 }
 0x633   : > { %v6017_v16 = vadd.f32 %v6016_v55, %v6015_v30  ;;  %vm6043_vm12 = vcmask 1044484   ;;  %v6030_v24 = vrot.slane %v5967_v25, 7  ;;  %v6034_v48 = vrot.slane %v6003_v18, 3 }
 0x634   : > { %v5958_v36 = vadd.f32 %v5957_v31, %v5956_v10  ;;  %vm6037_vm13 = vcmask 1040384   ;;  %v6040_v6 = vsel %vm6039_vm2, %v6031_v44, %v6032_v45  ;;  %vm6041_vm15 = vcmask 1041408  }
 0x635   : > { %v6018_v19 = vrot.slane %v6017_v16, 2  ;;  %vm6045_vm3 = vcmask 1046534   ;;  %v6035_v1 = vrot.slane %v6012_v7, 2  ;;  %v6044_v52 = vsel %vm6043_vm12, %v6033_v63, %v6034_v48 }
 0x636   : > { %vm6047_vm1 = vcmask 1045508   ;;  %vm6049_vm10 = vcmask 1043456   ;;  %v6038_v42 = vsel %vm6037_vm13, %v5958_v36, %v6030_v24 }
 0x637   : > { %v6019_v29 = vadd.f32 %v6018_v19, %v6017_v16  ;;  %v6042_v60 = vsel %vm6041_vm15, %v6038_v42, %v6040_v6 }
 0x639   : > { %v6020_v32 = vrot.slane %v6019_v29, 1 }
 0x63b   : > { %v6021_v20 = vadd.f32 %v6020_v32, %v6019_v29 }
 0x63d   : > { %v6036_v5 = vrot.slane %v6021_v20, 1 }
 0x63f   : > { %v6046_v46 = vsel %vm6045_vm3, %v6035_v1, %v6036_v5 }
 0x640   : > { %v6048_v57 = vsel %vm6047_vm1, %v6044_v52, %v6046_v46 }
 0x641   : > { %v6050_v51 = vsel %vm6049_vm10, %v6042_v60, %v6048_v57 }
 0x642   : > { %6052 = vst [vmem:[%s222_s6] sm:$0xff] %v6050_v51 }
 0x643 PF: > { %s15_s18 = sadd.s32 1, %s6329_s18  }
 0x644   : > { %p12_p4 = scmp.ge.s32.totalorder %s15_s18, 4  }
 0x646   :  { %14 = sbr.rel (!%p12_p4) target bundleno = 1 (0x1), region = 70 }

// kernel: audio_model_forward.7
= control target key start
LH: loop header
LB: loop body
LE: loop exit
PB: predicated region body
PF: predicated region fallthrough
CT: control target
= control target key end

     0   :  { %9 = vsyncpa [#allocation4], 0  ;;  %s1801_s0 = inlined_call_operand.vmem [shape: f32[2,1], index: 0, kind: input, shape index: {}]   ;;  %s1802_s1 = inlined_call_operand.vmem [shape: f32[2,8,128], index: 1, kind: input, shape index: {}]   ;;  %s1803_s2 = inlined_call_operand.vmem [shape: f32[2,8,1152], index: 2, kind: input, shape index: {}]   ;;  %s1804_s3 = inlined_call_operand.vmem [shape: bf16[2,1152,128], index: 3, kind: input, shape index: {}]   ;;  %s1805_s4 = inlined_call_operand.hbm [shape: f32[2,8,128], index: 4, kind: output, shape index: {}]  }
   0x1   :  { %10 = vsyncpa [#allocation3], 0 }
   0x2   :  { %12 = vsyncpa [#allocation3 + $0x1], 0  ;;  %s1615_s15 = smov 0   ;;  %s1617_s16 = smov 0  }
   0x3   :  { %s1619_s17 = smov 0   ;;  %s1621_s18 = smov 0  }
   0x4 LB: > { %s1636_s19 = sadd.s32 4294967295, %s1587_s18   ;;  %s1079_s20 = sadd.s32 4294967294, %s1587_s18   ;;  %s1587_s18 = sphi %s1621_s18, %s1811_s18   ;;  %s1583_s17 = sphi %s1619_s17, %s1810_s17   ;;  %s1579_s16 = sphi %s1617_s16, %s1809_s16   ;;  %s1575_s15 = sphi %s1615_s15, %s1808_s15  }
   0x5   : > { %s1640_s21 = sadd.s32 1, %s1587_s18   ;;  %s124_s22 = sadd.s32 1, %s1583_s17 }
   0x6   : > { %s121_s23 = ssub.s32 %s1587_s18, %s1640_s21  ;;  %p134_p0 = scmp.ne.s32.totalorder %s1583_s17, %s1579_s16 }
   0x7   : > { %p122_p1 = scmp.eq.s32.totalorder %s121_s23, 0  ;;  %p135_p2 = scmp.eq.s32.totalorder %s1636_s19, 1 }
   0x8   : > { %p140_p3 = scmp.ne.s32.totalorder %s1579_s16, %s1575_s15  ;;  %p141_p4 = scmp.eq.s32.totalorder %s1079_s20, 1 }
   0x9   : > { %s1651_s24 = scalar_select %p122_p1, %s1583_s17, %s124_s22  }
   0xa   : > { %p1653_p5 = por %p135_p2, %p134_p0  ;;  %p1657_p6 = por %p141_p4, %p140_p3 }
   0xb   : > { %p1080_p7 = scmp.ge.s32.totalorder %s1587_s18, 1  ;;  %p148_p8 = scmp.lt.s32.totalorder %s1587_s18, 3 }
   0xc   : > { %p1470_p9 = scmp.eq.s32.totalorder %s1636_s19, 0  ;;  %s160_s29 = sshll.u32 %s1801_s0, 4  ;;  %s161_s29 = int_to_ptr.vmem [resolvable:$true] %s160_s29 }
   0xd   : > { %p149_p10 = pnand %p1080_p7, %p148_p8  ;;  %s1589_s30 = smov [#allocation2]  }
   0xf   : > { %p1462_p11 = pneg %p149_p10  ;;  %196 = sbr.rel (%p149_p10) target bundleno = 262 (0x106), region = 36 }
  0x11   : > { %p1463_p12 = pnand %p1470_p9, %p1462_p11 }
  0x13   : > { %1465 = dma.vmem_to_smem (!%p1463_p12), %s161_s29, 32, %s1589_s30, [#allocation4]  }
  0x14   : > { %1566 = dma.done.wait (%p1470_p9), [#allocation4], 32  }
  0x15   : > { %1568 = vsyncadd (%p1470_p9), [#allocation4], 4294967264 }
  0x16   : > { %203 = sfence }
  0x17   : > { %p233_p13 = scmp.lt.s32.totalorder %s1636_s19, 1  ;;  %s1377_s14 = sshll.u32 %s1636_s19, 7 }
  0x18   : > { %s959_s20 = sld [smem:[#allocation2 + %s1377_s14]]  ;;  %s230_s23 = sand.u32 1, %s1579_s16  }
  0x19   : > { %s1669_s5 = scalar_select %p233_p13, %s1636_s19, 1 }
  0x1a   : > { %s1379_s7 = sshll.u32 %s1636_s19, 3  ;;  %s969_s19 = scalar_lea.sflag [#allocation3], %s230_s23 }
  0x1b   : > { %s1455_s6 = smul.u32 576, %s1669_s5  ;;  %s1086_s22 = sshll.u32 %s1669_s5, 3 }
  0x1c   : > { %s1454_s10 = smul.u32 72, %s1669_s5  ;;  %s236_s29 = scalar_lea.vmem %s1802_s1, %s1086_s22 }
  0x1d   : > { %s1675_s9 = scalar_lea.vmem %s1804_s3, %s1455_s6  ;;  %s1085_s6 = sshll.u32 %s230_s23, 3 }
  0x1e   : > { %v1389_v0 = vld [vmem:[%s1675_s9 + $0x38] sm:$0xff]  ;;  %v1388_v4 = vld [vmem:[%s1675_s9 + $0x30] sm:$0xff]  ;;  %v1387_v8 = vld [vmem:[%s1675_s9 + $0x28] sm:$0xff]  ;;  %s1709_s13 = scalar_lea.vmem %s1803_s2, %s1454_s10  ;;  %s963_s30 = ssub.f32 1.0, %s959_s20 }
  0x1f   : > { %v1405_v1 = vld [vmem:[%s1675_s9 + $0xb8] sm:$0xff]  ;;  %841 = vmatpush.bf16.msra.mxu0 %v1389_v0  ;;  %v1404_v5 = vld [vmem:[%s1675_s9 + $0xb0] sm:$0xff]  ;;  %v1403_v9 = vld [vmem:[%s1675_s9 + $0xa8] sm:$0xff]  ;;  %s979_s10 = scalar_lea.hbm %s1805_s4, %s1379_s7  ;;  %s232_s5 = scalar_lea.vmem [#allocation5], %s1085_s6 }
  0x20   : > { %v1413_v2 = vld [vmem:[%s1675_s9 + $0xf8] sm:$0xff]  ;;  %867 = vmatpush.bf16.msra.mxu2 %v1405_v1  ;;  %v1412_v6 = vld [vmem:[%s1675_s9 + $0xf0] sm:$0xff]  ;;  %v1411_v10 = vld [vmem:[%s1675_s9 + $0xe8] sm:$0xff]  ;;  %s981_s11 = sshll.u32 %s232_s5, 4  ;;  %s983_s12 = sshll.u32 %s979_s10, 4  ;;  %s982_s11 = int_to_ptr.vmem [resolvable:$true] %s981_s11  ;;  %s984_s12 = int_to_ptr.hbm [resolvable:$true] %s983_s12 }
  0x21   : > { %v1397_v3 = vld [vmem:[%s1675_s9 + $0x78] sm:$0xff]  ;;  %880 = vmatpush.bf16.msra.mxu3 %v1413_v2  ;;  %v1396_v7 = vld [vmem:[%s1675_s9 + $0x70] sm:$0xff]  ;;  %v1395_v11 = vld [vmem:[%s1675_s9 + $0x68] sm:$0xff]  ;;  %s1541_s27 = scalar_lea.hbm %s1805_s4, 16 }
  0x22   : > { %854 = vmatpush.bf16.msra.mxu1 %v1397_v3  ;;  %v1386_v12 = vld [vmem:[%s1675_s9 + $0x20] sm:$0xff]  ;;  %v1385_v16 = vld [vmem:[%s1675_s9 + $0x18] sm:$0xff]  ;;  %v1384_v20 = vld [vmem:[%s1675_s9 + $0x10] sm:$0xff] }
  0x23   : > { %842 = vmatpush.bf16.msra.mxu0 %v1388_v4  ;;  %v1402_v13 = vld [vmem:[%s1675_s9 + $0xa0] sm:$0xff]  ;;  %v1401_v17 = vld [vmem:[%s1675_s9 + $0x98] sm:$0xff]  ;;  %v1400_v21 = vld [vmem:[%s1675_s9 + $0x90] sm:$0xff] }
  0x24   : > { %868 = vmatpush.bf16.msra.mxu2 %v1404_v5  ;;  %v1410_v14 = vld [vmem:[%s1675_s9 + $0xe0] sm:$0xff]  ;;  %v1409_v18 = vld [vmem:[%s1675_s9 + $0xd8] sm:$0xff]  ;;  %v1408_v22 = vld [vmem:[%s1675_s9 + $0xd0] sm:$0xff] }
  0x25   : > { %881 = vmatpush.bf16.msra.mxu3 %v1412_v6  ;;  %v1394_v15 = vld [vmem:[%s1675_s9 + $0x60] sm:$0xff]  ;;  %v1393_v19 = vld [vmem:[%s1675_s9 + $0x58] sm:$0xff]  ;;  %v1392_v23 = vld [vmem:[%s1675_s9 + $0x50] sm:$0xff] }
  0x26   : > { %855 = vmatpush.bf16.msra.mxu1 %v1396_v7  ;;  %v1383_v24 = vld [vmem:[%s1675_s9 + $0x8] sm:$0xff]  ;;  %v1382_v28 = vld [vmem:[%s1675_s9] sm:$0xff]  ;;  %v1421_v30 = vld [vmem:[%s1675_s9 + $0x138] sm:$0xff] }
  0x27   : > { %843 = vmatpush.bf16.msra.mxu0 %v1387_v8  ;;  %v1399_v25 = vld [vmem:[%s1675_s9 + $0x88] sm:$0xff]  ;;  %v1398_v29 = vld [vmem:[%s1675_s9 + $0x80] sm:$0xff]  ;;  %v1437_v31 = vld [vmem:[%s1675_s9 + $0x1b8] sm:$0xff] }
  0x28   : > { %869 = vmatpush.bf16.msra.mxu2 %v1403_v9  ;;  %v1407_v26 = vld [vmem:[%s1675_s9 + $0xc8] sm:$0xff]  ;;  %v249_v32 = vld [vmem:[%s1709_s13 + $0x10] sm:$0xff]  ;;  %v247_v33 = vld [vmem:[%s1709_s13] sm:$0xff] }
  0x29   : > { %882 = vmatpush.bf16.msra.mxu3 %v1411_v10  ;;  %v1391_v27 = vld [vmem:[%s1675_s9 + $0x48] sm:$0xff]  ;;  %v1406_v34 = vld [vmem:[%s1675_s9 + $0xc0] sm:$0xff]  ;;  %v1445_v35 = vld [vmem:[%s1675_s9 + $0x1f8] sm:$0xff]  ;;  %v258_v40 = vpack.c.bf16 %v249_v32, %v249_v32  ;;  %v256_v41 = vpack.c.bf16 %v247_v33, %v247_v33 }
  0x2a   : > { %856 = vmatpush.bf16.msra.mxu1 %v1395_v11  ;;  %v1390_v36 = vld [vmem:[%s1675_s9 + $0x40] sm:$0xff]  ;;  %v1429_v37 = vld [vmem:[%s1675_s9 + $0x178] sm:$0xff]  ;;  %v248_v39 = vld [vmem:[%s1709_s13 + $0x8] sm:$0xff] }
  0x2b   : > { %844 = vmatpush.bf16.msra.mxu0 %v1386_v12  ;;  %v250_v38 = vld [vmem:[%s1709_s13 + $0x18] sm:$0xff]  ;;  %v1420_v42 = vld [vmem:[%s1675_s9 + $0x130] sm:$0xff]  ;;  %v257_v45 = vpack.c.bf16 %v248_v39, %v248_v39  ;;  %v1419_v48 = vld [vmem:[%s1675_s9 + $0x128] sm:$0xff] }
  0x2c   : > { %870 = vmatpush.bf16.msra.mxu2 %v1402_v13  ;;  %v1436_v43 = vld [vmem:[%s1675_s9 + $0x1b0] sm:$0xff]  ;;  %v259_v44 = vpack.c.bf16 %v250_v38, %v250_v38  ;;  %v1435_v49 = vld [vmem:[%s1675_s9 + $0x1a8] sm:$0xff]  ;;  %v1418_v52 = vld [vmem:[%s1675_s9 + $0x120] sm:$0xff] }
  0x2d   : > { %883 = vmatpush.bf16.msra.mxu3 %v1410_v14  ;;  %v1444_v46 = vld [vmem:[%s1675_s9 + $0x1f0] sm:$0xff]  ;;  %v1443_v50 = vld [vmem:[%s1675_s9 + $0x1e8] sm:$0xff]  ;;  %v1434_v53 = vld [vmem:[%s1675_s9 + $0x1a0] sm:$0xff] }
  0x2e   : > { %857 = vmatpush.bf16.msra.mxu1 %v1394_v15  ;;  %v1428_v47 = vld [vmem:[%s1675_s9 + $0x170] sm:$0xff]  ;;  %v1427_v51 = vld [vmem:[%s1675_s9 + $0x168] sm:$0xff]  ;;  %v1442_v54 = vld [vmem:[%s1675_s9 + $0x1e0] sm:$0xff] }
  0x2f   : > { %845 = vmatpush.bf16.msra.mxu0 %v1385_v16  ;;  %v1426_v55 = vld [vmem:[%s1675_s9 + $0x160] sm:$0xff]  ;;  %v1417_v56 = vld [vmem:[%s1675_s9 + $0x118] sm:$0xff]  ;;  %v1416_v60 = vld [vmem:[%s1675_s9 + $0x110] sm:$0xff] }
  0x30   : > { %871 = vmatpush.bf16.msra.mxu2 %v1401_v17  ;;  %v1433_v57 = vld [vmem:[%s1675_s9 + $0x198] sm:$0xff]  ;;  %v1432_v61 = vld [vmem:[%s1675_s9 + $0x190] sm:$0xff]  ;;  %v1415_v0 = vld [vmem:[%s1675_s9 + $0x108] sm:$0xff] }
  0x31   : > { %884 = vmatpush.bf16.msra.mxu3 %v1409_v18  ;;  %v1441_v58 = vld [vmem:[%s1675_s9 + $0x1d8] sm:$0xff]  ;;  %v1440_v62 = vld [vmem:[%s1675_s9 + $0x1d0] sm:$0xff]  ;;  %v1431_v1 = vld [vmem:[%s1675_s9 + $0x188] sm:$0xff] }
  0x32   : > { %858 = vmatpush.bf16.msra.mxu1 %v1393_v19  ;;  %v1425_v59 = vld [vmem:[%s1675_s9 + $0x158] sm:$0xff]  ;;  %v1424_v63 = vld [vmem:[%s1675_s9 + $0x150] sm:$0xff]  ;;  %v1439_v2 = vld [vmem:[%s1675_s9 + $0x1c8] sm:$0xff] }
  0x33   : > { %846 = vmatpush.bf16.msra.mxu0 %v1384_v20  ;;  %v1423_v3 = vld [vmem:[%s1675_s9 + $0x148] sm:$0xff]  ;;  %v1414_v4 = vld [vmem:[%s1675_s9 + $0x100] sm:$0xff]  ;;  %v253_v6 = vld [vmem:[%s1709_s13 + $0x30] sm:$0xff] }
  0x34   : > { %872 = vmatpush.bf16.msra.mxu2 %v1400_v21  ;;  %v1430_v5 = vld [vmem:[%s1675_s9 + $0x180] sm:$0xff]  ;;  %v1453_v8 = vld [vmem:[%s1675_s9 + $0x238] sm:$0xff]  ;;  %v262_v12 = vpack.c.bf16 %v253_v6, %v253_v6  ;;  %v252_v14 = vld [vmem:[%s1709_s13 + $0x28] sm:$0xff] }
  0x35   : > { %885 = vmatpush.bf16.msra.mxu3 %v1408_v22  ;;  %v251_v7 = vld [vmem:[%s1709_s13 + $0x20] sm:$0xff]  ;;  %v254_v11 = vld [vmem:[%s1709_s13 + $0x38] sm:$0xff]  ;;  %v1452_v15 = vld [vmem:[%s1675_s9 + $0x230] sm:$0xff]  ;;  %v261_v17 = vpack.c.bf16 %v252_v14, %v252_v14 }
  0x36   : > { %859 = vmatpush.bf16.msra.mxu1 %v1392_v23  ;;  %v1438_v9 = vld [vmem:[%s1675_s9 + $0x1c0] sm:$0xff]  ;;  %v260_v13 = vpack.c.bf16 %v251_v7, %v251_v7  ;;  %v263_v16 = vpack.c.bf16 %v254_v11, %v254_v11  ;;  %v1451_v18 = vld [vmem:[%s1675_s9 + $0x228] sm:$0xff]  ;;  %v1449_v20 = vld [vmem:[%s1675_s9 + $0x218] sm:$0xff] }
  0x37   : > { %847 = vmatpush.bf16.msra.mxu0 %v1383_v24  ;;  %v1422_v10 = vld [vmem:[%s1675_s9 + $0x140] sm:$0xff]  ;;  %v1448_v21 = vld [vmem:[%s1675_s9 + $0x210] sm:$0xff]  ;;  %v1447_v22 = vld [vmem:[%s1675_s9 + $0x208] sm:$0xff] }
  0x38   : > { %873 = vmatpush.bf16.msra.mxu2 %v1399_v25  ;;  %v1450_v19 = vld [vmem:[%s1675_s9 + $0x220] sm:$0xff] }
  0x39   : > { %886 = vmatpush.bf16.msra.mxu3 %v1407_v26  ;;  %v1446_v23 = vld [vmem:[%s1675_s9 + $0x200] sm:$0xff] }
  0x3a   : > { %860 = vmatpush.bf16.msra.mxu1 %v1391_v27  ;;  %v255_v24 = vld [vmem:[%s1709_s13 + $0x40] sm:$0xff]  ;;  %s1535_s13 = sshra.s32 %s984_s12, 4  ;;  %s1536_s13 = int_to_ptr.hbm [resolvable:$true] %s1535_s13 }
  0x3b   : > { %848 = vmatpush.bf16.msra.mxu0 %v1382_v28  ;;  %v264_v25 = vpack.c.bf16 %v255_v24, %v255_v24  ;;  %s1537_s14 = scalar_lea.hbm %s1536_s13, 8  ;;  %p1542_p3 = scmp.lt.s32.totalorder %s1536_s13, %s1805_s4 }
  0x3c   : > { %874 = vmatpush.bf16.msra.mxu2 %v1398_v29  ;;  %p1538_p0 = scmp.ne.s32.totalorder %s1536_s13, %s1537_s14  ;;  %p1543_p4 = scmp.lt.s32.totalorder %s1541_s27, %s1537_s14 }
  0x3d   : > { %887 = vmatpush.bf16.msra.mxu3 %v1406_v34 }
  0x3e   : > { %861 = vmatpush.bf16.msra.mxu1 %v1390_v36  ;;  %849 = vmatmul.bf16.vlgmr.msra.gmra.mxu0 %v256_v41  ;;  %p1539_p1 = pnand %p1538_p0, %p1653_p5  ;;  %p1544_p7 = por %p1543_p4, %p1542_p3 }
  0x3f   : > { %893 = vmatpush.bf16.msrb.mxu0 %v1421_v30  ;;  %875 = vmatmul.bf16.vlgmr.msra.gmra.mxu2 %v258_v40 }
  0x40   : > { %919 = vmatpush.bf16.msrb.mxu2 %v1437_v31  ;;  %888 = vmatmul.bf16.vlgmr.msra.gmra.mxu3 %v259_v44  ;;  %p1540_p2 = pneg %p1539_p1 }
  0x41   : > { %932 = vmatpush.bf16.msrb.mxu3 %v1445_v35  ;;  %862 = vmatmul.bf16.vlgmr.msra.gmra.mxu1 %v257_v45 }
  0x42   : > { %906 = vmatpush.bf16.msrb.mxu1 %v1429_v37  ;;  %p1545_p8 = pnand %p1544_p7, %p1540_p2 }
  0x43   : > { %894 = vmatpush.bf16.msrb.mxu0 %v1420_v42 }
  0x44   : > { %920 = vmatpush.bf16.msrb.mxu2 %v1436_v43 }
  0x45   : > { %933 = vmatpush.bf16.msrb.mxu3 %v1444_v46 }
  0x46   : > { %907 = vmatpush.bf16.msrb.mxu1 %v1428_v47 }
  0x47   : > { %895 = vmatpush.bf16.msrb.mxu0 %v1419_v48  ;;  %v960_v48 = vld [vmem:[%s236_s29] sm:$0xff] }
  0x48   : > { %921 = vmatpush.bf16.msrb.mxu2 %v1435_v49  ;;  %v961_v49 = vstv %s959_s20 }
  0x49   : > { %934 = vmatpush.bf16.msrb.mxu3 %v1443_v50 }
  0x4a   : > { %908 = vmatpush.bf16.msrb.mxu1 %v1427_v51 }
  0x4b   : > { %896 = vmatpush.bf16.msrb.mxu0 %v1418_v52  ;;  %v964_v52 = vstv %s963_s30 }
  0x4c   : > { %922 = vmatpush.bf16.msrb.mxu2 %v1434_v53 }
  0x4d   : > { %935 = vmatpush.bf16.msrb.mxu3 %v1442_v54  ;;  %v962_v54 = vmul.f32 %v961_v49, %v960_v48 }
  0x4e   : > { %909 = vmatpush.bf16.msrb.mxu1 %v1426_v55 }
  0x4f   : > { %897 = vmatpush.bf16.msrb.mxu0 %v1417_v56 }
  0x50   : > { %923 = vmatpush.bf16.msrb.mxu2 %v1433_v57 }
  0x51   : > { %936 = vmatpush.bf16.msrb.mxu3 %v1441_v58 }
  0x52   : > { %910 = vmatpush.bf16.msrb.mxu1 %v1425_v59 }
  0x53   : > { %898 = vmatpush.bf16.msrb.mxu0 %v1416_v60 }
  0x54   : > { %924 = vmatpush.bf16.msrb.mxu2 %v1432_v61 }
  0x55   : > { %937 = vmatpush.bf16.msrb.mxu3 %v1440_v62 }
  0x56   : > { %911 = vmatpush.bf16.msrb.mxu1 %v1424_v63 }
  0x57   : > { %899 = vmatpush.bf16.msrb.mxu0 %v1415_v0 }
  0x58   : > { %925 = vmatpush.bf16.msrb.mxu2 %v1431_v1 }
  0x59   : > { %938 = vmatpush.bf16.msrb.mxu3 %v1439_v2 }
  0x5a   : > { %912 = vmatpush.bf16.msrb.mxu1 %v1423_v3 }
  0x5b   : > { %900 = vmatpush.bf16.msrb.mxu0 %v1414_v4 }
  0x5c   : > { %926 = vmatpush.bf16.msrb.mxu2 %v1430_v5 }
  0x5d   : > { %939 = vmatpush.bf16.msrb.mxu3 %v1438_v9 }
  0x5e   : > { %913 = vmatpush.bf16.msrb.mxu1 %v1422_v10  ;;  %901 = vmatmul.bf16.vlgmr.msrb.gmra.mxu0 %v260_v13 }
  0x5f   : > { %945 = vmatpush.bf16.msra.mxu0 %v1453_v8  ;;  %927 = vmatmul.bf16.vlgmr.msrb.gmra.mxu2 %v262_v12 }
  0x60   : > { %940 = vmatmul.bf16.vlgmr.msrb.gmra.mxu3 %v263_v16 }
  0x61   : > { %914 = vmatmul.bf16.vlgmr.msrb.gmra.mxu1 %v261_v17 }
  0x63   : > { %946 = vmatpush.bf16.msra.mxu0 %v1452_v15 }
  0x67   : > { %947 = vmatpush.bf16.msra.mxu0 %v1451_v18 }
  0x6b   : > { %948 = vmatpush.bf16.msra.mxu0 %v1450_v19 }
  0x6f   : > { %949 = vmatpush.bf16.msra.mxu0 %v1449_v20 }
  0x73   : > { %950 = vmatpush.bf16.msra.mxu0 %v1448_v21 }
  0x77   : > { %951 = vmatpush.bf16.msra.mxu0 %v1447_v22 }
  0x7b   : > { %952 = vmatpush.bf16.msra.mxu0 %v1446_v23 }
  0x7e   : > { %953 = vmatmul.bf16.vlgmr.msra.gmra.mxu0 %v264_v25 }
  0xbb   : > { %v850_v26 = vpop.f32.mrf.mxu0 }
  0xbe   : > { %v863_v27 = vpop.f32.mrf.mxu1 }
  0xbf   : > { %v864_v36 = vadd.f32 %v863_v27, %v850_v26 }
  0xc2   : > { %v876_v28 = vpop.f32.mrf.mxu2 }
  0xc3   : > { %v889_v29 = vpop.f32.mrf.mxu3  ;;  %v852_v30 = vpop.f32.mrf.mxu0  ;;  %v877_v38 = vadd.f32 %v876_v28, %v864_v36 }
  0xc5   : > { %v890_v42 = vadd.f32 %v889_v29, %v877_v38 }
  0xc6   : > { %v865_v31 = vpop.f32.mrf.mxu1 }
  0xca   : > { %v878_v32 = vpop.f32.mrf.mxu2 }
  0xcb   : > { %v891_v33 = vpop.f32.mrf.mxu3 }
  0xdb   : > { %v902_v34 = vpop.f32.mrf.mxu0 }
  0xdc   : > { %v903_v44 = vadd.f32 %v902_v34, %v890_v42 }
  0xde   : > { %v915_v35 = vpop.f32.mrf.mxu1 }
  0xdf   : > { %v916_v46 = vadd.f32 %v915_v35, %v903_v44 }
  0xe2   : > { %v928_v37 = vpop.f32.mrf.mxu2 }
  0xe3   : > { %v941_v39 = vpop.f32.mrf.mxu3  ;;  %v904_v40 = vpop.f32.mrf.mxu0  ;;  %v929_v47 = vadd.f32 %v928_v37, %v916_v46 }
  0xe5   : > { %v942_v50 = vadd.f32 %v941_v39, %v929_v47 }
  0xe6   : > { %v917_v41 = vpop.f32.mrf.mxu1 }
  0xea   : > { %v930_v43 = vpop.f32.mrf.mxu2 }
  0xeb   : > { %v943_v45 = vpop.f32.mrf.mxu3 }
  0xfb   : > { %v954_v51 = vpop.f32.mrf.mxu0 }
  0xfc   : > { %v955_v53 = vadd.f32 %v954_v51, %v942_v50 }
  0xfe   : > { %v965_v55 = vmul.f32 %v964_v52, %v955_v53 }
 0x100   : > { %v966_v56 = vadd.f32 %v965_v55, %v962_v54 }
 0x102   : > { %967 = vst [vmem:[%s232_s5] sm:$0xff] %v966_v56 }
 0x103   : > { %v956_v57 = vpop.f32.mrf.mxu0 }
 0x104   : > { %1548 = shalt.err (!%p1545_p8)
}
 0x105   : > { %1460 = dma.vmem_to_hbm [thread:$0]  (%p1653_p5), %s982_s11, 128, %s984_s12, %s969_s19  }
 0x106 PF: > { %p1472_p9 = scmp.ge.s32.totalorder %s1587_s18, 2  ;;  %s995_s23 = sand.u32 1, %s1575_s15  }
 0x107   : > { %s996_s30 = scalar_lea.sflag [#allocation3], %s995_s23 }
 0x108   : > { %p1467_p10 = pnand %p1472_p9, %p1657_p6 }
 0x10a   : > { %p1468_p11 = pneg %p1467_p10 }
 0x10c   : > { %1570 = dma.done.wait (%p1468_p11), %s996_s30, 128  }
 0x10d   : > { %1572 = vsyncadd (%p1468_p11), %s996_s30, 4294967168  ;;  %p15_p12 = scmp.ge.s32.totalorder %s1640_s21, 4   ;;  %s1808_s15 = smov %s1579_s16 }
 0x10e   : > { %s1809_s16 = smov %s1583_s17  ;;  %s1810_s17 = smov %s1651_s24 }
 0x10f   : > { %s1811_s18 = smov %s1640_s21  ;;  %17 = sbr.rel (!%p15_p12) target bundleno = 4 (0x4), region = 82 }
 0x114   :  { %1002 = vsyncpa [#allocation3], 1 }
 0x115   :  { %1004 = vsyncpa [#allocation3 + $0x1], 1 }
 0x116   :  { %1005 = vsyncpa [#allocation4], 1 }
 0x117   :  { %1007 = vsyncpa [#allocation4 + $0x1], 1 }

</bundles_post_ra>
